<compile_context>
chip_gen: v6e
topology: v6e:2x2x1
jax: 0.10.0
libtpu: 0.0.40
codegen_flags: <defaults>
</compile_context>

<pallas_src>
import numpy as np
import jax
import jax.numpy as jnp
from jax.experimental import pallas as pl
from jax.experimental.pallas import tpu as pltpu


def _make_kernel(tb):
    """Build the kernel for a batch tile of `tb` images (rows = 30*b + h)."""
    NR = 30 * tb
    L1, LP1 = NR - 2, NR - 3          # rows carried after conv1 / pool1
    L2, LP2 = NR - 11, NR - 13        # rows carried after conv2 / pool2
    L3 = NR - 29                      # rows carried into the FC head

    def kernel(x_ref,                 # (NR, 30)      batch-stacked padded images
               k1_ref,                # (3, 30, 168)  conv1 bands (BN1 scale folded)
               sw1_ref,               # (2, 168, 84)  pool1 lane-parity selectors
               k2_ref,                # (5, 84, 160)  conv2 bands (BN2 scale folded)
               sw2_ref,               # (2, 160, 80)  pool2 lane-parity selectors
               wfc_ref,               # (5, 80, 10)   flatten+Linear, permuted
               sout_ref,              # (tb, NR-29)   row selector (row 30*b)
               sh1_ref, sh2_ref,      # (1,168), (1,160)  BN shifts
               bfc_ref,               # (1, 10)       Linear bias
               o_ref):                # (tb, 10)
        f32 = jnp.float32
        x = x_ref[...]                                            # (NR, 30)

        # ---- conv1 (3x3, pad pre-applied) as 3 band matmuls; lane = w*6+c ----
        h1 = jnp.dot(x[0:L1], k1_ref[0], preferred_element_type=f32)
        for dy in (1, 2):
            h1 = h1 + jnp.dot(x[dy:dy + L1], k1_ref[dy],
                              preferred_element_type=f32)
        h1 = jnp.maximum(h1 + sh1_ref[...], 0.0)                  # BN1 shift + ReLU

        # ---- 2x2 maxpool #1: lanes via selection matmuls, rows via shifted max ----
        cw = jnp.maximum(jnp.dot(h1, sw1_ref[0], preferred_element_type=f32),
                         jnp.dot(h1, sw1_ref[1], preferred_element_type=f32))
        cm = jnp.maximum(cw[0:LP1], cw[1:LP1 + 1])                # (LP1, 84)

        # ---- conv2 (5x5 valid) as 5 band matmuls, row stride 2; lane = w*16+c ----
        h2 = jnp.dot(cm[0:L2], k2_ref[0], preferred_element_type=f32)
        for dy in (1, 2, 3, 4):
            h2 = h2 + jnp.dot(cm[2 * dy:2 * dy + L2], k2_ref[dy],
                              preferred_element_type=f32)
        h2 = jnp.maximum(h2 + sh2_ref[...], 0.0)                  # BN2 shift + ReLU

        # ---- 2x2 maxpool #2 ----
        cw2 = jnp.maximum(jnp.dot(h2, sw2_ref[0], preferred_element_type=f32),
                          jnp.dot(h2, sw2_ref[1], preferred_element_type=f32))
        p2 = jnp.maximum(cw2[0:LP2], cw2[2:LP2 + 2])              # (LP2, 80)

        # ---- flatten(400) @ W as 5 band matmuls (row stride 4), then pick row 30*b ----
        of = jnp.dot(p2[0:L3], wfc_ref[0], preferred_element_type=f32)
        for j in (1, 2, 3, 4):
            of = of + jnp.dot(p2[4 * j:4 * j + L3], wfc_ref[j],
                              preferred_element_type=f32)
        o_ref[...] = (jnp.dot(sout_ref[...], of, preferred_element_type=f32)
                      + bfc_ref[...]).astype(o_ref.dtype)

    return kernel


def _pack_params(p, tb, eps=1e-5):
    """Host-side weight plumbing: fold BN, build band / selection matrices."""
    w1 = np.asarray(p["conv1_w"], np.float32)     # (6, 1, 3, 3)
    b1 = np.asarray(p["conv1_b"], np.float32)     # (6,)
    w2 = np.asarray(p["conv2_w"], np.float32)     # (16, 6, 5, 5)
    b2 = np.asarray(p["conv2_b"], np.float32)     # (16,)
    wf = np.asarray(p["fc_w"], np.float32)        # (400, 10) == torch weight.T
    bf = np.asarray(p["fc_b"], np.float32)        # (10,)

    def fold_bn(bias, g, beta, mean, var):
        g, beta, mean, var = (np.asarray(t, np.float32) for t in (g, beta, mean, var))
        s = g / np.sqrt(var + eps)
        return s, (bias - mean) * s + beta

    s1, t1 = fold_bn(b1, p["bn1_g"], p["bn1_b"], p["bn1_m"], p["bn1_v"])
    s2, t2 = fold_bn(b2, p["bn2_g"], p["bn2_b"], p["bn2_m"], p["bn2_v"])

    # conv1 band matrices (BN1 scale folded): K1[dy, w', w*6+c] = w1[c,0,dy,w'-w]*s1[c]
    K1 = np.zeros((3, 30, 28 * 6), np.float32)
    for dy in range(3):
        for kx in range(3):
            for w in range(28):
                K1[dy, w + kx, w * 6:(w + 1) * 6] = w1[:, 0, dy, kx] * s1

    # conv2 band matrices (BN2 scale folded): K2[dy, (w+kx)*6+ci, w*16+co]
    K2 = np.zeros((5, 14 * 6, 10 * 16), np.float32)
    for dy in range(5):
        for kx in range(5):
            for w in range(10):
                K2[dy, (w + kx) * 6:(w + kx + 1) * 6,
                   w * 16:(w + 1) * 16] = (w2[:, :, dy, kx] * s2[:, None]).T

    SH1 = np.tile(t1, 28)[None, :]                # (1, 168)  folded BN1 shift
    SH2 = np.tile(t2, 10)[None, :]                # (1, 160)  folded BN2 shift

    def pool_sel(hw, c):                          # lane-parity selectors for 2x2 pool
        half = hw // 2
        sw = np.zeros((2, hw * c, half * c), np.float32)
        for par in range(2):
            for i in range(half):
                for ch in range(c):
                    sw[par, (2 * i + par) * c + ch, i * c + ch] = 1.0
        return sw

    SW1 = pool_sel(28, 6)       # (2, 168, 84)
    SW2 = pool_sel(10, 16)      # (2, 160, 80)

    # Linear(400,10) permuted to the pooled [h, w*16+co] layout
    WFC = np.zeros((5, 80, 10), np.float32)
    for h in range(5):
        for w in range(5):
            for co in range(16):
                WFC[h, w * 16 + co, :] = wf[co * 25 + h * 5 + w, :]
    BFC = bf[None, :]                             # (1, 10)

    # row selector: logits for image b live at stacked row 30*b
    NR = 30 * tb
    SOUT = np.zeros((tb, NR - 29), np.float32)
    for b in range(tb):
        SOUT[b, 30 * b] = 1.0

    arrays = (K1, SW1, K2, SW2, WFC, SOUT, SH1, SH2, BFC)
    return tuple(jnp.asarray(a) for a in arrays)


def multi_network_forward(x, params, *, batch_block=8):
    """x: (B, 1, 28, 28) float32 -> (B, 10) logits."""
    B = x.shape[0]
    tb = batch_block
    bp = pl.cdiv(B, tb) * tb
    # pre-apply conv1's padding=1, pad the batch to a tile multiple, and stack
    # the batch along the sublane (row) axis -> (bp*30, 30)
    xpad = jnp.pad(x[:, 0, :, :].astype(jnp.float32),
                   ((0, bp - B), (1, 1), (1, 1)))
    xflat = xpad.reshape(bp * 30, 30)

    weights = _pack_params(params, tb)

    def const_spec(arr):
        zeros = (0,) * arr.ndim
        return pl.BlockSpec(arr.shape, lambda i, _z=zeros: _z)

    grid_spec = pltpu.PrefetchScalarGridSpec(
        num_scalar_prefetch=0,
        grid=(bp // tb,),
        in_specs=[pl.BlockSpec((tb * 30, 30), lambda i: (i, 0))]
                 + [const_spec(w) for w in weights],
        out_specs=pl.BlockSpec((tb, 10), lambda i: (i, 0)),
    )
    out = pl.pallas_call(
        _make_kernel(tb),
        out_shape=jax.ShapeDtypeStruct((bp, 10), jnp.float32),
        grid_spec=grid_spec,
        compiler_params=pltpu.CompilerParams(
            dimension_semantics=("parallel",)),
    )(xflat, *weights)
    return out[:B]


def init_params(key):
    """PyTorch-default-ish init; BN params randomized so the folding is exercised."""
    ks = jax.random.split(key, 16)

    def u(k, shape, bound):
        return jax.random.uniform(k, shape, jnp.float32, -bound, bound)

    p = {}
    p["conv1_w"] = u(ks[0], (6, 1, 3, 3), 1.0 / np.sqrt(9.0))
    p["conv1_b"] = u(ks[1], (6,), 1.0 / np.sqrt(9.0))
    p["conv2_w"] = u(ks[2], (16, 6, 5, 5), 1.0 / np.sqrt(150.0))
    p["conv2_b"] = u(ks[3], (16,), 1.0 / np.sqrt(150.0))
    p["fc_w"] = u(ks[4], (400, 10), 1.0 / np.sqrt(400.0))   # stored as (in, out)
    p["fc_b"] = u(ks[5], (10,), 1.0 / np.sqrt(400.0))
    # BatchNorm (eval mode) affine params + running statistics
    p["bn1_g"] = jax.random.uniform(ks[6], (6,), jnp.float32, 0.5, 1.5)
    p["bn1_b"] = u(ks[7], (6,), 0.1)
    p["bn1_m"] = 0.1 * jax.random.normal(ks[8], (6,), jnp.float32)
    p["bn1_v"] = jax.random.uniform(ks[9], (6,), jnp.float32, 0.5, 1.5)
    p["bn2_g"] = jax.random.uniform(ks[10], (16,), jnp.float32, 0.5, 1.5)
    p["bn2_b"] = u(ks[11], (16,), 0.1)
    p["bn2_m"] = 0.1 * jax.random.normal(ks[12], (16,), jnp.float32)
    p["bn2_v"] = jax.random.uniform(ks[13], (16,), jnp.float32, 0.5, 1.5)
    return p


def _ref_forward(x, p, eps=1e-5):
    """Pure-JAX reference with identical (eval-mode BN) semantics."""
    dn = ("NCHW", "OIHW", "NCHW")
    B = x.shape[0]

    z = jax.lax.conv_general_dilated(x, p["conv1_w"], (1, 1),
                                     ((1, 1), (1, 1)), dimension_numbers=dn)
    z = z + p["conv1_b"][None, :, None, None]
    s = p["bn1_g"] / jnp.sqrt(p["bn1_v"] + eps)
    z = (z - p["bn1_m"][None, :, None, None]) * s[None, :, None, None] \
        + p["bn1_b"][None, :, None, None]
    z = jnp.maximum(z, 0.0)
    z = z.reshape(B, 6, 14, 2, 14, 2).max(axis=(3, 5))

    z = jax.lax.conv_general_dilated(z, p["conv2_w"], (1, 1),
                                     "VALID", dimension_numbers=dn)
    z = z + p["conv2_b"][None, :, None, None]
    s = p["bn2_g"] / jnp.sqrt(p["bn2_v"] + eps)
    z = (z - p["bn2_m"][None, :, None, None]) * s[None, :, None, None] \
        + p["bn2_b"][None, :, None, None]
    z = jnp.maximum(z, 0.0)
    z = z.reshape(B, 16, 5, 2, 5, 2).max(axis=(3, 5))

    return z.reshape(B, 400) @ p["fc_w"] + p["fc_b"][None, :]


if __name__ == "__main__":
    key = jax.random.PRNGKey(0)
    k_params, k_x = jax.random.split(key)
    params = init_params(k_params)

    # 28x28 single-channel input is required by the 400-wide classifier head;
    # batch=12 is deliberately not a multiple of the 8-image tile (tests padding).
    x = jax.random.normal(k_x, (12, 1, 28, 28), jnp.float32)

    fwd = jax.jit(lambda xx: multi_network_forward(xx, params, batch_block=8))
    out = jax.block_until_ready(fwd(x))

    ref = _ref_forward(x, params)
    assert out.shape == (12, 10)
    assert jnp.allclose(out, ref, atol=5e-3, rtol=5e-3), \
        float(jnp.max(jnp.abs(out - ref)))
    print("KERNEL_OK")
</pallas_src>

<mosaic_0001>
module attributes {stable_mosaic.version = 11 : i64} {
  func.func @kernel(%arg0: i32, %arg1: memref<240x30xf32, #tpu.memory_space<vmem>>, %arg2: memref<3x30x168xf32, #tpu.memory_space<vmem>>, %arg3: memref<2x168x84xf32, #tpu.memory_space<vmem>>, %arg4: memref<5x84x160xf32, #tpu.memory_space<vmem>>, %arg5: memref<2x160x80xf32, #tpu.memory_space<vmem>>, %arg6: memref<5x80x10xf32, #tpu.memory_space<vmem>>, %arg7: memref<8x211xf32, #tpu.memory_space<vmem>>, %arg8: memref<1x168xf32, #tpu.memory_space<vmem>>, %arg9: memref<1x160xf32, #tpu.memory_space<vmem>>, %arg10: memref<1x10xf32, #tpu.memory_space<vmem>>, %arg11: memref<8x10xf32, #tpu.memory_space<vmem>>) attributes {dimension_semantics = [#tpu.dimension_semantics<parallel>], iteration_bounds = array<i64: 2>, scalar_prefetch = 0 : i64, scratch_operands = 0 : i64, tpu.core_type = #tpu.core_type<tc>, window_params = [{transform_indices = @transform_0, window_bounds = array<i64: 240, 30>}, {pipeline_mode = #tpu.pipeline_mode<synchronous>, transform_indices = @transform_1, window_bounds = array<i64: 3, 30, 168>}, {pipeline_mode = #tpu.pipeline_mode<synchronous>, transform_indices = @transform_2, window_bounds = array<i64: 2, 168, 84>}, {pipeline_mode = #tpu.pipeline_mode<synchronous>, transform_indices = @transform_3, window_bounds = array<i64: 5, 84, 160>}, {pipeline_mode = #tpu.pipeline_mode<synchronous>, transform_indices = @transform_4, window_bounds = array<i64: 2, 160, 80>}, {pipeline_mode = #tpu.pipeline_mode<synchronous>, transform_indices = @transform_5, window_bounds = array<i64: 5, 80, 10>}, {pipeline_mode = #tpu.pipeline_mode<synchronous>, transform_indices = @transform_6, window_bounds = array<i64: 8, 211>}, {pipeline_mode = #tpu.pipeline_mode<synchronous>, transform_indices = @transform_7, window_bounds = array<i64: 1, 168>}, {pipeline_mode = #tpu.pipeline_mode<synchronous>, transform_indices = @transform_8, window_bounds = array<i64: 1, 160>}, {pipeline_mode = #tpu.pipeline_mode<synchronous>, transform_indices = @transform_9, window_bounds = array<i64: 1, 10>}, {transform_indices = @transform_10, window_bounds = array<i64: 8, 10>}]} {
    %c0 = arith.constant 0 : index
    %c0_0 = arith.constant 0 : index
    %0 = vector.load %arg1[%c0, %c0_0] : memref<240x30xf32, #tpu.memory_space<vmem>>, vector<240x30xf32>
    %1 = vector.extract_strided_slice %0 {offsets = [0, 0], sizes = [238, 30], strides = [1, 1]} : vector<240x30xf32> to vector<238x30xf32>
    %c0_1 = arith.constant 0 : index
    %c0_2 = arith.constant 0 : index
    %c0_3 = arith.constant 0 : index
    %2 = vector.load %arg2[%c0_1, %c0_2, %c0_3] : memref<3x30x168xf32, #tpu.memory_space<vmem>>, vector<1x30x168xf32>
    %3 = vector.shape_cast %2 : vector<1x30x168xf32> to vector<30x168xf32>
    %cst = arith.constant dense<0.000000e+00> : vector<238x168xf32>
    %4 = tpu.matmul %1, %3, %cst {dimension_numbers = #tpu.dot_dimension_numbers<[1], [0], [0], [1], [0, 0, 1, 1], [], []>} : vector<238x30xf32>, vector<30x168xf32>, vector<238x168xf32> -> vector<238x168xf32>
    %5 = vector.extract_strided_slice %0 {offsets = [1, 0], sizes = [238, 30], strides = [1, 1]} : vector<240x30xf32> to vector<238x30xf32>
    %c1 = arith.constant 1 : index
    %c0_4 = arith.constant 0 : index
    %c0_5 = arith.constant 0 : index
    %6 = vector.load %arg2[%c1, %c0_4, %c0_5] : memref<3x30x168xf32, #tpu.memory_space<vmem>>, vector<1x30x168xf32>
    %7 = vector.shape_cast %6 : vector<1x30x168xf32> to vector<30x168xf32>
    %cst_6 = arith.constant dense<0.000000e+00> : vector<238x168xf32>
    %8 = tpu.matmul %5, %7, %cst_6 {dimension_numbers = #tpu.dot_dimension_numbers<[1], [0], [0], [1], [0, 0, 1, 1], [], []>} : vector<238x30xf32>, vector<30x168xf32>, vector<238x168xf32> -> vector<238x168xf32>
    %9 = arith.addf %4, %8 : vector<238x168xf32>
    %10 = vector.extract_strided_slice %0 {offsets = [2, 0], sizes = [238, 30], strides = [1, 1]} : vector<240x30xf32> to vector<238x30xf32>
    %c2 = arith.constant 2 : index
    %c0_7 = arith.constant 0 : index
    %c0_8 = arith.constant 0 : index
    %11 = vector.load %arg2[%c2, %c0_7, %c0_8] : memref<3x30x168xf32, #tpu.memory_space<vmem>>, vector<1x30x168xf32>
    %12 = vector.shape_cast %11 : vector<1x30x168xf32> to vector<30x168xf32>
    %cst_9 = arith.constant dense<0.000000e+00> : vector<238x168xf32>
    %13 = tpu.matmul %10, %12, %cst_9 {dimension_numbers = #tpu.dot_dimension_numbers<[1], [0], [0], [1], [0, 0, 1, 1], [], []>} : vector<238x30xf32>, vector<30x168xf32>, vector<238x168xf32> -> vector<238x168xf32>
    %14 = arith.addf %9, %13 : vector<238x168xf32>
    %c0_10 = arith.constant 0 : index
    %c0_11 = arith.constant 0 : index
    %15 = vector.load %arg8[%c0_10, %c0_11] : memref<1x168xf32, #tpu.memory_space<vmem>>, vector<1x168xf32>
    %16 = vector.broadcast %15 : vector<1x168xf32> to vector<238x168xf32>
    %17 = arith.addf %14, %16 : vector<238x168xf32>
    %cst_12 = arith.constant 0.000000e+00 : f32
    %18 = vector.broadcast %cst_12 : f32 to vector<238x168xf32>
    %19 = arith.maximumf %17, %18 : vector<238x168xf32>
    %c0_13 = arith.constant 0 : index
    %c0_14 = arith.constant 0 : index
    %c0_15 = arith.constant 0 : index
    %20 = vector.load %arg3[%c0_13, %c0_14, %c0_15] : memref<2x168x84xf32, #tpu.memory_space<vmem>>, vector<1x168x84xf32>
    %21 = vector.shape_cast %20 : vector<1x168x84xf32> to vector<168x84xf32>
    %cst_16 = arith.constant dense<0.000000e+00> : vector<238x84xf32>
    %22 = tpu.matmul %19, %21, %cst_16 {dimension_numbers = #tpu.dot_dimension_numbers<[1], [0], [0], [1], [0, 0, 1, 1], [], []>} : vector<238x168xf32>, vector<168x84xf32>, vector<238x84xf32> -> vector<238x84xf32>
    %c1_17 = arith.constant 1 : index
    %c0_18 = arith.constant 0 : index
    %c0_19 = arith.constant 0 : index
    %23 = vector.load %arg3[%c1_17, %c0_18, %c0_19] : memref<2x168x84xf32, #tpu.memory_space<vmem>>, vector<1x168x84xf32>
    %24 = vector.shape_cast %23 : vector<1x168x84xf32> to vector<168x84xf32>
    %cst_20 = arith.constant dense<0.000000e+00> : vector<238x84xf32>
    %25 = tpu.matmul %19, %24, %cst_20 {dimension_numbers = #tpu.dot_dimension_numbers<[1], [0], [0], [1], [0, 0, 1, 1], [], []>} : vector<238x168xf32>, vector<168x84xf32>, vector<238x84xf32> -> vector<238x84xf32>
    %26 = arith.maximumf %22, %25 : vector<238x84xf32>
    %27 = vector.extract_strided_slice %26 {offsets = [0, 0], sizes = [237, 84], strides = [1, 1]} : vector<238x84xf32> to vector<237x84xf32>
    %28 = vector.extract_strided_slice %26 {offsets = [1, 0], sizes = [237, 84], strides = [1, 1]} : vector<238x84xf32> to vector<237x84xf32>
    %29 = arith.maximumf %27, %28 : vector<237x84xf32>
    %30 = vector.extract_strided_slice %29 {offsets = [0, 0], sizes = [229, 84], strides = [1, 1]} : vector<237x84xf32> to vector<229x84xf32>
    %c0_21 = arith.constant 0 : index
    %c0_22 = arith.constant 0 : index
    %c0_23 = arith.constant 0 : index
    %31 = vector.load %arg4[%c0_21, %c0_22, %c0_23] : memref<5x84x160xf32, #tpu.memory_space<vmem>>, vector<1x84x160xf32>
    %32 = vector.shape_cast %31 : vector<1x84x160xf32> to vector<84x160xf32>
    %cst_24 = arith.constant dense<0.000000e+00> : vector<229x160xf32>
    %33 = tpu.matmul %30, %32, %cst_24 {dimension_numbers = #tpu.dot_dimension_numbers<[1], [0], [0], [1], [0, 0, 1, 1], [], []>} : vector<229x84xf32>, vector<84x160xf32>, vector<229x160xf32> -> vector<229x160xf32>
    %34 = vector.extract_strided_slice %29 {offsets = [2, 0], sizes = [229, 84], strides = [1, 1]} : vector<237x84xf32> to vector<229x84xf32>
    %c1_25 = arith.constant 1 : index
    %c0_26 = arith.constant 0 : index
    %c0_27 = arith.constant 0 : index
    %35 = vector.load %arg4[%c1_25, %c0_26, %c0_27] : memref<5x84x160xf32, #tpu.memory_space<vmem>>, vector<1x84x160xf32>
    %36 = vector.shape_cast %35 : vector<1x84x160xf32> to vector<84x160xf32>
    %cst_28 = arith.constant dense<0.000000e+00> : vector<229x160xf32>
    %37 = tpu.matmul %34, %36, %cst_28 {dimension_numbers = #tpu.dot_dimension_numbers<[1], [0], [0], [1], [0, 0, 1, 1], [], []>} : vector<229x84xf32>, vector<84x160xf32>, vector<229x160xf32> -> vector<229x160xf32>
    %38 = arith.addf %33, %37 : vector<229x160xf32>
    %39 = vector.extract_strided_slice %29 {offsets = [4, 0], sizes = [229, 84], strides = [1, 1]} : vector<237x84xf32> to vector<229x84xf32>
    %c2_29 = arith.constant 2 : index
    %c0_30 = arith.constant 0 : index
    %c0_31 = arith.constant 0 : index
    %40 = vector.load %arg4[%c2_29, %c0_30, %c0_31] : memref<5x84x160xf32, #tpu.memory_space<vmem>>, vector<1x84x160xf32>
    %41 = vector.shape_cast %40 : vector<1x84x160xf32> to vector<84x160xf32>
    %cst_32 = arith.constant dense<0.000000e+00> : vector<229x160xf32>
    %42 = tpu.matmul %39, %41, %cst_32 {dimension_numbers = #tpu.dot_dimension_numbers<[1], [0], [0], [1], [0, 0, 1, 1], [], []>} : vector<229x84xf32>, vector<84x160xf32>, vector<229x160xf32> -> vector<229x160xf32>
    %43 = arith.addf %38, %42 : vector<229x160xf32>
    %44 = vector.extract_strided_slice %29 {offsets = [6, 0], sizes = [229, 84], strides = [1, 1]} : vector<237x84xf32> to vector<229x84xf32>
    %c3 = arith.constant 3 : index
    %c0_33 = arith.constant 0 : index
    %c0_34 = arith.constant 0 : index
    %45 = vector.load %arg4[%c3, %c0_33, %c0_34] : memref<5x84x160xf32, #tpu.memory_space<vmem>>, vector<1x84x160xf32>
    %46 = vector.shape_cast %45 : vector<1x84x160xf32> to vector<84x160xf32>
    %cst_35 = arith.constant dense<0.000000e+00> : vector<229x160xf32>
    %47 = tpu.matmul %44, %46, %cst_35 {dimension_numbers = #tpu.dot_dimension_numbers<[1], [0], [0], [1], [0, 0, 1, 1], [], []>} : vector<229x84xf32>, vector<84x160xf32>, vector<229x160xf32> -> vector<229x160xf32>
    %48 = arith.addf %43, %47 : vector<229x160xf32>
    %49 = vector.extract_strided_slice %29 {offsets = [8, 0], sizes = [229, 84], strides = [1, 1]} : vector<237x84xf32> to vector<229x84xf32>
    %c4 = arith.constant 4 : index
    %c0_36 = arith.constant 0 : index
    %c0_37 = arith.constant 0 : index
    %50 = vector.load %arg4[%c4, %c0_36, %c0_37] : memref<5x84x160xf32, #tpu.memory_space<vmem>>, vector<1x84x160xf32>
    %51 = vector.shape_cast %50 : vector<1x84x160xf32> to vector<84x160xf32>
    %cst_38 = arith.constant dense<0.000000e+00> : vector<229x160xf32>
    %52 = tpu.matmul %49, %51, %cst_38 {dimension_numbers = #tpu.dot_dimension_numbers<[1], [0], [0], [1], [0, 0, 1, 1], [], []>} : vector<229x84xf32>, vector<84x160xf32>, vector<229x160xf32> -> vector<229x160xf32>
    %53 = arith.addf %48, %52 : vector<229x160xf32>
    %c0_39 = arith.constant 0 : index
    %c0_40 = arith.constant 0 : index
    %54 = vector.load %arg9[%c0_39, %c0_40] : memref<1x160xf32, #tpu.memory_space<vmem>>, vector<1x160xf32>
    %55 = vector.broadcast %54 : vector<1x160xf32> to vector<229x160xf32>
    %56 = arith.addf %53, %55 : vector<229x160xf32>
    %cst_41 = arith.constant 0.000000e+00 : f32
    %57 = vector.broadcast %cst_41 : f32 to vector<229x160xf32>
    %58 = arith.maximumf %56, %57 : vector<229x160xf32>
    %c0_42 = arith.constant 0 : index
    %c0_43 = arith.constant 0 : index
    %c0_44 = arith.constant 0 : index
    %59 = vector.load %arg5[%c0_42, %c0_43, %c0_44] : memref<2x160x80xf32, #tpu.memory_space<vmem>>, vector<1x160x80xf32>
    %60 = vector.shape_cast %59 : vector<1x160x80xf32> to vector<160x80xf32>
    %cst_45 = arith.constant dense<0.000000e+00> : vector<229x80xf32>
    %61 = tpu.matmul %58, %60, %cst_45 {dimension_numbers = #tpu.dot_dimension_numbers<[1], [0], [0], [1], [0, 0, 1, 1], [], []>} : vector<229x160xf32>, vector<160x80xf32>, vector<229x80xf32> -> vector<229x80xf32>
    %c1_46 = arith.constant 1 : index
    %c0_47 = arith.constant 0 : index
    %c0_48 = arith.constant 0 : index
    %62 = vector.load %arg5[%c1_46, %c0_47, %c0_48] : memref<2x160x80xf32, #tpu.memory_space<vmem>>, vector<1x160x80xf32>
    %63 = vector.shape_cast %62 : vector<1x160x80xf32> to vector<160x80xf32>
    %cst_49 = arith.constant dense<0.000000e+00> : vector<229x80xf32>
    %64 = tpu.matmul %58, %63, %cst_49 {dimension_numbers = #tpu.dot_dimension_numbers<[1], [0], [0], [1], [0, 0, 1, 1], [], []>} : vector<229x160xf32>, vector<160x80xf32>, vector<229x80xf32> -> vector<229x80xf32>
    %65 = arith.maximumf %61, %64 : vector<229x80xf32>
    %66 = vector.extract_strided_slice %65 {offsets = [0, 0], sizes = [227, 80], strides = [1, 1]} : vector<229x80xf32> to vector<227x80xf32>
    %67 = vector.extract_strided_slice %65 {offsets = [2, 0], sizes = [227, 80], strides = [1, 1]} : vector<229x80xf32> to vector<227x80xf32>
    %68 = arith.maximumf %66, %67 : vector<227x80xf32>
    %69 = vector.extract_strided_slice %68 {offsets = [0, 0], sizes = [211, 80], strides = [1, 1]} : vector<227x80xf32> to vector<211x80xf32>
    %c0_50 = arith.constant 0 : index
    %c0_51 = arith.constant 0 : index
    %c0_52 = arith.constant 0 : index
    %70 = vector.load %arg6[%c0_50, %c0_51, %c0_52] : memref<5x80x10xf32, #tpu.memory_space<vmem>>, vector<1x80x10xf32>
    %71 = vector.shape_cast %70 : vector<1x80x10xf32> to vector<80x10xf32>
    %cst_53 = arith.constant dense<0.000000e+00> : vector<211x10xf32>
    %72 = tpu.matmul %69, %71, %cst_53 {dimension_numbers = #tpu.dot_dimension_numbers<[1], [0], [0], [1], [0, 0, 1, 1], [], []>} : vector<211x80xf32>, vector<80x10xf32>, vector<211x10xf32> -> vector<211x10xf32>
    %73 = vector.extract_strided_slice %68 {offsets = [4, 0], sizes = [211, 80], strides = [1, 1]} : vector<227x80xf32> to vector<211x80xf32>
    %c1_54 = arith.constant 1 : index
    %c0_55 = arith.constant 0 : index
    %c0_56 = arith.constant 0 : index
    %74 = vector.load %arg6[%c1_54, %c0_55, %c0_56] : memref<5x80x10xf32, #tpu.memory_space<vmem>>, vector<1x80x10xf32>
    %75 = vector.shape_cast %74 : vector<1x80x10xf32> to vector<80x10xf32>
    %cst_57 = arith.constant dense<0.000000e+00> : vector<211x10xf32>
    %76 = tpu.matmul %73, %75, %cst_57 {dimension_numbers = #tpu.dot_dimension_numbers<[1], [0], [0], [1], [0, 0, 1, 1], [], []>} : vector<211x80xf32>, vector<80x10xf32>, vector<211x10xf32> -> vector<211x10xf32>
    %77 = arith.addf %72, %76 : vector<211x10xf32>
    %78 = vector.extract_strided_slice %68 {offsets = [8, 0], sizes = [211, 80], strides = [1, 1]} : vector<227x80xf32> to vector<211x80xf32>
    %c2_58 = arith.constant 2 : index
    %c0_59 = arith.constant 0 : index
    %c0_60 = arith.constant 0 : index
    %79 = vector.load %arg6[%c2_58, %c0_59, %c0_60] : memref<5x80x10xf32, #tpu.memory_space<vmem>>, vector<1x80x10xf32>
    %80 = vector.shape_cast %79 : vector<1x80x10xf32> to vector<80x10xf32>
    %cst_61 = arith.constant dense<0.000000e+00> : vector<211x10xf32>
    %81 = tpu.matmul %78, %80, %cst_61 {dimension_numbers = #tpu.dot_dimension_numbers<[1], [0], [0], [1], [0, 0, 1, 1], [], []>} : vector<211x80xf32>, vector<80x10xf32>, vector<211x10xf32> -> vector<211x10xf32>
    %82 = arith.addf %77, %81 : vector<211x10xf32>
    %83 = vector.extract_strided_slice %68 {offsets = [12, 0], sizes = [211, 80], strides = [1, 1]} : vector<227x80xf32> to vector<211x80xf32>
    %c3_62 = arith.constant 3 : index
    %c0_63 = arith.constant 0 : index
    %c0_64 = arith.constant 0 : index
    %84 = vector.load %arg6[%c3_62, %c0_63, %c0_64] : memref<5x80x10xf32, #tpu.memory_space<vmem>>, vector<1x80x10xf32>
    %85 = vector.shape_cast %84 : vector<1x80x10xf32> to vector<80x10xf32>
    %cst_65 = arith.constant dense<0.000000e+00> : vector<211x10xf32>
    %86 = tpu.matmul %83, %85, %cst_65 {dimension_numbers = #tpu.dot_dimension_numbers<[1], [0], [0], [1], [0, 0, 1, 1], [], []>} : vector<211x80xf32>, vector<80x10xf32>, vector<211x10xf32> -> vector<211x10xf32>
    %87 = arith.addf %82, %86 : vector<211x10xf32>
    %88 = vector.extract_strided_slice %68 {offsets = [16, 0], sizes = [211, 80], strides = [1, 1]} : vector<227x80xf32> to vector<211x80xf32>
    %c4_66 = arith.constant 4 : index
    %c0_67 = arith.constant 0 : index
    %c0_68 = arith.constant 0 : index
    %89 = vector.load %arg6[%c4_66, %c0_67, %c0_68] : memref<5x80x10xf32, #tpu.memory_space<vmem>>, vector<1x80x10xf32>
    %90 = vector.shape_cast %89 : vector<1x80x10xf32> to vector<80x10xf32>
    %cst_69 = arith.constant dense<0.000000e+00> : vector<211x10xf32>
    %91 = tpu.matmul %88, %90, %cst_69 {dimension_numbers = #tpu.dot_dimension_numbers<[1], [0], [0], [1], [0, 0, 1, 1], [], []>} : vector<211x80xf32>, vector<80x10xf32>, vector<211x10xf32> -> vector<211x10xf32>
    %92 = arith.addf %87, %91 : vector<211x10xf32>
    %c0_70 = arith.constant 0 : index
    %c0_71 = arith.constant 0 : index
    %93 = vector.load %arg7[%c0_70, %c0_71] : memref<8x211xf32, #tpu.memory_space<vmem>>, vector<8x211xf32>
    %cst_72 = arith.constant dense<0.000000e+00> : vector<8x10xf32>
    %94 = tpu.matmul %93, %92, %cst_72 {dimension_numbers = #tpu.dot_dimension_numbers<[1], [0], [0], [1], [0, 0, 1, 1], [], []>} : vector<8x211xf32>, vector<211x10xf32>, vector<8x10xf32> -> vector<8x10xf32>
    %c0_73 = arith.constant 0 : index
    %c0_74 = arith.constant 0 : index
    %95 = vector.load %arg10[%c0_73, %c0_74] : memref<1x10xf32, #tpu.memory_space<vmem>>, vector<1x10xf32>
    %96 = vector.broadcast %95 : vector<1x10xf32> to vector<8x10xf32>
    %97 = arith.addf %94, %96 : vector<8x10xf32>
    %c0_75 = arith.constant 0 : index
    %c0_76 = arith.constant 0 : index
    %98 = vector.load %arg11[%c0_75, %c0_76] : memref<8x10xf32, #tpu.memory_space<vmem>>, vector<8x10xf32>
    tpu.vector_store %arg11[%c0_75, %c0_76], %97 {strides = array<i32>} : memref<8x10xf32, #tpu.memory_space<vmem>>, vector<8x10xf32>,
    return
  }
  func.func @transform_0(%arg0: i32) -> (i32, i32) {
    %c0_i32 = arith.constant 0 : i32
    %c0_i32_0 = arith.constant 0 : i32
    return %arg0, %c0_i32 : i32, i32
  }
  func.func @transform_1(%arg0: i32) -> (i32, i32, i32) {
    %c0_i32 = arith.constant 0 : i32
    %c0_i32_0 = arith.constant 0 : i32
    %c0_i32_1 = arith.constant 0 : i32
    %c0_i32_2 = arith.constant 0 : i32
    return %c0_i32, %c0_i32_0, %c0_i32_1 : i32, i32, i32
  }
  func.func @transform_2(%arg0: i32) -> (i32, i32, i32) {
    %c0_i32 = arith.constant 0 : i32
    %c0_i32_0 = arith.constant 0 : i32
    %c0_i32_1 = arith.constant 0 : i32
    %c0_i32_2 = arith.constant 0 : i32
    return %c0_i32, %c0_i32_0, %c0_i32_1 : i32, i32, i32
  }
  func.func @transform_3(%arg0: i32) -> (i32, i32, i32) {
    %c0_i32 = arith.constant 0 : i32
    %c0_i32_0 = arith.constant 0 : i32
    %c0_i32_1 = arith.constant 0 : i32
    %c0_i32_2 = arith.constant 0 : i32
    return %c0_i32, %c0_i32_0, %c0_i32_1 : i32, i32, i32
  }
  func.func @transform_4(%arg0: i32) -> (i32, i32, i32) {
    %c0_i32 = arith.constant 0 : i32
    %c0_i32_0 = arith.constant 0 : i32
    %c0_i32_1 = arith.constant 0 : i32
    %c0_i32_2 = arith.constant 0 : i32
    return %c0_i32, %c0_i32_0, %c0_i32_1 : i32, i32, i32
  }
  func.func @transform_5(%arg0: i32) -> (i32, i32, i32) {
    %c0_i32 = arith.constant 0 : i32
    %c0_i32_0 = arith.constant 0 : i32
    %c0_i32_1 = arith.constant 0 : i32
    %c0_i32_2 = arith.constant 0 : i32
    return %c0_i32, %c0_i32_0, %c0_i32_1 : i32, i32, i32
  }
  func.func @transform_6(%arg0: i32) -> (i32, i32) {
    %c0_i32 = arith.constant 0 : i32
    %c0_i32_0 = arith.constant 0 : i32
    %c0_i32_1 = arith.constant 0 : i32
    return %c0_i32, %c0_i32_0 : i32, i32
  }
  func.func @transform_7(%arg0: i32) -> (i32, i32) {
    %c0_i32 = arith.constant 0 : i32
    %c0_i32_0 = arith.constant 0 : i32
    %c0_i32_1 = arith.constant 0 : i32
    return %c0_i32, %c0_i32_0 : i32, i32
  }
  func.func @transform_8(%arg0: i32) -> (i32, i32) {
    %c0_i32 = arith.constant 0 : i32
    %c0_i32_0 = arith.constant 0 : i32
    %c0_i32_1 = arith.constant 0 : i32
    return %c0_i32, %c0_i32_0 : i32, i32
  }
  func.func @transform_9(%arg0: i32) -> (i32, i32) {
    %c0_i32 = arith.constant 0 : i32
    %c0_i32_0 = arith.constant 0 : i32
    %c0_i32_1 = arith.constant 0 : i32
    return %c0_i32, %c0_i32_0 : i32, i32
  }
  func.func @transform_10(%arg0: i32) -> (i32, i32) {
    %c0_i32 = arith.constant 0 : i32
    %c0_i32_0 = arith.constant 0 : i32
    return %arg0, %c0_i32 : i32, i32
  }
}

</mosaic_0001>

<bundles_post_ra>
// kernel: _lambda_.1
= control target key start
LH: loop header
LB: loop body
LE: loop exit
PB: predicated region body
PF: predicated region fallthrough
CT: control target
= control target key end

     0   :  { %s12591_s0 = inlined_call_operand.vmem [shape: f32[480,30], index: 0, kind: input, shape index: {}]   ;;  %s12592_s1 = inlined_call_operand.vmem [shape: f32[3,30,168], index: 1, kind: input, shape index: {}]   ;;  %s12593_s2 = inlined_call_operand.vmem [shape: f32[2,168,84], index: 2, kind: input, shape index: {}]   ;;  %s12594_s3 = inlined_call_operand.vmem [shape: f32[5,84,160], index: 3, kind: input, shape index: {}]   ;;  %s12595_s4 = inlined_call_operand.vmem [shape: f32[2,160,80], index: 4, kind: input, shape index: {}]   ;;  %s12596_s5 = inlined_call_operand.vmem [shape: f32[5,80,10], index: 5, kind: input, shape index: {}]   ;;  %s12597_s6 = inlined_call_operand.vmem [shape: f32[8,211], index: 6, kind: input, shape index: {}]   ;;  %s12598_s7 = inlined_call_operand.vmem [shape: f32[1,168], index: 7, kind: input, shape index: {}]   ;;  %s12599_s8 = inlined_call_operand.vmem [shape: f32[1,160], index: 8, kind: input, shape index: {}]   ;;  %s12600_s9 = inlined_call_operand.vmem [shape: f32[1,10], index: 9, kind: input, shape index: {}]   ;;  %s12601_s10 = inlined_call_operand.hbm [shape: f32[16,10], index: 10, kind: output, shape index: {}]  }
   0x1   :  { %12606 = sst [smem:[#allocation156_spill]] %s12591_s0 }
   0x2   :  { %15 = vsyncpa [#allocation3], 0 }
   0x3   :  { %17 = vsyncpa [#allocation3 + $0x1], 0  ;;  %s8299_s13 = smov 0   ;;  %s8301_s14 = smov 0  }
   0x4   :  { %s8303_s15 = smov 0   ;;  %s8305_s16 = smov 0  }
   0x5 LB: > { %s8320_s17 = sadd.s32 4294967295, %s8239_s16   ;;  %s6738_s18 = sadd.s32 4294967294, %s8239_s16   ;;  %s8239_s16 = sphi %s8305_s16, %s13004_s16   ;;  %s8235_s15 = sphi %s8303_s15, %s13003_s15   ;;  %s8231_s14 = sphi %s8301_s14, %s13002_s14   ;;  %s8227_s13 = sphi %s8299_s13, %s13001_s13  }
   0x6   : > { %s8324_s19 = sadd.s32 1, %s8239_s16   ;;  %s245_s20 = sadd.s32 1, %s8235_s15 }
   0x7   : > { %s242_s21 = ssub.s32 %s8239_s16, %s8324_s19  ;;  %p255_p0 = scmp.ne.s32.totalorder %s8235_s15, %s8231_s14 }
   0x8   : > { %p243_p1 = scmp.eq.s32.totalorder %s242_s21, 0  ;;  %p256_p2 = scmp.eq.s32.totalorder %s8320_s17, 1 }
   0x9   : > { %p261_p3 = scmp.ne.s32.totalorder %s8231_s14, %s8227_s13  ;;  %p262_p4 = scmp.eq.s32.totalorder %s6738_s18, 1 }
   0xa   : > { %s8335_s22 = scalar_select %p243_p1, %s8235_s15, %s245_s20  }
   0xb   : > { %p8337_p5 = por %p256_p2, %p255_p0  ;;  %p8341_p6 = por %p262_p4, %p261_p3 }
   0xc   : > { %p6741_p7 = scmp.ge.s32.totalorder %s8239_s16, 1  ;;  %p316_p8 = scmp.lt.s32.totalorder %s8239_s16, 3 }
   0xe   : > { %p317_p9 = pnand %p6741_p7, %p316_p8 }
  0x10   : > { %320 = sbr.rel (%p317_p9) target bundleno = 2005 (0x7d5), region = 60 }
  0x15   : > { %v6751_v0 = vld [vmem:[%s12592_s1 + $0x78] sm:$0x3f]  ;;  %vm558_vm0 = vcmask 1045504   ;;  %v6750_v1 = vld [vmem:[%s12592_s1 + $0x70] sm:$0x3f]  ;;  %v6749_v2 = vld [vmem:[%s12592_s1 + $0x68] sm:$0xff] }
  0x16   : > { %6752 = vmatprep.subr.msk.mxu0 %vm558_vm0, %v6751_v0  ;;  %v6748_v3 = vld [vmem:[%s12592_s1 + $0x60] sm:$0xff]  ;;  %s354_s18 = smul.u32 30, %s8320_s17  ;;  %v6747_v4 = vld [vmem:[%s12592_s1 + $0x58] sm:$0xff]  ;;  %v6746_v5 = vld [vmem:[%s12592_s1 + $0x50] sm:$0xff]  ;;  %v12602_v6 = vmov 0.0   ;;  %s12609_s0 = sld [smem:[#allocation156_spill]] }
  0x17   : > { %6753 = vmatpush1.msk.msra.mxu0 %vm558_vm0, %v6750_v1  ;;  %629 = vmatprep.mubr.f32.mxu0 %v12602_v6  ;;  %v397_v7 = vld [vmem:[%s12592_s1 + $0x38] sm:$0x3f]  ;;  %v396_v8 = vld [vmem:[%s12592_s1 + $0x30] sm:$0x3f]  ;;  %v395_v9 = vld [vmem:[%s12592_s1 + $0x28] sm:$0xff]  ;;  %vm437_vm1 = vcmask 1046528  }
  0x18   : > { %591 = vmatprep.subr.mxu0 %v6749_v2  ;;  %p355_p10 = scmp.lt.s32.totalorder %s354_s18, 59  ;;  %8130 = vmatprep.subr.msk.mxu1 %vm558_vm0, %v397_v7  ;;  %v394_v10 = vld [vmem:[%s12592_s1 + $0x20] sm:$0xff]  ;;  %v6745_v11 = vld [vmem:[%s12592_s1 + $0x48] sm:$0xff]  ;;  %v393_v12 = vld [vmem:[%s12592_s1 + $0x18] sm:$0xff]  ;;  %vm497_vm2 = vcmask 244736   ;;  %vm2625_vm3 = vcmask 1043456  }
  0x19   : > { %592 = vmatpush1.msra.mxu0 %v6748_v3  ;;  %8134 = vmatpush1.msk.msra.mxu1 %vm558_vm0, %v396_v8  ;;  %v6744_v13 = vld [vmem:[%s12592_s1 + $0x40] sm:$0xff]  ;;  %v392_v14 = vld [vmem:[%s12592_s1 + $0x10] sm:$0xff]  ;;  %v391_v15 = vld [vmem:[%s12592_s1 + $0x8] sm:$0xff]  ;;  %vm1713_vm4 = vcmask 326656   ;;  %vm2566_vm5 = vcmask 687104   ;;  %vm3641_vm6 = vcmask 1041408  }
  0x1a   : > { %593 = vmatprep.subr.mxu0 %v6747_v4  ;;  %s13006_s18 = smov (!%p355_p10, %s354_s18), 59  ;;  %8131 = vmatprep.subr.mxu1 %v395_v9  ;;  %v390_v16 = vld [vmem:[%s12592_s1] sm:$0xff]  ;;  %v6823_v57 = vld [vmem:[%s12592_s1 + $0xb8] sm:$0x3f]  ;;  %vm4538_vm7 = vcmask 261120   ;;  %vm8242_vm8 = vmmov 0  }
  0x1b   : > { %594 = vmatpush1.msra.mxu0 %v6746_v5  ;;  %8135 = vmatpush1.msra.mxu1 %v394_v10  ;;  %s6743_s25 = sshll.u32 %s13006_s18, 3  ;;  %vm5341_vm9 = vcmask 654336   ;;  %vm6585_vm10 = vcmask 678912   ;;  %vm6589_vm11 = vcmask 1042432   ;;  %s351_s12 = sand.u32 1, %s8231_s14   ;;  %vm6663_vm12 = vcmask 80896  }
  0x1c   : > { %595 = vmatprep.subr.mxu0 %v6745_v11  ;;  %8132 = vmatprep.subr.mxu1 %v393_v12  ;;  %s8404_s30 = scalar_lea.vmem %s12609_s0, %s6743_s25  ;;  %s6742_s20 = sshll.u32 %s351_s12, 3 }
  0x1d   : > { %596 = vmatpush1.msra.mxu0 %v6744_v13  ;;  %8136 = vmatpush1.msra.mxu1 %v392_v14  ;;  %v8407_v17 = vld [vmem:[%s8404_s30] sm:$0xff]  ;;  %v8410_v18 = vld [vmem:[%s8404_s30 + $0x8] sm:$0xff]  ;;  %v8413_v19 = vld [vmem:[%s8404_s30 + $0x10] sm:$0xff]  ;;  %s7437_s26 = sshll.u32 %s8320_s17, 7  ;;  %s353_s27 = scalar_lea.vmem [#allocation2], %s6742_s20 }
  0x1e   : > { %6784 = vmatprep.subr.msk.mxu0 %vm558_vm0, %v397_v7  ;;  %8133 = vmatprep.subr.mxu1 %v391_v15  ;;  %v438_v20 = vrot.slane %v8407_v17, 1  ;;  %v439_v21 = vrot.slane %v8410_v18, 1  ;;  %v441_v22 = vrot.slane %v8413_v19, 1  ;;  %v8421_v23 = vld [vmem:[%s8404_s30 + $0x18] sm:$0xff]  ;;  %v8431_v27 = vld [vmem:[%s8404_s30 + $0x60] sm:$0xff]  ;;  %v8444_v31 = vld [vmem:[%s8404_s30 + $0x68] sm:$0xff]  ;;  %s12556_s18 = scalar_lea.hbm %s12601_s10, %s7437_s26 }
  0x1f   : > { %8137 = vmatpush1.msra.mxu1 %v390_v16  ;;  %1012 = vmatprep.mubr.f32.mxu1 %v12602_v6  ;;  %v443_v26 = vrot.slane %v8421_v23, 1  ;;  %v8434_v28 = vld [vmem:[%s8404_s30 + $0x20] sm:$0xff]  ;;  %v8447_v32 = vld [vmem:[%s8404_s30 + $0x28] sm:$0xff]  ;;  %v8457_v35 = vld [vmem:[%s8404_s30 + $0x70] sm:$0xff]  ;;  %v461_v62 = vrot.slane %v8431_v27, 1  ;;  %v463_v1 = vrot.slane %v8444_v31, 1 }
  0x20   : > { %1804 = vmatprep.subr.mxu1 %v12602_v6  ;;  %v440_v24 = vsel %vm437_vm1, %v438_v20, %v439_v21  ;;  %v442_v25 = vsel %vm437_vm1, %v439_v21, %v441_v22  ;;  %6798 = vmatmul.mubr.msk.f32.vlgmr.msra.gmra.mxu1 %vm497_vm2, %v8431_v27  ;;  %v445_v30 = vrot.slane %v8434_v28, 1  ;;  %v447_v34 = vrot.slane %v8447_v32, 1  ;;  %v8460_v36 = vld [vmem:[%s8404_s30 + $0x30] sm:$0xff]  ;;  %v8470_v39 = vld [vmem:[%s8404_s30 + $0x78] sm:$0xff]  ;;  %v8483_v43 = vld [vmem:[%s8404_s30 + $0x80] sm:$0xff]  ;;  %s6679_s28 = sshll.u32 %s353_s27, 4  ;;  %s6680_s28 = int_to_ptr.vmem [resolvable:$true] %s6679_s28 }
  0x21   : > { %6754 = vmatmul.mubr.msk.f32.vlgmr.msra.gmra.mxu0 %vm497_vm2, %v440_v24  ;;  %1018 = vmatprep.mubr.f32.mxu1 %v12602_v6  ;;  %v444_v29 = vsel %vm437_vm1, %v441_v22, %v443_v26  ;;  %v449_v38 = vrot.slane %v8460_v36, 1  ;;  %v8473_v40 = vld [vmem:[%s8404_s30 + $0x38] sm:$0xff]  ;;  %v8486_v44 = vld [vmem:[%s8404_s30 + $0x40] sm:$0xff]  ;;  %v8496_v47 = vld [vmem:[%s8404_s30 + $0x88] sm:$0xff]  ;;  %v464_v3 = vsel %vm437_vm1, %v461_v62, %v463_v1  ;;  %v465_v4 = vrot.slane %v8457_v35, 1  ;;  %s6666_s11 = scalar_lea.sflag [#allocation3], %s351_s12 }
  0x22   : > { %635 = vmatprep.mubr.f32.mxu0 %v12602_v6  ;;  %6785 = vmatpush1.msk.msra.mxu0 %vm558_vm0, %v396_v8  ;;  %v446_v33 = vsel %vm437_vm1, %v443_v26, %v445_v30  ;;  %v448_v37 = vsel %vm437_vm1, %v445_v30, %v447_v34  ;;  %v451_v42 = vrot.slane %v8473_v40, 1  ;;  %v453_v46 = vrot.slane %v8486_v44, 1  ;;  %v8499_v48 = vld [vmem:[%s8404_s30 + $0x48] sm:$0xff]  ;;  %v8509_v51 = vld [vmem:[%s8404_s30 + $0x90] sm:$0xff]  ;;  %v8522_v55 = vld [vmem:[%s8404_s30 + $0x98] sm:$0xff]  ;;  %s8179_s0 = scalar_lea.vmem %s6680_s28, 128 }
  0x23   : > { %902 = vmatprep.subr.mxu0 %v395_v9  ;;  %v450_v41 = vsel %vm437_vm1, %v447_v34, %v449_v38  ;;  %v455_v50 = vrot.slane %v8499_v48, 1  ;;  %v8512_v52 = vld [vmem:[%s8404_s30 + $0x50] sm:$0xff]  ;;  %v8525_v56 = vld [vmem:[%s8404_s30 + $0x58] sm:$0xff]  ;;  %v8539_v60 = vld [vmem:[%s8404_s30 + $0xa0] sm:$0xff]  ;;  %v466_v7 = vsel %vm437_vm1, %v463_v1, %v465_v4  ;;  %v467_v8 = vrot.slane %v8470_v39, 1  ;;  %p8180_p11 = scmp.ne.s32.totalorder %s6680_s28, %s8179_s0  ;;  %s8243_s17 = smov [#allocation2]  }
  0x24   : > { %903 = vmatpush1.msra.mxu0 %v394_v10  ;;  %6799 = vmatmul.mubr.msk.f32.gmra.mxu1 %vm497_vm2, %v8444_v31  ;;  %v452_v45 = vsel %vm437_vm1, %v449_v38, %v451_v42  ;;  %v454_v49 = vsel %vm437_vm1, %v451_v42, %v453_v46  ;;  %v457_v54 = vrot.slane %v8512_v52, 1  ;;  %v459_v59 = vrot.slane %v8525_v56, 1  ;;  %v8549_v63 = vld [vmem:[%s8404_s30 + $0xa8] sm:$0xff]  ;;  %v8559_v2 = vld [vmem:[%s8404_s30 + $0xb0] sm:$0xff]  ;;  %v8569_v5 = vld [vmem:[%s8404_s30 + $0xb8] sm:$0xff]  ;;  %s8183_s20 = sshll.u32 %s8243_s17, 4  ;;  %s8184_s20 = int_to_ptr.vmem [resolvable:$false] %s8183_s20 }
  0x25   : > { %6755 = vmatmul.mubr.msk.f32.gmra.mxu0 %vm497_vm2, %v442_v25  ;;  %904 = vmatprep.subr.mxu0 %v393_v12  ;;  %v456_v53 = vsel %vm437_vm1, %v453_v46, %v455_v50  ;;  %v8579_v9 = vld [vmem:[%s8404_s30 + $0xc0] sm:$0xff]  ;;  %v468_v10 = vsel %vm437_vm1, %v465_v4, %v467_v8  ;;  %v469_v11 = vrot.slane %v8483_v43, 1  ;;  %v8589_v12 = vld [vmem:[%s8404_s30 + $0xc8] sm:$0xff]  ;;  %v473_v20 = vrot.slane %v8509_v51, 1  ;;  %v8609_v21 = vld [vmem:[%s8404_s30 + $0xd8] sm:$0xff]  ;;  %p8181_p12 = pnand %p8180_p11, %p8337_p5  ;;  %s8185_s21 = scalar_lea.vmem %s8184_s20, 256 }
  0x26   : > { %641 = vmatprep.mubr.f32.mxu0 %v12602_v6  ;;  %905 = vmatpush1.msra.mxu0 %v392_v14  ;;  %v458_v58 = vsel %vm437_vm1, %v455_v50, %v457_v54  ;;  %v460_v61 = vsel %vm437_vm1, %v457_v54, %v459_v59  ;;  %v462_v0 = vsel %vm437_vm1, %v459_v59, %v461_v62  ;;  %v471_v14 = vrot.slane %v8496_v47, 1  ;;  %v8619_v25 = vld [vmem:[%s8404_s30 + $0xe0] sm:$0xff]  ;;  %v8629_v30 = vld [vmem:[%s8404_s30 + $0xe8] sm:$0xff]  ;;  %p8186_p0 = scmp.lt.s32.totalorder %s6680_s28, %s8184_s20  ;;  %p8187_p1 = scmp.lt.s32.totalorder %s8185_s21, %s8179_s0 }
  0x27   : > { %906 = vmatprep.subr.mxu0 %v391_v15  ;;  %1024 = vmatprep.mubr.f32.mxu1 %v12602_v6  ;;  %v470_v13 = vsel %vm437_vm1, %v467_v8, %v469_v11  ;;  %v8599_v15 = vld [vmem:[%s8404_s30 + $0xd0] sm:$0xff]  ;;  %v475_v24 = vrot.slane %v8522_v55, 1  ;;  %v479_v34 = vrot.slane %v8549_v63, 1  ;;  %v481_v38 = vrot.slane %v8559_v2, 1  ;;  %v6821_v4 = vld [vmem:[%s12592_s1 + $0xa8] sm:$0xff]  ;;  %v6819_v8 = vld [vmem:[%s12592_s1 + $0x98] sm:$0xff]  ;;  %p8182_p13 = pneg %p8181_p12 }
  0x28   : > { %907 = vmatpush1.msra.mxu0 %v390_v16  ;;  %6800 = vmatmul.mubr.msk.f32.gmra.mxu1 %vm497_vm2, %v8457_v35  ;;  %v472_v16 = vsel %vm437_vm1, %v469_v11, %v471_v14  ;;  %v474_v22 = vsel %vm437_vm1, %v471_v14, %v473_v20  ;;  %v483_v42 = vrot.slane %v8569_v5, 1  ;;  %v485_v46 = vrot.slane %v8579_v9, 1  ;;  %v6817_v11 = vld [vmem:[%s12592_s1 + $0x88] sm:$0xff]  ;;  %p8188_p2 = por %p8187_p1, %p8186_p0 }
  0x29   : > { %6756 = vmatmul.mubr.msk.f32.gmra.mxu0 %vm497_vm2, %v444_v29  ;;  %1030 = vmatprep.mubr.f32.mxu1 %v12602_v6  ;;  %v476_v26 = vsel %vm437_vm1, %v473_v20, %v475_v24  ;;  %v477_v29 = vrot.slane %v8539_v60, 1  ;;  %v487_v50 = vrot.slane %v8589_v12, 1  ;;  %v489_v54 = vrot.slane %v8599_v15, 1 }
  0x2a   : > { %647 = vmatprep.mubr.f32.mxu0 %v12602_v6  ;;  %6824 = vmatprep.subr.msk.mxu0 %vm558_vm0, %v6823_v57  ;;  %v1130_v14 = vrot.slane %v8407_v17, 2  ;;  %p8189_p3 = pnand %p8188_p2, %p8182_p13 }
  0x2b   : > { %v490_v57 = vsel %vm437_vm1, %v487_v50, %v489_v54 }
  0x2c   : > { %6801 = vmatmul.mubr.msk.f32.gmra.mxu1 %vm497_vm2, %v8470_v39 }
  0x2d   : > { %6757 = vmatmul.mubr.msk.f32.gmra.mxu0 %vm497_vm2, %v446_v33  ;;  %1036 = vmatprep.mubr.f32.mxu1 %v12602_v6  ;;  %v478_v33 = vsel %vm437_vm1, %v475_v24, %v477_v29  ;;  %v6901_v24 = vld [vmem:[%s12593_s2 + $0x120] sm:$0xff] }
  0x2e   : > { %653 = vmatprep.mubr.f32.mxu0 %v12602_v6 }
  0x30   : > { %6802 = vmatmul.mubr.msk.f32.gmra.mxu1 %vm497_vm2, %v8483_v43 }
  0x31   : > { %6758 = vmatmul.mubr.msk.f32.gmra.mxu0 %vm497_vm2, %v448_v37  ;;  %1042 = vmatprep.mubr.f32.mxu1 %v12602_v6  ;;  %v480_v37 = vsel %vm437_vm1, %v477_v29, %v479_v34  ;;  %v1137_v29 = vrot.slane %v8434_v28, 2 }
  0x32   : > { %659 = vmatprep.mubr.f32.mxu0 %v12602_v6 }
  0x34   : > { %6803 = vmatmul.mubr.msk.f32.gmra.mxu1 %vm497_vm2, %v8496_v47 }
  0x35   : > { %6759 = vmatmul.mubr.msk.f32.gmra.mxu0 %vm497_vm2, %v450_v41  ;;  %1048 = vmatprep.mubr.f32.mxu1 %v12602_v6  ;;  %v482_v41 = vsel %vm437_vm1, %v479_v34, %v481_v38  ;;  %v6899_v34 = vld [vmem:[%s12593_s2 + $0x110] sm:$0xff] }
  0x36   : > { %665 = vmatprep.mubr.f32.mxu0 %v12602_v6 }
  0x38   : > { %6804 = vmatmul.mubr.msk.f32.gmra.mxu1 %vm497_vm2, %v8509_v51 }
  0x39   : > { %6760 = vmatmul.mubr.msk.f32.gmra.mxu0 %vm497_vm2, %v452_v45  ;;  %1054 = vmatprep.mubr.f32.mxu1 %v12602_v6  ;;  %v484_v45 = vsel %vm437_vm1, %v481_v38, %v483_v42  ;;  %v6898_v38 = vld [vmem:[%s12593_s2 + $0x108] sm:$0xff] }
  0x3a   : > { %671 = vmatprep.mubr.f32.mxu0 %v12602_v6 }
  0x3c   : > { %6805 = vmatmul.mubr.msk.f32.gmra.mxu1 %vm497_vm2, %v8522_v55 }
  0x3d   : > { %6761 = vmatmul.mubr.msk.f32.gmra.mxu0 %vm497_vm2, %v454_v49  ;;  %1060 = vmatprep.mubr.f32.mxu1 %v12602_v6  ;;  %v486_v49 = vsel %vm437_vm1, %v483_v42, %v485_v46  ;;  %v1145_v42 = vrot.slane %v8486_v44, 2 }
  0x3e   : > { %677 = vmatprep.mubr.f32.mxu0 %v12602_v6 }
  0x40   : > { %6806 = vmatmul.mubr.msk.f32.gmra.mxu1 %vm497_vm2, %v8539_v60 }
  0x41   : > { %6762 = vmatmul.mubr.msk.f32.gmra.mxu0 %vm497_vm2, %v456_v53  ;;  %1066 = vmatprep.mubr.f32.mxu1 %v12602_v6  ;;  %v488_v53 = vsel %vm437_vm1, %v485_v46, %v487_v50 }
  0x42   : > { %683 = vmatprep.mubr.f32.mxu0 %v12602_v6 }
  0x44   : > { %6807 = vmatmul.mubr.msk.f32.gmra.mxu1 %vm497_vm2, %v8549_v63 }
  0x45   : > { %6763 = vmatmul.mubr.msk.f32.gmra.mxu0 %vm497_vm2, %v458_v58  ;;  %1072 = vmatprep.mubr.f32.mxu1 %v12602_v6  ;;  %v491_v58 = vrot.slane %v8609_v21, 1 }
  0x46   : > { %689 = vmatprep.mubr.f32.mxu0 %v12602_v6 }
  0x47   : > { %v492_v59 = vsel %vm437_vm1, %v489_v54, %v491_v58 }
  0x48   : > { %6808 = vmatmul.mubr.msk.f32.gmra.mxu1 %vm497_vm2, %v8559_v2 }
  0x49   : > { %6764 = vmatmul.mubr.msk.f32.gmra.mxu0 %vm497_vm2, %v460_v61  ;;  %1078 = vmatprep.mubr.f32.mxu1 %v12602_v6  ;;  %v493_v61 = vrot.slane %v8619_v25, 1 }
  0x4a   : > { %695 = vmatprep.mubr.f32.mxu0 %v12602_v6 }
  0x4b   : > { %v494_v62 = vsel %vm437_vm1, %v491_v58, %v493_v61 }
  0x4c   : > { %6809 = vmatmul.mubr.msk.f32.gmra.mxu1 %vm497_vm2, %v8569_v5 }
  0x4d   : > { %6765 = vmatmul.mubr.msk.f32.gmra.mxu0 %vm497_vm2, %v462_v0  ;;  %1084 = vmatprep.mubr.f32.mxu1 %v12602_v6  ;;  %v495_v0 = vrot.slane %v8629_v30, 1 }
  0x4e   : > { %701 = vmatprep.mubr.f32.mxu0 %v12602_v6 }
  0x4f   : > { %v496_v1 = vsel %vm437_vm1, %v493_v61, %v495_v0 }
  0x50   : > { %6810 = vmatmul.mubr.msk.f32.gmra.mxu1 %vm497_vm2, %v8579_v9 }
  0x51   : > { %6766 = vmatmul.mubr.msk.f32.gmra.mxu0 %vm497_vm2, %v464_v3  ;;  %1090 = vmatprep.mubr.f32.mxu1 %v12602_v6  ;;  %v6822_v3 = vld [vmem:[%s12592_s1 + $0xb0] sm:$0x3f] }
  0x52   : > { %707 = vmatprep.mubr.f32.mxu0 %v12602_v6 }
  0x54   : > { %6811 = vmatmul.mubr.msk.f32.gmra.mxu1 %vm497_vm2, %v8589_v12 }
  0x55   : > { %6767 = vmatmul.mubr.msk.f32.gmra.mxu0 %vm497_vm2, %v466_v7  ;;  %1096 = vmatprep.mubr.f32.mxu1 %v12602_v6  ;;  %v6820_v7 = vld [vmem:[%s12592_s1 + $0xa0] sm:$0xff] }
  0x56   : > { %713 = vmatprep.mubr.f32.mxu0 %v12602_v6 }
  0x58   : > { %6812 = vmatmul.mubr.msk.f32.gmra.mxu1 %vm497_vm2, %v8599_v15 }
  0x59   : > { %6768 = vmatmul.mubr.msk.f32.gmra.mxu0 %vm497_vm2, %v468_v10  ;;  %1102 = vmatprep.mubr.f32.mxu1 %v12602_v6  ;;  %v6818_v10 = vld [vmem:[%s12592_s1 + $0x90] sm:$0xff] }
  0x5a   : > { %719 = vmatprep.mubr.f32.mxu0 %v12602_v6 }
  0x5c   : > { %6813 = vmatmul.mubr.msk.f32.gmra.mxu1 %vm497_vm2, %v8609_v21 }
  0x5d   : > { %6769 = vmatmul.mubr.msk.f32.gmra.mxu0 %vm497_vm2, %v470_v13  ;;  %1108 = vmatprep.mubr.f32.mxu1 %v12602_v6  ;;  %v6816_v13 = vld [vmem:[%s12592_s1 + $0x80] sm:$0xff] }
  0x5e   : > { %725 = vmatprep.mubr.f32.mxu0 %v12602_v6 }
  0x60   : > { %6814 = vmatmul.mubr.msk.f32.gmra.mxu1 %vm497_vm2, %v8619_v25 }
  0x61   : > { %6770 = vmatmul.mubr.msk.f32.gmra.mxu0 %vm497_vm2, %v472_v16  ;;  %1114 = vmatprep.mubr.f32.mxu1 %v12602_v6  ;;  %v1131_v16 = vrot.slane %v8410_v18, 2 }
  0x62   : > { %731 = vmatprep.mubr.f32.mxu0 %v12602_v6 }
  0x63   : > { %v1132_v20 = vsel %vm558_vm0, %v1130_v14, %v1131_v16 }
  0x64   : > { %6815 = vmatmul.mubr.msk.f32.gmra.mxu1 %vm497_vm2, %v8629_v30 }
  0x65   : > { %6771 = vmatmul.mubr.msk.f32.gmra.mxu0 %vm497_vm2, %v474_v22  ;;  %v1133_v22 = vrot.slane %v8413_v19, 2 }
  0x66   : > { %737 = vmatprep.mubr.f32.mxu0 %v12602_v6 }
  0x69   : > { %6772 = vmatmul.mubr.msk.f32.gmra.mxu0 %vm497_vm2, %v476_v26  ;;  %v6900_v26 = vld [vmem:[%s12593_s2 + $0x118] sm:$0xff] }
  0x6a   : > { %743 = vmatprep.mubr.f32.mxu0 %v12602_v6 }
  0x6d   : > { %6773 = vmatmul.mubr.msk.f32.gmra.mxu0 %vm497_vm2, %v478_v33  ;;  %v1139_v33 = vrot.slane %v8447_v32, 2 }
  0x6e   : > { %749 = vmatprep.mubr.f32.mxu0 %v12602_v6 }
  0x71   : > { %6774 = vmatmul.mubr.msk.f32.gmra.mxu0 %vm497_vm2, %v480_v37  ;;  %v1141_v37 = vrot.slane %v8460_v36, 2 }
  0x72   : > { %755 = vmatprep.mubr.f32.mxu0 %v12602_v6 }
  0x75   : > { %6775 = vmatmul.mubr.msk.f32.gmra.mxu0 %vm497_vm2, %v482_v41  ;;  %v1143_v41 = vrot.slane %v8473_v40, 2 }
  0x76   : > { %761 = vmatprep.mubr.f32.mxu0 %v12602_v6 }
  0x79   : > { %6776 = vmatmul.mubr.msk.f32.gmra.mxu0 %vm497_vm2, %v484_v45  ;;  %v6897_v45 = vld [vmem:[%s12593_s2 + $0x100] sm:$0xff] }
  0x7a   : > { %767 = vmatprep.mubr.f32.mxu0 %v12602_v6 }
  0x7d   : > { %6777 = vmatmul.mubr.msk.f32.gmra.mxu0 %vm497_vm2, %v486_v49  ;;  %v1147_v49 = vrot.slane %v8499_v48, 2 }
  0x7e   : > { %773 = vmatprep.mubr.f32.mxu0 %v12602_v6 }
  0x7f   : > { %v1148_v54 = vsel %vm558_vm0, %v1145_v42, %v1147_v49 }
  0x81   : > { %6778 = vmatmul.mubr.msk.f32.gmra.mxu0 %vm497_vm2, %v488_v53 }
  0x82   : > { %779 = vmatprep.mubr.f32.mxu0 %v12602_v6 }
  0x85   : > { %6779 = vmatmul.mubr.msk.f32.gmra.mxu0 %vm497_vm2, %v490_v57  ;;  %v1149_v57 = vrot.slane %v8512_v52, 2 }
  0x86   : > { %785 = vmatprep.mubr.f32.mxu0 %v12602_v6 }
  0x87   : > { %v1150_v61 = vsel %vm558_vm0, %v1147_v49, %v1149_v57  ;;  %v6890_v49 = vld [vmem:[%s12593_s2 + $0xc8] sm:$0xff] }
  0x89   : > { %6780 = vmatmul.mubr.msk.f32.gmra.mxu0 %vm497_vm2, %v492_v59  ;;  %v1707_v59 = vld [vmem:[%s12593_s2 + $0x78] sm:$0xff] }
  0x8a   : > { %791 = vmatprep.mubr.f32.mxu0 %v12602_v6  ;;  %1805 = vmatpush1.msra.mxu1 %v1707_v59  ;;  %v1163_v59 = vrot.slane %v8496_v47, 2 }
  0x8b   : > { %1806 = vmatprep.subr.mxu1 %v12602_v6 }
  0x8d   : > { %6781 = vmatmul.mubr.msk.f32.gmra.mxu0 %vm497_vm2, %v494_v62  ;;  %v1151_v62 = vrot.slane %v8525_v56, 2 }
  0x8e   : > { %797 = vmatprep.mubr.f32.mxu0 %v12602_v6 }
  0x91   : > { %6782 = vmatmul.mubr.msk.f32.gmra.mxu0 %vm497_vm2, %v496_v1  ;;  %v1706_v1 = vld [vmem:[%s12593_s2 + $0x70] sm:$0xff] }
  0x92   : > { %803 = vmatprep.mubr.f32.mxu0 %v12602_v6  ;;  %1807 = vmatpush1.msra.mxu1 %v1706_v1 }
  0x93   : > { %1808 = vmatprep.subr.mxu1 %v12602_v6 }
  0x95   : > { %6783 = vmatmul.mubr.msk.f32.gmra.mxu0 %vm497_vm2, %v495_v0 }
  0x96   : > { %940 = vmatprep.mubr.f32.mxu0 %v12602_v6 }
  0x99   : > { %6786 = vmatmul.mubr.msk.f32.vlgmr.msra.gmra.mxu0 %vm497_vm2, %v8407_v17  ;;  %v1134_v17 = vsel %vm558_vm0, %v1131_v16, %v1133_v22  ;;  %v1155_v16 = vrot.slane %v8444_v31, 2  ;;  %v1701_v31 = vld [vmem:[%s12593_s2 + $0x48] sm:$0xff] }
  0x9a   : > { %946 = vmatprep.mubr.f32.mxu0 %v12602_v6  ;;  %6825 = vmatpush1.msk.msra.mxu0 %vm558_vm0, %v6822_v3 }
  0x9b   : > { %1281 = vmatprep.subr.mxu0 %v6821_v4  ;;  %v1152_v4 = vsel %vm558_vm0, %v1149_v57, %v1151_v62 }
  0x9c   : > { %1282 = vmatpush1.msra.mxu0 %v6820_v7  ;;  %v1153_v7 = vrot.slane %v8431_v27, 2  ;;  %v1703_v27 = vld [vmem:[%s12593_s2 + $0x58] sm:$0xff] }
  0x9d   : > { %6787 = vmatmul.mubr.msk.f32.gmra.mxu0 %vm497_vm2, %v8410_v18  ;;  %1283 = vmatprep.subr.mxu0 %v6819_v8  ;;  %v1135_v18 = vrot.slane %v8421_v23, 2  ;;  %v6894_v8 = vld [vmem:[%s12593_s2 + $0xe8] sm:$0xff] }
  0x9e   : > { %952 = vmatprep.mubr.f32.mxu0 %v12602_v6  ;;  %1284 = vmatpush1.msra.mxu0 %v6818_v10  ;;  %v1154_v14 = vsel %vm558_vm0, %v1151_v62, %v1153_v7  ;;  %v1694_v62 = vld [vmem:[%s12593_s2 + $0x10] sm:$0xff] }
  0x9f   : > { %1285 = vmatprep.subr.mxu0 %v6817_v11  ;;  %v1704_v11 = vld [vmem:[%s12593_s2 + $0x60] sm:$0xff] }
  0xa0   : > { %1286 = vmatpush1.msra.mxu0 %v6816_v13 }
  0xa1   : > { %6788 = vmatmul.mubr.msk.f32.gmra.mxu0 %vm497_vm2, %v8413_v19  ;;  %2041 = vmatprep.subr.mxu0 %v12602_v6  ;;  %v1136_v19 = vsel %vm558_vm0, %v1133_v22, %v1135_v18  ;;  %v1702_v22 = vld [vmem:[%s12593_s2 + $0x50] sm:$0xff] }
  0xa2   : > { %958 = vmatprep.mubr.f32.mxu0 %v12602_v6 }
  0xa5   : > { %6789 = vmatmul.mubr.msk.f32.gmra.mxu0 %vm497_vm2, %v8421_v23  ;;  %v1138_v23 = vsel %vm558_vm0, %v1135_v18, %v1137_v29  ;;  %v1156_v18 = vsel %vm558_vm0, %v1153_v7, %v1155_v16 }
  0xa6   : > { %964 = vmatprep.mubr.f32.mxu0 %v12602_v6 }
  0xa9   : > { %6790 = vmatmul.mubr.msk.f32.gmra.mxu0 %vm497_vm2, %v8434_v28  ;;  %v1140_v28 = vsel %vm558_vm0, %v1137_v29, %v1139_v33  ;;  %v1700_v29 = vld [vmem:[%s12593_s2 + $0x40] sm:$0xff] }
  0xaa   : > { %970 = vmatprep.mubr.f32.mxu0 %v12602_v6 }
  0xad   : > { %6791 = vmatmul.mubr.msk.f32.gmra.mxu0 %vm497_vm2, %v8447_v32  ;;  %v1142_v32 = vsel %vm558_vm0, %v1139_v33, %v1141_v37 }
  0xae   : > { %976 = vmatprep.mubr.f32.mxu0 %v12602_v6 }
  0xb1   : > { %6792 = vmatmul.mubr.msk.f32.gmra.mxu0 %vm497_vm2, %v8460_v36  ;;  %v1144_v36 = vsel %vm558_vm0, %v1141_v37, %v1143_v41 }
  0xb2   : > { %982 = vmatprep.mubr.f32.mxu0 %v12602_v6 }
  0xb5   : > { %6793 = vmatmul.mubr.msk.f32.gmra.mxu0 %vm497_vm2, %v8473_v40  ;;  %v1146_v40 = vsel %vm558_vm0, %v1143_v41, %v1145_v42  ;;  %v6891_v41 = vld [vmem:[%s12593_s2 + $0xd0] sm:$0xff]  ;;  %v1161_v42 = vrot.slane %v8483_v43, 2  ;;  %v1695_v43 = vld [vmem:[%s12593_s2 + $0x18] sm:$0xff] }
  0xb6   : > { %988 = vmatprep.mubr.f32.mxu0 %v12602_v6 }
  0xb7   : > { %v1164_v47 = vsel %vm558_vm0, %v1161_v42, %v1163_v59 }
  0xb9   : > { %6794 = vmatmul.mubr.msk.f32.gmra.mxu0 %vm497_vm2, %v8486_v44  ;;  %v6896_v44 = vld [vmem:[%s12593_s2 + $0xf8] sm:$0xff] }
  0xba   : > { %994 = vmatprep.mubr.f32.mxu0 %v12602_v6 }
  0xbd   : > { %6795 = vmatmul.mubr.msk.f32.gmra.mxu0 %vm497_vm2, %v8499_v48 }
  0xbe   : > { %1000 = vmatprep.mubr.f32.mxu0 %v12602_v6 }
  0xc1   : > { %6796 = vmatmul.mubr.msk.f32.gmra.mxu0 %vm497_vm2, %v8512_v52  ;;  %v6895_v52 = vld [vmem:[%s12593_s2 + $0xf0] sm:$0xff] }
  0xc2   : > { %1006 = vmatprep.mubr.f32.mxu0 %v12602_v6 }
  0xc5   : > { %6797 = vmatmul.mubr.msk.f32.gmra.mxu0 %vm497_vm2, %v8525_v56  ;;  %v1705_v56 = vld [vmem:[%s12593_s2 + $0x68] sm:$0xff] }
  0xc6   : > { %1319 = vmatprep.mubr.f32.mxu0 %v12602_v6  ;;  %1809 = vmatpush1.msra.mxu1 %v1705_v56  ;;  %v1165_v56 = vrot.slane %v8509_v51, 2  ;;  %v1692_v51 = vld [vmem:[%s12593_s2] sm:$0xff] }
  0xc7   : > { %1810 = vmatprep.subr.mxu1 %v12602_v6 }
  0xc8   : > { %1811 = vmatpush1.msra.mxu1 %v1704_v11 }
  0xc9   : > { %6826 = vmatmul.mubr.msk.f32.vlgmr.msra.gmra.mxu0 %vm497_vm2, %v1132_v20  ;;  %1812 = vmatprep.subr.mxu1 %v12602_v6 }
  0xca   : > { %1325 = vmatprep.mubr.f32.mxu0 %v12602_v6  ;;  %2042 = vmatpush1.msra.mxu0 %v6901_v24  ;;  %v6893_v24 = vld [vmem:[%s12593_s2 + $0xe0] sm:$0xff] }
  0xcb   : > { %2043 = vmatprep.subr.mxu0 %v12602_v6  ;;  %1813 = vmatpush1.msra.mxu1 %v1703_v27  ;;  %v6886_v27 = vld [vmem:[%s12593_s2 + $0xa8] sm:$0xff] }
  0xcc   : > { %2044 = vmatpush1.msra.mxu0 %v6900_v26  ;;  %1814 = vmatprep.subr.mxu1 %v12602_v6  ;;  %v1157_v26 = vrot.slane %v8457_v35, 2  ;;  %v1699_v35 = vld [vmem:[%s12593_s2 + $0x38] sm:$0xff] }
  0xcd   : > { %6827 = vmatmul.mubr.msk.f32.gmra.mxu0 %vm497_vm2, %v1134_v17  ;;  %2045 = vmatprep.subr.mxu0 %v12602_v6 }
  0xce   : > { %1331 = vmatprep.mubr.f32.mxu0 %v12602_v6  ;;  %2046 = vmatpush1.msra.mxu0 %v6899_v34  ;;  %v1158_v33 = vsel %vm558_vm0, %v1155_v16, %v1157_v26  ;;  %v1159_v34 = vrot.slane %v8470_v39, 2  ;;  %v1697_v39 = vld [vmem:[%s12593_s2 + $0x28] sm:$0xff]  ;;  %v1167_v16 = vrot.slane %v8522_v55, 2 }
  0xcf   : > { %2047 = vmatprep.subr.mxu0 %v12602_v6  ;;  %1815 = vmatpush1.msra.mxu1 %v1702_v22 }
  0xd0   : > { %2048 = vmatpush1.msra.mxu0 %v6898_v38  ;;  %1816 = vmatprep.subr.mxu1 %v12602_v6  ;;  %v1698_v38 = vld [vmem:[%s12593_s2 + $0x30] sm:$0xff]  ;;  %v1162_v57 = vsel %vm558_vm0, %v1159_v34, %v1161_v42  ;;  %v1168_v55 = vsel %vm558_vm0, %v1165_v56, %v1167_v16 }
  0xd1   : > { %6828 = vmatmul.mubr.msk.f32.gmra.mxu0 %vm497_vm2, %v1136_v19  ;;  %2049 = vmatprep.subr.mxu0 %v12602_v6  ;;  %v6903_v42 = vld [vmem:[%s12593_s2 + $0x130] sm:$0xff] }
  0xd2   : > { %1337 = vmatprep.mubr.f32.mxu0 %v12602_v6  ;;  %2050 = vmatpush1.msra.mxu0 %v6897_v45 }
  0xd3   : > { %2051 = vmatprep.subr.mxu0 %v12602_v6  ;;  %1817 = vmatpush1.msra.mxu1 %v1701_v31  ;;  %v6906_v31 = vld [vmem:[%s12593_s2 + $0x148] sm:$0xff] }
  0xd4   : > { %2052 = vmatpush1.msra.mxu0 %v6896_v44  ;;  %1818 = vmatprep.subr.mxu1 %v12602_v6 }
  0xd5   : > { %6829 = vmatmul.mubr.msk.f32.gmra.mxu0 %vm497_vm2, %v1138_v23  ;;  %2053 = vmatprep.subr.mxu0 %v12602_v6 }
  0xd6   : > { %1343 = vmatprep.mubr.f32.mxu0 %v12602_v6  ;;  %2054 = vmatpush1.msra.mxu0 %v6895_v52  ;;  %v6888_v52 = vld [vmem:[%s12593_s2 + $0xb8] sm:$0xff] }
  0xd7   : > { %2055 = vmatprep.subr.mxu0 %v12602_v6  ;;  %1819 = vmatpush1.msra.mxu1 %v1700_v29  ;;  %v1711_v29 = vld [vmem:[%s12593_s2 + $0x98] sm:$0xff] }
  0xd8   : > { %2056 = vmatpush1.msra.mxu0 %v6894_v8  ;;  %1820 = vmatprep.subr.mxu1 %v12602_v6  ;;  %v6887_v8 = vld [vmem:[%s12593_s2 + $0xb0] sm:$0xff] }
  0xd9   : > { %6830 = vmatmul.mubr.msk.f32.gmra.mxu0 %vm497_vm2, %v1140_v28  ;;  %2057 = vmatprep.subr.mxu0 %v12602_v6  ;;  %v6892_v28 = vld [vmem:[%s12593_s2 + $0xd8] sm:$0xff] }
  0xda   : > { %1349 = vmatprep.mubr.f32.mxu0 %v12602_v6  ;;  %2058 = vmatpush1.msra.mxu0 %v6893_v24  ;;  %v1712_v24 = vld [vmem:[%s12593_s2 + $0xa0] sm:$0xff] }
  0xdb   : > { %2059 = vmatprep.subr.mxu0 %v12602_v6  ;;  %1821 = vmatpush1.msra.mxu1 %v1699_v35 }
  0xdc   : > { %2060 = vmatpush1.msra.mxu0 %v6892_v28  ;;  %1822 = vmatprep.subr.mxu1 %v12602_v6  ;;  %v6904_v28 = vld [vmem:[%s12593_s2 + $0x138] sm:$0xff] }
  0xdd   : > { %6831 = vmatmul.mubr.msk.f32.gmra.mxu0 %vm497_vm2, %v1142_v32  ;;  %2061 = vmatprep.subr.mxu0 %v12602_v6 }
  0xde   : > { %1355 = vmatprep.mubr.f32.mxu0 %v12602_v6  ;;  %1823 = vmatpush1.msra.mxu1 %v1698_v38 }
  0xdf   : > { %1824 = vmatprep.subr.mxu1 %v12602_v6  ;;  %2062 = vmatpush1.msra.mxu0 %v6891_v41 }
  0xe0   : > { %1825 = vmatpush1.msra.mxu1 %v1697_v39  ;;  %2063 = vmatprep.subr.mxu0 %v12602_v6  ;;  %v1171_v39 = vrot.slane %v8549_v63, 2 }
  0xe1   : > { %v8783_v46 = vpop.f32.mrf.mxu0  ;;  %6832 = vmatmul.mubr.msk.f32.gmra.mxu0 %vm497_vm2, %v1144_v36  ;;  %v1160_v36 = vsel %vm558_vm0, %v1157_v26, %v1159_v34  ;;  %1826 = vmatprep.subr.mxu1 %v12602_v6  ;;  %v1169_v26 = vrot.slane %v8539_v60, 2  ;;  %v1710_v60 = vld [vmem:[%s12593_s2 + $0x90] sm:$0xff] }
  0xe2   : > { %1361 = vmatprep.mubr.f32.mxu0 %v12602_v6  ;;  %2064 = vmatpush1.msra.mxu0 %v6890_v49  ;;  %v1173_v49 = vrot.slane %v8559_v2, 2 }
  0xe3   : > { %v8789_v50 = vpop.f32.mrf.mxu0  ;;  %2065 = vmatprep.subr.mxu0 %v12602_v6  ;;  %v1170_v38 = vsel %vm558_vm0, %v1167_v16, %v1169_v26  ;;  %v1172_v63 = vsel %vm558_vm0, %v1169_v26, %v1171_v39  ;;  %v1183_v26 = vrot.slane %v8609_v21, 2 }
  0xe4   : > { %v1174_v2 = vsel %vm558_vm0, %v1171_v39, %v1173_v49  ;;  %v1187_v39 = vrot.slane %v8629_v30, 2 }
  0xe5   : > { %v8794_v53 = vpop.f32.mrf.mxu0  ;;  %6833 = vmatmul.mubr.msk.f32.gmra.mxu0 %vm497_vm2, %v1146_v40  ;;  %v1696_v40 = vld [vmem:[%s12593_s2 + $0x20] sm:$0xff] }
  0xe6   : > { %1367 = vmatprep.mubr.f32.mxu0 %v12602_v6  ;;  %1827 = vmatpush1.msra.mxu1 %v1696_v40 }
  0xe7   : > { %v8800_v58 = vpop.f32.mrf.mxu0  ;;  %1828 = vmatprep.subr.mxu1 %v12602_v6 }
  0xe8   : > { %1829 = vmatpush1.msra.mxu1 %v1695_v43  ;;  %v1708_v43 = vld [vmem:[%s12593_s2 + $0x80] sm:$0xff] }
  0xe9   : > { %v8803_v48 = vpop.f32.mrf.mxu0  ;;  %6834 = vmatmul.mubr.msk.f32.gmra.mxu0 %vm497_vm2, %v1148_v54  ;;  %v6889_v54 = vld [vmem:[%s12593_s2 + $0xc0] sm:$0xff]  ;;  %1830 = vmatprep.subr.mxu1 %v12602_v6 }
  0xea   : > { %1373 = vmatprep.mubr.f32.mxu0 %v12602_v6  ;;  %2066 = vmatpush1.msra.mxu0 %v6889_v54 }
  0xeb   : > { %v8815_v0 = vpop.f32.mrf.mxu0  ;;  %2067 = vmatprep.subr.mxu0 %v12602_v6  ;;  %1831 = vmatpush1.msra.mxu1 %v1694_v62  ;;  %v1175_v62 = vrot.slane %v8569_v5, 2 }
  0xec   : > { %2068 = vmatpush1.msra.mxu0 %v6888_v52  ;;  %1832 = vmatprep.subr.mxu1 %v12602_v6 }
  0xed   : > { %v8822_v3 = vpop.f32.mrf.mxu0  ;;  %6835 = vmatmul.mubr.msk.f32.gmra.mxu0 %vm497_vm2, %v1150_v61  ;;  %2069 = vmatprep.subr.mxu0 %v12602_v6 }
  0xee   : > { %1379 = vmatprep.mubr.f32.mxu0 %v12602_v6  ;;  %2070 = vmatpush1.msra.mxu0 %v6887_v8 }
  0xef   : > { %v8835_v10 = vpop.f32.mrf.mxu0  ;;  %2071 = vmatprep.subr.mxu0 %v12602_v6 }
  0xf0   : > { %2072 = vmatpush1.msra.mxu0 %v6886_v27  ;;  %v1179_v27 = vrot.slane %v8589_v12, 2 }
  0xf1   : > { %v8842_v13 = vpop.f32.mrf.mxu0  ;;  %6836 = vmatmul.mubr.msk.f32.gmra.mxu0 %vm497_vm2, %v1152_v4  ;;  %v1693_v4 = vld [vmem:[%s12593_s2 + $0x8] sm:$0xff]  ;;  %2095 = vmatprep.subr.mxu0 %v12602_v6 }
  0xf2   : > { %1385 = vmatprep.mubr.f32.mxu0 %v12602_v6  ;;  %1833 = vmatpush1.msra.mxu1 %v1693_v4  ;;  %v1177_v4 = vrot.slane %v8579_v9, 2 }
  0xf3   : > { %v8852_v20 = vpop.f32.mrf.mxu0  ;;  %1834 = vmatprep.subr.mxu1 %v12602_v6  ;;  %2096 = vmatpush2.msra.mxu0 %v6906_v31 }
  0xf4   : > { %1835 = vmatpush1.msra.mxu1 %v1692_v51  ;;  %2097 = vmatprep.subr.mxu0 %v12602_v6  ;;  %v1178_v5 = vsel %vm558_vm0, %v1175_v62, %v1177_v4  ;;  %v1180_v9 = vsel %vm558_vm0, %v1177_v4, %v1179_v27 }
  0xf5   : > { %v8861_v17 = vpop.f32.mrf.mxu0  ;;  %6837 = vmatmul.mubr.msk.f32.gmra.mxu0 %vm497_vm2, %v1154_v14  ;;  %v1166_v14 = vsel %vm558_vm0, %v1163_v59, %v1165_v56  ;;  %1858 = vmatprep.subr.mxu1 %v12602_v6  ;;  %v1176_v56 = vsel %vm558_vm0, %v1173_v49, %v1175_v62 }
  0xf6   : > { %1391 = vmatprep.mubr.f32.mxu0 %v12602_v6  ;;  %1859 = vmatpush2.msra.mxu1 %v1712_v24  ;;  %v1181_v24 = vrot.slane %v8599_v15, 2 }
  0xf7   : > { %v8871_v19 = vpop.f32.mrf.mxu0  ;;  %1860 = vmatprep.subr.mxu1 %v12602_v6 }
  0xf8   : > { %1861 = vmatpush2.msra.mxu1 %v1711_v29  ;;  %v1182_v12 = vsel %vm558_vm0, %v1179_v27, %v1181_v24  ;;  %v1184_v15 = vsel %vm558_vm0, %v1181_v24, %v1183_v26 }
  0xf9   : > { %v8878_v23 = vpop.f32.mrf.mxu0  ;;  %6838 = vmatmul.mubr.msk.f32.gmra.mxu0 %vm497_vm2, %v1156_v18  ;;  %1862 = vmatprep.subr.mxu1 %v12602_v6 }
  0xfa   : > { %1397 = vmatprep.mubr.f32.mxu0 %v12602_v6  ;;  %1863 = vmatpush2.msra.mxu1 %v1710_v60  ;;  %v1185_v60 = vrot.slane %v8619_v25, 2 }
  0xfb   : > { %v8891_v37 = vpop.f32.mrf.mxu0  ;;  %1864 = vmatprep.subr.mxu1 %v12602_v6 }
  0xfc   : > { %v1186_v21 = vsel %vm558_vm0, %v1183_v26, %v1185_v60  ;;  %v1188_v25 = vsel %vm558_vm0, %v1185_v60, %v1187_v39 }
  0xfd   : > { %v8898_v32 = vpop.f32.mrf.mxu0  ;;  %6839 = vmatmul.mubr.msk.f32.gmra.mxu0 %vm497_vm2, %v1158_v33  ;;  %v6905_v33 = vld [vmem:[%s12593_s2 + $0x140] sm:$0xff] }
  0xfe   : > { %1403 = vmatprep.mubr.f32.mxu0 %v12602_v6  ;;  %2098 = vmatpush2.msra.mxu0 %v6905_v33 }
  0xff   : > { %v8911_v45 = vpop.f32.mrf.mxu0  ;;  %2099 = vmatprep.subr.mxu0 %v12602_v6 }
 0x100   : > { %2100 = vmatpush2.msra.mxu0 %v6904_v28 }
 0x101   : > { %v8921_v44 = vpop.f32.mrf.mxu0  ;;  %6840 = vmatmul.mubr.msk.f32.gmra.mxu0 %vm497_vm2, %v1160_v36  ;;  %v1709_v36 = vld [vmem:[%s12593_s2 + $0x88] sm:$0xff]  ;;  %2101 = vmatprep.subr.mxu0 %v12602_v6 }
 0x102   : > { %1409 = vmatprep.mubr.f32.mxu0 %v12602_v6  ;;  %1865 = vmatpush2.msra.mxu1 %v1709_v36 }
 0x103   : > { %v8933_v61 = vpop.f32.mrf.mxu0  ;;  %2102 = vmatpush2.msra.mxu0 %v6903_v42  ;;  %1866 = vmatprep.subr.mxu1 %v12602_v6 }
 0x104   : > { %2103 = vmatprep.subr.mxu0 %v12602_v6  ;;  %1867 = vmatpush2.msra.mxu1 %v1708_v43 }
 0x105   : > { %v8943_v1 = vpop.f32.mrf.mxu0  ;;  %6841 = vmatmul.mubr.msk.f32.gmra.mxu0 %vm497_vm2, %v1162_v57  ;;  %v6902_v57 = vld [vmem:[%s12593_s2 + $0x128] sm:$0xff] }
 0x106   : > { %1415 = vmatprep.mubr.f32.mxu0 %v12602_v6  ;;  %2104 = vmatpush2.msra.mxu0 %v6902_v57 }
 0x107   : > { %v8954_v7 = vpop.f32.mrf.mxu0 }
 0x109   : > { %v8961_v11 = vpop.f32.mrf.mxu0  ;;  %6842 = vmatmul.mubr.msk.f32.gmra.mxu0 %vm497_vm2, %v1164_v47 }
 0x10a   : > { %1421 = vmatprep.mubr.f32.mxu0 %v12602_v6 }
 0x10b   : > { %v8973_v22 = vpop.f32.mrf.mxu0 }
 0x10d   : > { %v8983_v18 = vpop.f32.mrf.mxu0  ;;  %6843 = vmatmul.mubr.msk.f32.gmra.mxu0 %vm497_vm2, %v1166_v14 }
 0x10e   : > { %1427 = vmatprep.mubr.f32.mxu0 %v12602_v6 }
 0x10f   : > { %v8994_v35 = vpop.f32.mrf.mxu0 }
 0x111   : > { %v9001_v34 = vpop.f32.mrf.mxu0  ;;  %6844 = vmatmul.mubr.msk.f32.gmra.mxu0 %vm497_vm2, %v1168_v55 }
 0x112   : > { %1433 = vmatprep.mubr.f32.mxu0 %v12602_v6 }
 0x113   : > { %v9013_v41 = vpop.f32.mrf.mxu0 }
 0x114   : > { %12610 = vst [vmem:[#allocation5_spill] sm:$0xff] %v9013_v41 }
 0x115   : > { %v9023_v40 = vpop.f32.mrf.mxu0  ;;  %6845 = vmatmul.mubr.msk.f32.gmra.mxu0 %vm497_vm2, %v1170_v38 }
 0x116   : > { %12611 = vst [vmem:[#allocation6_spill] sm:$0xff] %v9023_v40  ;;  %1439 = vmatprep.mubr.f32.mxu0 %v12602_v6 }
 0x117   : > { %v9034_v54 = vpop.f32.mrf.mxu0 }
 0x118   : > { %12612 = vst [vmem:[#allocation7_spill] sm:$0xff] %v9034_v54 }
 0x119   : > { %v9041_v59 = vpop.f32.mrf.mxu0  ;;  %6846 = vmatmul.mubr.msk.f32.gmra.mxu0 %vm497_vm2, %v1172_v63 }
 0x11a   : > { %12613 = vst [vmem:[#allocation8_spill] sm:$0xff] %v9041_v59  ;;  %1445 = vmatprep.mubr.f32.mxu0 %v12602_v6 }
 0x11b   : > { %v9047_v52 = vpop.f32.mrf.mxu0 }
 0x11c   : > { %12614 = vst [vmem:[#allocation9_spill] sm:$0xff] %v9047_v52 }
 0x11d   : > { %v9049_v47 = vpop.f32.mrf.mxu0  ;;  %6847 = vmatmul.mubr.msk.f32.gmra.mxu0 %vm497_vm2, %v1174_v2 }
 0x11e   : > { %12615 = vst [vmem:[#allocation10_spill] sm:$0xff] %v9049_v47  ;;  %1451 = vmatprep.mubr.f32.mxu0 %v12602_v6 }
 0x11f   : > { %v9055_v8 = vpop.f32.mrf.mxu0 }
 0x120   : > { %12616 = vst [vmem:[#allocation11_spill] sm:$0xff] %v9055_v8  ;;  %v1560_v8 = vld [vmem:[%s12598_s7] sm:$0x3] }
 0x121   : > { %v9057_v51 = vpop.f32.mrf.mxu0  ;;  %6848 = vmatmul.mubr.msk.f32.gmra.mxu0 %vm497_vm2, %v1176_v56 }
 0x122   : > { %12617 = vst [vmem:[#allocation12_spill] sm:$0xff] %v9057_v51  ;;  %1457 = vmatprep.mubr.f32.mxu0 %v12602_v6 }
 0x123   : > { %v9063_v14 = vpop.f32.mrf.mxu0 }
 0x124   : > { %12618 = vst [vmem:[#allocation13_spill] sm:$0xff] %v9063_v14 }
 0x125   : > { %v9065_v16 = vpop.f32.mrf.mxu0  ;;  %6849 = vmatmul.mubr.msk.f32.gmra.mxu0 %vm497_vm2, %v1178_v5 }
 0x126   : > { %12619 = vst [vmem:[#allocation14_spill] sm:$0xff] %v9065_v16  ;;  %1463 = vmatprep.mubr.f32.mxu0 %v12602_v6 }
 0x127   : > { %v9071_v31 = vpop.f32.mrf.mxu0 }
 0x128   : > { %12620 = vst [vmem:[#allocation15_spill] sm:$0xff] %v9071_v31 }
 0x129   : > { %v9073_v55 = vpop.f32.mrf.mxu0  ;;  %6850 = vmatmul.mubr.msk.f32.gmra.mxu0 %vm497_vm2, %v1180_v9 }
 0x12a   : > { %12621 = vst [vmem:[#allocation16_spill] sm:$0xff] %v9073_v55  ;;  %1469 = vmatprep.mubr.f32.mxu0 %v12602_v6 }
 0x12b   : > { %v9079_v29 = vpop.f32.mrf.mxu0 }
 0x12c   : > { %12622 = vst [vmem:[#allocation17_spill] sm:$0xff] %v9079_v29 }
 0x12d   : > { %v9081_v33 = vpop.f32.mrf.mxu0  ;;  %6851 = vmatmul.mubr.msk.f32.gmra.mxu0 %vm497_vm2, %v1182_v12 }
 0x12e   : > { %12623 = vst [vmem:[#allocation18_spill] sm:$0xff] %v9081_v33  ;;  %1475 = vmatprep.mubr.f32.mxu0 %v12602_v6 }
 0x12f   : > { %v9087_v28 = vpop.f32.mrf.mxu0 }
 0x130   : > { %12624 = vst [vmem:[#allocation19_spill] sm:$0xff] %v9087_v28 }
 0x131   : > { %v9089_v38 = vpop.f32.mrf.mxu0  ;;  %6852 = vmatmul.mubr.msk.f32.gmra.mxu0 %vm497_vm2, %v1184_v15 }
 0x132   : > { %12625 = vst [vmem:[#allocation20_spill] sm:$0xff] %v9089_v38  ;;  %1481 = vmatprep.mubr.f32.mxu0 %v12602_v6  ;;  %v1562_v38 = vlaneseq }
 0x133   : > { %v9095_v36 = vpop.f32.mrf.mxu0 }
 0x134   : > { %12626 = vst [vmem:[#allocation21_spill] sm:$0xff] %v9095_v36  ;;  %v9179_v55 = vshrl.u32 %v1562_v38, 7  ;;  %v6958_v38 = vld [vmem:[%s12594_s3 + $0x158] sm:$0xf] }
 0x135   : > { %v9097_v42 = vpop.f32.mrf.mxu0  ;;  %6853 = vmatmul.mubr.msk.f32.gmra.mxu0 %vm497_vm2, %v1186_v21  ;;  %6959 = vmatprep.subr.msk.mxu1 %vm2625_vm3, %v6958_v38 }
 0x136   : > { %12627 = vst [vmem:[#allocation22_spill] sm:$0xff] %v9097_v42  ;;  %1487 = vmatprep.mubr.f32.mxu0 %v12602_v6  ;;  %12649 = vst [vmem:[#allocation44_spill] sm:$0xff] %v9179_v55  ;;  %v12652_v59 = vsub.s32 0, %v9179_v55 }
 0x137   : > { %v9102_v63 = vpop.f32.mrf.mxu0 }
 0x138   : > { %12628 = vst [vmem:[#allocation23_spill] sm:$0xff] %v9102_v63 }
 0x139   : > { %v9104_v49 = vpop.f32.mrf.mxu0  ;;  %6854 = vmatmul.mubr.msk.f32.gmra.mxu0 %vm497_vm2, %v1188_v25 }
 0x13a   : > { %12629 = vst [vmem:[#allocation24_spill] sm:$0xff] %v9104_v49  ;;  %1493 = vmatprep.mubr.f32.mxu0 %v12602_v6 }
 0x13b   : > { %v9108_v43 = vpop.f32.mrf.mxu0 }
 0x13c   : > { %12630 = vst [vmem:[#allocation25_spill] sm:$0xff] %v9108_v43 }
 0x13d   : > { %v9110_v30 = vpop.f32.mrf.mxu0  ;;  %6855 = vmatmul.mubr.msk.f32.gmra.mxu0 %vm497_vm2, %v1187_v39 }
 0x13e   : > { %12631 = vst [vmem:[#allocation26_spill] sm:$0xff] %v9110_v30 }
 0x13f   : > { %v9113_v57 = vpop.f32.mrf.mxu0 }
 0x140   : > { %12632 = vst [vmem:[#allocation27_spill] sm:$0xff] %v9113_v57 }
 0x141   : > { %v9115_v2 = vpop.f32.mrf.mxu0 }
 0x142   : > { %12633 = vst [vmem:[#allocation28_spill] sm:$0xff] %v9115_v2 }
 0x143   : > { %v9117_v62 = vpop.f32.mrf.mxu0 }
 0x144   : > { %12634 = vst [vmem:[#allocation29_spill] sm:$0xff] %v9117_v62 }
 0x145   : > { %v9119_v56 = vpop.f32.mrf.mxu0 }
 0x146   : > { %12635 = vst [vmem:[#allocation30_spill] sm:$0xff] %v9119_v56 }
 0x147   : > { %v9121_v4 = vpop.f32.mrf.mxu0 }
 0x148   : > { %12636 = vst [vmem:[#allocation31_spill] sm:$0xff] %v9121_v4 }
 0x149   : > { %v9123_v5 = vpop.f32.mrf.mxu0 }
 0x14a   : > { %12637 = vst [vmem:[#allocation32_spill] sm:$0xff] %v9123_v5 }
 0x14b   : > { %v9125_v27 = vpop.f32.mrf.mxu0 }
 0x14c   : > { %12638 = vst [vmem:[#allocation33_spill] sm:$0xff] %v9125_v27 }
 0x14d   : > { %v9127_v9 = vpop.f32.mrf.mxu0 }
 0x14e   : > { %12639 = vst [vmem:[#allocation34_spill] sm:$0xff] %v9127_v9 }
 0x14f   : > { %v9129_v24 = vpop.f32.mrf.mxu0 }
 0x150   : > { %12640 = vst [vmem:[#allocation35_spill] sm:$0xff] %v9129_v24 }
 0x151   : > { %v9131_v12 = vpop.f32.mrf.mxu0 }
 0x152   : > { %12641 = vst [vmem:[#allocation36_spill] sm:$0xff] %v9131_v12 }
 0x153   : > { %v9133_v26 = vpop.f32.mrf.mxu0 }
 0x154   : > { %12642 = vst [vmem:[#allocation37_spill] sm:$0xff] %v9133_v26  ;;  %v9149_v26 = vpop.f32.mrf.mxu1 }
 0x155   : > { %v9135_v15 = vpop.f32.mrf.mxu0 }
 0x156   : > { %12643 = vst [vmem:[#allocation38_spill] sm:$0xff] %v9135_v15  ;;  %v9155_v62 = vpop.f32.mrf.mxu1 }
 0x157   : > { %v9137_v60 = vpop.f32.mrf.mxu0  ;;  %12645 = vst [vmem:[#allocation40_spill] sm:$0xff] %v9155_v62 }
 0x158   : > { %12644 = vst [vmem:[#allocation39_spill] sm:$0xff] %v9137_v60  ;;  %v9161_v30 = vpop.f32.mrf.mxu1 }
 0x159   : > { %v942_v21 = vpop.f32.mrf.mxu0  ;;  %12646 = vst [vmem:[#allocation41_spill] sm:$0xff] %v9161_v30 }
 0x15a   : > { %v9167_v63 = vpop.f32.mrf.mxu1 }
 0x15b   : > { %v944_v39 = vpop.f32.mrf.mxu0  ;;  %12647 = vst [vmem:[#allocation42_spill] sm:$0xff] %v9167_v63  ;;  %v9203_v63 = vrot.slane %v1560_v8, %v12652_v59 }
 0x15c   : > { %v9173_v28 = vpop.f32.mrf.mxu1  ;;  %v945_v47 = vadd.f32 %v944_v39, %v8789_v50 }
 0x15d   : > { %v948_v25 = vpop.f32.mrf.mxu0  ;;  %12648 = vst [vmem:[#allocation43_spill] sm:$0xff] %v9173_v28 }
 0x15e   : > { %v9181_v31 = vpop.f32.mrf.mxu1 }
 0x15f   : > { %v950_v6 = vpop.f32.mrf.mxu0  ;;  %12650 = vst [vmem:[#allocation45_spill] sm:$0xff] %v9181_v31  ;;  %v943_v31 = vadd.f32 %v942_v21, %v8783_v46  ;;  %v7042_v46 = vld [vmem:[%s12594_s3 + $0x208] sm:$0xf]  ;;  %v949_v21 = vadd.f32 %v948_v25, %v8794_v53 }
 0x160   : > { %v9192_v52 = vpop.f32.mrf.mxu1  ;;  %7043 = vmatprep.subr.msk.mxu0 %vm2625_vm3, %v7042_v46 }
 0x161   : > { %v954_v4 = vpop.f32.mrf.mxu0  ;;  %12651 = vst [vmem:[#allocation46_spill] sm:$0xff] %v9192_v52  ;;  %v12653_v52 = vsub.s32 1, %v9179_v55 }
 0x162   : > { %v9210_v40 = vpop.f32.mrf.mxu1  ;;  %v955_v55 = vadd.f32 %v954_v4, %v8803_v48  ;;  %v6956_v48 = vld [vmem:[%s12594_s3 + $0x148] sm:$0xff]  ;;  %v7040_v4 = vld [vmem:[%s12594_s3 + $0x1f8] sm:$0xff] }
 0x163   : > { %v956_v5 = vpop.f32.mrf.mxu0  ;;  %v9208_v30 = vrot.slane %v1560_v8, %v12653_v52  ;;  %12654 = vst [vmem:[#allocation47_spill] sm:$0xff] %v9210_v40 }
 0x165   : > { %v9139_v56 = vpop.f32.mrf.mxu0 }
 0x167   : > { %v9141_v27 = vpop.f32.mrf.mxu0 }
 0x169   : > { %v9143_v9 = vpop.f32.mrf.mxu0 }
 0x16b   : > { %v9145_v24 = vpop.f32.mrf.mxu0 }
 0x16d   : > { %v9147_v12 = vpop.f32.mrf.mxu0 }
 0x16f   : > { %v9151_v15 = vpop.f32.mrf.mxu0 }
 0x171   : > { %v9153_v60 = vpop.f32.mrf.mxu0 }
 0x173   : > { %v9157_v2 = vpop.f32.mrf.mxu0 }
 0x175   : > { %v9159_v57 = vpop.f32.mrf.mxu0 }
 0x177   : > { %v9163_v43 = vpop.f32.mrf.mxu0 }
 0x179   : > { %v9165_v49 = vpop.f32.mrf.mxu0 }
 0x17b   : > { %v9169_v42 = vpop.f32.mrf.mxu0 }
 0x17d   : > { %v9171_v36 = vpop.f32.mrf.mxu0 }
 0x17f   : > { %v9175_v33 = vpop.f32.mrf.mxu0 }
 0x181   : > { %v9177_v29 = vpop.f32.mrf.mxu0 }
 0x183   : > { %v9183_v16 = vpop.f32.mrf.mxu0 }
 0x185   : > { %v9185_v14 = vpop.f32.mrf.mxu0 }
 0x187   : > { %v9194_v28 = vpop.f32.mrf.mxu0 }
 0x189   : > { %v1321_v51 = vpop.f32.mrf.mxu0 }
 0x18a   : > { %v1500_v54 = vadd.f32 %v1321_v51, %v943_v31  ;;  %v951_v51 = vadd.f32 %v950_v6, %v8800_v58  ;;  %v9220_v31 = vpop.f32.mrf.mxu1  ;;  %v7041_v6 = vld [vmem:[%s12594_s3 + $0x200] sm:$0xf]  ;;  %v957_v58 = vadd.f32 %v956_v5, %v8815_v0  ;;  %v961_v0 = vadd.f32 %v9139_v56, %v8822_v3 }
 0x18b   : > { %v1323_v62 = vpop.f32.mrf.mxu0 }
 0x18c   : > { %v1501_v38 = vadd.f32 %v1323_v62, %v945_v47  ;;  %v1572_v59 = vadd.f32 %v9203_v63, %v1500_v54  ;;  %v6957_v54 = vld [vmem:[%s12594_s3 + $0x150] sm:$0xf] }
 0x18d   : > { %v1327_v50 = vpop.f32.mrf.mxu0 }
 0x18e   : > { %v1573_v52 = vadd.f32 %v9208_v30, %v1501_v38  ;;  %v1502_v8 = vadd.f32 %v1327_v50, %v949_v21  ;;  %v1632_v53 = vmax.f32 %v1572_v59, 0.0  ;;  %v9240_v21 = vpop.f32.mrf.mxu1  ;;  %v6955_v50 = vld [vmem:[%s12594_s3 + $0x140] sm:$0xff] }
 0x18f   : > { %v1329_v39 = vpop.f32.mrf.mxu0 }
 0x190   : > { %v1633_v40 = vmax.f32 %v1573_v52, 0.0  ;;  %v1503_v41 = vadd.f32 %v1329_v39, %v951_v51  ;;  %v1574_v47 = vadd.f32 %v9203_v63, %v1502_v8  ;;  %v963_v51 = vadd.f32 %v9141_v27, %v8835_v10  ;;  %v6954_v52 = vld [vmem:[%s12594_s3 + $0x138] sm:$0xff]  ;;  %v9258_v8 = vpop.f32.mrf.mxu1 }
 0x191   : > { %v1333_v62 = vpop.f32.mrf.mxu0 }
 0x192   : > { %v1575_v25 = vadd.f32 %v9208_v30, %v1503_v41  ;;  %v1504_v46 = vadd.f32 %v1333_v62, %v955_v55  ;;  %6856 = vmatprep.mubr.msk.f32.mxu1 %vm1713_vm4, %v1633_v40  ;;  %6907 = vmatprep.mubr.msk.f32.mxu0 %vm1713_vm4, %v1633_v40  ;;  %v1634_v40 = vmax.f32 %v1574_v47, 0.0 }
 0x193   : > { %v1335_v38 = vpop.f32.mrf.mxu0  ;;  %1869 = vmatmul.mubr.f32.vlgmr.msra.gmra.mxu1 %v1632_v53  ;;  %2106 = vmatmul.mubr.f32.vlgmr.msra.gmra.mxu0 %v1632_v53  ;;  %v967_v53 = vadd.f32 %v9143_v9, %v8842_v13  ;;  %v6952_v13 = vld [vmem:[%s12594_s3 + $0x128] sm:$0xff]  ;;  %v9274_v9 = vpop.f32.mrf.mxu1 }
 0x194   : > { %v1635_v41 = vmax.f32 %v1575_v25, 0.0  ;;  %v1505_v55 = vadd.f32 %v1335_v38, %v957_v58  ;;  %6960 = vmatpush1.msk.msra.mxu1 %vm2625_vm3, %v6957_v54  ;;  %7044 = vmatpush1.msk.msra.mxu0 %vm2625_vm3, %v7041_v6  ;;  %v1576_v5 = vadd.f32 %v9203_v63, %v1504_v46  ;;  %v6953_v6 = vld [vmem:[%s12594_s3 + $0x130] sm:$0xff]  ;;  %v969_v58 = vadd.f32 %v9145_v24, %v8852_v20 }
 0x195   : > { %v1339_v59 = vpop.f32.mrf.mxu0  ;;  %2644 = vmatprep.subr.mxu1 %v6956_v48  ;;  %3333 = vmatprep.subr.mxu0 %v7040_v4  ;;  %v973_v4 = vadd.f32 %v9147_v12, %v8861_v17  ;;  %v6950_v17 = vld [vmem:[%s12594_s3 + $0x118] sm:$0xff]  ;;  %v9290_v12 = vpop.f32.mrf.mxu1 }
 0x196   : > { %v1577_v3 = vadd.f32 %v9208_v30, %v1505_v55  ;;  %v1506_v56 = vadd.f32 %v1339_v59, %v961_v0  ;;  %6857 = vmatprep.mubr.msk.f32.mxu1 %vm1713_vm4, %v1635_v41  ;;  %6908 = vmatprep.mubr.msk.f32.mxu0 %vm1713_vm4, %v1635_v41  ;;  %v1636_v47 = vmax.f32 %v1576_v5, 0.0  ;;  %v6951_v55 = vld [vmem:[%s12594_s3 + $0x120] sm:$0xff] }
 0x197   : > { %v1341_v39 = vpop.f32.mrf.mxu0  ;;  %1874 = vmatmul.mubr.f32.gmra.mxu1 %v1634_v40  ;;  %2111 = vmatmul.mubr.f32.gmra.mxu0 %v1634_v40  ;;  %v975_v40 = vadd.f32 %v9151_v15, %v8871_v19 }
 0x198   : > { %v1637_v10 = vmax.f32 %v1577_v3, 0.0  ;;  %v1507_v27 = vadd.f32 %v1341_v39, %v963_v51  ;;  %2645 = vmatpush1.msra.mxu1 %v6955_v50  ;;  %v1578_v62 = vadd.f32 %v9203_v63, %v1506_v56  ;;  %v979_v51 = vadd.f32 %v9153_v60, %v8878_v23  ;;  %v6949_v39 = vld [vmem:[%s12594_s3 + $0x110] sm:$0xff]  ;;  %v6948_v23 = vld [vmem:[%s12594_s3 + $0x108] sm:$0xff]  ;;  %v9306_v60 = vpop.f32.mrf.mxu1 }
 0x199   : > { %v1345_v54 = vpop.f32.mrf.mxu0  ;;  %2646 = vmatprep.subr.mxu1 %v6954_v52 }
 0x19a   : > { %v1579_v25 = vadd.f32 %v9208_v30, %v1507_v27  ;;  %v1508_v46 = vadd.f32 %v1345_v54, %v967_v53  ;;  %6858 = vmatprep.mubr.msk.f32.mxu1 %vm1713_vm4, %v1637_v10  ;;  %6909 = vmatprep.mubr.msk.f32.mxu0 %vm1713_vm4, %v1637_v10  ;;  %v1638_v38 = vmax.f32 %v1578_v62, 0.0  ;;  %v981_v53 = vadd.f32 %v9157_v2, %v8891_v37 }
 0x19b   : > { %v1347_v48 = vpop.f32.mrf.mxu0  ;;  %1879 = vmatmul.mubr.f32.gmra.mxu1 %v1636_v47  ;;  %2116 = vmatmul.mubr.f32.gmra.mxu0 %v1636_v47  ;;  %v985_v62 = vadd.f32 %v9159_v57, %v8898_v32  ;;  %v9319_v32 = vpop.f32.mrf.mxu1 }
 0x19c   : > { %v1639_v20 = vmax.f32 %v1579_v25, 0.0  ;;  %v1509_v24 = vadd.f32 %v1347_v48, %v969_v58  ;;  %2647 = vmatpush1.msra.mxu1 %v6953_v6  ;;  %v1580_v0 = vadd.f32 %v9203_v63, %v1508_v46  ;;  %v6947_v25 = vld [vmem:[%s12594_s3 + $0x100] sm:$0xff]  ;;  %v987_v46 = vadd.f32 %v9163_v43, %v8911_v45 }
 0x19d   : > { %v1351_v41 = vpop.f32.mrf.mxu0  ;;  %2648 = vmatprep.subr.mxu1 %v6952_v13 }
 0x19e   : > { %v1581_v5 = vadd.f32 %v9208_v30, %v1509_v24  ;;  %v1510_v59 = vadd.f32 %v1351_v41, %v973_v4  ;;  %6859 = vmatprep.mubr.msk.f32.mxu1 %vm1713_vm4, %v1639_v20  ;;  %6910 = vmatprep.mubr.msk.f32.mxu0 %vm1713_vm4, %v1639_v20  ;;  %v1640_v3 = vmax.f32 %v1580_v0, 0.0  ;;  %v991_v4 = vadd.f32 %v9165_v49, %v8921_v44 }
 0x19f   : > { %v1353_v50 = vpop.f32.mrf.mxu0  ;;  %1884 = vmatmul.mubr.f32.gmra.mxu1 %v1638_v38  ;;  %2121 = vmatmul.mubr.f32.gmra.mxu0 %v1638_v38  ;;  %v993_v0 = vadd.f32 %v9169_v42, %v8933_v61  ;;  %v997_v49 = vadd.f32 %v9171_v36, %v8943_v1  ;;  %v1003_v1 = vadd.f32 %v9177_v29, %v8961_v11 }
 0x1a0   : > { %v1641_v19 = vmax.f32 %v1581_v5, 0.0  ;;  %v1511_v15 = vadd.f32 %v1353_v50, %v975_v40  ;;  %2649 = vmatpush1.msra.mxu1 %v6951_v55  ;;  %v1582_v56 = vadd.f32 %v9203_v63, %v1510_v59  ;;  %v9329_v40 = vpop.f32.mrf.mxu1  ;;  %v999_v50 = vadd.f32 %v9175_v33, %v8954_v7 }
 0x1a1   : > { %v1357_v52 = vpop.f32.mrf.mxu0  ;;  %2650 = vmatprep.subr.mxu1 %v6950_v17  ;;  %v1009_v11 = vadd.f32 %v9185_v14, %v8983_v18  ;;  %v1015_v18 = vadd.f32 %v9149_v26, %v9001_v34  ;;  %v12657_v34 = vld [vmem:[#allocation6_spill] sm:$0xff]  ;;  %v12658_v26 = vld [vmem:[#allocation41_spill] sm:$0xff] }
 0x1a2   : > { %v1583_v10 = vadd.f32 %v9208_v30, %v1511_v15  ;;  %v1512_v27 = vadd.f32 %v1357_v52, %v979_v51  ;;  %6860 = vmatprep.mubr.msk.f32.mxu1 %vm1713_vm4, %v1641_v19  ;;  %6911 = vmatprep.mubr.msk.f32.mxu0 %vm1713_vm4, %v1641_v19  ;;  %v1642_v54 = vmax.f32 %v1582_v56, 0.0  ;;  %v9339_v15 = vpop.f32.mrf.mxu1 }
 0x1a3   : > { %v1359_v47 = vpop.f32.mrf.mxu0  ;;  %1889 = vmatmul.mubr.f32.gmra.mxu1 %v1640_v3  ;;  %2126 = vmatmul.mubr.f32.gmra.mxu0 %v1640_v3 }
 0x1a4   : > { %v1643_v37 = vmax.f32 %v1583_v10, 0.0  ;;  %v1513_v2 = vadd.f32 %v1359_v47, %v981_v53  ;;  %2651 = vmatpush1.msra.mxu1 %v6949_v39  ;;  %v1584_v6 = vadd.f32 %v9203_v63, %v1512_v27  ;;  %v1005_v39 = vadd.f32 %v9183_v16, %v8973_v22  ;;  %v9349_v27 = vpop.f32.mrf.mxu1 }
 0x1a5   : > { %v1363_v58 = vpop.f32.mrf.mxu0  ;;  %2652 = vmatprep.subr.mxu1 %v6948_v23 }
 0x1a6   : > { %v1585_v13 = vadd.f32 %v9208_v30, %v1513_v2  ;;  %v1514_v48 = vadd.f32 %v1363_v58, %v985_v62  ;;  %6861 = vmatprep.mubr.msk.f32.mxu1 %vm1713_vm4, %v1643_v37  ;;  %6912 = vmatprep.mubr.msk.f32.mxu0 %vm1713_vm4, %v1643_v37  ;;  %v1644_v38 = vmax.f32 %v1584_v6, 0.0  ;;  %v1011_v37 = vadd.f32 %v9194_v28, %v8994_v35  ;;  %v9359_v6 = vpop.f32.mrf.mxu1 }
 0x1a7   : > { %v1365_v57 = vpop.f32.mrf.mxu0  ;;  %1894 = vmatmul.mubr.f32.gmra.mxu1 %v1642_v54  ;;  %2131 = vmatmul.mubr.f32.gmra.mxu0 %v1642_v54 }
 0x1a8   : > { %v1645_v20 = vmax.f32 %v1585_v13, 0.0  ;;  %v1515_v24 = vadd.f32 %v1365_v57, %v987_v46  ;;  %2653 = vmatpush1.msra.mxu1 %v6947_v25  ;;  %v1586_v45 = vadd.f32 %v9203_v63, %v1514_v48  ;;  %v12655_v13 = vld [vmem:[#allocation5_spill] sm:$0xff]  ;;  %v12656_v48 = vld [vmem:[#allocation40_spill] sm:$0xff] }
 0x1a9   : > { %v1369_v43 = vpop.f32.mrf.mxu0  ;;  %v1017_v57 = vadd.f32 %v12656_v48, %v12655_v13  ;;  %v12669_v48 = vld [vmem:[#allocation12_spill] sm:$0xff] }
 0x1aa   : > { %v1587_v41 = vadd.f32 %v9208_v30, %v1515_v24  ;;  %v1516_v55 = vadd.f32 %v1369_v43, %v991_v4  ;;  %6862 = vmatprep.mubr.msk.f32.mxu1 %vm1713_vm4, %v1645_v20  ;;  %6913 = vmatprep.mubr.msk.f32.mxu0 %vm1713_vm4, %v1645_v20  ;;  %v1646_v17 = vmax.f32 %v1586_v45, 0.0  ;;  %v9369_v24 = vpop.f32.mrf.mxu1  ;;  %v1021_v45 = vadd.f32 %v12658_v26, %v12657_v34 }
 0x1ab   : > { %v1371_v44 = vpop.f32.mrf.mxu0  ;;  %1899 = vmatmul.mubr.f32.gmra.mxu1 %v1644_v38  ;;  %2136 = vmatmul.mubr.f32.gmra.mxu0 %v1644_v38 }
 0x1ac   : > { %v1647_v5 = vmax.f32 %v1587_v41, 0.0  ;;  %v1517_v59 = vadd.f32 %v1371_v44, %v993_v0  ;;  %v1588_v61 = vadd.f32 %v9203_v63, %v1516_v55 }
 0x1ad   : > { %v1375_v42 = vpop.f32.mrf.mxu0 }
 0x1ae   : > { %v1589_v51 = vadd.f32 %v9208_v30, %v1517_v59  ;;  %v1518_v19 = vadd.f32 %v1375_v42, %v997_v49  ;;  %6863 = vmatprep.mubr.msk.f32.mxu1 %vm1713_vm4, %v1647_v5  ;;  %6914 = vmatprep.mubr.msk.f32.mxu0 %vm1713_vm4, %v1647_v5  ;;  %v1648_v52 = vmax.f32 %v1588_v61, 0.0  ;;  %v12659_v49 = vld [vmem:[#allocation7_spill] sm:$0xff]  ;;  %v12660_v5 = vld [vmem:[#allocation42_spill] sm:$0xff]  ;;  %v9379_v42 = vpop.f32.mrf.mxu1 }
 0x1af   : > { %v1377_v3 = vpop.f32.mrf.mxu0  ;;  %1904 = vmatmul.mubr.f32.gmra.mxu1 %v1646_v17  ;;  %2141 = vmatmul.mubr.f32.gmra.mxu0 %v1646_v17  ;;  %v1023_v59 = vadd.f32 %v12660_v5, %v12659_v49 }
 0x1b0   : > { %v1649_v36 = vmax.f32 %v1589_v51, 0.0  ;;  %v1519_v56 = vadd.f32 %v1377_v3, %v999_v50  ;;  %v1590_v7 = vadd.f32 %v9203_v63, %v1518_v19  ;;  %v12661_v51 = vld [vmem:[#allocation8_spill] sm:$0xff]  ;;  %v12662_v19 = vld [vmem:[#allocation43_spill] sm:$0xff] }
 0x1b1   : > { %v1381_v33 = vpop.f32.mrf.mxu0  ;;  %v1027_v3 = vadd.f32 %v12662_v19, %v12661_v51 }
 0x1b2   : > { %v1591_v53 = vadd.f32 %v9208_v30, %v1519_v56  ;;  %v1520_v10 = vadd.f32 %v1381_v33, %v1003_v1  ;;  %6864 = vmatprep.mubr.msk.f32.mxu1 %vm1713_vm4, %v1649_v36  ;;  %6915 = vmatprep.mubr.msk.f32.mxu0 %vm1713_vm4, %v1649_v36  ;;  %v1650_v62 = vmax.f32 %v1590_v7, 0.0  ;;  %v12663_v33 = vld [vmem:[#allocation9_spill] sm:$0xff] }
 0x1b3   : > { %v1383_v23 = vpop.f32.mrf.mxu0  ;;  %1909 = vmatmul.mubr.f32.gmra.mxu1 %v1648_v52  ;;  %2146 = vmatmul.mubr.f32.gmra.mxu0 %v1648_v52 }
 0x1b4   : > { %v1651_v29 = vmax.f32 %v1591_v53, 0.0  ;;  %v1521_v47 = vadd.f32 %v1383_v23, %v1005_v39  ;;  %v1592_v22 = vadd.f32 %v9203_v63, %v1520_v10  ;;  %v12664_v39 = vld [vmem:[#allocation45_spill] sm:$0xff] }
 0x1b5   : > { %v1387_v16 = vpop.f32.mrf.mxu0  ;;  %v1029_v53 = vadd.f32 %v12664_v39, %v12663_v33 }
 0x1b6   : > { %v1593_v2 = vadd.f32 %v9208_v30, %v1521_v47  ;;  %v1522_v54 = vadd.f32 %v1387_v16, %v1009_v11  ;;  %6865 = vmatprep.mubr.msk.f32.mxu1 %vm1713_vm4, %v1651_v29  ;;  %6916 = vmatprep.mubr.msk.f32.mxu0 %vm1713_vm4, %v1651_v29  ;;  %v1652_v46 = vmax.f32 %v1592_v22, 0.0  ;;  %v9389_v11 = vpop.f32.mrf.mxu1  ;;  %v12665_v47 = vld [vmem:[#allocation10_spill] sm:$0xff] }
 0x1b7   : > { %v1389_v58 = vpop.f32.mrf.mxu0  ;;  %1914 = vmatmul.mubr.f32.gmra.mxu1 %v1650_v62  ;;  %2151 = vmatmul.mubr.f32.gmra.mxu0 %v1650_v62  ;;  %v12666_v62 = vld [vmem:[#allocation46_spill] sm:$0xff] }
 0x1b8   : > { %v1653_v14 = vmax.f32 %v1593_v2, 0.0  ;;  %v1523_v25 = vadd.f32 %v1389_v58, %v1011_v37  ;;  %v1594_v35 = vadd.f32 %v9203_v63, %v1522_v54  ;;  %v1033_v22 = vadd.f32 %v12666_v62, %v12665_v47 }
 0x1b9   : > { %v1393_v28 = vpop.f32.mrf.mxu0 }
 0x1ba   : > { %v1595_v4 = vadd.f32 %v9208_v30, %v1523_v25  ;;  %v1524_v20 = vadd.f32 %v1393_v28, %v1015_v18  ;;  %6866 = vmatprep.mubr.msk.f32.mxu1 %vm1713_vm4, %v1653_v14  ;;  %6917 = vmatprep.mubr.msk.f32.mxu0 %vm1713_vm4, %v1653_v14  ;;  %v1654_v41 = vmax.f32 %v1594_v35, 0.0  ;;  %v12667_v18 = vld [vmem:[#allocation11_spill] sm:$0xff]  ;;  %v9399_v28 = vpop.f32.mrf.mxu1 }
 0x1bb   : > { %v1395_v38 = vpop.f32.mrf.mxu0  ;;  %1919 = vmatmul.mubr.f32.gmra.mxu1 %v1652_v46  ;;  %2156 = vmatmul.mubr.f32.gmra.mxu0 %v1652_v46  ;;  %v12668_v14 = vld [vmem:[#allocation47_spill] sm:$0xff] }
 0x1bc   : > { %v1655_v43 = vmax.f32 %v1595_v4, 0.0  ;;  %v1525_v0 = vadd.f32 %v1395_v38, %v1017_v57  ;;  %v1596_v55 = vadd.f32 %v9203_v63, %v1524_v20  ;;  %v1035_v25 = vadd.f32 %v12668_v14, %v12667_v18  ;;  %v7037_v14 = vld [vmem:[%s12594_s3 + $0x1e0] sm:$0xff] }
 0x1bd   : > { %v1399_v44 = vpop.f32.mrf.mxu0  ;;  %v1039_v57 = vadd.f32 %v9220_v31, %v12669_v48  ;;  %v12671_v31 = vld [vmem:[#allocation14_spill] sm:$0xff] }
 0x1be   : > { %v1597_v17 = vadd.f32 %v9208_v30, %v1525_v0  ;;  %v1526_v61 = vadd.f32 %v1399_v44, %v1021_v45  ;;  %6867 = vmatprep.mubr.msk.f32.mxu1 %vm1713_vm4, %v1655_v43  ;;  %6918 = vmatprep.mubr.msk.f32.mxu0 %vm1713_vm4, %v1655_v43  ;;  %v1656_v56 = vmax.f32 %v1596_v55, 0.0  ;;  %v12670_v45 = vld [vmem:[#allocation13_spill] sm:$0xff]  ;;  %v9409_v55 = vpop.f32.mrf.mxu1  ;;  %v1045_v49 = vadd.f32 %v9258_v8, %v12671_v31  ;;  %v12673_v8 = vld [vmem:[#allocation16_spill] sm:$0xff] }
 0x1bf   : > { %v1401_v50 = vpop.f32.mrf.mxu0  ;;  %1924 = vmatmul.mubr.f32.gmra.mxu1 %v1654_v41  ;;  %2161 = vmatmul.mubr.f32.gmra.mxu0 %v1654_v41  ;;  %v1041_v43 = vadd.f32 %v9240_v21, %v12670_v45 }
 0x1c0   : > { %v1657_v1 = vmax.f32 %v1597_v17, 0.0  ;;  %v1527_v36 = vadd.f32 %v1401_v50, %v1023_v59  ;;  %v1598_v52 = vadd.f32 %v9203_v63, %v1526_v61  ;;  %v12672_v50 = vld [vmem:[#allocation15_spill] sm:$0xff] }
 0x1c1   : > { %v1405_v7 = vpop.f32.mrf.mxu0  ;;  %v1047_v51 = vadd.f32 %v9274_v9, %v12672_v50  ;;  %v6945_v50 = vld [vmem:[%s12594_s3 + $0xf0] sm:$0xff] }
 0x1c2   : > { %v1599_v10 = vadd.f32 %v9208_v30, %v1527_v36  ;;  %v1528_v23 = vadd.f32 %v1405_v7, %v1027_v3  ;;  %6868 = vmatprep.mubr.msk.f32.mxu1 %vm1713_vm4, %v1657_v1  ;;  %6919 = vmatprep.mubr.msk.f32.mxu0 %vm1713_vm4, %v1657_v1  ;;  %v1658_v2 = vmax.f32 %v1598_v52, 0.0  ;;  %v9419_v1 = vpop.f32.mrf.mxu1 }
 0x1c3   : > { %v1407_v29 = vpop.f32.mrf.mxu0  ;;  %1929 = vmatmul.mubr.f32.gmra.mxu1 %v1656_v56  ;;  %2166 = vmatmul.mubr.f32.gmra.mxu0 %v1656_v56  ;;  %v1051_v56 = vadd.f32 %v9290_v12, %v12673_v8  ;;  %v7039_v12 = vld [vmem:[%s12594_s3 + $0x1f0] sm:$0xff]  ;;  %v12680_v8 = vld [vmem:[#allocation23_spill] sm:$0xff] }
 0x1c4   : > { %v1659_v16 = vmax.f32 %v1599_v10, 0.0  ;;  %v1529_v37 = vadd.f32 %v1407_v29, %v1029_v53  ;;  %v1600_v54 = vadd.f32 %v9203_v63, %v1528_v23  ;;  %v12674_v53 = vld [vmem:[#allocation17_spill] sm:$0xff]  ;;  %v9432_v47 = vpop.f32.mrf.mxu1  ;;  %3334 = vmatpush1.msra.mxu0 %v7039_v12 }
 0x1c5   : > { %v1411_v58 = vpop.f32.mrf.mxu0  ;;  %v1053_v10 = vadd.f32 %v9306_v60, %v12674_v53  ;;  %v7038_v60 = vld [vmem:[%s12594_s3 + $0x1e8] sm:$0xff] }
 0x1c6   : > { %v1601_v46 = vadd.f32 %v9208_v30, %v1529_v37  ;;  %v1530_v35 = vadd.f32 %v1411_v58, %v1033_v22  ;;  %6869 = vmatprep.mubr.msk.f32.mxu1 %vm1713_vm4, %v1659_v16  ;;  %6920 = vmatprep.mubr.msk.f32.mxu0 %vm1713_vm4, %v1659_v16  ;;  %v1660_v38 = vmax.f32 %v1600_v54, 0.0  ;;  %v12675_v22 = vld [vmem:[#allocation18_spill] sm:$0xff]  ;;  %v9451_v48 = vpop.f32.mrf.mxu1 }
 0x1c7   : > { %v1413_v13 = vpop.f32.mrf.mxu0  ;;  %1934 = vmatmul.mubr.f32.gmra.mxu1 %v1658_v2  ;;  %2171 = vmatmul.mubr.f32.gmra.mxu0 %v1658_v2  ;;  %v1057_v16 = vadd.f32 %v9319_v32, %v12675_v22  ;;  %v7036_v32 = vld [vmem:[%s12594_s3 + $0x1d8] sm:$0xff]  ;;  %v7031_v22 = vld [vmem:[%s12594_s3 + $0x1b0] sm:$0xff] }
 0x1c8   : > { %v1661_v4 = vmax.f32 %v1601_v46, 0.0  ;;  %v1531_v20 = vadd.f32 %v1413_v13, %v1035_v25  ;;  %v1602_v34 = vadd.f32 %v9203_v63, %v1530_v35  ;;  %3335 = vmatprep.subr.mxu0 %v7038_v60  ;;  %v12676_v25 = vld [vmem:[#allocation19_spill] sm:$0xff] }
 0x1c9   : > { %v1417_v26 = vpop.f32.mrf.mxu0  ;;  %v1059_v46 = vadd.f32 %v9329_v40, %v12676_v25  ;;  %3336 = vmatpush1.msra.mxu0 %v7037_v14 }
 0x1ca   : > { %v1603_v0 = vadd.f32 %v9208_v30, %v1531_v20  ;;  %v1532_v41 = vadd.f32 %v1417_v26, %v1039_v57  ;;  %6870 = vmatprep.mubr.msk.f32.mxu1 %vm1713_vm4, %v1661_v4  ;;  %6921 = vmatprep.mubr.msk.f32.mxu0 %vm1713_vm4, %v1661_v4  ;;  %v1662_v17 = vmax.f32 %v1602_v34, 0.0  ;;  %v12677_v4 = vld [vmem:[#allocation20_spill] sm:$0xff] }
 0x1cb   : > { %v1419_v44 = vpop.f32.mrf.mxu0  ;;  %1939 = vmatmul.mubr.f32.gmra.mxu1 %v1660_v38  ;;  %2176 = vmatmul.mubr.f32.gmra.mxu0 %v1660_v38  ;;  %v1063_v20 = vadd.f32 %v9339_v15, %v12677_v4  ;;  %v7034_v15 = vld [vmem:[%s12594_s3 + $0x1c8] sm:$0xff] }
 0x1cc   : > { %v1663_v5 = vmax.f32 %v1603_v0, 0.0  ;;  %v1533_v59 = vadd.f32 %v1419_v44, %v1041_v43  ;;  %v1604_v21 = vadd.f32 %v9203_v63, %v1532_v41  ;;  %3337 = vmatprep.subr.mxu0 %v7036_v32  ;;  %v7035_v43 = vld [vmem:[%s12594_s3 + $0x1d0] sm:$0xff] }
 0x1cd   : > { %v1423_v61 = vpop.f32.mrf.mxu0  ;;  %v12678_v0 = vld [vmem:[#allocation21_spill] sm:$0xff]  ;;  %3338 = vmatpush1.msra.mxu0 %v7035_v43  ;;  %v6939_v43 = vld [vmem:[%s12594_s3 + $0xc0] sm:$0xff] }
 0x1ce   : > { %v1605_v19 = vadd.f32 %v9208_v30, %v1533_v59  ;;  %v1534_v3 = vadd.f32 %v1423_v61, %v1045_v49  ;;  %6871 = vmatprep.mubr.msk.f32.mxu1 %vm1713_vm4, %v1663_v5  ;;  %6922 = vmatprep.mubr.msk.f32.mxu0 %vm1713_vm4, %v1663_v5  ;;  %v1664_v33 = vmax.f32 %v1604_v21, 0.0  ;;  %v1065_v41 = vadd.f32 %v9349_v27, %v12678_v0  ;;  %v9467_v49 = vpop.f32.mrf.mxu1  ;;  %v6946_v27 = vld [vmem:[%s12594_s3 + $0xf8] sm:$0xff] }
 0x1cf   : > { %v1425_v36 = vpop.f32.mrf.mxu0  ;;  %1944 = vmatmul.mubr.f32.gmra.mxu1 %v1662_v17  ;;  %2181 = vmatmul.mubr.f32.gmra.mxu0 %v1662_v17  ;;  %v12679_v59 = vld [vmem:[#allocation22_spill] sm:$0xff] }
 0x1d0   : > { %v1665_v52 = vmax.f32 %v1605_v19, 0.0  ;;  %v1535_v7 = vadd.f32 %v1425_v36, %v1047_v51  ;;  %v1606_v9 = vadd.f32 %v9203_v63, %v1534_v3  ;;  %v1069_v17 = vadd.f32 %v9359_v6, %v12679_v59  ;;  %2654 = vmatprep.subr.mxu1 %v6946_v27  ;;  %3339 = vmatprep.subr.mxu0 %v7034_v15  ;;  %v7033_v36 = vld [vmem:[%s12594_s3 + $0x1c0] sm:$0xff]  ;;  %v6944_v6 = vld [vmem:[%s12594_s3 + $0xe8] sm:$0xff] }
 0x1d1   : > { %v1429_v39 = vpop.f32.mrf.mxu0  ;;  %2655 = vmatpush1.msra.mxu1 %v6945_v50  ;;  %3340 = vmatpush1.msra.mxu0 %v7033_v36 }
 0x1d2   : > { %v1607_v23 = vadd.f32 %v9208_v30, %v1535_v7  ;;  %v1536_v29 = vadd.f32 %v1429_v39, %v1051_v56  ;;  %6872 = vmatprep.mubr.msk.f32.mxu1 %vm1713_vm4, %v1665_v52  ;;  %6923 = vmatprep.mubr.msk.f32.mxu0 %vm1713_vm4, %v1665_v52  ;;  %v1666_v54 = vmax.f32 %v1606_v9, 0.0  ;;  %v1071_v56 = vadd.f32 %v9369_v24, %v12680_v8  ;;  %v6943_v9 = vld [vmem:[%s12594_s3 + $0xe0] sm:$0xff]  ;;  %v9495_v39 = vpop.f32.mrf.mxu1  ;;  %v12681_v24 = vld [vmem:[#allocation24_spill] sm:$0xff] }
 0x1d3   : > { %v1431_v62 = vpop.f32.mrf.mxu0  ;;  %1949 = vmatmul.mubr.f32.gmra.mxu1 %v1664_v33  ;;  %2186 = vmatmul.mubr.f32.gmra.mxu0 %v1664_v33  ;;  %v7032_v33 = vld [vmem:[%s12594_s3 + $0x1b8] sm:$0xff] }
 0x1d4   : > { %v1667_v37 = vmax.f32 %v1607_v23, 0.0  ;;  %v1537_v2 = vadd.f32 %v1431_v62, %v1053_v10  ;;  %v1608_v58 = vadd.f32 %v9203_v63, %v1536_v29  ;;  %v1075_v10 = vadd.f32 %v9379_v42, %v12681_v24  ;;  %2656 = vmatprep.subr.mxu1 %v6944_v6  ;;  %3341 = vmatprep.subr.mxu0 %v7032_v33  ;;  %v9517_v14 = vpop.f32.mrf.mxu1  ;;  %v12688_v24 = vld [vmem:[#allocation31_spill] sm:$0xff] }
 0x1d5   : > { %v1435_v18 = vpop.f32.mrf.mxu0  ;;  %2657 = vmatpush1.msra.mxu1 %v6943_v9  ;;  %3342 = vmatpush1.msra.mxu0 %v7031_v22 }
 0x1d6   : > { %v1609_v35 = vadd.f32 %v9208_v30, %v1537_v2  ;;  %v1538_v13 = vadd.f32 %v1435_v18, %v1057_v16  ;;  %6873 = vmatprep.mubr.msk.f32.mxu1 %vm1713_vm4, %v1667_v37  ;;  %6924 = vmatprep.mubr.msk.f32.mxu0 %vm1713_vm4, %v1667_v37  ;;  %v1668_v34 = vmax.f32 %v1608_v58, 0.0  ;;  %v6942_v16 = vld [vmem:[%s12594_s3 + $0xd8] sm:$0xff]  ;;  %v12682_v37 = vld [vmem:[#allocation25_spill] sm:$0xff]  ;;  %v7030_v58 = vld [vmem:[%s12594_s3 + $0x1a8] sm:$0xff]  ;;  %v9539_v0 = vpop.f32.mrf.mxu1 }
 0x1d7   : > { %v1437_v57 = vpop.f32.mrf.mxu0  ;;  %1954 = vmatmul.mubr.f32.gmra.mxu1 %v1666_v54  ;;  %2191 = vmatmul.mubr.f32.gmra.mxu0 %v1666_v54  ;;  %v1077_v42 = vadd.f32 %v9389_v11, %v12682_v37  ;;  %v6941_v18 = vld [vmem:[%s12594_s3 + $0xd0] sm:$0xff]  ;;  %v12683_v11 = vld [vmem:[#allocation26_spill] sm:$0xff] }
 0x1d8   : > { %v1669_v40 = vmax.f32 %v1609_v35, 0.0  ;;  %v1539_v38 = vadd.f32 %v1437_v57, %v1059_v46  ;;  %v1610_v26 = vadd.f32 %v9203_v63, %v1538_v13  ;;  %v1081_v46 = vadd.f32 %v9399_v28, %v12683_v11  ;;  %2658 = vmatprep.subr.mxu1 %v6942_v16  ;;  %3343 = vmatprep.subr.mxu0 %v7030_v58  ;;  %v1106_v36 = vpop.f32.mrf.mxu1  ;;  %v12690_v58 = vld [vmem:[#allocation33_spill] sm:$0xff] }
 0x1d9   : > { %v1441_v45 = vpop.f32.mrf.mxu0  ;;  %2659 = vmatpush1.msra.mxu1 %v6941_v18  ;;  %v1101_v18 = vadd.f32 %v9517_v14, %v12690_v58 }
 0x1da   : > { %v1611_v44 = vadd.f32 %v9208_v30, %v1539_v38  ;;  %v1540_v31 = vadd.f32 %v1441_v45, %v1063_v20  ;;  %6874 = vmatprep.mubr.msk.f32.mxu1 %vm1713_vm4, %v1669_v40  ;;  %6925 = vmatprep.mubr.msk.f32.mxu0 %vm1713_vm4, %v1669_v40  ;;  %v1670_v51 = vmax.f32 %v1610_v26, 0.0  ;;  %v7029_v20 = vld [vmem:[%s12594_s3 + $0x1a0] sm:$0xff]  ;;  %v6940_v40 = vld [vmem:[%s12594_s3 + $0xc8] sm:$0xff]  ;;  %v7028_v45 = vld [vmem:[%s12594_s3 + $0x198] sm:$0xff] }
 0x1db   : > { %v1443_v5 = vpop.f32.mrf.mxu0  ;;  %1959 = vmatmul.mubr.f32.gmra.mxu1 %v1668_v34  ;;  %2196 = vmatmul.mubr.f32.gmra.mxu0 %v1668_v34  ;;  %v12684_v38 = vld [vmem:[#allocation27_spill] sm:$0xff] }
 0x1dc   : > { %v1671_v21 = vmax.f32 %v1611_v44, 0.0  ;;  %v1541_v61 = vadd.f32 %v1443_v5, %v1065_v41  ;;  %v1612_v19 = vadd.f32 %v9203_v63, %v1540_v31  ;;  %v1083_v28 = vadd.f32 %v9409_v55, %v12684_v38  ;;  %v12685_v55 = vld [vmem:[#allocation28_spill] sm:$0xff]  ;;  %3344 = vmatpush1.msra.mxu0 %v7029_v20  ;;  %2660 = vmatprep.subr.mxu1 %v6940_v40  ;;  %v7021_v38 = vld [vmem:[%s12594_s3 + $0x160] sm:$0xff] }
 0x1dd   : > { %v1447_v3 = vpop.f32.mrf.mxu0  ;;  %v1087_v44 = vadd.f32 %v9419_v1, %v12685_v55  ;;  %3345 = vmatprep.subr.mxu0 %v7028_v45  ;;  %2661 = vmatpush1.msra.mxu1 %v6939_v43 }
 0x1de   : > { %v1613_v52 = vadd.f32 %v9208_v30, %v1541_v61  ;;  %v1542_v7 = vadd.f32 %v1447_v3, %v1069_v17  ;;  %6875 = vmatprep.mubr.msk.f32.mxu1 %vm1713_vm4, %v1671_v21  ;;  %6926 = vmatprep.mubr.msk.f32.mxu0 %vm1713_vm4, %v1671_v21  ;;  %v1672_v12 = vmax.f32 %v1612_v19, 0.0  ;;  %v7027_v17 = vld [vmem:[%s12594_s3 + $0x190] sm:$0xff]  ;;  %v6938_v21 = vld [vmem:[%s12594_s3 + $0xb8] sm:$0xff]  ;;  %v7026_v19 = vld [vmem:[%s12594_s3 + $0x188] sm:$0xff] }
 0x1df   : > { %v1449_v53 = vpop.f32.mrf.mxu0  ;;  %1964 = vmatmul.mubr.f32.gmra.mxu1 %v1670_v51  ;;  %2201 = vmatmul.mubr.f32.gmra.mxu0 %v1670_v51  ;;  %v12686_v61 = vld [vmem:[#allocation29_spill] sm:$0xff] }
 0x1e0   : > { %v1673_v23 = vmax.f32 %v1613_v52, 0.0  ;;  %v1543_v29 = vadd.f32 %v1449_v53, %v1071_v56  ;;  %v1614_v62 = vadd.f32 %v9203_v63, %v1542_v7  ;;  %v1089_v1 = vadd.f32 %v9432_v47, %v12686_v61  ;;  %v6937_v3 = vld [vmem:[%s12594_s3 + $0xb0] sm:$0xff]  ;;  %v12687_v47 = vld [vmem:[#allocation30_spill] sm:$0xff]  ;;  %3346 = vmatpush1.msra.mxu0 %v7027_v17  ;;  %2662 = vmatprep.subr.mxu1 %v6938_v21  ;;  %v7025_v53 = vld [vmem:[%s12594_s3 + $0x180] sm:$0xff] }
 0x1e1   : > { %v1453_v60 = vpop.f32.mrf.mxu0  ;;  %v1093_v8 = vadd.f32 %v9451_v48, %v12687_v47  ;;  %3347 = vmatprep.subr.mxu0 %v7026_v19  ;;  %2663 = vmatpush1.msra.mxu1 %v6937_v3 }
 0x1e2   : > { %v1615_v2 = vadd.f32 %v9208_v30, %v1543_v29  ;;  %v1544_v54 = vadd.f32 %v1453_v60, %v1075_v10  ;;  %6876 = vmatprep.mubr.msk.f32.mxu1 %vm1713_vm4, %v1673_v23  ;;  %6927 = vmatprep.mubr.msk.f32.mxu0 %vm1713_vm4, %v1673_v23  ;;  %v1674_v32 = vmax.f32 %v1614_v62, 0.0  ;;  %v1095_v10 = vadd.f32 %v9467_v49, %v12688_v24  ;;  %v7024_v29 = vld [vmem:[%s12594_s3 + $0x178] sm:$0xff]  ;;  %v12689_v60 = vld [vmem:[#allocation32_spill] sm:$0xff] }
 0x1e3   : > { %v1455_v25 = vpop.f32.mrf.mxu0  ;;  %1969 = vmatmul.mubr.f32.gmra.mxu1 %v1672_v12  ;;  %2206 = vmatmul.mubr.f32.gmra.mxu0 %v1672_v12  ;;  %v1110_v12 = vpop.f32.mrf.mxu1  ;;  %v1099_v22 = vadd.f32 %v9495_v39, %v12689_v60  ;;  %v7022_v39 = vld [vmem:[%s12594_s3 + $0x168] sm:$0xff] }
 0x1e4   : > { %v1675_v35 = vmax.f32 %v1615_v2, 0.0  ;;  %v1545_v13 = vadd.f32 %v1455_v25, %v1077_v42  ;;  %v1616_v57 = vadd.f32 %v9203_v63, %v1544_v54  ;;  %3348 = vmatpush1.msra.mxu0 %v7025_v53  ;;  %v7023_v54 = vld [vmem:[%s12594_s3 + $0x170] sm:$0xff] }
 0x1e5   : > { %v1459_v4 = vpop.f32.mrf.mxu0  ;;  %3349 = vmatprep.subr.mxu0 %v7024_v29 }
 0x1e6   : > { %v1617_v34 = vadd.f32 %v9208_v30, %v1545_v13  ;;  %v1546_v26 = vadd.f32 %v1459_v4, %v1081_v46  ;;  %6877 = vmatprep.mubr.msk.f32.mxu1 %vm1713_vm4, %v1675_v35  ;;  %6928 = vmatprep.mubr.msk.f32.mxu0 %vm1713_vm4, %v1675_v35  ;;  %v1676_v5 = vmax.f32 %v1616_v57, 0.0  ;;  %v1112_v46 = vpop.f32.mrf.mxu1  ;;  %v12691_v13 = vld [vmem:[#allocation34_spill] sm:$0xff] }
 0x1e7   : > { %v1461_v41 = vpop.f32.mrf.mxu0  ;;  %1974 = vmatmul.mubr.f32.gmra.mxu1 %v1674_v32  ;;  %2211 = vmatmul.mubr.f32.gmra.mxu0 %v1674_v32  ;;  %v1105_v32 = vadd.f32 %v9539_v0, %v12691_v13 }
 0x1e8   : > { %v1677_v31 = vmax.f32 %v1617_v34, 0.0  ;;  %v1547_v15 = vadd.f32 %v1461_v41, %v1083_v28  ;;  %v1618_v27 = vadd.f32 %v9203_v63, %v1546_v26  ;;  %3350 = vmatpush1.msra.mxu0 %v7023_v54  ;;  %v12692_v28 = vld [vmem:[#allocation35_spill] sm:$0xff]  ;;  %v1116_v43 = vpop.f32.mrf.mxu1  ;;  %v12693_v41 = vld [vmem:[#allocation36_spill] sm:$0xff] }
 0x1e9   : > { %v1465_v59 = vpop.f32.mrf.mxu0  ;;  %3351 = vmatprep.subr.mxu0 %v7022_v39  ;;  %v1107_v34 = vadd.f32 %v1106_v36, %v12692_v28  ;;  %v1111_v55 = vadd.f32 %v1110_v12, %v12693_v41 }
 0x1ea   : > { %v1619_v50 = vadd.f32 %v9208_v30, %v1547_v15  ;;  %v1548_v51 = vadd.f32 %v1465_v59, %v1087_v44  ;;  %6878 = vmatprep.mubr.msk.f32.mxu1 %vm1713_vm4, %v1677_v31  ;;  %6929 = vmatprep.mubr.msk.f32.mxu0 %vm1713_vm4, %v1677_v31  ;;  %v1678_v7 = vmax.f32 %v1618_v27, 0.0  ;;  %v12694_v59 = vld [vmem:[#allocation37_spill] sm:$0xff] }
 0x1eb   : > { %v1467_v6 = vpop.f32.mrf.mxu0  ;;  %1979 = vmatmul.mubr.f32.gmra.mxu1 %v1676_v5  ;;  %2216 = vmatmul.mubr.f32.gmra.mxu0 %v1676_v5  ;;  %v1113_v17 = vadd.f32 %v1112_v46, %v12694_v59 }
 0x1ec   : > { %v1679_v56 = vmax.f32 %v1619_v50, 0.0  ;;  %v1549_v52 = vadd.f32 %v1467_v6, %v1089_v1  ;;  %v1620_v33 = vadd.f32 %v9203_v63, %v1548_v51  ;;  %3352 = vmatpush1.msra.mxu0 %v7021_v38  ;;  %v1118_v1 = vpop.f32.mrf.mxu1  ;;  %v12695_v51 = vld [vmem:[#allocation38_spill] sm:$0xff] }
 0x1ed   : > { %v1471_v9 = vpop.f32.mrf.mxu0  ;;  %v1117_v19 = vadd.f32 %v1116_v43, %v12695_v51  ;;  %v7147_v51 = vld [vmem:[%s12594_s3 + $0x360] sm:$0xf] }
 0x1ee   : > { %v1621_v23 = vadd.f32 %v9208_v30, %v1549_v52  ;;  %v1550_v48 = vadd.f32 %v1471_v9, %v1093_v8  ;;  %6879 = vmatprep.mubr.msk.f32.mxu1 %vm1713_vm4, %v1679_v56  ;;  %6930 = vmatprep.mubr.msk.f32.mxu0 %vm1713_vm4, %v1679_v56  ;;  %v1680_v37 = vmax.f32 %v1620_v33, 0.0  ;;  %v12696_v56 = vld [vmem:[#allocation39_spill] sm:$0xff] }
 0x1ef   : > { %v1473_v62 = vpop.f32.mrf.mxu0  ;;  %1984 = vmatmul.mubr.f32.gmra.mxu1 %v1678_v7  ;;  %2221 = vmatmul.mubr.f32.gmra.mxu0 %v1678_v7  ;;  %v1119_v52 = vadd.f32 %v1118_v1, %v12696_v56 }
 0x1f0   : > { %v1681_v16 = vmax.f32 %v1621_v23, 0.0  ;;  %v1551_v49 = vadd.f32 %v1473_v62, %v1095_v10  ;;  %v1622_v42 = vadd.f32 %v9203_v63, %v1550_v48  ;;  %v12697_v62 = vmov 0.0  }
 0x1f1   : > { %v1477_v2 = vpop.f32.mrf.mxu0 }
 0x1f2   : > { %v1623_v25 = vadd.f32 %v9208_v30, %v1551_v49  ;;  %v1552_v11 = vadd.f32 %v1477_v2, %v1099_v22  ;;  %6880 = vmatprep.mubr.msk.f32.mxu1 %vm1713_vm4, %v1681_v16  ;;  %6931 = vmatprep.mubr.msk.f32.mxu0 %vm1713_vm4, %v1681_v16  ;;  %v1682_v4 = vmax.f32 %v1622_v42, 0.0 }
 0x1f3   : > { %v1479_v35 = vpop.f32.mrf.mxu0  ;;  %1989 = vmatmul.mubr.f32.gmra.mxu1 %v1680_v37  ;;  %2226 = vmatmul.mubr.f32.gmra.mxu0 %v1680_v37 }
 0x1f4   : > { %v1683_v57 = vmax.f32 %v1623_v25, 0.0  ;;  %v1553_v14 = vadd.f32 %v1479_v35, %v1101_v18  ;;  %v1624_v20 = vadd.f32 %v9203_v63, %v1552_v11 }
 0x1f5   : > { %v1483_v40 = vpop.f32.mrf.mxu0 }
 0x1f6   : > { %v1625_v26 = vadd.f32 %v9208_v30, %v1553_v14  ;;  %v1554_v45 = vadd.f32 %v1483_v40, %v1105_v32  ;;  %6881 = vmatprep.mubr.msk.f32.mxu1 %vm1713_vm4, %v1683_v57  ;;  %6932 = vmatprep.mubr.msk.f32.mxu0 %vm1713_vm4, %v1683_v57  ;;  %v1684_v15 = vmax.f32 %v1624_v20, 0.0 }
 0x1f7   : > { %v1485_v0 = vpop.f32.mrf.mxu0  ;;  %1994 = vmatmul.mubr.f32.gmra.mxu1 %v1682_v4  ;;  %2231 = vmatmul.mubr.f32.gmra.mxu0 %v1682_v4 }
 0x1f8   : > { %v1685_v44 = vmax.f32 %v1625_v26, 0.0  ;;  %v1555_v31 = vadd.f32 %v1485_v0, %v1107_v34  ;;  %v1626_v5 = vadd.f32 %v9203_v63, %v1554_v45 }
 0x1f9   : > { %v1489_v27 = vpop.f32.mrf.mxu0 }
 0x1fa   : > { %v1627_v21 = vadd.f32 %v9208_v30, %v1555_v31  ;;  %v1556_v61 = vadd.f32 %v1489_v27, %v1111_v55  ;;  %6882 = vmatprep.mubr.msk.f32.mxu1 %vm1713_vm4, %v1685_v44  ;;  %6933 = vmatprep.mubr.msk.f32.mxu0 %vm1713_vm4, %v1685_v44  ;;  %v1686_v6 = vmax.f32 %v1626_v5, 0.0 }
 0x1fb   : > { %v1491_v50 = vpop.f32.mrf.mxu0  ;;  %1999 = vmatmul.mubr.f32.gmra.mxu1 %v1684_v15  ;;  %2236 = vmatmul.mubr.f32.gmra.mxu0 %v1684_v15 }
 0x1fc   : > { %v1687_v3 = vmax.f32 %v1627_v21, 0.0  ;;  %v1557_v36 = vadd.f32 %v1491_v50, %v1113_v17  ;;  %v1628_v47 = vadd.f32 %v9203_v63, %v1556_v61  ;;  %v2455_v50 = vld [vmem:[%s12594_s3 + $0xa0] sm:$0xf] }
 0x1fd   : > { %v1495_v8 = vpop.f32.mrf.mxu0 }
 0x1fe   : > { %v1629_v7 = vadd.f32 %v9208_v30, %v1557_v36  ;;  %v1558_v33 = vadd.f32 %v1495_v8, %v1117_v19  ;;  %6883 = vmatprep.mubr.msk.f32.mxu1 %vm1713_vm4, %v1687_v3  ;;  %6934 = vmatprep.mubr.msk.f32.mxu0 %vm1713_vm4, %v1687_v3  ;;  %v1688_v10 = vmax.f32 %v1628_v47, 0.0  ;;  %v2454_v3 = vld [vmem:[%s12594_s3 + $0x98] sm:$0xff] }
 0x1ff   : > { %v1497_v9 = vpop.f32.mrf.mxu0  ;;  %2004 = vmatmul.mubr.f32.gmra.mxu1 %v1686_v6  ;;  %2241 = vmatmul.mubr.f32.gmra.mxu0 %v1686_v6  ;;  %v7146_v36 = vld [vmem:[%s12594_s3 + $0x358] sm:$0xff] }
 0x200   : > { %v1689_v53 = vmax.f32 %v1629_v7, 0.0  ;;  %v1559_v24 = vadd.f32 %v1497_v9, %v1119_v52  ;;  %v1630_v23 = vadd.f32 %v9203_v63, %v1558_v33  ;;  %v2456_v63 = vld [vmem:[%s12594_s3 + $0xa8] sm:$0xf] }
 0x201   : > { %6990 = vmatprep.subr.msk.mxu1 %vm2625_vm3, %v2456_v63  ;;  %v7144_v63 = vld [vmem:[%s12594_s3 + $0x348] sm:$0xff] }
 0x202   : > { %v1631_v48 = vadd.f32 %v9208_v30, %v1559_v24  ;;  %6884 = vmatprep.mubr.msk.f32.mxu1 %vm1713_vm4, %v1689_v53  ;;  %6935 = vmatprep.mubr.msk.f32.mxu0 %vm1713_vm4, %v1689_v53  ;;  %v1690_v12 = vmax.f32 %v1630_v23, 0.0  ;;  %v7148_v30 = vld [vmem:[%s12594_s3 + $0x368] sm:$0xf]  ;;  %v2453_v23 = vld [vmem:[%s12594_s3 + $0x90] sm:$0xff] }
 0x203   : > { %2009 = vmatmul.mubr.f32.gmra.mxu1 %v1688_v10  ;;  %2246 = vmatmul.mubr.f32.gmra.mxu0 %v1688_v10 }
 0x204   : > { %v1691_v29 = vmax.f32 %v1631_v48, 0.0  ;;  %7149 = vmatprep.subr.msk.mxu0 %vm2625_vm3, %v7148_v30  ;;  %v7145_v48 = vld [vmem:[%s12594_s3 + $0x350] sm:$0xff] }
 0x206   : > { %6885 = vmatprep.mubr.msk.f32.mxu1 %vm1713_vm4, %v1691_v29  ;;  %6936 = vmatprep.mubr.msk.f32.mxu0 %vm1713_vm4, %v1691_v29 }
 0x207   : > { %2014 = vmatmul.mubr.f32.gmra.mxu1 %v1690_v12  ;;  %2251 = vmatmul.mubr.f32.gmra.mxu0 %v1690_v12  ;;  %v2452_v12 = vld [vmem:[%s12594_s3 + $0x88] sm:$0xff] }
 0x208   : > { %2696 = vmatprep.mubr.f32.mxu1 %v12697_v62  ;;  %3385 = vmatprep.mubr.f32.mxu0 %v12697_v62 }
 0x253   : > { %v1870_v60 = vpop.f32.mrf.mxu1  ;;  %v2107_v22 = vpop.f32.mrf.mxu0 }
 0x254   : > { %v2256_v37 = vmax.f32 %v1870_v60, %v2107_v22 }
 0x255   : > { %v1872_v16 = vpop.f32.mrf.mxu1  ;;  %v2109_v49 = vpop.f32.mrf.mxu0 }
 0x256   : > { %v2316_v25 = vrot.slane %v2256_v37, 1 }
 0x257   : > { %v1875_v42 = vpop.f32.mrf.mxu1  ;;  %v2112_v2 = vpop.f32.mrf.mxu0 }
 0x258   : > { %v2257_v54 = vmax.f32 %v1875_v42, %v2112_v2 }
 0x259   : > { %v1877_v58 = vpop.f32.mrf.mxu1  ;;  %v2114_v18 = vpop.f32.mrf.mxu0 }
 0x25a   : > { %v2317_v11 = vrot.slane %v2257_v54, 1 }
 0x25b   : > { %v1880_v39 = vpop.f32.mrf.mxu1  ;;  %v2117_v46 = vpop.f32.mrf.mxu0 }
 0x25c   : > { %v2318_v35 = vsel %vm437_vm1, %v2316_v25, %v2317_v11  ;;  %v2258_v13 = vmax.f32 %v1880_v39, %v2117_v46  ;;  %v2451_v25 = vld [vmem:[%s12594_s3 + $0x80] sm:$0xff]  ;;  %v2450_v46 = vld [vmem:[%s12594_s3 + $0x78] sm:$0xff] }
 0x25d   : > { %v1882_v32 = vpop.f32.mrf.mxu1  ;;  %v2119_v57 = vpop.f32.mrf.mxu0  ;;  %v9628_v4 = vmax.f32 %v2256_v37, %v2318_v35  ;;  %v7142_v35 = vld [vmem:[%s12594_s3 + $0x338] sm:$0xff] }
 0x25e   : > { %v2319_v14 = vrot.slane %v2258_v13, 1 }
 0x25f   : > { %v1885_v20 = vpop.f32.mrf.mxu1  ;;  %v2122_v40 = vpop.f32.mrf.mxu0  ;;  %v3198_v0 = vrot.slane %v9628_v4, 4  ;;  %v2509_v44 = vrot.slane %v9628_v4, 2 }
 0x260   : > { %v2320_v38 = vsel %vm437_vm1, %v2317_v11, %v2319_v14  ;;  %v2259_v28 = vmax.f32 %v1885_v20, %v2122_v40  ;;  %v7143_v11 = vld [vmem:[%s12594_s3 + $0x340] sm:$0xff] }
 0x261   : > { %v9631_v34 = vmax.f32 %v2257_v54, %v2320_v38  ;;  %v1887_v26 = vpop.f32.mrf.mxu1  ;;  %v2124_v45 = vpop.f32.mrf.mxu0 }
 0x262   : > { %v2321_v43 = vrot.slane %v2259_v28, 1 }
 0x263   : > { %v1890_v41 = vpop.f32.mrf.mxu1  ;;  %v2127_v55 = vpop.f32.mrf.mxu0  ;;  %v2510_v31 = vrot.slane %v9631_v34, 2  ;;  %v3199_v15 = vrot.slane %v9631_v34, 4 }
 0x264   : > { %v2322_v5 = vsel %vm437_vm1, %v2319_v14, %v2321_v43  ;;  %v2260_v27 = vmax.f32 %v1890_v41, %v2127_v55  ;;  %v7141_v41 = vld [vmem:[%s12594_s3 + $0x330] sm:$0xff] }
 0x265   : > { %v9638_v59 = vmax.f32 %v2258_v13, %v2322_v5  ;;  %v1892_v17 = vpop.f32.mrf.mxu1  ;;  %v2129_v21 = vpop.f32.mrf.mxu0  ;;  %v2511_v61 = vsel %vm558_vm0, %v2509_v44, %v2510_v31  ;;  %v3200_v1 = vsel %vm2625_vm3, %v3198_v0, %v3199_v15  ;;  %v2449_v0 = vld [vmem:[%s12594_s3 + $0x70] sm:$0xff]  ;;  %v2448_v44 = vld [vmem:[%s12594_s3 + $0x68] sm:$0xff] }
 0x266   : > { %v2323_v19 = vrot.slane %v2260_v27, 1  ;;  %6961 = vmatmul.mubr.msk.f32.vlgmr.msra.gmra.mxu1 %vm2566_vm5, %v2511_v61  ;;  %7045 = vmatmul.mubr.msk.f32.vlgmr.msra.gmra.mxu0 %vm2566_vm5, %v3200_v1 }
 0x267   : > { %v1895_v6 = vpop.f32.mrf.mxu1  ;;  %v2132_v47 = vpop.f32.mrf.mxu0  ;;  %2702 = vmatprep.mubr.f32.mxu1 %v12697_v62  ;;  %3391 = vmatprep.mubr.f32.mxu0 %v12697_v62  ;;  %v2512_v8 = vrot.slane %v9638_v59, 2  ;;  %v3201_v56 = vrot.slane %v9638_v59, 4 }
 0x268   : > { %v2324_v52 = vsel %vm437_vm1, %v2321_v43, %v2323_v19  ;;  %v2261_v7 = vmax.f32 %v1895_v6, %v2132_v47  ;;  %6991 = vmatpush1.msk.msra.mxu1 %vm2625_vm3, %v2455_v50  ;;  %7150 = vmatpush1.msk.msra.mxu0 %vm2625_vm3, %v7147_v51  ;;  %v7139_v6 = vld [vmem:[%s12594_s3 + $0x320] sm:$0xff] }
 0x269   : > { %v9663_v33 = vmax.f32 %v2259_v28, %v2324_v52  ;;  %v1897_v9 = vpop.f32.mrf.mxu1  ;;  %v2134_v53 = vpop.f32.mrf.mxu0  ;;  %v2513_v24 = vsel %vm558_vm0, %v2510_v31, %v2512_v8  ;;  %v3202_v10 = vsel %vm2625_vm3, %v3199_v15, %v3201_v56  ;;  %2947 = vmatprep.subr.mxu1 %v2454_v3  ;;  %4105 = vmatprep.subr.mxu0 %v7146_v36  ;;  %v7140_v31 = vld [vmem:[%s12594_s3 + $0x328] sm:$0xff]  ;;  %v2447_v36 = vld [vmem:[%s12594_s3 + $0x60] sm:$0xff] }
 0x26a   : > { %v2325_v29 = vrot.slane %v2261_v7, 1  ;;  %6962 = vmatmul.mubr.msk.f32.gmra.mxu1 %vm2566_vm5, %v2513_v24  ;;  %7046 = vmatmul.mubr.msk.f32.gmra.mxu0 %vm2566_vm5, %v3202_v10 }
 0x26b   : > { %v1900_v30 = vpop.f32.mrf.mxu1  ;;  %v2137_v60 = vpop.f32.mrf.mxu0  ;;  %2708 = vmatprep.mubr.f32.mxu1 %v12697_v62  ;;  %3397 = vmatprep.mubr.f32.mxu0 %v12697_v62  ;;  %v2514_v22 = vrot.slane %v9663_v33, 2  ;;  %v3203_v16 = vrot.slane %v9663_v33, 4 }
 0x26c   : > { %v2326_v49 = vsel %vm437_vm1, %v2323_v19, %v2325_v29  ;;  %v2262_v37 = vmax.f32 %v1900_v30, %v2137_v60  ;;  %2948 = vmatpush1.msra.mxu1 %v2453_v23  ;;  %4106 = vmatpush1.msra.mxu0 %v7145_v48  ;;  %v2445_v30 = vld [vmem:[%s12594_s3 + $0x50] sm:$0xff] }
 0x26d   : > { %v9686_v42 = vmax.f32 %v2260_v27, %v2326_v49  ;;  %v1902_v2 = vpop.f32.mrf.mxu1  ;;  %v2139_v54 = vpop.f32.mrf.mxu0  ;;  %v2515_v58 = vsel %vm558_vm0, %v2512_v8, %v2514_v22  ;;  %v3204_v18 = vsel %vm2625_vm3, %v3201_v56, %v3203_v16  ;;  %2949 = vmatprep.subr.mxu1 %v2452_v12  ;;  %4107 = vmatprep.subr.mxu0 %v7144_v63  ;;  %v2446_v8 = vld [vmem:[%s12594_s3 + $0x58] sm:$0xff]  ;;  %v7137_v60 = vld [vmem:[%s12594_s3 + $0x310] sm:$0xff]  ;;  %v7136_v49 = vld [vmem:[%s12594_s3 + $0x308] sm:$0xff] }
 0x26e   : > { %v2327_v39 = vrot.slane %v2262_v37, 1  ;;  %6963 = vmatmul.mubr.msk.f32.gmra.mxu1 %vm2566_vm5, %v2515_v58  ;;  %7047 = vmatmul.mubr.msk.f32.gmra.mxu0 %vm2566_vm5, %v3204_v18  ;;  %v7138_v56 = vld [vmem:[%s12594_s3 + $0x318] sm:$0xff] }
 0x26f   : > { %v1905_v13 = vpop.f32.mrf.mxu1  ;;  %v2142_v32 = vpop.f32.mrf.mxu0  ;;  %2714 = vmatprep.mubr.f32.mxu1 %v12697_v62  ;;  %3403 = vmatprep.mubr.f32.mxu0 %v12697_v62  ;;  %v2516_v57 = vrot.slane %v9686_v42, 2  ;;  %v3205_v14 = vrot.slane %v9686_v42, 4 }
 0x270   : > { %v2328_v20 = vsel %vm437_vm1, %v2325_v29, %v2327_v39  ;;  %v2263_v40 = vmax.f32 %v1905_v13, %v2142_v32  ;;  %2950 = vmatpush1.msra.mxu1 %v2451_v25  ;;  %4108 = vmatpush1.msra.mxu0 %v7143_v11  ;;  %v2443_v32 = vld [vmem:[%s12594_s3 + $0x40] sm:$0xff] }
 0x271   : > { %v9709_v38 = vmax.f32 %v2261_v7, %v2328_v20  ;;  %v1907_v28 = vpop.f32.mrf.mxu1  ;;  %v2144_v26 = vpop.f32.mrf.mxu0  ;;  %v2517_v45 = vsel %vm558_vm0, %v2514_v22, %v2516_v57  ;;  %v3206_v43 = vsel %vm2625_vm3, %v3203_v16, %v3205_v14  ;;  %2951 = vmatprep.subr.mxu1 %v2450_v46  ;;  %4109 = vmatprep.subr.mxu0 %v7142_v35  ;;  %v2444_v16 = vld [vmem:[%s12594_s3 + $0x48] sm:$0xff]  ;;  %v2442_v20 = vld [vmem:[%s12594_s3 + $0x38] sm:$0xff] }
 0x272   : > { %v2329_v55 = vrot.slane %v2263_v40, 1  ;;  %6964 = vmatmul.mubr.msk.f32.gmra.mxu1 %vm2566_vm5, %v2517_v45  ;;  %7048 = vmatmul.mubr.msk.f32.gmra.mxu0 %vm2566_vm5, %v3206_v43 }
 0x273   : > { %v1910_v15 = vpop.f32.mrf.mxu1  ;;  %v2147_v5 = vpop.f32.mrf.mxu0  ;;  %2720 = vmatprep.mubr.f32.mxu1 %v12697_v62  ;;  %3409 = vmatprep.mubr.f32.mxu0 %v12697_v62  ;;  %v2518_v27 = vrot.slane %v9709_v38, 2  ;;  %v3207_v17 = vrot.slane %v9709_v38, 4 }
 0x274   : > { %v2330_v21 = vsel %vm437_vm1, %v2327_v39, %v2329_v55  ;;  %v2264_v61 = vmax.f32 %v1910_v15, %v2147_v5  ;;  %2952 = vmatpush1.msra.mxu1 %v2449_v0  ;;  %4110 = vmatpush1.msra.mxu0 %v7141_v41 }
 0x275   : > { %v9732_v1 = vmax.f32 %v2262_v37, %v2330_v21  ;;  %v1912_v50 = vpop.f32.mrf.mxu1  ;;  %v2149_v51 = vpop.f32.mrf.mxu0  ;;  %v2519_v19 = vsel %vm558_vm0, %v2516_v57, %v2518_v27  ;;  %v3208_v3 = vsel %vm2625_vm3, %v3205_v14, %v3207_v17  ;;  %2953 = vmatprep.subr.mxu1 %v2448_v44  ;;  %4111 = vmatprep.subr.mxu0 %v7140_v31  ;;  %v7135_v57 = vld [vmem:[%s12594_s3 + $0x300] sm:$0xff] }
 0x276   : > { %v2331_v47 = vrot.slane %v2264_v61, 1  ;;  %6965 = vmatmul.mubr.msk.f32.gmra.mxu1 %vm2566_vm5, %v2519_v19  ;;  %7049 = vmatmul.mubr.msk.f32.gmra.mxu0 %vm2566_vm5, %v3208_v3  ;;  %v7132_v50 = vld [vmem:[%s12594_s3 + $0x2e8] sm:$0xff] }
 0x277   : > { %v1915_v52 = vpop.f32.mrf.mxu1  ;;  %v2152_v7 = vpop.f32.mrf.mxu0  ;;  %2726 = vmatprep.mubr.f32.mxu1 %v12697_v62  ;;  %3415 = vmatprep.mubr.f32.mxu0 %v12697_v62  ;;  %v2520_v9 = vrot.slane %v9732_v1, 2  ;;  %v3209_v53 = vrot.slane %v9732_v1, 4 }
 0x278   : > { %v2332_v24 = vsel %vm437_vm1, %v2329_v55, %v2331_v47  ;;  %v2265_v10 = vmax.f32 %v1915_v52, %v2152_v7  ;;  %2954 = vmatpush1.msra.mxu1 %v2447_v36  ;;  %4112 = vmatpush1.msra.mxu0 %v7139_v6 }
 0x279   : > { %v9755_v23 = vmax.f32 %v2263_v40, %v2332_v24  ;;  %v1917_v48 = vpop.f32.mrf.mxu1  ;;  %v2154_v29 = vpop.f32.mrf.mxu0  ;;  %v2521_v12 = vsel %vm558_vm0, %v2518_v27, %v2520_v9  ;;  %v3210_v63 = vsel %vm2625_vm3, %v3207_v17, %v3209_v53  ;;  %2955 = vmatprep.subr.mxu1 %v2446_v8  ;;  %4113 = vmatprep.subr.mxu0 %v7138_v56  ;;  %v7134_v40 = vld [vmem:[%s12594_s3 + $0x2f8] sm:$0xff]  ;;  %v2441_v27 = vld [vmem:[%s12594_s3 + $0x30] sm:$0xff]  ;;  %v7131_v24 = vld [vmem:[%s12594_s3 + $0x2e0] sm:$0xff] }
 0x27a   : > { %v2333_v22 = vrot.slane %v2265_v10, 1  ;;  %6966 = vmatmul.mubr.msk.f32.gmra.mxu1 %vm2566_vm5, %v2521_v12  ;;  %7050 = vmatmul.mubr.msk.f32.gmra.mxu0 %vm2566_vm5, %v3210_v63  ;;  %v7133_v17 = vld [vmem:[%s12594_s3 + $0x2f0] sm:$0xff]  ;;  %v2438_v48 = vld [vmem:[%s12594_s3 + $0x18] sm:$0xff] }
 0x27b   : > { %v1920_v37 = vpop.f32.mrf.mxu1  ;;  %v2157_v2 = vpop.f32.mrf.mxu0  ;;  %2732 = vmatprep.mubr.f32.mxu1 %v12697_v62  ;;  %3421 = vmatprep.mubr.f32.mxu0 %v12697_v62  ;;  %v2522_v54 = vrot.slane %v9755_v23, 2  ;;  %v3211_v58 = vrot.slane %v9755_v23, 4  ;;  %v7130_v29 = vld [vmem:[%s12594_s3 + $0x2d8] sm:$0xff] }
 0x27c   : > { %v2334_v18 = vsel %vm437_vm1, %v2331_v47, %v2333_v22  ;;  %v2266_v25 = vmax.f32 %v1920_v37, %v2157_v2  ;;  %2956 = vmatpush1.msra.mxu1 %v2445_v30  ;;  %4114 = vmatpush1.msra.mxu0 %v7137_v60 }
 0x27d   : > { %v9778_v11 = vmax.f32 %v2264_v61, %v2334_v18  ;;  %v1922_v39 = vpop.f32.mrf.mxu1  ;;  %v2159_v46 = vpop.f32.mrf.mxu0  ;;  %v2523_v35 = vsel %vm558_vm0, %v2520_v9, %v2522_v54  ;;  %v3212_v13 = vsel %vm2625_vm3, %v3209_v53, %v3211_v58  ;;  %2957 = vmatprep.subr.mxu1 %v2444_v16  ;;  %4115 = vmatprep.subr.mxu0 %v7136_v49  ;;  %v2440_v61 = vld [vmem:[%s12594_s3 + $0x28] sm:$0xff]  ;;  %v2439_v53 = vld [vmem:[%s12594_s3 + $0x20] sm:$0xff]  ;;  %v2437_v18 = vld [vmem:[%s12594_s3 + $0x10] sm:$0xff] }
 0x27e   : > { %v2335_v14 = vrot.slane %v2266_v25, 1  ;;  %6967 = vmatmul.mubr.msk.f32.gmra.mxu1 %vm2566_vm5, %v2523_v35  ;;  %7051 = vmatmul.mubr.msk.f32.gmra.mxu0 %vm2566_vm5, %v3212_v13  ;;  %v2436_v46 = vld [vmem:[%s12594_s3 + $0x8] sm:$0xff] }
 0x27f   : > { %v1925_v28 = vpop.f32.mrf.mxu1  ;;  %v2162_v26 = vpop.f32.mrf.mxu0  ;;  %2738 = vmatprep.mubr.f32.mxu1 %v12697_v62  ;;  %3427 = vmatprep.mubr.f32.mxu0 %v12697_v62  ;;  %v2524_v45 = vrot.slane %v9778_v11, 2  ;;  %v3213_v43 = vrot.slane %v9778_v11, 4  ;;  %v7128_v35 = vld [vmem:[%s12594_s3 + $0x2c8] sm:$0xff] }
 0x280   : > { %v2336_v0 = vsel %vm437_vm1, %v2333_v22, %v2335_v14  ;;  %v2267_v41 = vmax.f32 %v1925_v28, %v2162_v26  ;;  %2958 = vmatpush1.msra.mxu1 %v2443_v32  ;;  %4116 = vmatpush1.msra.mxu0 %v7135_v57 }
 0x281   : > { %v9801_v55 = vmax.f32 %v2265_v10, %v2336_v0  ;;  %v1927_v44 = vpop.f32.mrf.mxu1  ;;  %v2164_v31 = vpop.f32.mrf.mxu0  ;;  %v2525_v15 = vsel %vm558_vm0, %v2522_v54, %v2524_v45  ;;  %v3214_v5 = vsel %vm2625_vm3, %v3211_v58, %v3213_v43  ;;  %2959 = vmatprep.subr.mxu1 %v2442_v20  ;;  %4117 = vmatprep.subr.mxu0 %v7134_v40 }
 0x282   : > { %v2337_v21 = vrot.slane %v2267_v41, 1  ;;  %6968 = vmatmul.mubr.msk.f32.gmra.mxu1 %vm2566_vm5, %v2525_v15  ;;  %7052 = vmatmul.mubr.msk.f32.gmra.mxu0 %vm2566_vm5, %v3214_v5  ;;  %v7127_v44 = vld [vmem:[%s12594_s3 + $0x2c0] sm:$0xff]  ;;  %v7095_v15 = vld [vmem:[%s12594_s3 + $0x2b8] sm:$0xf] }
 0x283   : > { %v1930_v51 = vpop.f32.mrf.mxu1  ;;  %v2167_v19 = vpop.f32.mrf.mxu0  ;;  %2744 = vmatprep.mubr.f32.mxu1 %v12697_v62  ;;  %3433 = vmatprep.mubr.f32.mxu0 %v12697_v62  ;;  %v2526_v3 = vrot.slane %v9801_v55, 2  ;;  %v3215_v36 = vrot.slane %v9801_v55, 4 }
 0x284   : > { %v2338_v6 = vsel %vm437_vm1, %v2335_v14, %v2337_v21  ;;  %v2268_v47 = vmax.f32 %v1930_v51, %v2167_v19  ;;  %2960 = vmatpush1.msra.mxu1 %v2441_v27  ;;  %4118 = vmatpush1.msra.mxu0 %v7133_v17 }
 0x285   : > { %v9824_v8 = vmax.f32 %v2266_v25, %v2338_v6  ;;  %v1932_v56 = vpop.f32.mrf.mxu1  ;;  %v2169_v52 = vpop.f32.mrf.mxu0  ;;  %v2527_v7 = vsel %vm558_vm0, %v2524_v45, %v2526_v3  ;;  %v3216_v9 = vsel %vm2625_vm3, %v3213_v43, %v3215_v36  ;;  %2961 = vmatprep.subr.mxu1 %v2440_v61  ;;  %4119 = vmatprep.subr.mxu0 %v7132_v50  ;;  %v7129_v25 = vld [vmem:[%s12594_s3 + $0x2d0] sm:$0xff] }
 0x286   : > { %v2339_v10 = vrot.slane %v2268_v47, 1  ;;  %6969 = vmatmul.mubr.msk.f32.gmra.mxu1 %vm2566_vm5, %v2527_v7  ;;  %7053 = vmatmul.mubr.msk.f32.gmra.mxu0 %vm2566_vm5, %v3216_v9 }
 0x287   : > { %v1935_v12 = vpop.f32.mrf.mxu1  ;;  %v2172_v63 = vpop.f32.mrf.mxu0  ;;  %2750 = vmatprep.mubr.f32.mxu1 %v12697_v62  ;;  %3439 = vmatprep.mubr.f32.mxu0 %v12697_v62  ;;  %v2528_v30 = vrot.slane %v9824_v8, 2  ;;  %v3217_v60 = vrot.slane %v9824_v8, 4 }
 0x288   : > { %v2340_v22 = vsel %vm437_vm1, %v2337_v21, %v2339_v10  ;;  %v2269_v16 = vmax.f32 %v1935_v12, %v2172_v63  ;;  %2962 = vmatpush1.msra.mxu1 %v2439_v53  ;;  %4120 = vmatpush1.msra.mxu0 %v7131_v24 }
 0x289   : > { %v9847_v49 = vmax.f32 %v2267_v41, %v2340_v22  ;;  %v1937_v37 = vpop.f32.mrf.mxu1  ;;  %v2174_v2 = vpop.f32.mrf.mxu0  ;;  %v2529_v54 = vsel %vm558_vm0, %v2526_v3, %v2528_v30  ;;  %v3218_v58 = vsel %vm2625_vm3, %v3215_v36, %v3217_v60  ;;  %2963 = vmatprep.subr.mxu1 %v2438_v48  ;;  %4121 = vmatprep.subr.mxu0 %v7130_v29  ;;  %v2435_v41 = vld [vmem:[%s12594_s3] sm:$0xff] }
 0x28a   : > { %v2341_v39 = vrot.slane %v2269_v16, 1  ;;  %6970 = vmatmul.mubr.msk.f32.gmra.mxu1 %vm2566_vm5, %v2529_v54  ;;  %7054 = vmatmul.mubr.msk.f32.gmra.mxu0 %vm2566_vm5, %v3218_v58 }
 0x28b   : > { %v1940_v13 = vpop.f32.mrf.mxu1  ;;  %v2177_v32 = vpop.f32.mrf.mxu0  ;;  %2756 = vmatprep.mubr.f32.mxu1 %v12697_v62  ;;  %3445 = vmatprep.mubr.f32.mxu0 %v12697_v62  ;;  %v2530_v57 = vrot.slane %v9847_v49, 2  ;;  %v3219_v14 = vrot.slane %v9847_v49, 4 }
 0x28c   : > { %v2342_v20 = vsel %vm437_vm1, %v2339_v10, %v2341_v39  ;;  %v2270_v40 = vmax.f32 %v1940_v13, %v2177_v32  ;;  %2964 = vmatpush1.msra.mxu1 %v2437_v18  ;;  %4122 = vmatpush1.msra.mxu0 %v7129_v25 }
 0x28d   : > { %v9870_v28 = vmax.f32 %v2268_v47, %v2342_v20  ;;  %v1942_v26 = vpop.f32.mrf.mxu1  ;;  %v2179_v45 = vpop.f32.mrf.mxu0  ;;  %v2531_v43 = vsel %vm558_vm0, %v2528_v30, %v2530_v57  ;;  %v3220_v0 = vsel %vm2625_vm3, %v3217_v60, %v3219_v14  ;;  %2965 = vmatprep.subr.mxu1 %v2436_v46  ;;  %4123 = vmatprep.subr.mxu0 %v7128_v35 }
 0x28e   : > { %v2343_v31 = vrot.slane %v2270_v40, 1  ;;  %6971 = vmatmul.mubr.msk.f32.gmra.mxu1 %vm2566_vm5, %v2531_v43  ;;  %7055 = vmatmul.mubr.msk.f32.gmra.mxu0 %vm2566_vm5, %v3220_v0 }
 0x28f   : > { %v1945_v5 = vpop.f32.mrf.mxu1  ;;  %v2182_v27 = vpop.f32.mrf.mxu0  ;;  %2762 = vmatprep.mubr.f32.mxu1 %v12697_v62  ;;  %3451 = vmatprep.mubr.f32.mxu0 %v12697_v62  ;;  %v2532_v17 = vrot.slane %v9870_v28, 2  ;;  %v3221_v21 = vrot.slane %v9870_v28, 4 }
 0x290   : > { %v2344_v61 = vsel %vm437_vm1, %v2341_v39, %v2343_v31  ;;  %v2271_v50 = vmax.f32 %v1945_v5, %v2182_v27  ;;  %2966 = vmatpush1.msra.mxu1 %v2435_v41  ;;  %4124 = vmatpush1.msra.mxu0 %v7127_v44 }
 0x291   : > { %v9890_v51 = vmax.f32 %v2269_v16, %v2344_v61  ;;  %v1947_v19 = vpop.f32.mrf.mxu1  ;;  %v2184_v3 = vpop.f32.mrf.mxu0  ;;  %v2533_v36 = vsel %vm558_vm0, %v2530_v57, %v2532_v17  ;;  %v3222_v6 = vsel %vm2625_vm3, %v3219_v14, %v3221_v21  ;;  %7096 = vmatprep.subr.msk.mxu1 %vm2625_vm3, %v7095_v15  ;;  %4857 = vmatprep.subr.mxu0 %v12697_v62 }
 0x292   : > { %v2345_v47 = vrot.slane %v2271_v50, 1  ;;  %6972 = vmatmul.mubr.msk.f32.gmra.mxu1 %vm2566_vm5, %v2533_v36  ;;  %7056 = vmatmul.mubr.msk.f32.gmra.mxu0 %vm2566_vm5, %v3222_v6 }
 0x293   : > { %v1950_v56 = vpop.f32.mrf.mxu1  ;;  %v2187_v52 = vpop.f32.mrf.mxu0  ;;  %2768 = vmatprep.mubr.f32.mxu1 %v12697_v62  ;;  %3457 = vmatprep.mubr.f32.mxu0 %v12697_v62  ;;  %v2534_v7 = vrot.slane %v9890_v51, 2  ;;  %v3223_v9 = vrot.slane %v9890_v51, 4 }
 0x294   : > { %v2346_v53 = vsel %vm437_vm1, %v2343_v31, %v2345_v47  ;;  %v2272_v24 = vmax.f32 %v1950_v56, %v2187_v52 }
 0x295   : > { %v9903_v10 = vmax.f32 %v2270_v40, %v2346_v53  ;;  %v1952_v48 = vpop.f32.mrf.mxu1  ;;  %v2189_v29 = vpop.f32.mrf.mxu0  ;;  %v2535_v12 = vsel %vm558_vm0, %v2532_v17, %v2534_v7  ;;  %v3224_v63 = vsel %vm2625_vm3, %v3221_v21, %v3223_v9 }
 0x296   : > { %v2347_v30 = vrot.slane %v2272_v24, 1  ;;  %6973 = vmatmul.mubr.msk.f32.gmra.mxu1 %vm2566_vm5, %v2535_v12  ;;  %7057 = vmatmul.mubr.msk.f32.gmra.mxu0 %vm2566_vm5, %v3224_v63 }
 0x297   : > { %v1955_v60 = vpop.f32.mrf.mxu1  ;;  %v2192_v22 = vpop.f32.mrf.mxu0  ;;  %2774 = vmatprep.mubr.f32.mxu1 %v12697_v62  ;;  %3463 = vmatprep.mubr.f32.mxu0 %v12697_v62  ;;  %v2536_v16 = vrot.slane %v9903_v10, 2  ;;  %v3225_v37 = vrot.slane %v9903_v10, 4 }
 0x298   : > { %v2348_v2 = vsel %vm437_vm1, %v2345_v47, %v2347_v30  ;;  %v2273_v54 = vmax.f32 %v1955_v60, %v2192_v22 }
 0x299   : > { %v9914_v58 = vmax.f32 %v2271_v50, %v2348_v2  ;;  %v1957_v18 = vpop.f32.mrf.mxu1  ;;  %v2194_v25 = vpop.f32.mrf.mxu0  ;;  %v2537_v39 = vsel %vm558_vm0, %v2534_v7, %v2536_v16  ;;  %v3226_v46 = vsel %vm2625_vm3, %v3223_v9, %v3225_v37 }
 0x29a   : > { %v2349_v35 = vrot.slane %v2273_v54, 1  ;;  %6974 = vmatmul.mubr.msk.f32.gmra.mxu1 %vm2566_vm5, %v2537_v39  ;;  %7058 = vmatmul.mubr.msk.f32.gmra.mxu0 %vm2566_vm5, %v3226_v46 }
 0x29b   : > { %v1960_v13 = vpop.f32.mrf.mxu1  ;;  %v2197_v32 = vpop.f32.mrf.mxu0  ;;  %2780 = vmatprep.mubr.f32.mxu1 %v12697_v62  ;;  %3469 = vmatprep.mubr.f32.mxu0 %v12697_v62  ;;  %v2538_v57 = vrot.slane %v9914_v58, 2  ;;  %v3227_v14 = vrot.slane %v9914_v58, 4 }
 0x29c   : > { %v2350_v20 = vsel %vm437_vm1, %v2347_v30, %v2349_v35  ;;  %v2274_v40 = vmax.f32 %v1960_v13, %v2197_v32 }
 0x29d   : > { %v9925_v26 = vmax.f32 %v2272_v24, %v2350_v20  ;;  %v1962_v45 = vpop.f32.mrf.mxu1  ;;  %v2199_v43 = vpop.f32.mrf.mxu0  ;;  %v2539_v0 = vsel %vm558_vm0, %v2536_v16, %v2538_v57  ;;  %v3228_v41 = vsel %vm2625_vm3, %v3225_v37, %v3227_v14 }
 0x29e   : > { %v2351_v44 = vrot.slane %v2274_v40, 1  ;;  %6975 = vmatmul.mubr.msk.f32.gmra.mxu1 %vm2566_vm5, %v2539_v0  ;;  %7059 = vmatmul.mubr.msk.f32.gmra.mxu0 %vm2566_vm5, %v3228_v41 }
 0x29f   : > { %v1965_v31 = vpop.f32.mrf.mxu1  ;;  %v2202_v15 = vpop.f32.mrf.mxu0  ;;  %2786 = vmatprep.mubr.f32.mxu1 %v12697_v62  ;;  %3475 = vmatprep.mubr.f32.mxu0 %v12697_v62  ;;  %v2540_v5 = vrot.slane %v9925_v26, 2  ;;  %v3229_v27 = vrot.slane %v9925_v26, 4 }
 0x2a0   : > { %v2352_v17 = vsel %vm437_vm1, %v2349_v35, %v2351_v44  ;;  %v2275_v21 = vmax.f32 %v1965_v31, %v2202_v15 }
 0x2a1   : > { %v9936_v61 = vmax.f32 %v2273_v54, %v2352_v17  ;;  %v1967_v50 = vpop.f32.mrf.mxu1  ;;  %v2204_v19 = vpop.f32.mrf.mxu0  ;;  %v2541_v3 = vsel %vm558_vm0, %v2538_v57, %v2540_v5  ;;  %v3230_v36 = vsel %vm2625_vm3, %v3227_v14, %v3229_v27 }
 0x2a2   : > { %v2353_v6 = vrot.slane %v2275_v21, 1  ;;  %6976 = vmatmul.mubr.msk.f32.gmra.mxu1 %vm2566_vm5, %v2541_v3  ;;  %7060 = vmatmul.mubr.msk.f32.gmra.mxu0 %vm2566_vm5, %v3230_v36 }
 0x2a3   : > { %v1970_v47 = vpop.f32.mrf.mxu1  ;;  %v2207_v56 = vpop.f32.mrf.mxu0  ;;  %2792 = vmatprep.mubr.f32.mxu1 %v12697_v62  ;;  %3481 = vmatprep.mubr.f32.mxu0 %v12697_v62  ;;  %v2542_v52 = vrot.slane %v9936_v61, 2  ;;  %v3231_v7 = vrot.slane %v9936_v61, 4 }
 0x2a4   : > { %v2354_v9 = vsel %vm437_vm1, %v2351_v44, %v2353_v6  ;;  %v2276_v53 = vmax.f32 %v1970_v47, %v2207_v56 }
 0x2a5   : > { %v9947_v24 = vmax.f32 %v2274_v40, %v2354_v9  ;;  %v1972_v48 = vpop.f32.mrf.mxu1  ;;  %v2209_v29 = vpop.f32.mrf.mxu0  ;;  %v2543_v12 = vsel %vm558_vm0, %v2540_v5, %v2542_v52  ;;  %v3232_v63 = vsel %vm2625_vm3, %v3229_v27, %v3231_v7 }
 0x2a6   : > { %v2355_v30 = vrot.slane %v2276_v53, 1  ;;  %6977 = vmatmul.mubr.msk.f32.gmra.mxu1 %vm2566_vm5, %v2543_v12  ;;  %7061 = vmatmul.mubr.msk.f32.gmra.mxu0 %vm2566_vm5, %v3232_v63 }
 0x2a7   : > { %v1975_v60 = vpop.f32.mrf.mxu1  ;;  %v2212_v22 = vpop.f32.mrf.mxu0  ;;  %2798 = vmatprep.mubr.f32.mxu1 %v12697_v62  ;;  %3487 = vmatprep.mubr.f32.mxu0 %v12697_v62  ;;  %v2544_v16 = vrot.slane %v9947_v24, 2  ;;  %v3233_v37 = vrot.slane %v9947_v24, 4 }
 0x2a8   : > { %v2356_v2 = vsel %vm437_vm1, %v2353_v6, %v2355_v30  ;;  %v2277_v54 = vmax.f32 %v1975_v60, %v2212_v22 }
 0x2a9   : > { %v9958_v18 = vmax.f32 %v2275_v21, %v2356_v2  ;;  %v1977_v25 = vpop.f32.mrf.mxu1  ;;  %v2214_v39 = vpop.f32.mrf.mxu0  ;;  %v2545_v46 = vsel %vm558_vm0, %v2542_v52, %v2544_v16  ;;  %v3234_v35 = vsel %vm2625_vm3, %v3231_v7, %v3233_v37 }
 0x2aa   : > { %v2357_v13 = vrot.slane %v2277_v54, 1  ;;  %6978 = vmatmul.mubr.msk.f32.gmra.mxu1 %vm2566_vm5, %v2545_v46  ;;  %7062 = vmatmul.mubr.msk.f32.gmra.mxu0 %vm2566_vm5, %v3234_v35 }
 0x2ab   : > { %v1980_v32 = vpop.f32.mrf.mxu1  ;;  %v2217_v57 = vpop.f32.mrf.mxu0  ;;  %2804 = vmatprep.mubr.f32.mxu1 %v12697_v62  ;;  %3493 = vmatprep.mubr.f32.mxu0 %v12697_v62  ;;  %v2546_v14 = vrot.slane %v9958_v18, 2  ;;  %v3235_v20 = vrot.slane %v9958_v18, 4 }
 0x2ac   : > { %v2358_v40 = vsel %vm437_vm1, %v2355_v30, %v2357_v13  ;;  %v2278_v45 = vmax.f32 %v1980_v32, %v2217_v57 }
 0x2ad   : > { %v9969_v43 = vmax.f32 %v2276_v53, %v2358_v40  ;;  %v1982_v0 = vpop.f32.mrf.mxu1  ;;  %v2219_v41 = vpop.f32.mrf.mxu0  ;;  %v2547_v44 = vsel %vm558_vm0, %v2544_v16, %v2546_v14  ;;  %v3236_v31 = vsel %vm2625_vm3, %v3233_v37, %v3235_v20 }
 0x2ae   : > { %v2359_v15 = vrot.slane %v2278_v45, 1  ;;  %6979 = vmatmul.mubr.msk.f32.gmra.mxu1 %vm2566_vm5, %v2547_v44  ;;  %7063 = vmatmul.mubr.msk.f32.gmra.mxu0 %vm2566_vm5, %v3236_v31 }
 0x2af   : > { %v1985_v5 = vpop.f32.mrf.mxu1  ;;  %v2222_v27 = vpop.f32.mrf.mxu0  ;;  %2810 = vmatprep.mubr.f32.mxu1 %v12697_v62  ;;  %3499 = vmatprep.mubr.f32.mxu0 %v12697_v62  ;;  %v2548_v17 = vrot.slane %v9969_v43, 2  ;;  %v3237_v21 = vrot.slane %v9969_v43, 4 }
 0x2b0   : > { %v2360_v50 = vsel %vm437_vm1, %v2357_v13, %v2359_v15  ;;  %v2279_v19 = vmax.f32 %v1985_v5, %v2222_v27 }
 0x2b1   : > { %v9980_v3 = vmax.f32 %v2277_v54, %v2360_v50  ;;  %v1987_v36 = vpop.f32.mrf.mxu1  ;;  %v2224_v6 = vpop.f32.mrf.mxu0  ;;  %v2549_v47 = vsel %vm558_vm0, %v2546_v14, %v2548_v17  ;;  %v3238_v56 = vsel %vm2625_vm3, %v3235_v20, %v3237_v21 }
 0x2b2   : > { %v2361_v52 = vrot.slane %v2279_v19, 1  ;;  %6980 = vmatmul.mubr.msk.f32.gmra.mxu1 %vm2566_vm5, %v2549_v47  ;;  %7064 = vmatmul.mubr.msk.f32.gmra.mxu0 %vm2566_vm5, %v3238_v56 }
 0x2b3   : > { %v1990_v7 = vpop.f32.mrf.mxu1  ;;  %v2227_v9 = vpop.f32.mrf.mxu0  ;;  %2816 = vmatprep.mubr.f32.mxu1 %v12697_v62  ;;  %3505 = vmatprep.mubr.f32.mxu0 %v12697_v62  ;;  %v2550_v53 = vrot.slane %v9980_v3, 2  ;;  %v3239_v48 = vrot.slane %v9980_v3, 4 }
 0x2b4   : > { %v2362_v29 = vsel %vm437_vm1, %v2359_v15, %v2361_v52  ;;  %v2280_v12 = vmax.f32 %v1990_v7, %v2227_v9 }
 0x2b5   : > { %v9991_v63 = vmax.f32 %v2278_v45, %v2362_v29  ;;  %v1992_v30 = vpop.f32.mrf.mxu1  ;;  %v2229_v60 = vpop.f32.mrf.mxu0  ;;  %v2551_v22 = vsel %vm558_vm0, %v2548_v17, %v2550_v53  ;;  %v3240_v16 = vsel %vm2625_vm3, %v3237_v21, %v3239_v48 }
 0x2b6   : > { %v2363_v37 = vrot.slane %v2280_v12, 1  ;;  %6981 = vmatmul.mubr.msk.f32.gmra.mxu1 %vm2566_vm5, %v2551_v22  ;;  %7065 = vmatmul.mubr.msk.f32.gmra.mxu0 %vm2566_vm5, %v3240_v16 }
 0x2b7   : > { %v1995_v2 = vpop.f32.mrf.mxu1  ;;  %v2232_v54 = vpop.f32.mrf.mxu0  ;;  %2822 = vmatprep.mubr.f32.mxu1 %v12697_v62  ;;  %3511 = vmatprep.mubr.f32.mxu0 %v12697_v62  ;;  %v2552_v25 = vrot.slane %v9991_v63, 2  ;;  %v3241_v39 = vrot.slane %v9991_v63, 4 }
 0x2b8   : > { %v2364_v46 = vsel %vm437_vm1, %v2361_v52, %v2363_v37  ;;  %v2281_v35 = vmax.f32 %v1995_v2, %v2232_v54 }
 0x2b9   : > { %v10002_v13 = vmax.f32 %v2279_v19, %v2364_v46  ;;  %v1997_v32 = vpop.f32.mrf.mxu1  ;;  %v2234_v57 = vpop.f32.mrf.mxu0  ;;  %v2553_v14 = vsel %vm558_vm0, %v2550_v53, %v2552_v25  ;;  %v3242_v20 = vsel %vm2625_vm3, %v3239_v48, %v3241_v39 }
 0x2ba   : > { %v2365_v40 = vrot.slane %v2281_v35, 1  ;;  %6982 = vmatmul.mubr.msk.f32.gmra.mxu1 %vm2566_vm5, %v2553_v14  ;;  %7066 = vmatmul.mubr.msk.f32.gmra.mxu0 %vm2566_vm5, %v3242_v20 }
 0x2bb   : > { %v2000_v45 = vpop.f32.mrf.mxu1  ;;  %v2237_v0 = vpop.f32.mrf.mxu0  ;;  %2828 = vmatprep.mubr.f32.mxu1 %v12697_v62  ;;  %3517 = vmatprep.mubr.f32.mxu0 %v12697_v62  ;;  %v2554_v41 = vrot.slane %v10002_v13, 2  ;;  %v3243_v44 = vrot.slane %v10002_v13, 4 }
 0x2bc   : > { %v2366_v31 = vsel %vm437_vm1, %v2363_v37, %v2365_v40  ;;  %v2282_v15 = vmax.f32 %v2000_v45, %v2237_v0 }
 0x2bd   : > { %v10013_v5 = vmax.f32 %v2280_v12, %v2366_v31  ;;  %v2002_v27 = vpop.f32.mrf.mxu1  ;;  %v2239_v17 = vpop.f32.mrf.mxu0  ;;  %v2555_v21 = vsel %vm558_vm0, %v2552_v25, %v2554_v41  ;;  %v3244_v50 = vsel %vm2625_vm3, %v3241_v39, %v3243_v44 }
 0x2be   : > { %v2367_v19 = vrot.slane %v2282_v15, 1  ;;  %6983 = vmatmul.mubr.msk.f32.gmra.mxu1 %vm2566_vm5, %v2555_v21  ;;  %7067 = vmatmul.mubr.msk.f32.gmra.mxu0 %vm2566_vm5, %v3244_v50 }
 0x2bf   : > { %v2005_v36 = vpop.f32.mrf.mxu1  ;;  %v2242_v6 = vpop.f32.mrf.mxu0  ;;  %2834 = vmatprep.mubr.f32.mxu1 %v12697_v62  ;;  %3523 = vmatprep.mubr.f32.mxu0 %v12697_v62  ;;  %v2556_v47 = vrot.slane %v10013_v5, 2  ;;  %v3245_v56 = vrot.slane %v10013_v5, 4 }
 0x2c0   : > { %v2368_v52 = vsel %vm437_vm1, %v2365_v40, %v2367_v19  ;;  %v2283_v7 = vmax.f32 %v2005_v36, %v2242_v6 }
 0x2c1   : > { %v10024_v9 = vmax.f32 %v2281_v35, %v2368_v52  ;;  %v2007_v53 = vpop.f32.mrf.mxu1  ;;  %v2244_v48 = vpop.f32.mrf.mxu0  ;;  %v2557_v29 = vsel %vm558_vm0, %v2554_v41, %v2556_v47  ;;  %v3246_v12 = vsel %vm2625_vm3, %v3243_v44, %v3245_v56 }
 0x2c2   : > { %v2369_v30 = vrot.slane %v2283_v7, 1  ;;  %6984 = vmatmul.mubr.msk.f32.gmra.mxu1 %vm2566_vm5, %v2557_v29  ;;  %7068 = vmatmul.mubr.msk.f32.gmra.mxu0 %vm2566_vm5, %v3246_v12 }
 0x2c3   : > { %v2010_v60 = vpop.f32.mrf.mxu1  ;;  %v2247_v22 = vpop.f32.mrf.mxu0  ;;  %2840 = vmatprep.mubr.f32.mxu1 %v12697_v62  ;;  %3529 = vmatprep.mubr.f32.mxu0 %v12697_v62  ;;  %v2558_v16 = vrot.slane %v10024_v9, 2  ;;  %v3247_v37 = vrot.slane %v10024_v9, 4 }
 0x2c4   : > { %v2370_v2 = vsel %vm437_vm1, %v2367_v19, %v2369_v30  ;;  %v2284_v54 = vmax.f32 %v2010_v60, %v2247_v22  ;;  %v7094_v60 = vld [vmem:[%s12594_s3 + $0x2b0] sm:$0xf]  ;;  %v7093_v22 = vld [vmem:[%s12594_s3 + $0x2a8] sm:$0xff] }
 0x2c5   : > { %v10035_v25 = vmax.f32 %v2282_v15, %v2370_v2  ;;  %v2012_v39 = vpop.f32.mrf.mxu1  ;;  %v2249_v46 = vpop.f32.mrf.mxu0  ;;  %v2559_v35 = vsel %vm558_vm0, %v2556_v47, %v2558_v16  ;;  %v3248_v32 = vsel %vm2625_vm3, %v3245_v56, %v3247_v37  ;;  %v7090_v2 = vld [vmem:[%s12594_s3 + $0x290] sm:$0xff] }
 0x2c6   : > { %v2371_v57 = vrot.slane %v2284_v54, 1  ;;  %6985 = vmatmul.mubr.msk.f32.gmra.mxu1 %vm2566_vm5, %v2559_v35  ;;  %7069 = vmatmul.mubr.msk.f32.gmra.mxu0 %vm2566_vm5, %v3248_v32  ;;  %v7088_v39 = vld [vmem:[%s12594_s3 + $0x280] sm:$0xff]  ;;  %v7087_v46 = vld [vmem:[%s12594_s3 + $0x278] sm:$0xff]  ;;  %v7086_v35 = vld [vmem:[%s12594_s3 + $0x270] sm:$0xff] }
 0x2c7   : > { %v2015_v14 = vpop.f32.mrf.mxu1  ;;  %v2252_v20 = vpop.f32.mrf.mxu0  ;;  %2846 = vmatprep.mubr.f32.mxu1 %v12697_v62  ;;  %3535 = vmatprep.mubr.f32.mxu0 %v12697_v62  ;;  %v2560_v40 = vrot.slane %v10035_v25, 2  ;;  %v3249_v45 = vrot.slane %v10035_v25, 4  ;;  %v7085_v32 = vld [vmem:[%s12594_s3 + $0x268] sm:$0xff] }
 0x2c8   : > { %v2372_v0 = vsel %vm437_vm1, %v2369_v30, %v2371_v57  ;;  %v2285_v41 = vmax.f32 %v2015_v14, %v2252_v20  ;;  %v7083_v14 = vld [vmem:[%s12594_s3 + $0x258] sm:$0xff]  ;;  %v7082_v20 = vld [vmem:[%s12594_s3 + $0x250] sm:$0xff] }
 0x2c9   : > { %v10046_v44 = vmax.f32 %v2283_v7, %v2372_v0  ;;  %v2017_v31 = vpop.f32.mrf.mxu1  ;;  %v2254_v15 = vpop.f32.mrf.mxu0  ;;  %v2561_v27 = vsel %vm558_vm0, %v2558_v16, %v2560_v40  ;;  %v3250_v17 = vsel %vm2625_vm3, %v3247_v37, %v3249_v45  ;;  %v7092_v16 = vld [vmem:[%s12594_s3 + $0x2a0] sm:$0xff]  ;;  %v7091_v37 = vld [vmem:[%s12594_s3 + $0x298] sm:$0xff] }
 0x2ca   : > { %v2373_v21 = vrot.slane %v2285_v41, 1  ;;  %6986 = vmatmul.mubr.msk.f32.gmra.mxu1 %vm2566_vm5, %v2561_v27  ;;  %7070 = vmatmul.mubr.msk.f32.gmra.mxu0 %vm2566_vm5, %v3250_v17  ;;  %v7079_v0 = vld [vmem:[%s12594_s3 + $0x238] sm:$0xff]  ;;  %v7077_v31 = vld [vmem:[%s12594_s3 + $0x228] sm:$0xff]  ;;  %v7076_v15 = vld [vmem:[%s12594_s3 + $0x220] sm:$0xff] }
 0x2cb   : > { %2852 = vmatprep.mubr.f32.mxu1 %v12697_v62  ;;  %3541 = vmatprep.mubr.f32.mxu0 %v12697_v62  ;;  %v2562_v50 = vrot.slane %v10046_v44, 2  ;;  %v3251_v19 = vrot.slane %v10046_v44, 4  ;;  %v7075_v27 = vld [vmem:[%s12594_s3 + $0x218] sm:$0xff]  ;;  %v7074_v17 = vld [vmem:[%s12594_s3 + $0x210] sm:$0xff] }
 0x2cc   : > { %v2374_v36 = vsel %vm437_vm1, %v2371_v57, %v2373_v21  ;;  %v10059_v47 = vmax.f32 %v2285_v41, %v2373_v21  ;;  %v7084_v57 = vld [vmem:[%s12594_s3 + $0x260] sm:$0xff]  ;;  %v7078_v41 = vld [vmem:[%s12594_s3 + $0x230] sm:$0xff] }
 0x2cd   : > { %v10057_v6 = vmax.f32 %v2284_v54, %v2374_v36  ;;  %v2563_v56 = vsel %vm558_vm0, %v2560_v40, %v2562_v50  ;;  %v3252_v52 = vsel %vm2625_vm3, %v3249_v45, %v3251_v19  ;;  %v7089_v54 = vld [vmem:[%s12594_s3 + $0x288] sm:$0xff]  ;;  %v7080_v45 = vld [vmem:[%s12594_s3 + $0x240] sm:$0xff] }
 0x2ce   : > { %6987 = vmatmul.mubr.msk.f32.gmra.mxu1 %vm2566_vm5, %v2563_v56  ;;  %7071 = vmatmul.mubr.msk.f32.gmra.mxu0 %vm2566_vm5, %v3252_v52  ;;  %v3255_v48 = vrot.slane %v10059_v47, 4  ;;  %v7081_v40 = vld [vmem:[%s12594_s3 + $0x248] sm:$0xff] }
 0x2cf   : > { %2858 = vmatprep.mubr.f32.mxu1 %v12697_v62  ;;  %3547 = vmatprep.mubr.f32.mxu0 %v12697_v62  ;;  %v2564_v7 = vrot.slane %v10057_v6, 2  ;;  %v3253_v53 = vrot.slane %v10057_v6, 4 }
 0x2d1   : > { %v2565_v29 = vsel %vm558_vm0, %v2562_v50, %v2564_v7  ;;  %v3254_v12 = vsel %vm2625_vm3, %v3251_v19, %v3253_v53  ;;  %v3256_v30 = vsel %vm2625_vm3, %v3253_v53, %v3255_v48 }
 0x2d2   : > { %6988 = vmatmul.mubr.msk.f32.gmra.mxu1 %vm2566_vm5, %v2565_v29  ;;  %7072 = vmatmul.mubr.msk.f32.gmra.mxu0 %vm2566_vm5, %v3254_v12 }
 0x2d3   : > { %2864 = vmatprep.mubr.f32.mxu1 %v12697_v62  ;;  %3553 = vmatprep.mubr.f32.mxu0 %v12697_v62 }
 0x2d6   : > { %6989 = vmatmul.mubr.msk.f32.gmra.mxu1 %vm2566_vm5, %v2564_v7  ;;  %7073 = vmatmul.mubr.msk.f32.gmra.mxu0 %vm2566_vm5, %v3256_v30 }
 0x2d7   : > { %2999 = vmatprep.mubr.f32.mxu1 %v12697_v62  ;;  %4157 = vmatprep.mubr.f32.mxu0 %v12697_v62 }
 0x2da   : > { %6992 = vmatmul.mubr.msk.f32.vlgmr.msra.gmra.mxu1 %vm2566_vm5, %v9628_v4  ;;  %7151 = vmatmul.mubr.msk.f32.vlgmr.msra.gmra.mxu0 %vm2566_vm5, %v9631_v34 }
 0x2db   : > { %3005 = vmatprep.mubr.f32.mxu1 %v12697_v62  ;;  %4163 = vmatprep.mubr.f32.mxu0 %v12697_v62 }
 0x2dc   : > { %7097 = vmatpush1.msk.msra.mxu1 %vm2625_vm3, %v7094_v60 }
 0x2dd   : > { %3777 = vmatprep.subr.mxu1 %v7093_v22 }
 0x2de   : > { %6993 = vmatmul.mubr.msk.f32.gmra.mxu1 %vm2566_vm5, %v9631_v34  ;;  %7152 = vmatmul.mubr.msk.f32.gmra.mxu0 %vm2566_vm5, %v9638_v59 }
 0x2df   : > { %3011 = vmatprep.mubr.f32.mxu1 %v12697_v62  ;;  %4169 = vmatprep.mubr.f32.mxu0 %v12697_v62 }
 0x2e0   : > { %3778 = vmatpush1.msra.mxu1 %v7092_v16 }
 0x2e1   : > { %3779 = vmatprep.subr.mxu1 %v7091_v37 }
 0x2e2   : > { %6994 = vmatmul.mubr.msk.f32.gmra.mxu1 %vm2566_vm5, %v9638_v59  ;;  %7153 = vmatmul.mubr.msk.f32.gmra.mxu0 %vm2566_vm5, %v9663_v33 }
 0x2e3   : > { %3017 = vmatprep.mubr.f32.mxu1 %v12697_v62  ;;  %4175 = vmatprep.mubr.f32.mxu0 %v12697_v62 }
 0x2e4   : > { %3780 = vmatpush1.msra.mxu1 %v7090_v2 }
 0x2e5   : > { %3781 = vmatprep.subr.mxu1 %v7089_v54 }
 0x2e6   : > { %6995 = vmatmul.mubr.msk.f32.gmra.mxu1 %vm2566_vm5, %v9663_v33  ;;  %7154 = vmatmul.mubr.msk.f32.gmra.mxu0 %vm2566_vm5, %v9686_v42 }
 0x2e7   : > { %3023 = vmatprep.mubr.f32.mxu1 %v12697_v62  ;;  %4181 = vmatprep.mubr.f32.mxu0 %v12697_v62 }
 0x2e8   : > { %3782 = vmatpush1.msra.mxu1 %v7088_v39 }
 0x2e9   : > { %3783 = vmatprep.subr.mxu1 %v7087_v46 }
 0x2ea   : > { %6996 = vmatmul.mubr.msk.f32.gmra.mxu1 %vm2566_vm5, %v9686_v42  ;;  %7155 = vmatmul.mubr.msk.f32.gmra.mxu0 %vm2566_vm5, %v9709_v38 }
 0x2eb   : > { %3029 = vmatprep.mubr.f32.mxu1 %v12697_v62  ;;  %4187 = vmatprep.mubr.f32.mxu0 %v12697_v62 }
 0x2ec   : > { %3784 = vmatpush1.msra.mxu1 %v7086_v35 }
 0x2ed   : > { %3785 = vmatprep.subr.mxu1 %v7085_v32 }
 0x2ee   : > { %6997 = vmatmul.mubr.msk.f32.gmra.mxu1 %vm2566_vm5, %v9709_v38  ;;  %7156 = vmatmul.mubr.msk.f32.gmra.mxu0 %vm2566_vm5, %v9732_v1 }
 0x2ef   : > { %3035 = vmatprep.mubr.f32.mxu1 %v12697_v62  ;;  %4193 = vmatprep.mubr.f32.mxu0 %v12697_v62 }
 0x2f0   : > { %3786 = vmatpush1.msra.mxu1 %v7084_v57 }
 0x2f1   : > { %3787 = vmatprep.subr.mxu1 %v7083_v14 }
 0x2f2   : > { %6998 = vmatmul.mubr.msk.f32.gmra.mxu1 %vm2566_vm5, %v9732_v1  ;;  %7157 = vmatmul.mubr.msk.f32.gmra.mxu0 %vm2566_vm5, %v9755_v23 }
 0x2f3   : > { %3041 = vmatprep.mubr.f32.mxu1 %v12697_v62  ;;  %4199 = vmatprep.mubr.f32.mxu0 %v12697_v62 }
 0x2f4   : > { %3788 = vmatpush1.msra.mxu1 %v7082_v20 }
 0x2f5   : > { %3789 = vmatprep.subr.mxu1 %v7081_v40 }
 0x2f6   : > { %6999 = vmatmul.mubr.msk.f32.gmra.mxu1 %vm2566_vm5, %v9755_v23  ;;  %7158 = vmatmul.mubr.msk.f32.gmra.mxu0 %vm2566_vm5, %v9778_v11 }
 0x2f7   : > { %3047 = vmatprep.mubr.f32.mxu1 %v12697_v62  ;;  %4205 = vmatprep.mubr.f32.mxu0 %v12697_v62 }
 0x2f8   : > { %3790 = vmatpush1.msra.mxu1 %v7080_v45 }
 0x2f9   : > { %3791 = vmatprep.subr.mxu1 %v7079_v0 }
 0x2fa   : > { %7000 = vmatmul.mubr.msk.f32.gmra.mxu1 %vm2566_vm5, %v9778_v11  ;;  %7159 = vmatmul.mubr.msk.f32.gmra.mxu0 %vm2566_vm5, %v9801_v55 }
 0x2fb   : > { %3053 = vmatprep.mubr.f32.mxu1 %v12697_v62  ;;  %4211 = vmatprep.mubr.f32.mxu0 %v12697_v62 }
 0x2fc   : > { %3792 = vmatpush1.msra.mxu1 %v7078_v41 }
 0x2fd   : > { %3793 = vmatprep.subr.mxu1 %v7077_v31 }
 0x2fe   : > { %7001 = vmatmul.mubr.msk.f32.gmra.mxu1 %vm2566_vm5, %v9801_v55  ;;  %7160 = vmatmul.mubr.msk.f32.gmra.mxu0 %vm2566_vm5, %v9824_v8 }
 0x2ff   : > { %3059 = vmatprep.mubr.f32.mxu1 %v12697_v62  ;;  %4217 = vmatprep.mubr.f32.mxu0 %v12697_v62 }
 0x300   : > { %3794 = vmatpush1.msra.mxu1 %v7076_v15 }
 0x301   : > { %3795 = vmatprep.subr.mxu1 %v7075_v27 }
 0x302   : > { %7002 = vmatmul.mubr.msk.f32.gmra.mxu1 %vm2566_vm5, %v9824_v8  ;;  %7161 = vmatmul.mubr.msk.f32.gmra.mxu0 %vm2566_vm5, %v9847_v49 }
 0x303   : > { %3065 = vmatprep.mubr.f32.mxu1 %v12697_v62  ;;  %4223 = vmatprep.mubr.f32.mxu0 %v12697_v62 }
 0x304   : > { %3796 = vmatpush1.msra.mxu1 %v7074_v17 }
 0x305   : > { %4626 = vmatprep.subr.mxu1 %v12697_v62 }
 0x306   : > { %7003 = vmatmul.mubr.msk.f32.gmra.mxu1 %vm2566_vm5, %v9847_v49  ;;  %7162 = vmatmul.mubr.msk.f32.gmra.mxu0 %vm2566_vm5, %v9870_v28 }
 0x307   : > { %3071 = vmatprep.mubr.f32.mxu1 %v12697_v62  ;;  %4229 = vmatprep.mubr.f32.mxu0 %v12697_v62 }
 0x30a   : > { %7004 = vmatmul.mubr.msk.f32.gmra.mxu1 %vm2566_vm5, %v9870_v28  ;;  %7163 = vmatmul.mubr.msk.f32.gmra.mxu0 %vm2566_vm5, %v9890_v51 }
 0x30b   : > { %3077 = vmatprep.mubr.f32.mxu1 %v12697_v62  ;;  %4235 = vmatprep.mubr.f32.mxu0 %v12697_v62 }
 0x30e   : > { %7005 = vmatmul.mubr.msk.f32.gmra.mxu1 %vm2566_vm5, %v9890_v51  ;;  %7164 = vmatmul.mubr.msk.f32.gmra.mxu0 %vm2566_vm5, %v9903_v10 }
 0x30f   : > { %3083 = vmatprep.mubr.f32.mxu1 %v12697_v62  ;;  %4241 = vmatprep.mubr.f32.mxu0 %v12697_v62 }
 0x312   : > { %7006 = vmatmul.mubr.msk.f32.gmra.mxu1 %vm2566_vm5, %v9903_v10  ;;  %7165 = vmatmul.mubr.msk.f32.gmra.mxu0 %vm2566_vm5, %v9914_v58 }
 0x313   : > { %3089 = vmatprep.mubr.f32.mxu1 %v12697_v62  ;;  %4247 = vmatprep.mubr.f32.mxu0 %v12697_v62 }
 0x316   : > { %7007 = vmatmul.mubr.msk.f32.gmra.mxu1 %vm2566_vm5, %v9914_v58  ;;  %7166 = vmatmul.mubr.msk.f32.gmra.mxu0 %vm2566_vm5, %v9925_v26 }
 0x317   : > { %3095 = vmatprep.mubr.f32.mxu1 %v12697_v62  ;;  %4253 = vmatprep.mubr.f32.mxu0 %v12697_v62 }
 0x31a   : > { %7008 = vmatmul.mubr.msk.f32.gmra.mxu1 %vm2566_vm5, %v9925_v26  ;;  %7167 = vmatmul.mubr.msk.f32.gmra.mxu0 %vm2566_vm5, %v9936_v61 }
 0x31b   : > { %3101 = vmatprep.mubr.f32.mxu1 %v12697_v62  ;;  %4259 = vmatprep.mubr.f32.mxu0 %v12697_v62 }
 0x31e   : > { %7009 = vmatmul.mubr.msk.f32.gmra.mxu1 %vm2566_vm5, %v9936_v61  ;;  %7168 = vmatmul.mubr.msk.f32.gmra.mxu0 %vm2566_vm5, %v9947_v24 }
 0x31f   : > { %3107 = vmatprep.mubr.f32.mxu1 %v12697_v62  ;;  %4265 = vmatprep.mubr.f32.mxu0 %v12697_v62 }
 0x322   : > { %7010 = vmatmul.mubr.msk.f32.gmra.mxu1 %vm2566_vm5, %v9947_v24  ;;  %7169 = vmatmul.mubr.msk.f32.gmra.mxu0 %vm2566_vm5, %v9958_v18 }
 0x323   : > { %3113 = vmatprep.mubr.f32.mxu1 %v12697_v62  ;;  %4271 = vmatprep.mubr.f32.mxu0 %v12697_v62 }
 0x326   : > { %v10260_v21 = vpop.f32.mrf.mxu1  ;;  %7011 = vmatmul.mubr.msk.f32.gmra.mxu1 %vm2566_vm5, %v9958_v18  ;;  %v10264_v50 = vpop.f32.mrf.mxu0  ;;  %7170 = vmatmul.mubr.msk.f32.gmra.mxu0 %vm2566_vm5, %v9969_v43 }
 0x327   : > { %3119 = vmatprep.mubr.f32.mxu1 %v12697_v62  ;;  %4277 = vmatprep.mubr.f32.mxu0 %v12697_v62 }
 0x328   : > { %v10270_v19 = vpop.f32.mrf.mxu1  ;;  %v10272_v36 = vpop.f32.mrf.mxu0 }
 0x32a   : > { %v10274_v56 = vpop.f32.mrf.mxu1  ;;  %7012 = vmatmul.mubr.msk.f32.gmra.mxu1 %vm2566_vm5, %v9969_v43  ;;  %v10278_v52 = vpop.f32.mrf.mxu0  ;;  %7171 = vmatmul.mubr.msk.f32.gmra.mxu0 %vm2566_vm5, %v9980_v3 }
 0x32b   : > { %3125 = vmatprep.mubr.f32.mxu1 %v12697_v62  ;;  %4283 = vmatprep.mubr.f32.mxu0 %v12697_v62 }
 0x32c   : > { %v10284_v7 = vpop.f32.mrf.mxu1  ;;  %v10286_v53 = vpop.f32.mrf.mxu0 }
 0x32e   : > { %v10288_v48 = vpop.f32.mrf.mxu1  ;;  %7013 = vmatmul.mubr.msk.f32.gmra.mxu1 %vm2566_vm5, %v9980_v3  ;;  %v10292_v29 = vpop.f32.mrf.mxu0  ;;  %7172 = vmatmul.mubr.msk.f32.gmra.mxu0 %vm2566_vm5, %v9991_v63 }
 0x32f   : > { %3131 = vmatprep.mubr.f32.mxu1 %v12697_v62  ;;  %4289 = vmatprep.mubr.f32.mxu0 %v12697_v62 }
 0x330   : > { %v10298_v12 = vpop.f32.mrf.mxu1  ;;  %v10300_v30 = vpop.f32.mrf.mxu0 }
 0x332   : > { %v10302_v60 = vpop.f32.mrf.mxu1  ;;  %7014 = vmatmul.mubr.msk.f32.gmra.mxu1 %vm2566_vm5, %v9991_v63  ;;  %v10306_v22 = vpop.f32.mrf.mxu0  ;;  %7173 = vmatmul.mubr.msk.f32.gmra.mxu0 %vm2566_vm5, %v10002_v13 }
 0x333   : > { %3137 = vmatprep.mubr.f32.mxu1 %v12697_v62  ;;  %4295 = vmatprep.mubr.f32.mxu0 %v12697_v62 }
 0x334   : > { %v10312_v16 = vpop.f32.mrf.mxu1  ;;  %v10314_v37 = vpop.f32.mrf.mxu0 }
 0x336   : > { %v10316_v2 = vpop.f32.mrf.mxu1  ;;  %7015 = vmatmul.mubr.msk.f32.gmra.mxu1 %vm2566_vm5, %v10002_v13  ;;  %v10320_v54 = vpop.f32.mrf.mxu0  ;;  %7174 = vmatmul.mubr.msk.f32.gmra.mxu0 %vm2566_vm5, %v10013_v5 }
 0x337   : > { %3143 = vmatprep.mubr.f32.mxu1 %v12697_v62  ;;  %4301 = vmatprep.mubr.f32.mxu0 %v12697_v62 }
 0x338   : > { %v10326_v39 = vpop.f32.mrf.mxu1  ;;  %v10328_v46 = vpop.f32.mrf.mxu0 }
 0x33a   : > { %v10330_v35 = vpop.f32.mrf.mxu1  ;;  %7016 = vmatmul.mubr.msk.f32.gmra.mxu1 %vm2566_vm5, %v10013_v5  ;;  %v10334_v32 = vpop.f32.mrf.mxu0  ;;  %7175 = vmatmul.mubr.msk.f32.gmra.mxu0 %vm2566_vm5, %v10024_v9 }
 0x33b   : > { %3149 = vmatprep.mubr.f32.mxu1 %v12697_v62  ;;  %4307 = vmatprep.mubr.f32.mxu0 %v12697_v62 }
 0x33c   : > { %v10340_v57 = vpop.f32.mrf.mxu1  ;;  %v10342_v14 = vpop.f32.mrf.mxu0 }
 0x33e   : > { %v10344_v20 = vpop.f32.mrf.mxu1  ;;  %7017 = vmatmul.mubr.msk.f32.gmra.mxu1 %vm2566_vm5, %v10024_v9  ;;  %v10348_v40 = vpop.f32.mrf.mxu0  ;;  %7176 = vmatmul.mubr.msk.f32.gmra.mxu0 %vm2566_vm5, %v10035_v25 }
 0x33f   : > { %12698 = vst [vmem:[#allocation5_spill] sm:$0xff] %v10348_v40  ;;  %3155 = vmatprep.mubr.f32.mxu1 %v12697_v62  ;;  %4313 = vmatprep.mubr.f32.mxu0 %v12697_v62 }
 0x340   : > { %v10354_v45 = vpop.f32.mrf.mxu1  ;;  %v10356_v0 = vpop.f32.mrf.mxu0 }
 0x341   : > { %12699 = vst [vmem:[#allocation40_spill] sm:$0xff] %v10354_v45  ;;  %12700 = vst [vmem:[#allocation6_spill] sm:$0xff] %v10356_v0 }
 0x342   : > { %v10358_v41 = vpop.f32.mrf.mxu1  ;;  %7018 = vmatmul.mubr.msk.f32.gmra.mxu1 %vm2566_vm5, %v10035_v25  ;;  %v10362_v31 = vpop.f32.mrf.mxu0  ;;  %7177 = vmatmul.mubr.msk.f32.gmra.mxu0 %vm2566_vm5, %v10046_v44 }
 0x343   : > { %12701 = vst [vmem:[#allocation41_spill] sm:$0xff] %v10358_v41  ;;  %12702 = vst [vmem:[#allocation7_spill] sm:$0xff] %v10362_v31  ;;  %3161 = vmatprep.mubr.f32.mxu1 %v12697_v62  ;;  %4319 = vmatprep.mubr.f32.mxu0 %v12697_v62 }
 0x344   : > { %v10368_v15 = vpop.f32.mrf.mxu1  ;;  %v10370_v27 = vpop.f32.mrf.mxu0 }
 0x345   : > { %12703 = vst [vmem:[#allocation42_spill] sm:$0xff] %v10368_v15  ;;  %12704 = vst [vmem:[#allocation8_spill] sm:$0xff] %v10370_v27  ;;  %v3643_v27 = vrot.slane %v9631_v34, 6 }
 0x346   : > { %v10372_v17 = vpop.f32.mrf.mxu1  ;;  %7019 = vmatmul.mubr.msk.f32.gmra.mxu1 %vm2566_vm5, %v10046_v44  ;;  %v10376_v0 = vpop.f32.mrf.mxu0  ;;  %7178 = vmatmul.mubr.msk.f32.gmra.mxu0 %vm2566_vm5, %v10057_v6 }
 0x347   : > { %12705 = vst [vmem:[#allocation43_spill] sm:$0xff] %v10372_v17  ;;  %12706 = vst [vmem:[#allocation9_spill] sm:$0xff] %v10376_v0  ;;  %3167 = vmatprep.mubr.f32.mxu1 %v12697_v62  ;;  %4325 = vmatprep.mubr.f32.mxu0 %v12697_v62  ;;  %v3642_v0 = vrot.slane %v9628_v4, 6 }
 0x348   : > { %v10382_v31 = vpop.f32.mrf.mxu1  ;;  %v10384_v40 = vpop.f32.mrf.mxu0 }
 0x349   : > { %12707 = vst [vmem:[#allocation45_spill] sm:$0xff] %v10382_v31  ;;  %12708 = vst [vmem:[#allocation10_spill] sm:$0xff] %v10384_v40  ;;  %v3644_v34 = vsel %vm3641_vm6, %v3642_v0, %v3643_v27  ;;  %v7224_v0 = vld [vmem:[%s12595_s4 + $0x118] sm:$0xff] }
 0x34a   : > { %v10387_v15 = vpop.f32.mrf.mxu1  ;;  %7020 = vmatmul.mubr.msk.f32.gmra.mxu1 %vm2566_vm5, %v10057_v6  ;;  %v10391_v17 = vpop.f32.mrf.mxu0  ;;  %7179 = vmatmul.mubr.msk.f32.gmra.mxu0 %vm2566_vm5, %v10059_v47 }
 0x34b   : > { %12709 = vst [vmem:[#allocation46_spill] sm:$0xff] %v10387_v15  ;;  %12710 = vst [vmem:[#allocation11_spill] sm:$0xff] %v10391_v17  ;;  %3829 = vmatprep.mubr.f32.mxu1 %v12697_v62  ;;  %v3645_v15 = vrot.slane %v9638_v59, 6  ;;  %v4533_v59 = vld [vmem:[%s12595_s4 + $0x78] sm:$0xff]  ;;  %4858 = vmatpush1.msra.mxu0 %v7224_v0 }
 0x34c   : > { %v10397_v31 = vpop.f32.mrf.mxu1  ;;  %v10399_v40 = vpop.f32.mrf.mxu0  ;;  %4859 = vmatprep.subr.mxu0 %v12697_v62 }
 0x34d   : > { %12711 = vst [vmem:[#allocation47_spill] sm:$0xff] %v10397_v31  ;;  %12712 = vst [vmem:[#allocation12_spill] sm:$0xff] %v10399_v40  ;;  %v3646_v31 = vsel %vm3641_vm6, %v3643_v27, %v3645_v15  ;;  %v3647_v40 = vrot.slane %v9663_v33, 6 }
 0x34e   : > { %v10403_v41 = vpop.f32.mrf.mxu1  ;;  %v10405_v45 = vpop.f32.mrf.mxu0  ;;  %7098 = vmatmul.mubr.msk.f32.vlgmr.msra.gmra.mxu1 %vm2566_vm5, %v3644_v34 }
 0x34f   : > { %12713 = vst [vmem:[#allocation13_spill] sm:$0xff] %v10403_v41  ;;  %12714 = vst [vmem:[#allocation14_spill] sm:$0xff] %v10405_v45  ;;  %3835 = vmatprep.mubr.f32.mxu1 %v12697_v62  ;;  %4627 = vmatpush1.msra.mxu1 %v4533_v59  ;;  %v7223_v59 = vld [vmem:[%s12595_s4 + $0x110] sm:$0xff] }
 0x350   : > { %v10409_v17 = vpop.f32.mrf.mxu1  ;;  %v10411_v4 = vpop.f32.mrf.mxu0  ;;  %4628 = vmatprep.subr.mxu1 %v12697_v62  ;;  %4860 = vmatpush1.msra.mxu0 %v7223_v59  ;;  %v4531_v59 = vld [vmem:[%s12595_s4 + $0x68] sm:$0xff] }
 0x351   : > { %12715 = vst [vmem:[#allocation15_spill] sm:$0xff] %v10409_v17  ;;  %12716 = vst [vmem:[#allocation16_spill] sm:$0xff] %v10411_v4  ;;  %v3648_v4 = vsel %vm3641_vm6, %v3645_v15, %v3647_v40  ;;  %4861 = vmatprep.subr.mxu0 %v12697_v62 }
 0x352   : > { %v10421_v45 = vpop.f32.mrf.mxu1  ;;  %v10423_v34 = vpop.f32.mrf.mxu0  ;;  %7099 = vmatmul.mubr.msk.f32.gmra.mxu1 %vm2566_vm5, %v3646_v31  ;;  %v4532_v31 = vld [vmem:[%s12595_s4 + $0x70] sm:$0xff] }
 0x353   : > { %12717 = vst [vmem:[#allocation17_spill] sm:$0xff] %v10421_v45  ;;  %12718 = vst [vmem:[#allocation18_spill] sm:$0xff] %v10423_v34  ;;  %3841 = vmatprep.mubr.f32.mxu1 %v12697_v62  ;;  %v3649_v45 = vrot.slane %v9686_v42, 6  ;;  %4629 = vmatpush1.msra.mxu1 %v4532_v31 }
 0x354   : > { %v10427_v27 = vpop.f32.mrf.mxu1  ;;  %v10429_v33 = vpop.f32.mrf.mxu0  ;;  %4630 = vmatprep.subr.mxu1 %v12697_v62 }
 0x355   : > { %12719 = vst [vmem:[#allocation19_spill] sm:$0xff] %v10427_v27  ;;  %12720 = vst [vmem:[#allocation20_spill] sm:$0xff] %v10429_v33  ;;  %v3650_v42 = vsel %vm3641_vm6, %v3647_v40, %v3649_v45  ;;  %4631 = vmatpush1.msra.mxu1 %v4531_v59 }
 0x356   : > { %v10435_v17 = vpop.f32.mrf.mxu1  ;;  %v10437_v34 = vpop.f32.mrf.mxu0  ;;  %7100 = vmatmul.mubr.msk.f32.gmra.mxu1 %vm2566_vm5, %v3648_v4  ;;  %v3651_v4 = vrot.slane %v9709_v38, 6  ;;  %v3653_v38 = vrot.slane %v9732_v1, 6  ;;  %4632 = vmatprep.subr.mxu1 %v12697_v62 }
 0x357   : > { %12721 = vst [vmem:[#allocation21_spill] sm:$0xff] %v10435_v17  ;;  %12722 = vst [vmem:[#allocation22_spill] sm:$0xff] %v10437_v34  ;;  %3847 = vmatprep.mubr.f32.mxu1 %v12697_v62 }
 0x358   : > { %v10447_v0 = vpop.f32.mrf.mxu1  ;;  %v10449_v15 = vpop.f32.mrf.mxu0  ;;  %v3652_v40 = vsel %vm3641_vm6, %v3649_v45, %v3651_v4 }
 0x359   : > { %12723 = vst [vmem:[#allocation23_spill] sm:$0xff] %v10447_v0  ;;  %12724 = vst [vmem:[#allocation24_spill] sm:$0xff] %v10449_v15 }
 0x35a   : > { %v10455_v34 = vpop.f32.mrf.mxu1  ;;  %v10457_v33 = vpop.f32.mrf.mxu0  ;;  %7101 = vmatmul.mubr.msk.f32.gmra.mxu1 %vm2566_vm5, %v3650_v42 }
 0x35b   : > { %12725 = vst [vmem:[#allocation25_spill] sm:$0xff] %v10455_v34  ;;  %12726 = vst [vmem:[#allocation26_spill] sm:$0xff] %v10457_v33  ;;  %3853 = vmatprep.mubr.f32.mxu1 %v12697_v62  ;;  %v7222_v33 = vld [vmem:[%s12595_s4 + $0x108] sm:$0xff] }
 0x35c   : > { %v10461_v0 = vpop.f32.mrf.mxu1  ;;  %v10463_v31 = vpop.f32.mrf.mxu0  ;;  %4862 = vmatpush1.msra.mxu0 %v7222_v33  ;;  %v4530_v33 = vld [vmem:[%s12595_s4 + $0x60] sm:$0xff] }
 0x35d   : > { %12727 = vst [vmem:[#allocation27_spill] sm:$0xff] %v10461_v0  ;;  %12728 = vst [vmem:[#allocation28_spill] sm:$0xff] %v10463_v31  ;;  %4863 = vmatprep.subr.mxu0 %v12697_v62  ;;  %v3654_v31 = vsel %vm3641_vm6, %v3651_v4, %v3653_v38  ;;  %4633 = vmatpush1.msra.mxu1 %v4530_v33 }
 0x35e   : > { %v10473_v15 = vpop.f32.mrf.mxu1  ;;  %v10475_v42 = vpop.f32.mrf.mxu0  ;;  %7102 = vmatmul.mubr.msk.f32.gmra.mxu1 %vm2566_vm5, %v3652_v40  ;;  %v7221_v40 = vld [vmem:[%s12595_s4 + $0x100] sm:$0xff]  ;;  %4634 = vmatprep.subr.mxu1 %v12697_v62 }
 0x35f   : > { %12729 = vst [vmem:[#allocation29_spill] sm:$0xff] %v10473_v15  ;;  %12730 = vst [vmem:[#allocation30_spill] sm:$0xff] %v10475_v42  ;;  %3859 = vmatprep.mubr.f32.mxu1 %v12697_v62  ;;  %v3655_v15 = vrot.slane %v9755_v23, 6  ;;  %4864 = vmatpush1.msra.mxu0 %v7221_v40  ;;  %v4529_v40 = vld [vmem:[%s12595_s4 + $0x58] sm:$0xff] }
 0x360   : > { %v10479_v45 = vpop.f32.mrf.mxu1  ;;  %v10481_v1 = vpop.f32.mrf.mxu0  ;;  %4865 = vmatprep.subr.mxu0 %v12697_v62  ;;  %4635 = vmatpush1.msra.mxu1 %v4529_v40 }
 0x361   : > { %12731 = vst [vmem:[#allocation31_spill] sm:$0xff] %v10479_v45  ;;  %12732 = vst [vmem:[#allocation32_spill] sm:$0xff] %v10481_v1  ;;  %v3656_v23 = vsel %vm3641_vm6, %v3653_v38, %v3655_v15  ;;  %4636 = vmatprep.subr.mxu1 %v12697_v62 }
 0x362   : > { %v10487_v0 = vpop.f32.mrf.mxu1  ;;  %v10489_v42 = vpop.f32.mrf.mxu0  ;;  %7103 = vmatmul.mubr.msk.f32.gmra.mxu1 %vm2566_vm5, %v3654_v31  ;;  %v3657_v31 = vrot.slane %v9778_v11, 6  ;;  %v3659_v11 = vrot.slane %v9801_v55, 6 }
 0x363   : > { %12733 = vst [vmem:[#allocation33_spill] sm:$0xff] %v10487_v0  ;;  %12734 = vst [vmem:[#allocation34_spill] sm:$0xff] %v10489_v42  ;;  %3865 = vmatprep.mubr.f32.mxu1 %v12697_v62 }
 0x364   : > { %v10499_v59 = vpop.f32.mrf.mxu1  ;;  %v10501_v4 = vpop.f32.mrf.mxu0  ;;  %v3658_v38 = vsel %vm3641_vm6, %v3655_v15, %v3657_v31 }
 0x365   : > { %12735 = vst [vmem:[#allocation35_spill] sm:$0xff] %v10499_v59  ;;  %12736 = vst [vmem:[#allocation36_spill] sm:$0xff] %v10501_v4 }
 0x366   : > { %v10507_v42 = vpop.f32.mrf.mxu1  ;;  %v10509_v1 = vpop.f32.mrf.mxu0  ;;  %7104 = vmatmul.mubr.msk.f32.gmra.mxu1 %vm2566_vm5, %v3656_v23 }
 0x367   : > { %12737 = vst [vmem:[#allocation37_spill] sm:$0xff] %v10507_v42  ;;  %12738 = vst [vmem:[#allocation38_spill] sm:$0xff] %v10509_v1  ;;  %3871 = vmatprep.mubr.f32.mxu1 %v12697_v62  ;;  %v7220_v1 = vld [vmem:[%s12595_s4 + $0xf8] sm:$0xff] }
 0x368   : > { %v10513_v59 = vpop.f32.mrf.mxu1  ;;  %v10515_v33 = vpop.f32.mrf.mxu0  ;;  %4866 = vmatpush1.msra.mxu0 %v7220_v1  ;;  %v4528_v1 = vld [vmem:[%s12595_s4 + $0x50] sm:$0xff] }
 0x369   : > { %12739 = vst [vmem:[#allocation39_spill] sm:$0xff] %v10513_v59  ;;  %12740 = vst [vmem:[#allocation48_spill] sm:$0xff] %v10515_v33  ;;  %4867 = vmatprep.subr.mxu0 %v12697_v62  ;;  %v3660_v33 = vsel %vm3641_vm6, %v3657_v31, %v3659_v11  ;;  %4637 = vmatpush1.msra.mxu1 %v4528_v1 }
 0x36a   : > { %v10525_v4 = vpop.f32.mrf.mxu1  ;;  %v10527_v23 = vpop.f32.mrf.mxu0  ;;  %7105 = vmatmul.mubr.msk.f32.gmra.mxu1 %vm2566_vm5, %v3658_v38  ;;  %v7219_v38 = vld [vmem:[%s12595_s4 + $0xf0] sm:$0xff]  ;;  %4638 = vmatprep.subr.mxu1 %v12697_v62 }
 0x36b   : > { %12741 = vst [vmem:[#allocation49_spill] sm:$0xff] %v10525_v4  ;;  %12742 = vst [vmem:[#allocation50_spill] sm:$0xff] %v10527_v23  ;;  %3877 = vmatprep.mubr.f32.mxu1 %v12697_v62  ;;  %v3661_v4 = vrot.slane %v9824_v8, 6  ;;  %4868 = vmatpush1.msra.mxu0 %v7219_v38  ;;  %v4527_v38 = vld [vmem:[%s12595_s4 + $0x48] sm:$0xff] }
 0x36c   : > { %v10531_v15 = vpop.f32.mrf.mxu1  ;;  %v10533_v55 = vpop.f32.mrf.mxu0  ;;  %4869 = vmatprep.subr.mxu0 %v12697_v62  ;;  %4639 = vmatpush1.msra.mxu1 %v4527_v38 }
 0x36d   : > { %12743 = vst [vmem:[#allocation51_spill] sm:$0xff] %v10531_v15  ;;  %12744 = vst [vmem:[#allocation52_spill] sm:$0xff] %v10533_v55  ;;  %v3662_v8 = vsel %vm3641_vm6, %v3659_v11, %v3661_v4  ;;  %4640 = vmatprep.subr.mxu1 %v12697_v62 }
 0x36e   : > { %v10539_v59 = vpop.f32.mrf.mxu1  ;;  %v10541_v23 = vpop.f32.mrf.mxu0  ;;  %7106 = vmatmul.mubr.msk.f32.gmra.mxu1 %vm2566_vm5, %v3660_v33  ;;  %v3663_v33 = vrot.slane %v9847_v49, 6  ;;  %v3665_v49 = vrot.slane %v9870_v28, 6 }
 0x36f   : > { %12745 = vst [vmem:[#allocation53_spill] sm:$0xff] %v10539_v59  ;;  %12746 = vst [vmem:[#allocation54_spill] sm:$0xff] %v10541_v23  ;;  %3883 = vmatprep.mubr.f32.mxu1 %v12697_v62 }
 0x370   : > { %v10551_v40 = vpop.f32.mrf.mxu1  ;;  %v10553_v31 = vpop.f32.mrf.mxu0  ;;  %v3664_v11 = vsel %vm3641_vm6, %v3661_v4, %v3663_v33 }
 0x371   : > { %12747 = vst [vmem:[#allocation55_spill] sm:$0xff] %v10551_v40  ;;  %12748 = vst [vmem:[#allocation56_spill] sm:$0xff] %v10553_v31 }
 0x372   : > { %v10559_v23 = vpop.f32.mrf.mxu1  ;;  %v10561_v55 = vpop.f32.mrf.mxu0  ;;  %7107 = vmatmul.mubr.msk.f32.gmra.mxu1 %vm2566_vm5, %v3662_v8 }
 0x373   : > { %12749 = vst [vmem:[#allocation57_spill] sm:$0xff] %v10559_v23  ;;  %12750 = vst [vmem:[#allocation58_spill] sm:$0xff] %v10561_v55  ;;  %3889 = vmatprep.mubr.f32.mxu1 %v12697_v62  ;;  %v7218_v55 = vld [vmem:[%s12595_s4 + $0xe8] sm:$0xff] }
 0x374   : > { %v10565_v40 = vpop.f32.mrf.mxu1  ;;  %v10567_v1 = vpop.f32.mrf.mxu0  ;;  %4870 = vmatpush1.msra.mxu0 %v7218_v55  ;;  %v4526_v55 = vld [vmem:[%s12595_s4 + $0x40] sm:$0xff] }
 0x375   : > { %12751 = vst [vmem:[#allocation59_spill] sm:$0xff] %v10565_v40  ;;  %12752 = vst [vmem:[#allocation60_spill] sm:$0xff] %v10567_v1  ;;  %4871 = vmatprep.subr.mxu0 %v12697_v62  ;;  %v3666_v1 = vsel %vm3641_vm6, %v3663_v33, %v3665_v49  ;;  %4641 = vmatpush1.msra.mxu1 %v4526_v55 }
 0x376   : > { %v10577_v31 = vpop.f32.mrf.mxu1  ;;  %v10579_v8 = vpop.f32.mrf.mxu0  ;;  %7108 = vmatmul.mubr.msk.f32.gmra.mxu1 %vm2566_vm5, %v3664_v11  ;;  %v7217_v11 = vld [vmem:[%s12595_s4 + $0xe0] sm:$0xff]  ;;  %4642 = vmatprep.subr.mxu1 %v12697_v62 }
 0x377   : > { %12753 = vst [vmem:[#allocation61_spill] sm:$0xff] %v10577_v31  ;;  %12754 = vst [vmem:[#allocation62_spill] sm:$0xff] %v10579_v8  ;;  %3895 = vmatprep.mubr.f32.mxu1 %v12697_v62  ;;  %v3667_v31 = vrot.slane %v9890_v51, 6  ;;  %4872 = vmatpush1.msra.mxu0 %v7217_v11  ;;  %v4525_v11 = vld [vmem:[%s12595_s4 + $0x38] sm:$0xff] }
 0x378   : > { %v10583_v4 = vpop.f32.mrf.mxu1  ;;  %v10585_v28 = vpop.f32.mrf.mxu0  ;;  %4873 = vmatprep.subr.mxu0 %v12697_v62  ;;  %4643 = vmatpush1.msra.mxu1 %v4525_v11 }
 0x379   : > { %12755 = vst [vmem:[#allocation63_spill] sm:$0xff] %v10583_v4  ;;  %12756 = vst [vmem:[#allocation64_spill] sm:$0xff] %v10585_v28  ;;  %v3668_v51 = vsel %vm3641_vm6, %v3665_v49, %v3667_v31  ;;  %4644 = vmatprep.subr.mxu1 %v12697_v62 }
 0x37a   : > { %v10591_v40 = vpop.f32.mrf.mxu1  ;;  %v10593_v8 = vpop.f32.mrf.mxu0  ;;  %7109 = vmatmul.mubr.msk.f32.gmra.mxu1 %vm2566_vm5, %v3666_v1  ;;  %v3669_v1 = vrot.slane %v9903_v10, 6  ;;  %v3671_v10 = vrot.slane %v9914_v58, 6 }
 0x37b   : > { %12757 = vst [vmem:[#allocation65_spill] sm:$0xff] %v10591_v40  ;;  %12758 = vst [vmem:[#allocation66_spill] sm:$0xff] %v10593_v8  ;;  %3901 = vmatprep.mubr.f32.mxu1 %v12697_v62 }
 0x37c   : > { %v10603_v38 = vpop.f32.mrf.mxu1  ;;  %v10605_v33 = vpop.f32.mrf.mxu0  ;;  %v3670_v49 = vsel %vm3641_vm6, %v3667_v31, %v3669_v1 }
 0x37d   : > { %12759 = vst [vmem:[#allocation67_spill] sm:$0xff] %v10603_v38  ;;  %12760 = vst [vmem:[#allocation68_spill] sm:$0xff] %v10605_v33 }
 0x37e   : > { %v10611_v8 = vpop.f32.mrf.mxu1  ;;  %v10613_v28 = vpop.f32.mrf.mxu0  ;;  %7110 = vmatmul.mubr.msk.f32.gmra.mxu1 %vm2566_vm5, %v3668_v51 }
 0x37f   : > { %12761 = vst [vmem:[#allocation69_spill] sm:$0xff] %v10611_v8  ;;  %12762 = vst [vmem:[#allocation70_spill] sm:$0xff] %v10613_v28  ;;  %3907 = vmatprep.mubr.f32.mxu1 %v12697_v62  ;;  %v7216_v28 = vld [vmem:[%s12595_s4 + $0xd8] sm:$0xff] }
 0x380   : > { %v10617_v38 = vpop.f32.mrf.mxu1  ;;  %v10619_v55 = vpop.f32.mrf.mxu0  ;;  %4874 = vmatpush1.msra.mxu0 %v7216_v28  ;;  %v7215_v28 = vld [vmem:[%s12595_s4 + $0xd0] sm:$0xff] }
 0x381   : > { %12763 = vst [vmem:[#allocation71_spill] sm:$0xff] %v10617_v38  ;;  %12764 = vst [vmem:[#allocation72_spill] sm:$0xff] %v10619_v55  ;;  %4875 = vmatprep.subr.mxu0 %v12697_v62  ;;  %v3672_v55 = vsel %vm3641_vm6, %v3669_v1, %v3671_v10  ;;  %v7214_v1 = vld [vmem:[%s12595_s4 + $0xc8] sm:$0xff] }
 0x382   : > { %v10629_v33 = vpop.f32.mrf.mxu1  ;;  %v10631_v51 = vpop.f32.mrf.mxu0  ;;  %7111 = vmatmul.mubr.msk.f32.gmra.mxu1 %vm2566_vm5, %v3670_v49  ;;  %v4524_v49 = vld [vmem:[%s12595_s4 + $0x30] sm:$0xff]  ;;  %4876 = vmatpush1.msra.mxu0 %v7215_v28  ;;  %v4522_v28 = vld [vmem:[%s12595_s4 + $0x20] sm:$0xff] }
 0x383   : > { %12765 = vst [vmem:[#allocation73_spill] sm:$0xff] %v10629_v33  ;;  %12766 = vst [vmem:[#allocation74_spill] sm:$0xff] %v10631_v51  ;;  %3913 = vmatprep.mubr.f32.mxu1 %v12697_v62  ;;  %v3673_v33 = vrot.slane %v9925_v26, 6  ;;  %4645 = vmatpush1.msra.mxu1 %v4524_v49  ;;  %v4523_v26 = vld [vmem:[%s12595_s4 + $0x28] sm:$0xff]  ;;  %v3675_v49 = vrot.slane %v9936_v61, 6  ;;  %v7212_v61 = vld [vmem:[%s12595_s4 + $0xb8] sm:$0xff] }
 0x384   : > { %v10635_v31 = vpop.f32.mrf.mxu1  ;;  %v10637_v58 = vpop.f32.mrf.mxu0  ;;  %4646 = vmatprep.subr.mxu1 %v12697_v62  ;;  %4877 = vmatprep.subr.mxu0 %v12697_v62 }
 0x385   : > { %12767 = vst [vmem:[#allocation75_spill] sm:$0xff] %v10635_v31  ;;  %12768 = vst [vmem:[#allocation76_spill] sm:$0xff] %v10637_v58  ;;  %4647 = vmatpush1.msra.mxu1 %v4523_v26  ;;  %4878 = vmatpush1.msra.mxu0 %v7214_v1  ;;  %v4521_v1 = vld [vmem:[%s12595_s4 + $0x18] sm:$0xff] }
 0x386   : > { %v10649_v11 = vpop.f32.mrf.mxu1  ;;  %v10651_v51 = vpop.f32.mrf.mxu0  ;;  %7112 = vmatmul.mubr.msk.f32.gmra.mxu1 %vm2566_vm5, %v3672_v55  ;;  %v3674_v55 = vsel %vm3641_vm6, %v3671_v10, %v3673_v33  ;;  %4648 = vmatprep.subr.mxu1 %v12697_v62 }
 0x387   : > { %12769 = vst [vmem:[#allocation77_spill] sm:$0xff] %v10649_v11  ;;  %12770 = vst [vmem:[#allocation78_spill] sm:$0xff] %v10651_v51  ;;  %3919 = vmatprep.mubr.f32.mxu1 %v12697_v62  ;;  %v7213_v51 = vld [vmem:[%s12595_s4 + $0xc0] sm:$0xff]  ;;  %4879 = vmatprep.subr.mxu0 %v12697_v62 }
 0x388   : > { %v10661_v58 = vpop.f32.mrf.mxu1  ;;  %v10663_v31 = vpop.f32.mrf.mxu0  ;;  %4649 = vmatpush1.msra.mxu1 %v4522_v28  ;;  %4880 = vmatpush1.msra.mxu0 %v7213_v51  ;;  %v4520_v51 = vld [vmem:[%s12595_s4 + $0x10] sm:$0xff] }
 0x389   : > { %12771 = vst [vmem:[#allocation79_spill] sm:$0xff] %v10661_v58  ;;  %12772 = vst [vmem:[#allocation80_spill] sm:$0xff] %v10663_v31  ;;  %4650 = vmatprep.subr.mxu1 %v12697_v62  ;;  %4881 = vmatprep.subr.mxu0 %v12697_v62 }
 0x38a   : > { %v10675_v58 = vpop.f32.mrf.mxu1  ;;  %v10677_v31 = vpop.f32.mrf.mxu0  ;;  %7113 = vmatmul.mubr.msk.f32.gmra.mxu1 %vm2566_vm5, %v3674_v55  ;;  %v3676_v55 = vsel %vm3641_vm6, %v3673_v33, %v3675_v49  ;;  %4882 = vmatpush1.msra.mxu0 %v7212_v61  ;;  %v7211_v33 = vld [vmem:[%s12595_s4 + $0xb0] sm:$0xff] }
 0x38b   : > { %12773 = vst [vmem:[#allocation81_spill] sm:$0xff] %v10675_v58  ;;  %12774 = vst [vmem:[#allocation82_spill] sm:$0xff] %v10677_v31  ;;  %3925 = vmatprep.mubr.f32.mxu1 %v12697_v62  ;;  %v3677_v31 = vrot.slane %v9947_v24, 6  ;;  %4651 = vmatpush1.msra.mxu1 %v4521_v1  ;;  %v7210_v1 = vld [vmem:[%s12595_s4 + $0xa8] sm:$0xff] }
 0x38c   : > { %v10686_v10 = vpop.f32.mrf.mxu1  ;;  %v10688_v26 = vpop.f32.mrf.mxu0  ;;  %4652 = vmatprep.subr.mxu1 %v12697_v62  ;;  %4883 = vmatprep.subr.mxu0 %v12697_v62 }
 0x38d   : > { %12775 = vst [vmem:[#allocation83_spill] sm:$0xff] %v10686_v10  ;;  %12776 = vst [vmem:[#allocation84_spill] sm:$0xff] %v10688_v26  ;;  %v3678_v61 = vsel %vm3641_vm6, %v3675_v49, %v3677_v31  ;;  %4653 = vmatpush1.msra.mxu1 %v4520_v51  ;;  %4884 = vmatpush1.msra.mxu0 %v7211_v33  ;;  %v4518_v33 = vld [vmem:[%s12595_s4] sm:$0xff] }
 0x38e   : > { %v10697_v58 = vpop.f32.mrf.mxu1  ;;  %v10699_v11 = vpop.f32.mrf.mxu0  ;;  %7114 = vmatmul.mubr.msk.f32.gmra.mxu1 %vm2566_vm5, %v3676_v55  ;;  %v3679_v55 = vrot.slane %v9958_v18, 6  ;;  %4654 = vmatprep.subr.mxu1 %v12697_v62  ;;  %v7209_v18 = vld [vmem:[%s12595_s4 + $0xa0] sm:$0xff] }
 0x38f   : > { %12777 = vst [vmem:[#allocation85_spill] sm:$0xff] %v10697_v58  ;;  %12778 = vst [vmem:[#allocation86_spill] sm:$0xff] %v10699_v11  ;;  %3931 = vmatprep.mubr.f32.mxu1 %v12697_v62  ;;  %v4519_v11 = vld [vmem:[%s12595_s4 + $0x8] sm:$0xff]  ;;  %4885 = vmatprep.subr.mxu0 %v12697_v62  ;;  %v3691_v58 = vrot.slane %v10024_v9, 6 }
 0x390   : > { %v10709_v24 = vpop.f32.mrf.mxu1  ;;  %v10711_v28 = vpop.f32.mrf.mxu0  ;;  %4655 = vmatpush1.msra.mxu1 %v4519_v11  ;;  %4886 = vmatpush1.msra.mxu0 %v7210_v1  ;;  %v4537_v11 = vld [vmem:[%s12595_s4 + $0x98] sm:$0xff] }
 0x391   : > { %12779 = vst [vmem:[#allocation87_spill] sm:$0xff] %v10709_v24  ;;  %12780 = vst [vmem:[#allocation88_spill] sm:$0xff] %v10711_v28  ;;  %4656 = vmatprep.subr.mxu1 %v12697_v62  ;;  %4887 = vmatprep.subr.mxu0 %v12697_v62 }
 0x392   : > { %v10723_v24 = vpop.f32.mrf.mxu1  ;;  %v10725_v28 = vpop.f32.mrf.mxu0  ;;  %7115 = vmatmul.mubr.msk.f32.gmra.mxu1 %vm2566_vm5, %v3678_v61  ;;  %v3680_v61 = vsel %vm3641_vm6, %v3677_v31, %v3679_v55  ;;  %4888 = vmatpush1.msra.mxu0 %v7209_v18  ;;  %v7228_v31 = vld [vmem:[%s12595_s4 + $0x138] sm:$0xff]  ;;  %v3683_v18 = vrot.slane %v9980_v3, 6  ;;  %v7226_v3 = vld [vmem:[%s12595_s4 + $0x128] sm:$0xff] }
 0x393   : > { %12781 = vst [vmem:[#allocation89_spill] sm:$0xff] %v10723_v24  ;;  %12782 = vst [vmem:[#allocation90_spill] sm:$0xff] %v10725_v28  ;;  %3937 = vmatprep.mubr.f32.mxu1 %v12697_v62  ;;  %v3681_v28 = vrot.slane %v9969_v43, 6  ;;  %4657 = vmatpush1.msra.mxu1 %v4518_v33  ;;  %v7227_v33 = vld [vmem:[%s12595_s4 + $0x130] sm:$0xff] }
 0x394   : > { %v10734_v49 = vpop.f32.mrf.mxu1  ;;  %v10736_v51 = vpop.f32.mrf.mxu0  ;;  %4682 = vmatprep.subr.mxu1 %v12697_v62  ;;  %4913 = vmatprep.subr.mxu0 %v12697_v62 }
 0x395   : > { %12783 = vst [vmem:[#allocation91_spill] sm:$0xff] %v10734_v49  ;;  %12784 = vst [vmem:[#allocation92_spill] sm:$0xff] %v10736_v51  ;;  %v3682_v1 = vsel %vm3641_vm6, %v3679_v55, %v3681_v28  ;;  %4683 = vmatpush2.msra.mxu1 %v4537_v11  ;;  %4914 = vmatpush2.msra.mxu0 %v7228_v31  ;;  %v4535_v11 = vld [vmem:[%s12595_s4 + $0x88] sm:$0xff]  ;;  %v3684_v31 = vsel %vm3641_vm6, %v3681_v28, %v3683_v18  ;;  %v7225_v28 = vld [vmem:[%s12595_s4 + $0x120] sm:$0xff] }
 0x396   : > { %v10745_v24 = vpop.f32.mrf.mxu1  ;;  %v10747_v26 = vpop.f32.mrf.mxu0  ;;  %7116 = vmatmul.mubr.msk.f32.gmra.mxu1 %vm2566_vm5, %v3680_v61  ;;  %v4536_v61 = vld [vmem:[%s12595_s4 + $0x90] sm:$0xff]  ;;  %4684 = vmatprep.subr.mxu1 %v12697_v62 }
 0x397   : > { %12785 = vst [vmem:[#allocation93_spill] sm:$0xff] %v10745_v24  ;;  %12786 = vst [vmem:[#allocation94_spill] sm:$0xff] %v10747_v26  ;;  %3943 = vmatprep.mubr.f32.mxu1 %v12697_v62  ;;  %4915 = vmatprep.subr.mxu0 %v12697_v62 }
 0x398   : > { %v10757_v43 = vpop.f32.mrf.mxu1  ;;  %v10769_v26 = vpop.f32.mrf.mxu0  ;;  %4685 = vmatpush2.msra.mxu1 %v4536_v61  ;;  %4916 = vmatpush2.msra.mxu0 %v7227_v33  ;;  %v4534_v61 = vld [vmem:[%s12595_s4 + $0x80] sm:$0xff] }
 0x399   : > { %12787 = vst [vmem:[#allocation95_spill] sm:$0xff] %v10757_v43  ;;  %12788 = vst [vmem:[#allocation96_spill] sm:$0xff] %v10769_v26  ;;  %4686 = vmatprep.subr.mxu1 %v12697_v62  ;;  %4917 = vmatprep.subr.mxu0 %v12697_v62 }
 0x39a   : > { %v10771_v43 = vpop.f32.mrf.mxu1  ;;  %7117 = vmatmul.mubr.msk.f32.gmra.mxu1 %vm2566_vm5, %v3682_v1  ;;  %v3685_v1 = vrot.slane %v9991_v63, 6  ;;  %v10789_v26 = vpop.f32.mrf.mxu0  ;;  %4918 = vmatpush2.msra.mxu0 %v7226_v3  ;;  %v3687_v3 = vrot.slane %v10002_v13, 6  ;;  %v3689_v13 = vrot.slane %v10013_v5, 6 }
 0x39b   : > { %3949 = vmatprep.mubr.f32.mxu1 %v12697_v62  ;;  %4687 = vmatpush2.msra.mxu1 %v4535_v11 }
 0x39c   : > { %v10780_v55 = vpop.f32.mrf.mxu1  ;;  %4688 = vmatprep.subr.mxu1 %v12697_v62  ;;  %4919 = vmatprep.subr.mxu0 %v12697_v62  ;;  %v3686_v33 = vsel %vm3641_vm6, %v3683_v18, %v3685_v1  ;;  %v3688_v18 = vsel %vm3641_vm6, %v3685_v1, %v3687_v3  ;;  %v3690_v49 = vsel %vm3641_vm6, %v3687_v3, %v3689_v13  ;;  %v3695_v3 = vrot.slane %v10046_v44, 6 }
 0x39d   : > { %4689 = vmatpush2.msra.mxu1 %v4534_v61  ;;  %4920 = vmatpush2.msra.mxu0 %v7225_v28  ;;  %v3692_v1 = vsel %vm3641_vm6, %v3689_v13, %v3691_v58 }
 0x39e   : > { %v10791_v51 = vpop.f32.mrf.mxu1  ;;  %7118 = vmatmul.mubr.msk.f32.gmra.mxu1 %vm2566_vm5, %v3684_v31  ;;  %v10807_v31 = vpop.f32.mrf.mxu0  ;;  %7625 = vmatprep.subr.mxu1 %v12697_v62 }
 0x39f   : > { %3955 = vmatprep.mubr.f32.mxu1 %v12697_v62  ;;  %7726 = vmatprep.subr.mxu0 %v12697_v62 }
 0x3a0   : > { %v10801_v63 = vpop.f32.mrf.mxu1  ;;  %v10819_v61 = vpop.f32.mrf.mxu0 }
 0x3a2   : > { %v10809_v24 = vpop.f32.mrf.mxu1  ;;  %7119 = vmatmul.mubr.msk.f32.gmra.mxu1 %vm2566_vm5, %v3686_v33  ;;  %v10829_v10 = vpop.f32.mrf.mxu0 }
 0x3a3   : > { %3961 = vmatprep.mubr.f32.mxu1 %v12697_v62 }
 0x3a4   : > { %v10815_v11 = vpop.f32.mrf.mxu1  ;;  %v10839_v8 = vpop.f32.mrf.mxu0 }
 0x3a6   : > { %v10821_v28 = vpop.f32.mrf.mxu1  ;;  %7120 = vmatmul.mubr.msk.f32.gmra.mxu1 %vm2566_vm5, %v3688_v18  ;;  %v3693_v18 = vrot.slane %v10035_v25, 6  ;;  %v10849_v4 = vpop.f32.mrf.mxu0 }
 0x3a7   : > { %3967 = vmatprep.mubr.f32.mxu1 %v12697_v62 }
 0x3a8   : > { %v10825_v33 = vpop.f32.mrf.mxu1  ;;  %v3696_v13 = vsel %vm3641_vm6, %v3693_v18, %v3695_v3  ;;  %v10859_v59 = vpop.f32.mrf.mxu0 }
 0x3aa   : > { %v10831_v38 = vpop.f32.mrf.mxu1  ;;  %7121 = vmatmul.mubr.msk.f32.gmra.mxu1 %vm2566_vm5, %v3690_v49  ;;  %v3694_v49 = vsel %vm3641_vm6, %v3691_v58, %v3693_v18  ;;  %v3699_v58 = vrot.slane %v10059_v47, 6  ;;  %v10869_v42 = vpop.f32.mrf.mxu0 }
 0x3ab   : > { %3973 = vmatprep.mubr.f32.mxu1 %v12697_v62 }
 0x3ac   : > { %v10835_v5 = vpop.f32.mrf.mxu1 }
 0x3ae   : > { %v10841_v40 = vpop.f32.mrf.mxu1  ;;  %7122 = vmatmul.mubr.msk.f32.gmra.mxu1 %vm2566_vm5, %v3692_v1  ;;  %v3697_v1 = vrot.slane %v10057_v6, 6 }
 0x3af   : > { %3979 = vmatprep.mubr.f32.mxu1 %v12697_v62 }
 0x3b0   : > { %v10845_v9 = vpop.f32.mrf.mxu1  ;;  %v3700_v18 = vsel %vm3641_vm6, %v3697_v1, %v3699_v58 }
 0x3b2   : > { %v10851_v23 = vpop.f32.mrf.mxu1  ;;  %7123 = vmatmul.mubr.msk.f32.gmra.mxu1 %vm2566_vm5, %v3694_v49  ;;  %v3698_v49 = vsel %vm3641_vm6, %v3695_v3, %v3697_v1 }
 0x3b3   : > { %3985 = vmatprep.mubr.f32.mxu1 %v12697_v62 }
 0x3b4   : > { %v10855_v25 = vpop.f32.mrf.mxu1 }
 0x3b6   : > { %v10861_v15 = vpop.f32.mrf.mxu1  ;;  %7124 = vmatmul.mubr.msk.f32.gmra.mxu1 %vm2566_vm5, %v3696_v13  ;;  %v10878_v13 = vpop.f32.mrf.mxu0 }
 0x3b7   : > { %3991 = vmatprep.mubr.f32.mxu1 %v12697_v62 }
 0x3b8   : > { %v10865_v44 = vpop.f32.mrf.mxu1  ;;  %v10885_v3 = vpop.f32.mrf.mxu0 }
 0x3ba   : > { %v10871_v0 = vpop.f32.mrf.mxu1  ;;  %7125 = vmatmul.mubr.msk.f32.gmra.mxu1 %vm2566_vm5, %v3698_v49  ;;  %v10891_v49 = vpop.f32.mrf.mxu0 }
 0x3bb   : > { %12789 = vst [vmem:[#allocation97_spill] sm:$0xff] %v10871_v0  ;;  %3997 = vmatprep.mubr.f32.mxu1 %v12697_v62 }
 0x3bc   : > { %v10875_v6 = vpop.f32.mrf.mxu1  ;;  %v10897_v1 = vpop.f32.mrf.mxu0 }
 0x3bd   : > { %12790 = vst [vmem:[#allocation98_spill] sm:$0xff] %v10875_v6  ;;  %12797 = vst [vmem:[#allocation105_spill] sm:$0xff] %v10897_v1 }
 0x3be   : > { %v10880_v45 = vpop.f32.mrf.mxu1  ;;  %7126 = vmatmul.mubr.msk.f32.gmra.mxu1 %vm2566_vm5, %v3700_v18  ;;  %v10903_v18 = vpop.f32.mrf.mxu0 }
 0x3bf   : > { %12791 = vst [vmem:[#allocation99_spill] sm:$0xff] %v10880_v45  ;;  %12800 = vst [vmem:[#allocation108_spill] sm:$0xff] %v10903_v18 }
 0x3c0   : > { %v10883_v47 = vpop.f32.mrf.mxu1 }
 0x3c1   : > { %12792 = vst [vmem:[#allocation100_spill] sm:$0xff] %v10883_v47 }
 0x3c2   : > { %v10887_v34 = vpop.f32.mrf.mxu1 }
 0x3c3   : > { %12793 = vst [vmem:[#allocation101_spill] sm:$0xff] %v10887_v34  ;;  %v10909_v34 = vpop.f32.mrf.mxu0 }
 0x3c4   : > { %v10889_v17 = vpop.f32.mrf.mxu1  ;;  %12803 = vst [vmem:[#allocation111_spill] sm:$0xff] %v10909_v34 }
 0x3c5   : > { %12794 = vst [vmem:[#allocation102_spill] sm:$0xff] %v10889_v17 }
 0x3c6   : > { %v10893_v27 = vpop.f32.mrf.mxu1 }
 0x3c7   : > { %12795 = vst [vmem:[#allocation103_spill] sm:$0xff] %v10893_v27  ;;  %v10915_v27 = vpop.f32.mrf.mxu0 }
 0x3c8   : > { %v10895_v41 = vpop.f32.mrf.mxu1  ;;  %12806 = vst [vmem:[#allocation114_spill] sm:$0xff] %v10915_v27 }
 0x3c9   : > { %12796 = vst [vmem:[#allocation104_spill] sm:$0xff] %v10895_v41 }
 0x3ca   : > { %v10899_v58 = vpop.f32.mrf.mxu1 }
 0x3cb   : > { %12798 = vst [vmem:[#allocation106_spill] sm:$0xff] %v10899_v58  ;;  %v10921_v58 = vpop.f32.mrf.mxu0 }
 0x3cc   : > { %v10901_v45 = vpop.f32.mrf.mxu1  ;;  %12809 = vst [vmem:[#allocation117_spill] sm:$0xff] %v10921_v58 }
 0x3cd   : > { %12799 = vst [vmem:[#allocation107_spill] sm:$0xff] %v10901_v45 }
 0x3ce   : > { %v10905_v47 = vpop.f32.mrf.mxu1 }
 0x3cf   : > { %12801 = vst [vmem:[#allocation109_spill] sm:$0xff] %v10905_v47  ;;  %v10927_v47 = vpop.f32.mrf.mxu0 }
 0x3d0   : > { %v10907_v6 = vpop.f32.mrf.mxu1  ;;  %12812 = vst [vmem:[#allocation120_spill] sm:$0xff] %v10927_v47 }
 0x3d1   : > { %12802 = vst [vmem:[#allocation110_spill] sm:$0xff] %v10907_v6 }
 0x3d2   : > { %v10911_v17 = vpop.f32.mrf.mxu1 }
 0x3d3   : > { %12804 = vst [vmem:[#allocation112_spill] sm:$0xff] %v10911_v17  ;;  %v10933_v17 = vpop.f32.mrf.mxu0 }
 0x3d4   : > { %v10913_v0 = vpop.f32.mrf.mxu1  ;;  %12815 = vst [vmem:[#allocation123_spill] sm:$0xff] %v10933_v17 }
 0x3d5   : > { %12805 = vst [vmem:[#allocation113_spill] sm:$0xff] %v10913_v0 }
 0x3d6   : > { %v10917_v41 = vpop.f32.mrf.mxu1 }
 0x3d7   : > { %12807 = vst [vmem:[#allocation115_spill] sm:$0xff] %v10917_v41  ;;  %v10939_v41 = vpop.f32.mrf.mxu0 }
 0x3d8   : > { %v10919_v1 = vpop.f32.mrf.mxu1  ;;  %12818 = vst [vmem:[#allocation126_spill] sm:$0xff] %v10939_v41 }
 0x3d9   : > { %12808 = vst [vmem:[#allocation116_spill] sm:$0xff] %v10919_v1 }
 0x3da   : > { %v10923_v45 = vpop.f32.mrf.mxu1 }
 0x3db   : > { %12810 = vst [vmem:[#allocation118_spill] sm:$0xff] %v10923_v45  ;;  %v10945_v45 = vpop.f32.mrf.mxu0 }
 0x3dc   : > { %v10925_v18 = vpop.f32.mrf.mxu1  ;;  %12821 = vst [vmem:[#allocation129_spill] sm:$0xff] %v10945_v45 }
 0x3dd   : > { %12811 = vst [vmem:[#allocation119_spill] sm:$0xff] %v10925_v18 }
 0x3de   : > { %v10929_v6 = vpop.f32.mrf.mxu1 }
 0x3df   : > { %12813 = vst [vmem:[#allocation121_spill] sm:$0xff] %v10929_v6  ;;  %v10951_v6 = vpop.f32.mrf.mxu0 }
 0x3e0   : > { %v10931_v34 = vpop.f32.mrf.mxu1  ;;  %12824 = vst [vmem:[#allocation132_spill] sm:$0xff] %v10951_v6 }
 0x3e1   : > { %12814 = vst [vmem:[#allocation122_spill] sm:$0xff] %v10931_v34 }
 0x3e2   : > { %v10935_v0 = vpop.f32.mrf.mxu1 }
 0x3e3   : > { %12816 = vst [vmem:[#allocation124_spill] sm:$0xff] %v10935_v0  ;;  %v10957_v0 = vpop.f32.mrf.mxu0 }
 0x3e4   : > { %v10937_v27 = vpop.f32.mrf.mxu1  ;;  %12827 = vst [vmem:[#allocation135_spill] sm:$0xff] %v10957_v0 }
 0x3e5   : > { %12817 = vst [vmem:[#allocation125_spill] sm:$0xff] %v10937_v27 }
 0x3e6   : > { %v10941_v1 = vpop.f32.mrf.mxu1 }
 0x3e7   : > { %12819 = vst [vmem:[#allocation127_spill] sm:$0xff] %v10941_v1  ;;  %v10963_v1 = vpop.f32.mrf.mxu0 }
 0x3e8   : > { %v10943_v58 = vpop.f32.mrf.mxu1  ;;  %12830 = vst [vmem:[#allocation138_spill] sm:$0xff] %v10963_v1 }
 0x3e9   : > { %12820 = vst [vmem:[#allocation128_spill] sm:$0xff] %v10943_v58 }
 0x3ea   : > { %v10947_v18 = vpop.f32.mrf.mxu1 }
 0x3eb   : > { %12822 = vst [vmem:[#allocation130_spill] sm:$0xff] %v10947_v18  ;;  %v10969_v18 = vpop.f32.mrf.mxu0 }
 0x3ec   : > { %v10949_v47 = vpop.f32.mrf.mxu1  ;;  %12833 = vst [vmem:[#allocation141_spill] sm:$0xff] %v10969_v18 }
 0x3ed   : > { %12823 = vst [vmem:[#allocation131_spill] sm:$0xff] %v10949_v47 }
 0x3ee   : > { %v10953_v34 = vpop.f32.mrf.mxu1 }
 0x3ef   : > { %12825 = vst [vmem:[#allocation133_spill] sm:$0xff] %v10953_v34  ;;  %v10975_v34 = vpop.f32.mrf.mxu0 }
 0x3f0   : > { %v10955_v17 = vpop.f32.mrf.mxu1 }
 0x3f1   : > { %12826 = vst [vmem:[#allocation134_spill] sm:$0xff] %v10955_v17 }
 0x3f2   : > { %v10959_v27 = vpop.f32.mrf.mxu1 }
 0x3f3   : > { %12828 = vst [vmem:[#allocation136_spill] sm:$0xff] %v10959_v27  ;;  %v10981_v27 = vpop.f32.mrf.mxu0 }
 0x3f4   : > { %v10961_v41 = vpop.f32.mrf.mxu1  ;;  %12838 = vst [vmem:[#allocation146_spill] sm:$0xff] %v10981_v27 }
 0x3f5   : > { %12829 = vst [vmem:[#allocation137_spill] sm:$0xff] %v10961_v41 }
 0x3f6   : > { %v10965_v58 = vpop.f32.mrf.mxu1 }
 0x3f7   : > { %12831 = vst [vmem:[#allocation139_spill] sm:$0xff] %v10965_v58  ;;  %v10987_v58 = vpop.f32.mrf.mxu0 }
 0x3f8   : > { %v10967_v45 = vpop.f32.mrf.mxu1  ;;  %12841 = vst [vmem:[#allocation149_spill] sm:$0xff] %v10987_v58 }
 0x3f9   : > { %12832 = vst [vmem:[#allocation140_spill] sm:$0xff] %v10967_v45 }
 0x3fa   : > { %v10971_v47 = vpop.f32.mrf.mxu1 }
 0x3fb   : > { %12834 = vst [vmem:[#allocation142_spill] sm:$0xff] %v10971_v47  ;;  %v10995_v47 = vpop.f32.mrf.mxu0 }
 0x3fc   : > { %v10973_v6 = vpop.f32.mrf.mxu1  ;;  %12844 = vst [vmem:[#allocation152_spill] sm:$0xff] %v10995_v47 }
 0x3fd   : > { %12835 = vst [vmem:[#allocation143_spill] sm:$0xff] %v10973_v6  ;;  %v3002_v6 = vadd.f32 %v10771_v43, %v10260_v21  ;;  %v3010_v43 = vadd.f32 %v10801_v63, %v10284_v7 }
 0x3fe   : > { %v10977_v17 = vpop.f32.mrf.mxu1 }
 0x3ff   : > { %12836 = vst [vmem:[#allocation144_spill] sm:$0xff] %v10977_v17 }
 0x400   : > { %v10979_v0 = vpop.f32.mrf.mxu1 }
 0x401   : > { %12837 = vst [vmem:[#allocation145_spill] sm:$0xff] %v10979_v0  ;;  %v3004_v0 = vadd.f32 %v10780_v55, %v10270_v19  ;;  %v12848_v55 = vld [vmem:[#allocation44_spill] sm:$0xff] }
 0x402   : > { %v10983_v41 = vpop.f32.mrf.mxu1 }
 0x403   : > { %12839 = vst [vmem:[#allocation147_spill] sm:$0xff] %v10983_v41  ;;  %v3560_v41 = vadd.f32 %v10264_v50, %v3002_v6  ;;  %v3561_v19 = vadd.f32 %v10272_v36, %v3004_v0  ;;  %v12850_v50 = vsub.s32 1, %v12848_v55  ;;  %v3014_v6 = vadd.f32 %v10809_v24, %v10288_v48 }
 0x404   : > { %v10985_v1 = vpop.f32.mrf.mxu1 }
 0x405   : > { %12840 = vst [vmem:[#allocation148_spill] sm:$0xff] %v10985_v1  ;;  %v3008_v1 = vadd.f32 %v10791_v51, %v10274_v56 }
 0x406   : > { %v10989_v45 = vpop.f32.mrf.mxu1 }
 0x407   : > { %12842 = vst [vmem:[#allocation150_spill] sm:$0xff] %v10989_v45  ;;  %v11009_v45 = vpop.f32.mrf.mxu0  ;;  %v3562_v7 = vadd.f32 %v10278_v52, %v3008_v1  ;;  %v3564_v1 = vadd.f32 %v10292_v29, %v3014_v6 }
 0x408   : > { %v10991_v18 = vpop.f32.mrf.mxu1  ;;  %12847 = vst [vmem:[#allocation155_spill] sm:$0xff] %v11009_v45 }
 0x409   : > { %12843 = vst [vmem:[#allocation151_spill] sm:$0xff] %v10991_v18  ;;  %v4390_v18 = vld [vmem:[%s12599_s8] sm:$0x3] }
 0x40a   : > { %v10997_v17 = vpop.f32.mrf.mxu1  ;;  %v11020_v51 = vrot.slane %v4390_v18, %v12850_v50 }
 0x40b   : > { %12845 = vst [vmem:[#allocation153_spill] sm:$0xff] %v10997_v17 }
 0x40c   : > { %v11001_v27 = vpop.f32.mrf.mxu1 }
 0x40d   : > { %12846 = vst [vmem:[#allocation154_spill] sm:$0xff] %v11001_v27  ;;  %v12849_v27 = vsub.s32 0, %v12848_v55 }
 0x40e   : > { %v3831_v21 = vpop.f32.mrf.mxu1 }
 0x40f   : > { %v4004_v17 = vadd.f32 %v3831_v21, %v3560_v41  ;;  %v11016_v47 = vrot.slane %v4390_v18, %v12849_v27  ;;  %v11026_v41 = vpop.f32.mrf.mxu0  ;;  %v3016_v27 = vadd.f32 %v10815_v11, %v10298_v12  ;;  %v3563_v18 = vadd.f32 %v10286_v53, %v3010_v43 }
 0x410   : > { %v3833_v56 = vpop.f32.mrf.mxu1  ;;  %v3020_v21 = vadd.f32 %v10821_v28, %v10302_v60  ;;  %v3022_v12 = vadd.f32 %v10825_v33, %v10312_v16  ;;  %v7267_v16 = vld [vmem:[%s12596_s5 + $0x98] sm:$0xff] }
 0x411   : > { %v4332_v45 = vadd.f32 %v10789_v26, %v4004_v17  ;;  %v4005_v58 = vadd.f32 %v3833_v56, %v3561_v19  ;;  %v3028_v56 = vadd.f32 %v10835_v5, %v10326_v39  ;;  %v5248_v39 = vld [vmem:[%s12596_s5 + $0x40] sm:$0xff] }
 0x412   : > { %v3837_v36 = vpop.f32.mrf.mxu1  ;;  %v3566_v19 = vadd.f32 %v10306_v22, %v3020_v21 }
 0x413   : > { %v4333_v0 = vadd.f32 %v10807_v31, %v4005_v58  ;;  %v4006_v63 = vadd.f32 %v3837_v36, %v3562_v7  ;;  %v4402_v48 = vadd.f32 %v11016_v47, %v4332_v45  ;;  %v11040_v31 = vpop.f32.mrf.mxu0  ;;  %v3565_v45 = vadd.f32 %v10300_v30, %v3016_v27 }
 0x414   : > { %v3839_v17 = vpop.f32.mrf.mxu1  ;;  %v3026_v58 = vadd.f32 %v10831_v38, %v10316_v2  ;;  %v3567_v38 = vadd.f32 %v10314_v37, %v3022_v12  ;;  %v7266_v37 = vld [vmem:[%s12596_s5 + $0x90] sm:$0xff] }
 0x415   : > { %v4403_v26 = vadd.f32 %v11020_v51, %v4333_v0  ;;  %v4334_v52 = vadd.f32 %v10819_v61, %v4006_v63  ;;  %v4007_v24 = vadd.f32 %v3839_v17, %v3563_v18  ;;  %v4460_v61 = vmax.f32 %v4402_v48, 0.0  ;;  %v11058_v2 = vpop.f32.mrf.mxu0 }
 0x416   : > { %v3843_v11 = vpop.f32.mrf.mxu1  ;;  %v3568_v63 = vadd.f32 %v10320_v54, %v3026_v58  ;;  %v3034_v54 = vadd.f32 %v10845_v9, %v10340_v57 }
 0x417   : > { %v4461_v53 = vmax.f32 %v4403_v26, 0.0  ;;  %v4335_v60 = vadd.f32 %v10829_v10, %v4007_v24  ;;  %v4008_v28 = vadd.f32 %v3843_v11, %v3564_v1  ;;  %v4404_v43 = vadd.f32 %v11016_v47, %v4334_v52  ;;  %v5249_v10 = vld [vmem:[%s12596_s5 + $0x48] sm:$0xff]  ;;  %v11082_v5 = vpop.f32.mrf.mxu0 }
 0x418   : > { %v3845_v29 = vpop.f32.mrf.mxu1  ;;  %v3569_v26 = vadd.f32 %v10328_v46, %v3028_v56  ;;  %v5247_v46 = vld [vmem:[%s12596_s5 + $0x38] sm:$0xff]  ;;  %v3571_v11 = vadd.f32 %v10342_v14, %v3034_v54  ;;  %v7264_v14 = vld [vmem:[%s12596_s5 + $0x80] sm:$0xff]  ;;  %v12860_v54 = vld [vmem:[#allocation108_spill] sm:$0xff] }
 0x419   : > { %v4405_v33 = vadd.f32 %v11020_v51, %v4335_v60  ;;  %v4336_v30 = vadd.f32 %v10839_v8, %v4008_v28  ;;  %v4009_v55 = vadd.f32 %v3845_v29, %v3565_v45  ;;  %7180 = vmatprep.mubr.msk.f32.mxu1 %vm4538_vm7, %v4461_v53  ;;  %7229 = vmatprep.mubr.msk.f32.mxu0 %vm4538_vm7, %v4461_v53  ;;  %v4462_v36 = vmax.f32 %v4404_v43, 0.0  ;;  %v12851_v53 = vld [vmem:[#allocation40_spill] sm:$0xff] }
 0x41a   : > { %v3849_v22 = vpop.f32.mrf.mxu1  ;;  %4691 = vmatmul.mubr.f32.vlgmr.msra.gmra.mxu1 %v4460_v61  ;;  %4922 = vmatmul.mubr.f32.vlgmr.msra.gmra.mxu0 %v4460_v61  ;;  %v3032_v8 = vadd.f32 %v10841_v40, %v10330_v35  ;;  %v3040_v60 = vadd.f32 %v10855_v25, %v12851_v53  ;;  %v5246_v25 = vld [vmem:[%s12596_s5 + $0x30] sm:$0xff] }
 0x41b   : > { %v4463_v50 = vmax.f32 %v4405_v33, 0.0  ;;  %v4337_v6 = vadd.f32 %v10849_v4, %v4009_v55  ;;  %v4010_v7 = vadd.f32 %v3849_v22, %v3566_v19  ;;  %7626 = vmatpush3.msra.mxu1 %v7267_v16  ;;  %7727 = vmatpush3.msra.mxu0 %v5249_v10  ;;  %v4406_v27 = vadd.f32 %v11016_v47, %v4336_v30  ;;  %v12853_v16 = vld [vmem:[#allocation5_spill] sm:$0xff]  ;;  %v12854_v30 = vld [vmem:[#allocation42_spill] sm:$0xff] }
 0x41c   : > { %v3851_v0 = vpop.f32.mrf.mxu1  ;;  %7627 = vmatprep.subr.mxu1 %v12697_v62  ;;  %7728 = vmatprep.subr.mxu0 %v12697_v62  ;;  %v3570_v9 = vadd.f32 %v10334_v32, %v3032_v8  ;;  %v11102_v32 = vpop.f32.mrf.mxu0  ;;  %v3046_v55 = vadd.f32 %v10865_v44, %v12854_v30  ;;  %v12856_v8 = vld [vmem:[#allocation6_spill] sm:$0xff] }
 0x41d   : > { %v4407_v35 = vadd.f32 %v11020_v51, %v4337_v6  ;;  %v4338_v40 = vadd.f32 %v10859_v59, %v4010_v7  ;;  %v4011_v4 = vadd.f32 %v3851_v0, %v3567_v38  ;;  %7181 = vmatprep.mubr.msk.f32.mxu1 %vm4538_vm7, %v4463_v50  ;;  %7230 = vmatprep.mubr.msk.f32.mxu0 %vm4538_vm7, %v4463_v50  ;;  %v4464_v52 = vmax.f32 %v4406_v27, 0.0  ;;  %v12855_v50 = vld [vmem:[#allocation105_spill] sm:$0xff]  ;;  %v12872_v30 = vld [vmem:[#allocation10_spill] sm:$0xff] }
 0x41e   : > { %v3855_v18 = vpop.f32.mrf.mxu1  ;;  %4696 = vmatmul.mubr.f32.gmra.mxu1 %v4462_v36  ;;  %4927 = vmatmul.mubr.f32.gmra.mxu0 %v4462_v36  ;;  %v3038_v59 = vadd.f32 %v10851_v23, %v10344_v20  ;;  %v11126_v22 = vpop.f32.mrf.mxu0  ;;  %v3573_v36 = vadd.f32 %v12856_v8, %v3040_v60  ;;  %v12858_v27 = vld [vmem:[#allocation97_spill] sm:$0xff] }
 0x41f   : > { %v4465_v21 = vmax.f32 %v4407_v35, 0.0  ;;  %v4339_v48 = vadd.f32 %v10869_v42, %v4011_v4  ;;  %v4012_v17 = vadd.f32 %v3855_v18, %v3568_v63  ;;  %7628 = vmatpush3.msra.mxu1 %v7266_v37  ;;  %7729 = vmatpush3.msra.mxu0 %v5248_v39  ;;  %v4408_v24 = vadd.f32 %v11016_v47, %v4338_v40  ;;  %v7265_v42 = vld [vmem:[%s12596_s5 + $0x88] sm:$0xff]  ;;  %v12859_v39 = vld [vmem:[#allocation7_spill] sm:$0xff]  ;;  %v7263_v40 = vld [vmem:[%s12596_s5 + $0x78] sm:$0xff] }
 0x420   : > { %v3857_v57 = vpop.f32.mrf.mxu1  ;;  %7629 = vmatprep.subr.mxu1 %v12697_v62  ;;  %7730 = vmatprep.subr.mxu0 %v12697_v62  ;;  %v3572_v10 = vadd.f32 %v12853_v16, %v3038_v59 }
 0x421   : > { %v4409_v20 = vadd.f32 %v11020_v51, %v4339_v48  ;;  %v4340_v23 = vadd.f32 %v10878_v13, %v4012_v17  ;;  %v4013_v1 = vadd.f32 %v3857_v57, %v3569_v26  ;;  %7182 = vmatprep.mubr.msk.f32.mxu1 %vm4538_vm7, %v4465_v21  ;;  %7231 = vmatprep.mubr.msk.f32.mxu0 %vm4538_vm7, %v4465_v21  ;;  %v12852_v13 = vld [vmem:[#allocation41_spill] sm:$0xff]  ;;  %v4466_v43 = vmax.f32 %v4408_v24, 0.0  ;;  %v11143_v48 = vpop.f32.mrf.mxu0  ;;  %v12861_v26 = vld [vmem:[#allocation8_spill] sm:$0xff]  ;;  %v12863_v24 = vld [vmem:[#allocation98_spill] sm:$0xff] }
 0x422   : > { %v3861_v12 = vpop.f32.mrf.mxu1  ;;  %4701 = vmatmul.mubr.f32.gmra.mxu1 %v4464_v52  ;;  %4932 = vmatmul.mubr.f32.gmra.mxu0 %v4464_v52  ;;  %v3044_v61 = vadd.f32 %v10861_v15, %v12852_v13  ;;  %v3575_v59 = vadd.f32 %v12861_v26, %v3046_v55  ;;  %v12862_v52 = vld [vmem:[#allocation45_spill] sm:$0xff]  ;;  %v12868_v13 = vld [vmem:[#allocation114_spill] sm:$0xff] }
 0x423   : > { %v4467_v28 = vmax.f32 %v4409_v20, 0.0  ;;  %v4341_v45 = vadd.f32 %v10885_v3, %v4013_v1  ;;  %v4014_v58 = vadd.f32 %v3861_v12, %v3570_v9  ;;  %7630 = vmatpush3.msra.mxu1 %v7265_v42  ;;  %7731 = vmatpush3.msra.mxu0 %v5247_v46  ;;  %v4410_v29 = vadd.f32 %v11016_v47, %v4340_v23  ;;  %v12864_v42 = vld [vmem:[#allocation111_spill] sm:$0xff]  ;;  %v12865_v23 = vld [vmem:[#allocation46_spill] sm:$0xff] }
 0x424   : > { %v3863_v19 = vpop.f32.mrf.mxu1  ;;  %7631 = vmatprep.subr.mxu1 %v12697_v62  ;;  %7732 = vmatprep.subr.mxu0 %v12697_v62  ;;  %v3574_v35 = vadd.f32 %v12859_v39, %v3044_v61  ;;  %v3052_v57 = vadd.f32 %v12863_v24, %v12862_v52  ;;  %v12866_v1 = vld [vmem:[#allocation99_spill] sm:$0xff]  ;;  %v12881_v52 = vld [vmem:[#allocation17_spill] sm:$0xff] }
 0x425   : > { %v4411_v15 = vadd.f32 %v11020_v51, %v4341_v45  ;;  %v4342_v3 = vadd.f32 %v10891_v49, %v4014_v58  ;;  %v4015_v33 = vadd.f32 %v3863_v19, %v3571_v11  ;;  %7183 = vmatprep.mubr.msk.f32.mxu1 %vm4538_vm7, %v4467_v28  ;;  %7232 = vmatprep.mubr.msk.f32.mxu0 %vm4538_vm7, %v4467_v28  ;;  %v12857_v49 = vld [vmem:[#allocation43_spill] sm:$0xff]  ;;  %v4468_v63 = vmax.f32 %v4410_v29, 0.0  ;;  %v12867_v28 = vld [vmem:[#allocation9_spill] sm:$0xff]  ;;  %v12870_v19 = vld [vmem:[#allocation100_spill] sm:$0xff] }
 0x426   : > { %v3867_v38 = vpop.f32.mrf.mxu1  ;;  %4706 = vmatmul.mubr.f32.gmra.mxu1 %v4466_v43  ;;  %4937 = vmatmul.mubr.f32.gmra.mxu0 %v4466_v43  ;;  %v3050_v0 = vadd.f32 %v12858_v27, %v12857_v49  ;;  %v3056_v12 = vadd.f32 %v12866_v1, %v12865_v23  ;;  %v12869_v29 = vld [vmem:[#allocation47_spill] sm:$0xff]  ;;  %v3577_v55 = vadd.f32 %v12872_v30, %v3052_v57 }
 0x427   : > { %v4469_v56 = vmax.f32 %v4411_v15, 0.0  ;;  %v4343_v6 = vadd.f32 %v12855_v50, %v4015_v33  ;;  %v4016_v7 = vadd.f32 %v3867_v38, %v3572_v10  ;;  %7632 = vmatpush3.msra.mxu1 %v7264_v14  ;;  %7733 = vmatpush3.msra.mxu0 %v5246_v25  ;;  %v4412_v37 = vadd.f32 %v11016_v47, %v4342_v3  ;;  %v11160_v10 = vpop.f32.mrf.mxu0  ;;  %v12871_v15 = vld [vmem:[#allocation117_spill] sm:$0xff]  ;;  %v12882_v24 = vld [vmem:[#allocation103_spill] sm:$0xff] }
 0x428   : > { %v3869_v44 = vpop.f32.mrf.mxu1  ;;  %7633 = vmatprep.subr.mxu1 %v12697_v62  ;;  %7734 = vmatprep.subr.mxu0 %v12697_v62  ;;  %v3576_v45 = vadd.f32 %v12867_v28, %v3050_v0  ;;  %v3058_v16 = vadd.f32 %v12870_v19, %v12869_v29  ;;  %v12873_v38 = vld [vmem:[#allocation13_spill] sm:$0xff]  ;;  %v12876_v0 = vld [vmem:[#allocation120_spill] sm:$0xff]  ;;  %v3068_v57 = vadd.f32 %v12882_v24, %v12881_v52  ;;  %v12899_v24 = vld [vmem:[#allocation22_spill] sm:$0xff] }
 0x429   : > { %v4413_v4 = vadd.f32 %v11020_v51, %v4343_v6  ;;  %v4344_v18 = vadd.f32 %v12860_v54, %v4016_v7  ;;  %v4017_v21 = vadd.f32 %v3869_v44, %v3573_v36  ;;  %7184 = vmatprep.mubr.msk.f32.mxu1 %vm4538_vm7, %v4469_v56  ;;  %7233 = vmatprep.mubr.msk.f32.mxu0 %vm4538_vm7, %v4469_v56  ;;  %v4470_v11 = vmax.f32 %v4412_v37, 0.0  ;;  %v12874_v56 = vld [vmem:[#allocation101_spill] sm:$0xff]  ;;  %v12875_v36 = vld [vmem:[#allocation11_spill] sm:$0xff]  ;;  %v11172_v44 = vpop.f32.mrf.mxu0  ;;  %v12879_v54 = vld [vmem:[#allocation102_spill] sm:$0xff] }
 0x42a   : > { %v3873_v17 = vpop.f32.mrf.mxu1  ;;  %4711 = vmatmul.mubr.f32.gmra.mxu1 %v4468_v63  ;;  %4942 = vmatmul.mubr.f32.gmra.mxu0 %v4468_v63  ;;  %v3062_v50 = vadd.f32 %v12874_v56, %v12873_v38  ;;  %v3578_v49 = vadd.f32 %v12875_v36, %v3056_v12  ;;  %v12884_v12 = vld [vmem:[#allocation126_spill] sm:$0xff]  ;;  %v12886_v28 = vld [vmem:[#allocation104_spill] sm:$0xff] }
 0x42b   : > { %v4471_v9 = vmax.f32 %v4413_v4, 0.0  ;;  %v4345_v46 = vadd.f32 %v12864_v42, %v4017_v21  ;;  %v4018_v20 = vadd.f32 %v3873_v17, %v3574_v35  ;;  %7634 = vmatpush3.msra.mxu1 %v7263_v40  ;;  %v4414_v53 = vadd.f32 %v11016_v47, %v4344_v18  ;;  %v12877_v35 = vld [vmem:[#allocation12_spill] sm:$0xff]  ;;  %v12878_v4 = vld [vmem:[#allocation15_spill] sm:$0xff]  ;;  %v12891_v38 = vld [vmem:[#allocation18_spill] sm:$0xff] }
 0x42c   : > { %v3875_v60 = vpop.f32.mrf.mxu1  ;;  %7635 = vmatprep.subr.mxu1 %v12697_v62  ;;  %v3579_v40 = vadd.f32 %v12877_v35, %v3058_v16  ;;  %v3064_v18 = vadd.f32 %v12879_v54, %v12878_v4  ;;  %v12880_v17 = vld [vmem:[#allocation123_spill] sm:$0xff]  ;;  %v12888_v16 = vld [vmem:[#allocation16_spill] sm:$0xff]  ;;  %v3582_v56 = vadd.f32 %v12891_v38, %v3068_v57 }
 0x42d   : > { %v4415_v58 = vadd.f32 %v11020_v51, %v4345_v46  ;;  %v4346_v61 = vadd.f32 %v12868_v13, %v4018_v20  ;;  %v4019_v43 = vadd.f32 %v3875_v60, %v3575_v59  ;;  %7185 = vmatprep.mubr.msk.f32.mxu1 %vm4538_vm7, %v4471_v9  ;;  %7234 = vmatprep.mubr.msk.f32.mxu0 %vm4538_vm7, %v4471_v9  ;;  %v4472_v6 = vmax.f32 %v4414_v53, 0.0  ;;  %v12883_v20 = vld [vmem:[#allocation14_spill] sm:$0xff]  ;;  %v12885_v60 = vld [vmem:[#allocation19_spill] sm:$0xff] }
 0x42e   : > { %v3879_v14 = vpop.f32.mrf.mxu1  ;;  %4716 = vmatmul.mubr.f32.gmra.mxu1 %v4470_v11  ;;  %4947 = vmatmul.mubr.f32.gmra.mxu0 %v4470_v11  ;;  %v3580_v23 = vadd.f32 %v12883_v20, %v3062_v50 }
 0x42f   : > { %v4473_v25 = vmax.f32 %v4415_v58, 0.0  ;;  %v4347_v3 = vadd.f32 %v12871_v15, %v4019_v43  ;;  %v4020_v33 = vadd.f32 %v3879_v14, %v3576_v45  ;;  %v4416_v7 = vadd.f32 %v11016_v47, %v4346_v61  ;;  %v11188_v58 = vpop.f32.mrf.mxu0  ;;  %v12887_v43 = vld [vmem:[#allocation129_spill] sm:$0xff]  ;;  %v12890_v15 = vld [vmem:[#allocation106_spill] sm:$0xff] }
 0x430   : > { %v3881_v8 = vpop.f32.mrf.mxu1  ;;  %v3070_v45 = vadd.f32 %v12886_v28, %v12885_v60  ;;  %v3581_v14 = vadd.f32 %v12888_v16, %v3064_v18  ;;  %v12897_v18 = vld [vmem:[#allocation25_spill] sm:$0xff] }
 0x431   : > { %v4417_v27 = vadd.f32 %v11020_v51, %v4347_v3  ;;  %v4348_v63 = vadd.f32 %v12876_v0, %v4020_v33  ;;  %v4021_v37 = vadd.f32 %v3881_v8, %v3577_v55  ;;  %7186 = vmatprep.mubr.msk.f32.mxu1 %vm4538_vm7, %v4473_v25  ;;  %7235 = vmatprep.mubr.msk.f32.mxu0 %vm4538_vm7, %v4473_v25  ;;  %v4474_v9 = vmax.f32 %v4416_v7, 0.0  ;;  %v12889_v25 = vld [vmem:[#allocation21_spill] sm:$0xff]  ;;  %v11200_v36 = vpop.f32.mrf.mxu0 }
 0x432   : > { %v3885_v39 = vpop.f32.mrf.mxu1  ;;  %4721 = vmatmul.mubr.f32.gmra.mxu1 %v4472_v6  ;;  %4952 = vmatmul.mubr.f32.gmra.mxu0 %v4472_v6  ;;  %v3074_v3 = vadd.f32 %v12890_v15, %v12889_v25  ;;  %v12892_v6 = vld [vmem:[#allocation132_spill] sm:$0xff]  ;;  %v12903_v28 = vld [vmem:[#allocation141_spill] sm:$0xff] }
 0x433   : > { %v4475_v21 = vmax.f32 %v4417_v27, 0.0  ;;  %v4349_v26 = vadd.f32 %v12880_v17, %v4021_v37  ;;  %v4022_v59 = vadd.f32 %v3885_v39, %v3578_v49  ;;  %v4418_v42 = vadd.f32 %v11016_v47, %v4348_v63  ;;  %v12893_v27 = vld [vmem:[#allocation20_spill] sm:$0xff]  ;;  %v12894_v63 = vld [vmem:[#allocation23_spill] sm:$0xff] }
 0x434   : > { %v3887_v46 = vpop.f32.mrf.mxu1  ;;  %v3583_v0 = vadd.f32 %v12893_v27, %v3070_v45  ;;  %v12895_v37 = vld [vmem:[#allocation107_spill] sm:$0xff]  ;;  %v3584_v57 = vadd.f32 %v12899_v24, %v3074_v3  ;;  %v12907_v3 = vld [vmem:[#allocation26_spill] sm:$0xff] }
 0x435   : > { %v4419_v1 = vadd.f32 %v11020_v51, %v4349_v26  ;;  %v4350_v11 = vadd.f32 %v12884_v12, %v4022_v59  ;;  %v4023_v53 = vadd.f32 %v3887_v46, %v3579_v40  ;;  %7187 = vmatprep.mubr.msk.f32.mxu1 %vm4538_vm7, %v4475_v21  ;;  %7236 = vmatprep.mubr.msk.f32.mxu0 %vm4538_vm7, %v4475_v21  ;;  %v4476_v33 = vmax.f32 %v4418_v42, 0.0  ;;  %v12896_v40 = vld [vmem:[#allocation135_spill] sm:$0xff]  ;;  %v12898_v21 = vld [vmem:[#allocation109_spill] sm:$0xff]  ;;  %v12900_v42 = vld [vmem:[#allocation138_spill] sm:$0xff] }
 0x436   : > { %v3891_v13 = vpop.f32.mrf.mxu1  ;;  %4726 = vmatmul.mubr.f32.gmra.mxu1 %v4474_v9  ;;  %4957 = vmatmul.mubr.f32.gmra.mxu0 %v4474_v9  ;;  %v3076_v39 = vadd.f32 %v12895_v37, %v12894_v63  ;;  %v3080_v17 = vadd.f32 %v12898_v21, %v12897_v18  ;;  %v12911_v63 = vld [vmem:[#allocation146_spill] sm:$0xff] }
 0x437   : > { %v4477_v61 = vmax.f32 %v4419_v1, 0.0  ;;  %v4351_v29 = vadd.f32 %v12887_v43, %v4023_v53  ;;  %v4024_v19 = vadd.f32 %v3891_v13, %v3580_v23  ;;  %v4420_v30 = vadd.f32 %v11016_v47, %v4350_v11  ;;  %v12901_v23 = vld [vmem:[#allocation27_spill] sm:$0xff]  ;;  %v12902_v1 = vld [vmem:[#allocation110_spill] sm:$0xff]  ;;  %v11216_v11 = vpop.f32.mrf.mxu0 }
 0x438   : > { %v3893_v55 = vpop.f32.mrf.mxu1  ;;  %v3082_v12 = vadd.f32 %v12902_v1, %v12901_v23  ;;  %v12914_v21 = vld [vmem:[#allocation30_spill] sm:$0xff]  ;;  %v12918_v1 = vld [vmem:[#allocation152_spill] sm:$0xff] }
 0x439   : > { %v4421_v50 = vadd.f32 %v11020_v51, %v4351_v29  ;;  %v4352_v7 = vadd.f32 %v12892_v6, %v4024_v19  ;;  %v4025_v8 = vadd.f32 %v3893_v55, %v3581_v14  ;;  %7188 = vmatprep.mubr.msk.f32.mxu1 %vm4538_vm7, %v4477_v61  ;;  %7237 = vmatprep.mubr.msk.f32.mxu0 %vm4538_vm7, %v4477_v61  ;;  %v4478_v26 = vmax.f32 %v4420_v30, 0.0  ;;  %v12904_v61 = vld [vmem:[#allocation24_spill] sm:$0xff]  ;;  %v12905_v29 = vld [vmem:[#allocation29_spill] sm:$0xff] }
 0x43a   : > { %v3897_v49 = vpop.f32.mrf.mxu1  ;;  %4731 = vmatmul.mubr.f32.gmra.mxu1 %v4476_v33  ;;  %4962 = vmatmul.mubr.f32.gmra.mxu0 %v4476_v33  ;;  %v3585_v43 = vadd.f32 %v12904_v61, %v3076_v39  ;;  %v12906_v19 = vld [vmem:[#allocation112_spill] sm:$0xff]  ;;  %v3586_v33 = vadd.f32 %v12907_v3, %v3080_v17 }
 0x43b   : > { %v4479_v35 = vmax.f32 %v4421_v50, 0.0  ;;  %v4353_v4 = vadd.f32 %v12896_v40, %v4025_v8  ;;  %v4026_v54 = vadd.f32 %v3897_v49, %v3582_v56  ;;  %v4422_v59 = vadd.f32 %v11016_v47, %v4352_v7  ;;  %v11228_v56 = vpop.f32.mrf.mxu0  ;;  %v12908_v6 = vld [vmem:[#allocation28_spill] sm:$0xff]  ;;  %v12909_v8 = vld [vmem:[#allocation31_spill] sm:$0xff]  ;;  %v12910_v49 = vld [vmem:[#allocation113_spill] sm:$0xff] }
 0x43c   : > { %v3899_v52 = vpop.f32.mrf.mxu1  ;;  %v3086_v16 = vadd.f32 %v12906_v19, %v12905_v29  ;;  %v3587_v7 = vadd.f32 %v12908_v6, %v3082_v12  ;;  %v3088_v27 = vadd.f32 %v12910_v49, %v12909_v8  ;;  %v12925_v6 = vld [vmem:[#allocation39_spill] sm:$0xff] }
 0x43d   : > { %v4423_v9 = vadd.f32 %v11020_v51, %v4353_v4  ;;  %v4354_v46 = vadd.f32 %v12900_v42, %v4026_v54  ;;  %v4027_v20 = vadd.f32 %v3899_v52, %v3583_v0  ;;  %7189 = vmatprep.mubr.msk.f32.mxu1 %vm4538_vm7, %v4479_v35  ;;  %7238 = vmatprep.mubr.msk.f32.mxu0 %vm4538_vm7, %v4479_v35  ;;  %v4480_v14 = vmax.f32 %v4422_v59, 0.0  ;;  %v12913_v35 = vld [vmem:[#allocation115_spill] sm:$0xff]  ;;  %v12915_v59 = vld [vmem:[#allocation149_spill] sm:$0xff] }
 0x43e   : > { %v3903_v53 = vpop.f32.mrf.mxu1  ;;  %4736 = vmatmul.mubr.f32.gmra.mxu1 %v4478_v26  ;;  %4967 = vmatmul.mubr.f32.gmra.mxu0 %v4478_v26  ;;  %v3588_v17 = vadd.f32 %v12914_v21, %v3086_v16  ;;  %v12922_v16 = vld [vmem:[#allocation34_spill] sm:$0xff] }
 0x43f   : > { %v4481_v60 = vmax.f32 %v4423_v9, 0.0  ;;  %v4355_v45 = vadd.f32 %v12903_v28, %v4027_v20  ;;  %v4028_v13 = vadd.f32 %v3903_v53, %v3584_v57  ;;  %v4424_v25 = vadd.f32 %v11016_v47, %v4354_v46  ;;  %v12916_v57 = vld [vmem:[#allocation35_spill] sm:$0xff]  ;;  %v12917_v9 = vld [vmem:[#allocation116_spill] sm:$0xff]  ;;  %v11244_v46 = vpop.f32.mrf.mxu0 }
 0x440   : > { %v3905_v15 = vpop.f32.mrf.mxu1  ;;  %v3094_v42 = vadd.f32 %v12917_v9, %v12916_v57 }
 0x441   : > { %v4425_v30 = vadd.f32 %v11020_v51, %v4355_v45  ;;  %v4356_v55 = vadd.f32 %v10975_v34, %v4028_v13  ;;  %v4029_v38 = vadd.f32 %v3905_v15, %v3585_v43  ;;  %7190 = vmatprep.mubr.msk.f32.mxu1 %vm4538_vm7, %v4481_v60  ;;  %7239 = vmatprep.mubr.msk.f32.mxu0 %vm4538_vm7, %v4481_v60  ;;  %v12912_v34 = vld [vmem:[#allocation33_spill] sm:$0xff]  ;;  %v4482_v4 = vmax.f32 %v4424_v25, 0.0  ;;  %v12919_v60 = vld [vmem:[#allocation32_spill] sm:$0xff]  ;;  %v12921_v13 = vld [vmem:[#allocation118_spill] sm:$0xff] }
 0x442   : > { %v3909_v50 = vpop.f32.mrf.mxu1  ;;  %4741 = vmatmul.mubr.f32.gmra.mxu1 %v4480_v14  ;;  %4972 = vmatmul.mubr.f32.gmra.mxu0 %v4480_v14  ;;  %v3092_v40 = vadd.f32 %v12913_v35, %v12912_v34  ;;  %v3589_v28 = vadd.f32 %v12919_v60, %v3088_v27  ;;  %v12920_v45 = vld [vmem:[#allocation37_spill] sm:$0xff]  ;;  %v12923_v15 = vld [vmem:[#allocation155_spill] sm:$0xff] }
 0x443   : > { %v4483_v0 = vmax.f32 %v4425_v30, 0.0  ;;  %v4357_v37 = vadd.f32 %v12911_v63, %v4029_v38  ;;  %v4030_v39 = vadd.f32 %v3909_v50, %v3586_v33  ;;  %v4426_v54 = vadd.f32 %v11016_v47, %v4356_v55  ;;  %v11256_v30 = vpop.f32.mrf.mxu0  ;;  %v12924_v38 = vld [vmem:[#allocation36_spill] sm:$0xff]  ;;  %v12927_v63 = vld [vmem:[#allocation49_spill] sm:$0xff] }
 0x444   : > { %v3911_v18 = vpop.f32.mrf.mxu1  ;;  %v3098_v61 = vadd.f32 %v12921_v13, %v12920_v45  ;;  %v3590_v14 = vadd.f32 %v12922_v16, %v3092_v40  ;;  %v3591_v50 = vadd.f32 %v12924_v38, %v3094_v42  ;;  %v12935_v45 = vld [vmem:[#allocation50_spill] sm:$0xff]  ;;  %v12936_v16 = vld [vmem:[#allocation52_spill] sm:$0xff] }
 0x445   : > { %v4427_v26 = vadd.f32 %v11020_v51, %v4357_v37  ;;  %v4358_v52 = vadd.f32 %v12915_v59, %v4030_v39  ;;  %v4031_v24 = vadd.f32 %v3911_v18, %v3587_v7  ;;  %7191 = vmatprep.mubr.msk.f32.mxu1 %vm4538_vm7, %v4483_v0  ;;  %7240 = vmatprep.mubr.msk.f32.mxu0 %vm4538_vm7, %v4483_v0  ;;  %v4484_v43 = vmax.f32 %v4426_v54, 0.0  ;;  %v12926_v7 = vld [vmem:[#allocation119_spill] sm:$0xff]  ;;  %v12928_v37 = vld [vmem:[#allocation121_spill] sm:$0xff] }
 0x446   : > { %v3915_v20 = vpop.f32.mrf.mxu1  ;;  %4746 = vmatmul.mubr.f32.gmra.mxu1 %v4482_v4  ;;  %4977 = vmatmul.mubr.f32.gmra.mxu0 %v4482_v4  ;;  %v3100_v8 = vadd.f32 %v12926_v7, %v12925_v6  ;;  %v3104_v39 = vadd.f32 %v12928_v37, %v12927_v63  ;;  %v12929_v4 = vld [vmem:[#allocation38_spill] sm:$0xff] }
 0x447   : > { %v4485_v23 = vmax.f32 %v4427_v26, 0.0  ;;  %v4359_v12 = vadd.f32 %v12918_v1, %v4031_v24  ;;  %v4032_v53 = vadd.f32 %v3915_v20, %v3588_v17  ;;  %v4428_v29 = vadd.f32 %v11016_v47, %v4358_v52  ;;  %v12931_v26 = vld [vmem:[#allocation122_spill] sm:$0xff]  ;;  %v11272_v52 = vpop.f32.mrf.mxu0  ;;  %v12932_v20 = vld [vmem:[#allocation48_spill] sm:$0xff] }
 0x448   : > { %v3917_v19 = vpop.f32.mrf.mxu1  ;;  %v3592_v54 = vadd.f32 %v12929_v4, %v3098_v61  ;;  %v12934_v1 = vld [vmem:[#allocation124_spill] sm:$0xff]  ;;  %v3594_v13 = vadd.f32 %v12935_v45, %v3104_v39  ;;  %v12950_v45 = vld [vmem:[#allocation131_spill] sm:$0xff] }
 0x449   : > { %v4429_v25 = vadd.f32 %v11020_v51, %v4359_v12  ;;  %v4360_v3 = vadd.f32 %v12923_v15, %v4032_v53  ;;  %v4033_v33 = vadd.f32 %v3917_v19, %v3589_v28  ;;  %7192 = vmatprep.mubr.msk.f32.mxu1 %vm4538_vm7, %v4485_v23  ;;  %7241 = vmatprep.mubr.msk.f32.mxu0 %vm4538_vm7, %v4485_v23  ;;  %v4486_v34 = vmax.f32 %v4428_v29, 0.0  ;;  %v12938_v15 = vld [vmem:[#allocation125_spill] sm:$0xff] }
 0x44a   : > { %v3921_v55 = vpop.f32.mrf.mxu1  ;;  %4751 = vmatmul.mubr.f32.gmra.mxu1 %v4484_v43  ;;  %4982 = vmatmul.mubr.f32.gmra.mxu0 %v4484_v43  ;;  %v3593_v23 = vadd.f32 %v12932_v20, %v3100_v8 }
 0x44b   : > { %v4487_v49 = vmax.f32 %v4429_v25, 0.0  ;;  %v4361_v27 = vadd.f32 %v11026_v41, %v4033_v33  ;;  %v4034_v0 = vadd.f32 %v3921_v55, %v3590_v14  ;;  %v4430_v35 = vadd.f32 %v11016_v47, %v4360_v3  ;;  %v12930_v41 = vld [vmem:[#allocation51_spill] sm:$0xff] }
 0x44c   : > { %v3923_v40 = vpop.f32.mrf.mxu1  ;;  %v3106_v59 = vadd.f32 %v12931_v26, %v12930_v41  ;;  %v12937_v25 = vld [vmem:[#allocation55_spill] sm:$0xff]  ;;  %v12946_v26 = vld [vmem:[#allocation130_spill] sm:$0xff] }
 0x44d   : > { %v4431_v18 = vadd.f32 %v11020_v51, %v4361_v27  ;;  %v4362_v21 = vadd.f32 %v11040_v31, %v4034_v0  ;;  %v4035_v17 = vadd.f32 %v3923_v40, %v3591_v50  ;;  %7193 = vmatprep.mubr.msk.f32.mxu1 %vm4538_vm7, %v4487_v49  ;;  %7242 = vmatprep.mubr.msk.f32.mxu0 %vm4538_vm7, %v4487_v49  ;;  %v12933_v31 = vld [vmem:[#allocation53_spill] sm:$0xff]  ;;  %v4488_v53 = vmax.f32 %v4430_v35, 0.0  ;;  %v12940_v50 = vld [vmem:[#allocation127_spill] sm:$0xff]  ;;  %v12941_v27 = vld [vmem:[#allocation54_spill] sm:$0xff] }
 0x44e   : > { %v3927_v24 = vpop.f32.mrf.mxu1  ;;  %4756 = vmatmul.mubr.f32.gmra.mxu1 %v4486_v34  ;;  %4987 = vmatmul.mubr.f32.gmra.mxu0 %v4486_v34  ;;  %v3110_v12 = vadd.f32 %v12934_v1, %v12933_v31  ;;  %v3595_v14 = vadd.f32 %v12936_v16, %v3106_v59  ;;  %v3112_v3 = vadd.f32 %v12938_v15, %v12937_v25  ;;  %v12943_v34 = vld [vmem:[#allocation128_spill] sm:$0xff]  ;;  %v12952_v16 = vld [vmem:[#allocation133_spill] sm:$0xff] }
 0x44f   : > { %v4489_v57 = vmax.f32 %v4431_v18, 0.0  ;;  %v4363_v9 = vadd.f32 %v11058_v2, %v4035_v17  ;;  %v4036_v42 = vadd.f32 %v3927_v24, %v3592_v54  ;;  %v4432_v60 = vadd.f32 %v11016_v47, %v4362_v21  ;;  %v11284_v2 = vpop.f32.mrf.mxu0  ;;  %v12944_v17 = vld [vmem:[#allocation56_spill] sm:$0xff] }
 0x450   : > { %v3929_v28 = vpop.f32.mrf.mxu1  ;;  %v3596_v0 = vadd.f32 %v12941_v27, %v3110_v12  ;;  %v3597_v41 = vadd.f32 %v12944_v17, %v3112_v3 }
 0x451   : > { %v4433_v61 = vadd.f32 %v11020_v51, %v4363_v9  ;;  %v4364_v43 = vadd.f32 %v11082_v5, %v4036_v42  ;;  %v4037_v29 = vadd.f32 %v3929_v28, %v3593_v23  ;;  %7194 = vmatprep.mubr.msk.f32.mxu1 %vm4538_vm7, %v4489_v57  ;;  %7243 = vmatprep.mubr.msk.f32.mxu0 %vm4538_vm7, %v4489_v57  ;;  %v12939_v5 = vld [vmem:[#allocation57_spill] sm:$0xff]  ;;  %v4490_v7 = vmax.f32 %v4432_v60, 0.0  ;;  %v11300_v40 = vpop.f32.mrf.mxu0  ;;  %v12947_v42 = vld [vmem:[#allocation58_spill] sm:$0xff]  ;;  %v12949_v28 = vld [vmem:[#allocation63_spill] sm:$0xff] }
 0x452   : > { %v3933_v19 = vpop.f32.mrf.mxu1  ;;  %4761 = vmatmul.mubr.f32.gmra.mxu1 %v4488_v53  ;;  %4992 = vmatmul.mubr.f32.gmra.mxu0 %v4488_v53  ;;  %v3116_v6 = vadd.f32 %v12940_v50, %v12939_v5  ;;  %v12948_v53 = vld [vmem:[#allocation60_spill] sm:$0xff]  ;;  %v5244_v50 = vld [vmem:[%s12596_s5 + $0x20] sm:$0xff] }
 0x453   : > { %v4491_v33 = vmax.f32 %v4433_v61, 0.0  ;;  %v4365_v55 = vadd.f32 %v11102_v32, %v4037_v29  ;;  %v4038_v38 = vadd.f32 %v3933_v19, %v3594_v13  ;;  %v4434_v8 = vadd.f32 %v11016_v47, %v4364_v43  ;;  %v12942_v32 = vld [vmem:[#allocation59_spill] sm:$0xff]  ;;  %v12951_v19 = vld [vmem:[#allocation65_spill] sm:$0xff] }
 0x454   : > { %v3935_v49 = vpop.f32.mrf.mxu1  ;;  %v3118_v35 = vadd.f32 %v12943_v34, %v12942_v32  ;;  %v3598_v20 = vadd.f32 %v12947_v42, %v3116_v6  ;;  %v3124_v13 = vadd.f32 %v12950_v45, %v12949_v28  ;;  %v12954_v6 = vld [vmem:[#allocation67_spill] sm:$0xff]  ;;  %v12957_v32 = vld [vmem:[#allocation69_spill] sm:$0xff]  ;;  %v12958_v34 = vld [vmem:[#allocation136_spill] sm:$0xff] }
 0x455   : > { %v4435_v63 = vadd.f32 %v11020_v51, %v4365_v55  ;;  %v4366_v37 = vadd.f32 %v11126_v22, %v4038_v38  ;;  %v4039_v39 = vadd.f32 %v3935_v49, %v3595_v14  ;;  %7195 = vmatprep.mubr.msk.f32.mxu1 %vm4538_vm7, %v4491_v33  ;;  %7244 = vmatprep.mubr.msk.f32.mxu0 %vm4538_vm7, %v4491_v33  ;;  %v12945_v22 = vld [vmem:[#allocation61_spill] sm:$0xff]  ;;  %v4492_v24 = vmax.f32 %v4434_v8, 0.0  ;;  %v12953_v33 = vld [vmem:[#allocation62_spill] sm:$0xff]  ;;  %v12961_v42 = vld [vmem:[#allocation71_spill] sm:$0xff] }
 0x456   : > { %v3939_v4 = vpop.f32.mrf.mxu1  ;;  %4766 = vmatmul.mubr.f32.gmra.mxu1 %v4490_v7  ;;  %4997 = vmatmul.mubr.f32.gmra.mxu0 %v4490_v7  ;;  %v3122_v59 = vadd.f32 %v12946_v26, %v12945_v22  ;;  %v3599_v60 = vadd.f32 %v12948_v53, %v3118_v35  ;;  %v3128_v14 = vadd.f32 %v12952_v16, %v12951_v19  ;;  %v12955_v7 = vld [vmem:[#allocation134_spill] sm:$0xff]  ;;  %v12964_v53 = vld [vmem:[#allocation139_spill] sm:$0xff]  ;;  %v5242_v16 = vld [vmem:[%s12596_s5 + $0x10] sm:$0xff] }
 0x457   : > { %v4493_v54 = vmax.f32 %v4435_v63, 0.0  ;;  %v4367_v18 = vadd.f32 %v11143_v48, %v4039_v39  ;;  %v4040_v21 = vadd.f32 %v3939_v4, %v3596_v0  ;;  %v4436_v57 = vadd.f32 %v11016_v47, %v4366_v37  ;;  %v11312_v48 = vpop.f32.mrf.mxu0  ;;  %v12956_v37 = vld [vmem:[#allocation64_spill] sm:$0xff]  ;;  %v5243_v26 = vld [vmem:[%s12596_s5 + $0x18] sm:$0xff] }
 0x458   : > { %v3941_v9 = vpop.f32.mrf.mxu1  ;;  %v3600_v55 = vadd.f32 %v12953_v33, %v3122_v59  ;;  %v3130_v8 = vadd.f32 %v12955_v7, %v12954_v6  ;;  %v3601_v39 = vadd.f32 %v12956_v37, %v3124_v13  ;;  %v3134_v35 = vadd.f32 %v12958_v34, %v12957_v32  ;;  %v12970_v6 = vld [vmem:[#allocation142_spill] sm:$0xff]  ;;  %v5241_v34 = vld [vmem:[%s12596_s5 + $0x8] sm:$0xff] }
 0x459   : > { %v4437_v23 = vadd.f32 %v11020_v51, %v4367_v18  ;;  %v4368_v31 = vadd.f32 %v11160_v10, %v4040_v21  ;;  %v4041_v1 = vadd.f32 %v3941_v9, %v3597_v41  ;;  %7196 = vmatprep.mubr.msk.f32.mxu1 %vm4538_vm7, %v4493_v54  ;;  %7245 = vmatprep.mubr.msk.f32.mxu0 %vm4538_vm7, %v4493_v54  ;;  %v5245_v10 = vld [vmem:[%s12596_s5 + $0x28] sm:$0xff]  ;;  %v4494_v25 = vmax.f32 %v4436_v57, 0.0  ;;  %v11334_v49 = vpop.f32.mrf.mxu0  ;;  %v12959_v21 = vld [vmem:[#allocation66_spill] sm:$0xff] }
 0x45a   : > { %v3945_v12 = vpop.f32.mrf.mxu1  ;;  %4771 = vmatmul.mubr.f32.gmra.mxu1 %v4492_v24  ;;  %5002 = vmatmul.mubr.f32.gmra.mxu0 %v4492_v24  ;;  %v3602_v17 = vadd.f32 %v12959_v21, %v3128_v14  ;;  %v12960_v57 = vld [vmem:[#allocation68_spill] sm:$0xff]  ;;  %v12966_v14 = vld [vmem:[#allocation75_spill] sm:$0xff] }
 0x45b   : > { %v4495_v61 = vmax.f32 %v4437_v23, 0.0  ;;  %v4369_v43 = vadd.f32 %v11172_v44, %v4041_v1  ;;  %v4042_v29 = vadd.f32 %v3945_v12, %v3598_v20  ;;  %v4438_v15 = vadd.f32 %v11016_v47, %v4368_v31  ;;  %7735 = vmatpush3.msra.mxu0 %v5245_v10  ;;  %v11350_v59 = vpop.f32.mrf.mxu0  ;;  %v12962_v20 = vld [vmem:[#allocation137_spill] sm:$0xff]  ;;  %v12973_v21 = vld [vmem:[#allocation79_spill] sm:$0xff] }
 0x45c   : > { %v3947_v3 = vpop.f32.mrf.mxu1  ;;  %7736 = vmatprep.subr.mxu0 %v12697_v62  ;;  %v3603_v9 = vadd.f32 %v12960_v57, %v3130_v8  ;;  %v3136_v23 = vadd.f32 %v12962_v20, %v12961_v42  ;;  %v12963_v12 = vld [vmem:[#allocation73_spill] sm:$0xff] }
 0x45d   : > { %v4439_v38 = vadd.f32 %v11020_v51, %v4369_v43  ;;  %v4370_v5 = vadd.f32 %v11188_v58, %v4042_v29  ;;  %v4043_v44 = vadd.f32 %v3947_v3, %v3599_v60  ;;  %7197 = vmatprep.mubr.msk.f32.mxu1 %vm4538_vm7, %v4495_v61  ;;  %7246 = vmatprep.mubr.msk.f32.mxu0 %vm4538_vm7, %v4495_v61  ;;  %v4496_v4 = vmax.f32 %v4438_v15, 0.0  ;;  %v12965_v61 = vld [vmem:[#allocation70_spill] sm:$0xff]  ;;  %v7262_v29 = vld [vmem:[%s12596_s5 + $0x70] sm:$0xff]  ;;  %v11373_v3 = vpop.f32.mrf.mxu0 }
 0x45e   : > { %v3951_v27 = vpop.f32.mrf.mxu1  ;;  %4776 = vmatmul.mubr.f32.gmra.mxu1 %v4494_v25  ;;  %5007 = vmatmul.mubr.f32.gmra.mxu0 %v4494_v25  ;;  %v3140_v60 = vadd.f32 %v12964_v53, %v12963_v12  ;;  %v3604_v43 = vadd.f32 %v12965_v61, %v3134_v35  ;;  %v12967_v25 = vld [vmem:[#allocation140_spill] sm:$0xff]  ;;  %v5240_v53 = vld [vmem:[%s12596_s5] sm:$0xff] }
 0x45f   : > { %v4497_v0 = vmax.f32 %v4439_v38, 0.0  ;;  %v4371_v58 = vadd.f32 %v11200_v36, %v4043_v44  ;;  %v4044_v63 = vadd.f32 %v3951_v27, %v3600_v55  ;;  %v4440_v54 = vadd.f32 %v11016_v47, %v4370_v5  ;;  %7737 = vmatpush3.msra.mxu0 %v5244_v50  ;;  %v12968_v5 = vld [vmem:[#allocation72_spill] sm:$0xff]  ;;  %7636 = vmatpush3.msra.mxu1 %v7262_v29  ;;  %v12969_v50 = vld [vmem:[#allocation77_spill] sm:$0xff]  ;;  %v11393_v35 = vpop.f32.mrf.mxu0 }
 0x460   : > { %v3953_v18 = vpop.f32.mrf.mxu1  ;;  %7738 = vmatprep.subr.mxu0 %v12697_v62  ;;  %v3142_v15 = vadd.f32 %v12967_v25, %v12966_v14  ;;  %v3605_v44 = vadd.f32 %v12968_v5, %v3136_v23  ;;  %v3146_v7 = vadd.f32 %v12970_v6, %v12969_v50  ;;  %7637 = vmatprep.subr.mxu1 %v12697_v62  ;;  %v12977_v23 = vld [vmem:[#allocation78_spill] sm:$0xff] }
 0x461   : > { %v4441_v41 = vadd.f32 %v11020_v51, %v4371_v58  ;;  %v4372_v22 = vadd.f32 %v11216_v11, %v4044_v63  ;;  %v4045_v36 = vadd.f32 %v3953_v18, %v3601_v39  ;;  %7198 = vmatprep.mubr.msk.f32.mxu1 %vm4538_vm7, %v4497_v0  ;;  %7247 = vmatprep.mubr.msk.f32.mxu0 %vm4538_vm7, %v4497_v0  ;;  %v4498_v28 = vmax.f32 %v4440_v54, 0.0  ;;  %v12971_v58 = vld [vmem:[#allocation74_spill] sm:$0xff]  ;;  %v12972_v54 = vld [vmem:[#allocation76_spill] sm:$0xff] }
 0x462   : > { %v3957_v24 = vpop.f32.mrf.mxu1  ;;  %4781 = vmatmul.mubr.f32.gmra.mxu1 %v4496_v4  ;;  %5012 = vmatmul.mubr.f32.gmra.mxu0 %v4496_v4  ;;  %v3606_v63 = vadd.f32 %v12971_v58, %v3140_v60  ;;  %v3607_v18 = vadd.f32 %v12972_v54, %v3142_v15  ;;  %v12978_v60 = vld [vmem:[#allocation83_spill] sm:$0xff] }
 0x463   : > { %v4499_v11 = vmax.f32 %v4441_v41, 0.0  ;;  %v4373_v31 = vadd.f32 %v11228_v56, %v4045_v36  ;;  %v4046_v1 = vadd.f32 %v3957_v24, %v3602_v17  ;;  %v4442_v45 = vadd.f32 %v11016_v47, %v4372_v22  ;;  %7739 = vmatpush3.msra.mxu0 %v5243_v26  ;;  %v12974_v17 = vld [vmem:[#allocation143_spill] sm:$0xff]  ;;  %v12975_v26 = vld [vmem:[#allocation81_spill] sm:$0xff]  ;;  %v12976_v24 = vld [vmem:[#allocation144_spill] sm:$0xff] }
 0x464   : > { %v3959_v13 = vpop.f32.mrf.mxu1  ;;  %7740 = vmatprep.subr.mxu0 %v12697_v62  ;;  %v3148_v41 = vadd.f32 %v12974_v17, %v12973_v21  ;;  %v3152_v57 = vadd.f32 %v12976_v24, %v12975_v26  ;;  %v7258_v17 = vld [vmem:[%s12596_s5 + $0x50] sm:$0xff]  ;;  %v12991_v26 = vld [vmem:[#allocation151_spill] sm:$0xff] }
 0x465   : > { %v4443_v10 = vadd.f32 %v11020_v51, %v4373_v31  ;;  %v4374_v56 = vadd.f32 %v11244_v46, %v4046_v1  ;;  %v4047_v19 = vadd.f32 %v3959_v13, %v3603_v9  ;;  %7199 = vmatprep.mubr.msk.f32.mxu1 %vm4538_vm7, %v4499_v11  ;;  %7248 = vmatprep.mubr.msk.f32.mxu0 %vm4538_vm7, %v4499_v11  ;;  %v4500_v8 = vmax.f32 %v4442_v45, 0.0  ;;  %v11417_v13 = vpop.f32.mrf.mxu0 }
 0x466   : > { %v3963_v33 = vpop.f32.mrf.mxu1  ;;  %4786 = vmatmul.mubr.f32.gmra.mxu1 %v4498_v28  ;;  %5017 = vmatmul.mubr.f32.gmra.mxu0 %v4498_v28  ;;  %v3608_v11 = vadd.f32 %v12977_v23, %v3146_v7  ;;  %v12979_v28 = vld [vmem:[#allocation145_spill] sm:$0xff]  ;;  %v12984_v7 = vld [vmem:[#allocation84_spill] sm:$0xff] }
 0x467   : > { %v4501_v55 = vmax.f32 %v4443_v10, 0.0  ;;  %v4375_v46 = vadd.f32 %v11256_v30, %v4047_v19  ;;  %v4048_v38 = vadd.f32 %v3963_v33, %v3604_v43  ;;  %v4444_v27 = vadd.f32 %v11016_v47, %v4374_v56  ;;  %7741 = vmatpush3.msra.mxu0 %v5242_v16  ;;  %v7261_v30 = vld [vmem:[%s12596_s5 + $0x68] sm:$0xff]  ;;  %v12981_v19 = vld [vmem:[#allocation85_spill] sm:$0xff]  ;;  %v12982_v16 = vld [vmem:[#allocation147_spill] sm:$0xff]  ;;  %v4317_v50 = vpop.f32.mrf.mxu0 }
 0x468   : > { %v3965_v0 = vpop.f32.mrf.mxu1  ;;  %7742 = vmatprep.subr.mxu0 %v12697_v62  ;;  %7638 = vmatpush3.msra.mxu1 %v7261_v30  ;;  %v3154_v45 = vadd.f32 %v12979_v28, %v12978_v60  ;;  %v12980_v10 = vld [vmem:[#allocation80_spill] sm:$0xff]  ;;  %v3158_v14 = vadd.f32 %v12982_v16, %v12981_v19  ;;  %v12995_v60 = vld [vmem:[#allocation90_spill] sm:$0xff] }
 0x469   : > { %v4445_v37 = vadd.f32 %v11020_v51, %v4375_v46  ;;  %v4376_v39 = vadd.f32 %v11272_v52, %v4048_v38  ;;  %v4049_v32 = vadd.f32 %v3965_v0, %v3605_v44  ;;  %7200 = vmatprep.mubr.msk.f32.mxu1 %vm4538_vm7, %v4501_v55  ;;  %7249 = vmatprep.mubr.msk.f32.mxu0 %vm4538_vm7, %v4501_v55  ;;  %v4502_v9 = vmax.f32 %v4444_v27, 0.0  ;;  %v12983_v55 = vld [vmem:[#allocation82_spill] sm:$0xff]  ;;  %v12985_v27 = vld [vmem:[#allocation87_spill] sm:$0xff]  ;;  %v12986_v0 = vld [vmem:[#allocation148_spill] sm:$0xff] }
 0x46a   : > { %v3969_v4 = vpop.f32.mrf.mxu1  ;;  %4791 = vmatmul.mubr.f32.gmra.mxu1 %v4500_v8  ;;  %5022 = vmatmul.mubr.f32.gmra.mxu0 %v4500_v8  ;;  %v3609_v56 = vadd.f32 %v12980_v10, %v3148_v41  ;;  %v3610_v46 = vadd.f32 %v12983_v55, %v3152_v57  ;;  %v3611_v8 = vadd.f32 %v12984_v7, %v3154_v45  ;;  %v12992_v23 = vld [vmem:[#allocation88_spill] sm:$0xff]  ;;  %v12998_v19 = vld [vmem:[#allocation154_spill] sm:$0xff] }
 0x46b   : > { %v4503_v52 = vmax.f32 %v4445_v37, 0.0  ;;  %v4377_v22 = vadd.f32 %v11284_v2, %v4049_v32  ;;  %v4050_v36 = vadd.f32 %v3969_v4, %v3606_v63  ;;  %v4446_v42 = vadd.f32 %v11016_v47, %v4376_v39  ;;  %7743 = vmatpush3.msra.mxu0 %v5241_v34  ;;  %7639 = vmatprep.subr.mxu1 %v12697_v62  ;;  %v7260_v2 = vld [vmem:[%s12596_s5 + $0x60] sm:$0xff]  ;;  %v12988_v39 = vld [vmem:[#allocation150_spill] sm:$0xff] }
 0x46c   : > { %v3971_v20 = vpop.f32.mrf.mxu1  ;;  %7744 = vmatprep.subr.mxu0 %v12697_v62  ;;  %7640 = vmatpush3.msra.mxu1 %v7260_v2  ;;  %v3160_v58 = vadd.f32 %v12986_v0, %v12985_v27  ;;  %v12994_v2 = vld [vmem:[#allocation153_spill] sm:$0xff]  ;;  %v13000_v0 = vld [vmem:[#allocation96_spill] sm:$0xff] }
 0x46d   : > { %v4447_v31 = vadd.f32 %v11020_v51, %v4377_v22  ;;  %v4378_v1 = vadd.f32 %v11300_v40, %v4050_v36  ;;  %v4051_v12 = vadd.f32 %v3971_v20, %v3607_v18  ;;  %7201 = vmatprep.mubr.msk.f32.mxu1 %vm4538_vm7, %v4503_v52  ;;  %7250 = vmatprep.mubr.msk.f32.mxu0 %vm4538_vm7, %v4503_v52  ;;  %v4504_v25 = vmax.f32 %v4446_v42, 0.0  ;;  %v12989_v18 = vld [vmem:[#allocation86_spill] sm:$0xff]  ;;  %v4321_v22 = vpop.f32.mrf.mxu0  ;;  %v12990_v36 = vld [vmem:[#allocation91_spill] sm:$0xff] }
 0x46e   : > { %v3975_v61 = vpop.f32.mrf.mxu1  ;;  %4796 = vmatmul.mubr.f32.gmra.mxu1 %v4502_v9  ;;  %5027 = vmatmul.mubr.f32.gmra.mxu0 %v4502_v9  ;;  %v3612_v21 = vadd.f32 %v12989_v18, %v3158_v14  ;;  %v3166_v24 = vadd.f32 %v12991_v26, %v12990_v36 }
 0x46f   : > { %v4505_v43 = vmax.f32 %v4447_v31, 0.0  ;;  %v4379_v40 = vadd.f32 %v11312_v48, %v4051_v12  ;;  %v4052_v29 = vadd.f32 %v3975_v61, %v3608_v11  ;;  %v4448_v15 = vadd.f32 %v11016_v47, %v4378_v1  ;;  %7745 = vmatpush3.msra.mxu0 %v5240_v53  ;;  %7641 = vmatprep.subr.mxu1 %v12697_v62  ;;  %v7259_v48 = vld [vmem:[%s12596_s5 + $0x58] sm:$0xff] }
 0x470   : > { %v3977_v33 = vpop.f32.mrf.mxu1  ;;  %7642 = vmatpush3.msra.mxu1 %v7259_v48  ;;  %7928 = vmatprep.subr.mxu0 %v12697_v62  ;;  %v3613_v11 = vadd.f32 %v12992_v23, %v3160_v58 }
 0x471   : > { %v4449_v38 = vadd.f32 %v11020_v51, %v4379_v40  ;;  %v4380_v5 = vadd.f32 %v11334_v49, %v4052_v29  ;;  %v4053_v44 = vadd.f32 %v3977_v33, %v3609_v56  ;;  %7202 = vmatprep.mubr.msk.f32.mxu1 %vm4538_vm7, %v4505_v43  ;;  %7251 = vmatprep.mubr.msk.f32.mxu0 %vm4538_vm7, %v4505_v43  ;;  %v12987_v49 = vld [vmem:[#allocation89_spill] sm:$0xff]  ;;  %v4506_v34 = vmax.f32 %v4448_v15, 0.0  ;;  %v4323_v43 = vpop.f32.mrf.mxu0  ;;  %v12996_v29 = vld [vmem:[#allocation92_spill] sm:$0xff]  ;;  %v12997_v56 = vld [vmem:[#allocation95_spill] sm:$0xff] }
 0x472   : > { %v3981_v6 = vpop.f32.mrf.mxu1  ;;  %4801 = vmatmul.mubr.f32.gmra.mxu1 %v4504_v25  ;;  %5032 = vmatmul.mubr.f32.gmra.mxu0 %v4504_v25  ;;  %v3164_v32 = vadd.f32 %v12988_v39, %v12987_v49  ;;  %v3615_v10 = vadd.f32 %v12996_v29, %v3166_v24  ;;  %v3172_v16 = vadd.f32 %v12998_v19, %v12997_v56  ;;  %v7366_v19 = vld [vmem:[%s12596_s5 + $0x128] sm:$0xff] }
 0x473   : > { %v4507_v63 = vmax.f32 %v4449_v38, 0.0  ;;  %v4381_v30 = vadd.f32 %v11350_v59, %v4053_v44  ;;  %v4054_v37 = vadd.f32 %v3981_v6, %v3610_v46  ;;  %v4450_v4 = vadd.f32 %v11016_v47, %v4380_v5  ;;  %7643 = vmatprep.subr.mxu1 %v12697_v62  ;;  %v12999_v46 = vld [vmem:[#allocation94_spill] sm:$0xff]  ;;  %v4327_v6 = vpop.f32.mrf.mxu0 }
 0x474   : > { %v3983_v54 = vpop.f32.mrf.mxu1  ;;  %7644 = vmatpush3.msra.mxu1 %v7258_v17  ;;  %v3614_v28 = vadd.f32 %v12995_v60, %v3164_v32  ;;  %v3617_v58 = vadd.f32 %v13000_v0, %v3172_v16  ;;  %v7368_v60 = vld [vmem:[%s12596_s5 + $0x138] sm:$0xff] }
 0x475   : > { %v4451_v59 = vadd.f32 %v11020_v51, %v4381_v30  ;;  %v4382_v41 = vadd.f32 %v11373_v3, %v4054_v37  ;;  %v4055_v52 = vadd.f32 %v3983_v54, %v3611_v8  ;;  %7203 = vmatprep.mubr.msk.f32.mxu1 %vm4538_vm7, %v4507_v63  ;;  %7252 = vmatprep.mubr.msk.f32.mxu0 %vm4538_vm7, %v4507_v63  ;;  %v12993_v3 = vld [vmem:[#allocation93_spill] sm:$0xff]  ;;  %v4508_v1 = vmax.f32 %v4450_v4, 0.0  ;;  %v7364_v0 = vld [vmem:[%s12596_s5 + $0x118] sm:$0xff] }
 0x476   : > { %v3987_v57 = vpop.f32.mrf.mxu1  ;;  %4806 = vmatmul.mubr.f32.gmra.mxu1 %v4506_v34  ;;  %5037 = vmatmul.mubr.f32.gmra.mxu0 %v4506_v34  ;;  %v3170_v31 = vadd.f32 %v12994_v2, %v12993_v3  ;;  %v4329_v34 = vpop.f32.mrf.mxu0 }
 0x477   : > { %v4509_v9 = vmax.f32 %v4451_v59, 0.0  ;;  %v4383_v42 = vadd.f32 %v11393_v35, %v4055_v52  ;;  %v4056_v20 = vadd.f32 %v3987_v57, %v3612_v21  ;;  %v4452_v12 = vadd.f32 %v11016_v47, %v4382_v41  ;;  %7827 = vmatprep.subr.mxu1 %v12697_v62 }
 0x478   : > { %v3989_v53 = vpop.f32.mrf.mxu1  ;;  %v3616_v48 = vadd.f32 %v12999_v46, %v3170_v31 }
 0x479   : > { %v4453_v45 = vadd.f32 %v11020_v51, %v4383_v42  ;;  %v4384_v61 = vadd.f32 %v11417_v13, %v4056_v20  ;;  %v4057_v35 = vadd.f32 %v3989_v53, %v3613_v11  ;;  %7204 = vmatprep.mubr.msk.f32.mxu1 %vm4538_vm7, %v4509_v9  ;;  %7253 = vmatprep.mubr.msk.f32.mxu0 %vm4538_vm7, %v4509_v9  ;;  %v4510_v33 = vmax.f32 %v4452_v12, 0.0 }
 0x47a   : > { %v3993_v40 = vpop.f32.mrf.mxu1  ;;  %4811 = vmatmul.mubr.f32.gmra.mxu1 %v4508_v1  ;;  %5042 = vmatmul.mubr.f32.gmra.mxu0 %v4508_v1 }
 0x47b   : > { %v4511_v14 = vmax.f32 %v4453_v45, 0.0  ;;  %v4385_v25 = vadd.f32 %v4317_v50, %v4057_v35  ;;  %v4058_v15 = vadd.f32 %v3993_v40, %v3614_v28  ;;  %v4454_v13 = vadd.f32 %v11016_v47, %v4384_v61  ;;  %v7367_v35 = vld [vmem:[%s12596_s5 + $0x130] sm:$0xff] }
 0x47c   : > { %v3995_v55 = vpop.f32.mrf.mxu1 }
 0x47d   : > { %v4455_v38 = vadd.f32 %v11020_v51, %v4385_v25  ;;  %v4386_v5 = vadd.f32 %v4321_v22, %v4058_v15  ;;  %v4059_v44 = vadd.f32 %v3995_v55, %v3615_v10  ;;  %7205 = vmatprep.mubr.msk.f32.mxu1 %vm4538_vm7, %v4511_v14  ;;  %7254 = vmatprep.mubr.msk.f32.mxu0 %vm4538_vm7, %v4511_v14  ;;  %v4512_v63 = vmax.f32 %v4454_v13, 0.0  ;;  %v7365_v13 = vld [vmem:[%s12596_s5 + $0x120] sm:$0xff] }
 0x47e   : > { %v3999_v7 = vpop.f32.mrf.mxu1  ;;  %4816 = vmatmul.mubr.f32.gmra.mxu1 %v4510_v33  ;;  %5047 = vmatmul.mubr.f32.gmra.mxu0 %v4510_v33 }
 0x47f   : > { %v4513_v50 = vmax.f32 %v4455_v38, 0.0  ;;  %v4387_v8 = vadd.f32 %v4323_v43, %v4059_v44  ;;  %v4060_v27 = vadd.f32 %v3999_v7, %v3616_v48  ;;  %v4456_v30 = vadd.f32 %v11016_v47, %v4386_v5 }
 0x480   : > { %v4001_v37 = vpop.f32.mrf.mxu1 }
 0x481   : > { %v4457_v49 = vadd.f32 %v11020_v51, %v4387_v8  ;;  %v4388_v39 = vadd.f32 %v4327_v6, %v4060_v27  ;;  %v4061_v32 = vadd.f32 %v4001_v37, %v3617_v58  ;;  %7206 = vmatprep.mubr.msk.f32.mxu1 %vm4538_vm7, %v4513_v50  ;;  %7255 = vmatprep.mubr.msk.f32.mxu0 %vm4538_vm7, %v4513_v50  ;;  %v4514_v18 = vmax.f32 %v4456_v30, 0.0  ;;  %v7331_v6 = vld [vmem:[%s12596_s5 + $0xe8] sm:$0xff] }
 0x482   : > { %4821 = vmatmul.mubr.f32.gmra.mxu1 %v4512_v63  ;;  %5052 = vmatmul.mubr.f32.gmra.mxu0 %v4512_v63 }
 0x483   : > { %v4515_v4 = vmax.f32 %v4457_v49, 0.0  ;;  %v4389_v54 = vadd.f32 %v4329_v34, %v4061_v32  ;;  %v4458_v21 = vadd.f32 %v11016_v47, %v4388_v39  ;;  %v7330_v32 = vld [vmem:[%s12596_s5 + $0xe0] sm:$0xff] }
 0x485   : > { %v4459_v17 = vadd.f32 %v11020_v51, %v4389_v54  ;;  %7207 = vmatprep.mubr.msk.f32.mxu1 %vm4538_vm7, %v4515_v4  ;;  %7256 = vmatprep.mubr.msk.f32.mxu0 %vm4538_vm7, %v4515_v4  ;;  %v4516_v41 = vmax.f32 %v4458_v21, 0.0  ;;  %v7363_v21 = vld [vmem:[%s12596_s5 + $0x110] sm:$0xff] }
 0x486   : > { %4826 = vmatmul.mubr.f32.gmra.mxu1 %v4514_v18  ;;  %5057 = vmatmul.mubr.f32.gmra.mxu0 %v4514_v18 }
 0x487   : > { %v4517_v59 = vmax.f32 %v4459_v17, 0.0 }
 0x489   : > { %7208 = vmatprep.mubr.msk.f32.mxu1 %vm4538_vm7, %v4517_v59  ;;  %7257 = vmatprep.mubr.msk.f32.mxu0 %vm4538_vm7, %v4517_v59 }
 0x48a   : > { %4831 = vmatmul.mubr.f32.gmra.mxu1 %v4516_v41  ;;  %5062 = vmatmul.mubr.f32.gmra.mxu0 %v4516_v41 }
 0x48b   : > { %7746 = vmatprep.mubr.msk.f32.mxu0 %vm8242_vm8, %v12697_v62  ;;  %7645 = vmatprep.mubr.msk.f32.mxu1 %vm8242_vm8, %v12697_v62 }
 0x4da   : > { %v4692_v47 = vpop.f32.mrf.mxu1  ;;  %v4923_v51 = vpop.f32.mrf.mxu0 }
 0x4db   : > { %v5067_v36 = vmax.f32 %v4692_v47, %v4923_v51 }
 0x4dc   : > { %v4694_v52 = vpop.f32.mrf.mxu1  ;;  %v4925_v22 = vpop.f32.mrf.mxu0 }
 0x4dd   : > { %v5125_v20 = vrot.slane %v5067_v36, 2  ;;  %v7329_v22 = vld [vmem:[%s12596_s5 + $0xd8] sm:$0xff] }
 0x4de   : > { %v4697_v26 = vpop.f32.mrf.mxu1  ;;  %v4928_v24 = vpop.f32.mrf.mxu0 }
 0x4df   : > { %v5068_v57 = vmax.f32 %v4697_v26, %v4928_v24 }
 0x4e0   : > { %v4699_v9 = vpop.f32.mrf.mxu1  ;;  %v4930_v42 = vpop.f32.mrf.mxu0 }
 0x4e1   : > { %v5126_v23 = vrot.slane %v5068_v57, 2  ;;  %v7362_v9 = vld [vmem:[%s12596_s5 + $0x108] sm:$0xff] }
 0x4e2   : > { %v4702_v11 = vpop.f32.mrf.mxu1  ;;  %v4933_v3 = vpop.f32.mrf.mxu0 }
 0x4e3   : > { %v5127_v2 = vsel %vm558_vm0, %v5125_v20, %v5126_v23  ;;  %v5069_v31 = vmax.f32 %v4702_v11, %v4933_v3 }
 0x4e4   : > { %v5211_v1 = vmax.f32 %v5067_v36, %v5127_v2  ;;  %v4704_v12 = vpop.f32.mrf.mxu1  ;;  %v4935_v53 = vpop.f32.mrf.mxu0 }
 0x4e5   : > { %v5128_v28 = vrot.slane %v5069_v31, 2 }
 0x4e6   : > { %v4707_v45 = vpop.f32.mrf.mxu1  ;;  %v4938_v61 = vpop.f32.mrf.mxu0  ;;  %7747 = vmatmul.mubr.msk.f32.vlgmr.msra.gmra.mxu0 %vm5341_vm9, %v5211_v1  ;;  %v5288_v14 = vrot.slane %v5211_v1, 4 }
 0x4e7   : > { %v5129_v43 = vsel %vm558_vm0, %v5126_v23, %v5128_v28  ;;  %v5070_v40 = vmax.f32 %v4707_v45, %v4938_v61  ;;  %7749 = vmatprep.mubr.msk.f32.mxu0 %vm8242_vm8, %v12697_v62  ;;  %7929 = vmatpush3.msra.mxu0 %v7368_v60 }
 0x4e8   : > { %v11498_v29 = vmax.f32 %v5068_v57, %v5129_v43  ;;  %v4709_v10 = vpop.f32.mrf.mxu1  ;;  %v4940_v56 = vpop.f32.mrf.mxu0  ;;  %7930 = vmatprep.subr.mxu0 %v12697_v62 }
 0x4e9   : > { %v5130_v16 = vrot.slane %v5070_v40, 2  ;;  %7931 = vmatpush3.msra.mxu0 %v7367_v35  ;;  %v7327_v56 = vld [vmem:[%s12596_s5 + $0xc8] sm:$0xff] }
 0x4ea   : > { %v5289_v25 = vrot.slane %v11498_v29, 4  ;;  %v4712_v15 = vpop.f32.mrf.mxu1  ;;  %v4943_v33 = vpop.f32.mrf.mxu0  ;;  %7750 = vmatmul.mubr.msk.f32.gmra.mxu0 %vm5341_vm9, %v11498_v29  ;;  %7932 = vmatprep.subr.mxu0 %v12697_v62 }
 0x4eb   : > { %v5131_v55 = vsel %vm558_vm0, %v5128_v28, %v5130_v16  ;;  %v5071_v46 = vmax.f32 %v4712_v15, %v4943_v33  ;;  %7752 = vmatprep.mubr.msk.f32.mxu0 %vm8242_vm8, %v12697_v62  ;;  %7933 = vmatpush3.msra.mxu0 %v7366_v19  ;;  %v7361_v28 = vld [vmem:[%s12596_s5 + $0x100] sm:$0xff]  ;;  %v7360_v15 = vld [vmem:[%s12596_s5 + $0xf8] sm:$0xff] }
 0x4ec   : > { %v11514_v48 = vmax.f32 %v5069_v31, %v5131_v55  ;;  %v4714_v38 = vpop.f32.mrf.mxu1  ;;  %v4945_v5 = vpop.f32.mrf.mxu0  ;;  %v5290_v44 = vsel %vm2625_vm3, %v5288_v14, %v5289_v25  ;;  %7934 = vmatprep.subr.mxu0 %v12697_v62  ;;  %v7328_v31 = vld [vmem:[%s12596_s5 + $0xd0] sm:$0xff] }
 0x4ed   : > { %v5132_v7 = vrot.slane %v5071_v46, 2  ;;  %7646 = vmatmul.mubr.msk.f32.vlgmr.msra.gmra.mxu1 %vm5341_vm9, %v5290_v44  ;;  %7935 = vmatpush3.msra.mxu0 %v7365_v13  ;;  %v7326_v44 = vld [vmem:[%s12596_s5 + $0xc0] sm:$0xff] }
 0x4ee   : > { %v4717_v50 = vpop.f32.mrf.mxu1  ;;  %v4948_v8 = vpop.f32.mrf.mxu0  ;;  %7753 = vmatmul.mubr.msk.f32.gmra.mxu0 %vm5341_vm9, %v11514_v48  ;;  %7648 = vmatprep.mubr.msk.f32.mxu1 %vm8242_vm8, %v12697_v62  ;;  %v5291_v27 = vrot.slane %v11514_v48, 4 }
 0x4ef   : > { %v5133_v58 = vsel %vm558_vm0, %v5130_v16, %v5132_v7  ;;  %v5072_v63 = vmax.f32 %v4717_v50, %v4948_v8  ;;  %7755 = vmatprep.mubr.msk.f32.mxu0 %vm8242_vm8, %v12697_v62  ;;  %7828 = vmatpush3.msra.mxu1 %v7331_v6 }
 0x4f0   : > { %v11533_v30 = vmax.f32 %v5070_v40, %v5133_v58  ;;  %v4719_v37 = vpop.f32.mrf.mxu1  ;;  %v4950_v49 = vpop.f32.mrf.mxu0  ;;  %v11536_v39 = vsel %vm2625_vm3, %v5289_v25, %v5291_v27  ;;  %7829 = vmatprep.subr.mxu1 %v12697_v62  ;;  %7936 = vmatprep.subr.mxu0 %v12697_v62 }
 0x4f1   : > { %v5134_v34 = vrot.slane %v5072_v63, 2  ;;  %7649 = vmatmul.mubr.msk.f32.gmra.mxu1 %vm5341_vm9, %v11536_v39  ;;  %7937 = vmatpush3.msra.mxu0 %v7364_v0 }
 0x4f2   : > { %v4722_v4 = vpop.f32.mrf.mxu1  ;;  %v4953_v54 = vpop.f32.mrf.mxu0  ;;  %7756 = vmatmul.mubr.msk.f32.gmra.mxu0 %vm5341_vm9, %v11533_v30  ;;  %7651 = vmatprep.mubr.msk.f32.mxu1 %vm8242_vm8, %v12697_v62  ;;  %v5293_v18 = vrot.slane %v11533_v30, 4 }
 0x4f3   : > { %v5135_v17 = vsel %vm558_vm0, %v5132_v7, %v5134_v34  ;;  %v5073_v59 = vmax.f32 %v4722_v4, %v4953_v54  ;;  %7758 = vmatprep.mubr.msk.f32.mxu0 %vm8242_vm8, %v12697_v62  ;;  %7830 = vmatpush3.msra.mxu1 %v7330_v32 }
 0x4f4   : > { %v11556_v41 = vmax.f32 %v5071_v46, %v5135_v17  ;;  %v4724_v47 = vpop.f32.mrf.mxu1  ;;  %v4955_v51 = vpop.f32.mrf.mxu0  ;;  %v11559_v52 = vsel %vm2625_vm3, %v5291_v27, %v5293_v18  ;;  %7831 = vmatprep.subr.mxu1 %v12697_v62  ;;  %7938 = vmatprep.subr.mxu0 %v12697_v62  ;;  %v7359_v27 = vld [vmem:[%s12596_s5 + $0xf0] sm:$0xff] }
 0x4f5   : > { %v5136_v36 = vrot.slane %v5073_v59, 2  ;;  %7652 = vmatmul.mubr.msk.f32.gmra.mxu1 %vm5341_vm9, %v11559_v52  ;;  %7939 = vmatpush3.msra.mxu0 %v7363_v21 }
 0x4f6   : > { %v4727_v26 = vpop.f32.mrf.mxu1  ;;  %v4958_v24 = vpop.f32.mrf.mxu0  ;;  %7759 = vmatmul.mubr.msk.f32.gmra.mxu0 %vm5341_vm9, %v11556_v41  ;;  %7654 = vmatprep.mubr.msk.f32.mxu1 %vm8242_vm8, %v12697_v62  ;;  %v5295_v57 = vrot.slane %v11556_v41, 4 }
 0x4f7   : > { %v5137_v42 = vsel %vm558_vm0, %v5134_v34, %v5136_v36  ;;  %v5074_v20 = vmax.f32 %v4727_v26, %v4958_v24  ;;  %7761 = vmatprep.mubr.msk.f32.mxu0 %vm8242_vm8, %v12697_v62  ;;  %7832 = vmatpush3.msra.mxu1 %v7329_v22  ;;  %v7325_v34 = vld [vmem:[%s12596_s5 + $0xb8] sm:$0xff]  ;;  %v7324_v26 = vld [vmem:[%s12596_s5 + $0xb0] sm:$0xff] }
 0x4f8   : > { %v11579_v23 = vmax.f32 %v5072_v63, %v5137_v42  ;;  %v4729_v11 = vpop.f32.mrf.mxu1  ;;  %v4960_v3 = vpop.f32.mrf.mxu0  ;;  %v11582_v2 = vsel %vm2625_vm3, %v5293_v18, %v5295_v57  ;;  %7833 = vmatprep.subr.mxu1 %v12697_v62  ;;  %7940 = vmatprep.subr.mxu0 %v12697_v62 }
 0x4f9   : > { %v5138_v1 = vrot.slane %v5074_v20, 2  ;;  %7655 = vmatmul.mubr.msk.f32.gmra.mxu1 %vm5341_vm9, %v11582_v2  ;;  %7941 = vmatpush3.msra.mxu0 %v7362_v9 }
 0x4fa   : > { %v4732_v12 = vpop.f32.mrf.mxu1  ;;  %v4963_v53 = vpop.f32.mrf.mxu0  ;;  %7762 = vmatmul.mubr.msk.f32.gmra.mxu0 %vm5341_vm9, %v11579_v23  ;;  %7657 = vmatprep.mubr.msk.f32.mxu1 %vm8242_vm8, %v12697_v62  ;;  %v5297_v60 = vrot.slane %v11579_v23, 4 }
 0x4fb   : > { %v5139_v45 = vsel %vm558_vm0, %v5136_v36, %v5138_v1  ;;  %v5075_v61 = vmax.f32 %v4732_v12, %v4963_v53  ;;  %7764 = vmatprep.mubr.msk.f32.mxu0 %vm8242_vm8, %v12697_v62  ;;  %7834 = vmatpush3.msra.mxu1 %v7328_v31  ;;  %v7323_v53 = vld [vmem:[%s12596_s5 + $0xa8] sm:$0xff] }
 0x4fc   : > { %v11602_v35 = vmax.f32 %v5073_v59, %v5139_v45  ;;  %v4734_v43 = vpop.f32.mrf.mxu1  ;;  %v4965_v40 = vpop.f32.mrf.mxu0  ;;  %v11605_v10 = vsel %vm2625_vm3, %v5295_v57, %v5297_v60  ;;  %7835 = vmatprep.subr.mxu1 %v12697_v62  ;;  %7942 = vmatprep.subr.mxu0 %v12697_v62 }
 0x4fd   : > { %v5140_v19 = vrot.slane %v5075_v61, 2  ;;  %7658 = vmatmul.mubr.msk.f32.gmra.mxu1 %vm5341_vm9, %v11605_v10  ;;  %7943 = vmatpush3.msra.mxu0 %v7361_v28 }
 0x4fe   : > { %v4737_v16 = vpop.f32.mrf.mxu1  ;;  %v4968_v14 = vpop.f32.mrf.mxu0  ;;  %7765 = vmatmul.mubr.msk.f32.gmra.mxu0 %vm5341_vm9, %v11602_v35  ;;  %7660 = vmatprep.mubr.msk.f32.mxu1 %vm8242_vm8, %v12697_v62  ;;  %v5299_v25 = vrot.slane %v11602_v35, 4 }
 0x4ff   : > { %v5141_v33 = vsel %vm558_vm0, %v5138_v1, %v5140_v19  ;;  %v5076_v13 = vmax.f32 %v4737_v16, %v4968_v14  ;;  %7767 = vmatprep.mubr.msk.f32.mxu0 %vm8242_vm8, %v12697_v62  ;;  %7836 = vmatpush3.msra.mxu1 %v7327_v56 }
 0x500   : > { %v11625_v55 = vmax.f32 %v5074_v20, %v5141_v33  ;;  %v4739_v46 = vpop.f32.mrf.mxu1  ;;  %v4970_v38 = vpop.f32.mrf.mxu0  ;;  %v11628_v5 = vsel %vm2625_vm3, %v5297_v60, %v5299_v25  ;;  %7837 = vmatprep.subr.mxu1 %v12697_v62  ;;  %7944 = vmatprep.subr.mxu0 %v12697_v62 }
 0x501   : > { %v5142_v6 = vrot.slane %v5076_v13, 2  ;;  %7661 = vmatmul.mubr.msk.f32.gmra.mxu1 %vm5341_vm9, %v11628_v5  ;;  %7945 = vmatpush3.msra.mxu0 %v7360_v15 }
 0x502   : > { %v4742_v7 = vpop.f32.mrf.mxu1  ;;  %v4973_v50 = vpop.f32.mrf.mxu0  ;;  %7768 = vmatmul.mubr.msk.f32.gmra.mxu0 %vm5341_vm9, %v11625_v55  ;;  %7663 = vmatprep.mubr.msk.f32.mxu1 %vm8242_vm8, %v12697_v62  ;;  %v5301_v8 = vrot.slane %v11625_v55, 4 }
 0x503   : > { %v5143_v0 = vsel %vm558_vm0, %v5140_v19, %v5142_v6  ;;  %v5077_v58 = vmax.f32 %v4742_v7, %v4973_v50  ;;  %7770 = vmatprep.mubr.msk.f32.mxu0 %vm8242_vm8, %v12697_v62  ;;  %7838 = vmatpush3.msra.mxu1 %v7326_v44 }
 0x504   : > { %v11648_v63 = vmax.f32 %v5075_v61, %v5143_v0  ;;  %v4744_v37 = vpop.f32.mrf.mxu1  ;;  %v4975_v49 = vpop.f32.mrf.mxu0  ;;  %v11651_v32 = vsel %vm2625_vm3, %v5299_v25, %v5301_v8  ;;  %7946 = vmatprep.subr.mxu0 %v12697_v62  ;;  %7839 = vmatprep.subr.mxu1 %v12697_v62  ;;  %v7322_v25 = vld [vmem:[%s12596_s5 + $0xa0] sm:$0xff] }
 0x505   : > { %v5144_v4 = vrot.slane %v5077_v58, 2  ;;  %7664 = vmatmul.mubr.msk.f32.gmra.mxu1 %vm5341_vm9, %v11651_v32  ;;  %7947 = vmatpush3.msra.mxu0 %v7359_v27 }
 0x506   : > { %v4747_v54 = vpop.f32.mrf.mxu1  ;;  %v4978_v18 = vpop.f32.mrf.mxu0  ;;  %7771 = vmatmul.mubr.msk.f32.gmra.mxu0 %vm5341_vm9, %v11648_v63  ;;  %7666 = vmatprep.mubr.msk.f32.mxu1 %vm8242_vm8, %v12697_v62  ;;  %v5303_v21 = vrot.slane %v11648_v63, 4 }
 0x507   : > { %v5145_v17 = vsel %vm558_vm0, %v5142_v6, %v5144_v4  ;;  %v5078_v59 = vmax.f32 %v4747_v54, %v4978_v18  ;;  %7773 = vmatprep.mubr.msk.f32.mxu0 %vm8242_vm8, %v12697_v62  ;;  %7840 = vmatpush3.msra.mxu1 %v7325_v34 }
 0x508   : > { %v11668_v47 = vmax.f32 %v5076_v13, %v5145_v17  ;;  %v4749_v51 = vpop.f32.mrf.mxu1  ;;  %v4980_v22 = vpop.f32.mrf.mxu0  ;;  %v11671_v36 = vsel %vm2625_vm3, %v5301_v8, %v5303_v21  ;;  %7841 = vmatprep.subr.mxu1 %v12697_v62  ;;  %6593 = vmatprep.subr.mxu0 %v12697_v62 }
 0x509   : > { %v5146_v24 = vrot.slane %v5078_v59, 2  ;;  %7667 = vmatmul.mubr.msk.f32.gmra.mxu1 %vm5341_vm9, %v11671_v36 }
 0x50a   : > { %v4752_v57 = vpop.f32.mrf.mxu1  ;;  %v4983_v9 = vpop.f32.mrf.mxu0  ;;  %7774 = vmatmul.mubr.msk.f32.gmra.mxu0 %vm5341_vm9, %v11668_v47  ;;  %7669 = vmatprep.mubr.msk.f32.mxu1 %vm8242_vm8, %v12697_v62  ;;  %v5305_v42 = vrot.slane %v11668_v47, 4 }
 0x50b   : > { %v5147_v20 = vsel %vm558_vm0, %v5144_v4, %v5146_v24  ;;  %v5079_v11 = vmax.f32 %v4752_v57, %v4983_v9  ;;  %7776 = vmatprep.mubr.msk.f32.mxu0 %vm8242_vm8, %v12697_v62  ;;  %7842 = vmatpush3.msra.mxu1 %v7324_v26 }
 0x50c   : > { %v11688_v3 = vmax.f32 %v5077_v58, %v5147_v20  ;;  %v4754_v31 = vpop.f32.mrf.mxu1  ;;  %v4985_v1 = vpop.f32.mrf.mxu0  ;;  %v11691_v12 = vsel %vm2625_vm3, %v5303_v21, %v5305_v42  ;;  %7843 = vmatprep.subr.mxu1 %v12697_v62 }
 0x50d   : > { %v5148_v60 = vrot.slane %v5079_v11, 2  ;;  %7670 = vmatmul.mubr.msk.f32.gmra.mxu1 %vm5341_vm9, %v11691_v12 }
 0x50e   : > { %v4757_v28 = vpop.f32.mrf.mxu1  ;;  %v4988_v45 = vpop.f32.mrf.mxu0  ;;  %7777 = vmatmul.mubr.msk.f32.gmra.mxu0 %vm5341_vm9, %v11688_v3  ;;  %7672 = vmatprep.mubr.msk.f32.mxu1 %vm8242_vm8, %v12697_v62  ;;  %v5307_v61 = vrot.slane %v11688_v3, 4 }
 0x50f   : > { %v5149_v43 = vsel %vm558_vm0, %v5146_v24, %v5148_v60  ;;  %v5080_v40 = vmax.f32 %v4757_v28, %v4988_v45  ;;  %7779 = vmatprep.mubr.msk.f32.mxu0 %vm8242_vm8, %v12697_v62  ;;  %7844 = vmatpush3.msra.mxu1 %v7323_v53 }
 0x510   : > { %v11707_v56 = vmax.f32 %v5078_v59, %v5149_v43  ;;  %v4759_v19 = vpop.f32.mrf.mxu1  ;;  %v4990_v16 = vpop.f32.mrf.mxu0  ;;  %v11710_v14 = vsel %vm2625_vm3, %v5305_v42, %v5307_v61  ;;  %7845 = vmatprep.subr.mxu1 %v12697_v62 }
 0x511   : > { %v5150_v15 = vrot.slane %v5080_v40, 2  ;;  %7673 = vmatmul.mubr.msk.f32.gmra.mxu1 %vm5341_vm9, %v11710_v14 }
 0x512   : > { %v4762_v33 = vpop.f32.mrf.mxu1  ;;  %v4993_v13 = vpop.f32.mrf.mxu0  ;;  %7780 = vmatmul.mubr.msk.f32.gmra.mxu0 %vm5341_vm9, %v11707_v56  ;;  %7675 = vmatprep.mubr.msk.f32.mxu1 %vm8242_vm8, %v12697_v62  ;;  %v5309_v46 = vrot.slane %v11707_v56, 4 }
 0x513   : > { %v5151_v38 = vsel %vm558_vm0, %v5148_v60, %v5150_v15  ;;  %v5081_v44 = vmax.f32 %v4762_v33, %v4993_v13  ;;  %7782 = vmatprep.mubr.msk.f32.mxu0 %vm8242_vm8, %v12697_v62  ;;  %7846 = vmatpush3.msra.mxu1 %v7322_v25 }
 0x514   : > { %v11726_v6 = vmax.f32 %v5079_v11, %v5151_v38  ;;  %v4764_v7 = vpop.f32.mrf.mxu1  ;;  %v4995_v50 = vpop.f32.mrf.mxu0  ;;  %v11729_v8 = vsel %vm2625_vm3, %v5307_v61, %v5309_v46  ;;  %8029 = vmatprep.subr.mxu1 %v12697_v62 }
 0x515   : > { %v5152_v27 = vrot.slane %v5081_v44, 2  ;;  %7676 = vmatmul.mubr.msk.f32.gmra.mxu1 %vm5341_vm9, %v11729_v8 }
 0x516   : > { %v4767_v0 = vpop.f32.mrf.mxu1  ;;  %v4998_v58 = vpop.f32.mrf.mxu0  ;;  %7783 = vmatmul.mubr.msk.f32.gmra.mxu0 %vm5341_vm9, %v11726_v6  ;;  %7678 = vmatprep.mubr.msk.f32.mxu1 %vm8242_vm8, %v12697_v62  ;;  %v5311_v37 = vrot.slane %v11726_v6, 4 }
 0x517   : > { %v5153_v49 = vsel %vm558_vm0, %v5150_v15, %v5152_v27  ;;  %v5082_v34 = vmax.f32 %v4767_v0, %v4998_v58  ;;  %7785 = vmatprep.mubr.msk.f32.mxu0 %vm8242_vm8, %v12697_v62 }
 0x518   : > { %v11742_v4 = vmax.f32 %v5080_v40, %v5153_v49  ;;  %v4769_v54 = vpop.f32.mrf.mxu1  ;;  %v5000_v18 = vpop.f32.mrf.mxu0  ;;  %v11745_v21 = vsel %vm2625_vm3, %v5309_v46, %v5311_v37 }
 0x519   : > { %v5154_v17 = vrot.slane %v5082_v34, 2  ;;  %7679 = vmatmul.mubr.msk.f32.gmra.mxu1 %vm5341_vm9, %v11745_v21 }
 0x51a   : > { %v4772_v59 = vpop.f32.mrf.mxu1  ;;  %v5003_v51 = vpop.f32.mrf.mxu0  ;;  %7786 = vmatmul.mubr.msk.f32.gmra.mxu0 %vm5341_vm9, %v11742_v4  ;;  %7681 = vmatprep.mubr.msk.f32.mxu1 %vm8242_vm8, %v12697_v62  ;;  %v5313_v22 = vrot.slane %v11742_v4, 4 }
 0x51b   : > { %v5155_v26 = vsel %vm558_vm0, %v5152_v27, %v5154_v17  ;;  %v5083_v24 = vmax.f32 %v4772_v59, %v5003_v51  ;;  %7788 = vmatprep.mubr.msk.f32.mxu0 %vm8242_vm8, %v12697_v62 }
 0x51c   : > { %v11757_v57 = vmax.f32 %v5081_v44, %v5155_v26  ;;  %v4774_v9 = vpop.f32.mrf.mxu1  ;;  %v5005_v42 = vpop.f32.mrf.mxu0  ;;  %v11760_v20 = vsel %vm2625_vm3, %v5311_v37, %v5313_v22 }
 0x51d   : > { %v5156_v11 = vrot.slane %v5083_v24, 2  ;;  %7682 = vmatmul.mubr.msk.f32.gmra.mxu1 %vm5341_vm9, %v11760_v20 }
 0x51e   : > { %v4777_v31 = vpop.f32.mrf.mxu1  ;;  %v5008_v1 = vpop.f32.mrf.mxu0  ;;  %7789 = vmatmul.mubr.msk.f32.gmra.mxu0 %vm5341_vm9, %v11757_v57  ;;  %7684 = vmatprep.mubr.msk.f32.mxu1 %vm8242_vm8, %v12697_v62  ;;  %v5315_v53 = vrot.slane %v11757_v57, 4 }
 0x51f   : > { %v5157_v60 = vsel %vm558_vm0, %v5154_v17, %v5156_v11  ;;  %v5084_v28 = vmax.f32 %v4777_v31, %v5008_v1  ;;  %7791 = vmatprep.mubr.msk.f32.mxu0 %vm8242_vm8, %v12697_v62 }
 0x520   : > { %v11772_v45 = vmax.f32 %v5082_v34, %v5157_v60  ;;  %v4779_v61 = vpop.f32.mrf.mxu1  ;;  %v5010_v43 = vpop.f32.mrf.mxu0  ;;  %v11775_v40 = vsel %vm2625_vm3, %v5313_v22, %v5315_v53 }
 0x521   : > { %v5158_v19 = vrot.slane %v5084_v28, 2  ;;  %7685 = vmatmul.mubr.msk.f32.gmra.mxu1 %vm5341_vm9, %v11775_v40 }
 0x522   : > { %v4782_v16 = vpop.f32.mrf.mxu1  ;;  %v5013_v25 = vpop.f32.mrf.mxu0  ;;  %7792 = vmatmul.mubr.msk.f32.gmra.mxu0 %vm5341_vm9, %v11772_v45  ;;  %7687 = vmatprep.mubr.msk.f32.mxu1 %vm8242_vm8, %v12697_v62  ;;  %v5317_v15 = vrot.slane %v11772_v45, 4 }
 0x523   : > { %v5159_v33 = vsel %vm558_vm0, %v5156_v11, %v5158_v19  ;;  %v5085_v13 = vmax.f32 %v4782_v16, %v5013_v25  ;;  %7794 = vmatprep.mubr.msk.f32.mxu0 %vm8242_vm8, %v12697_v62 }
 0x524   : > { %v11787_v46 = vmax.f32 %v5083_v24, %v5159_v33  ;;  %v4784_v38 = vpop.f32.mrf.mxu1  ;;  %v5015_v44 = vpop.f32.mrf.mxu0  ;;  %v11790_v7 = vsel %vm2625_vm3, %v5315_v53, %v5317_v15 }
 0x525   : > { %v5160_v50 = vrot.slane %v5085_v13, 2  ;;  %7688 = vmatmul.mubr.msk.f32.gmra.mxu1 %vm5341_vm9, %v11790_v7 }
 0x526   : > { %v4787_v27 = vpop.f32.mrf.mxu1  ;;  %v5018_v0 = vpop.f32.mrf.mxu0  ;;  %7795 = vmatmul.mubr.msk.f32.gmra.mxu0 %vm5341_vm9, %v11787_v46  ;;  %7690 = vmatprep.mubr.msk.f32.mxu1 %vm8242_vm8, %v12697_v62  ;;  %v5319_v58 = vrot.slane %v11787_v46, 4 }
 0x527   : > { %v5161_v37 = vsel %vm558_vm0, %v5158_v19, %v5160_v50  ;;  %v5086_v49 = vmax.f32 %v4787_v27, %v5018_v0  ;;  %7797 = vmatprep.mubr.msk.f32.mxu0 %vm8242_vm8, %v12697_v62 }
 0x528   : > { %v11802_v34 = vmax.f32 %v5084_v28, %v5161_v37  ;;  %v4789_v54 = vpop.f32.mrf.mxu1  ;;  %v5020_v18 = vpop.f32.mrf.mxu0  ;;  %v11805_v17 = vsel %vm2625_vm3, %v5317_v15, %v5319_v58 }
 0x529   : > { %v5162_v59 = vrot.slane %v5086_v49, 2  ;;  %7691 = vmatmul.mubr.msk.f32.gmra.mxu1 %vm5341_vm9, %v11805_v17 }
 0x52a   : > { %v4792_v51 = vpop.f32.mrf.mxu1  ;;  %v5023_v22 = vpop.f32.mrf.mxu0  ;;  %7798 = vmatmul.mubr.msk.f32.gmra.mxu0 %vm5341_vm9, %v11802_v34  ;;  %7693 = vmatprep.mubr.msk.f32.mxu1 %vm8242_vm8, %v12697_v62  ;;  %v5321_v26 = vrot.slane %v11802_v34, 4 }
 0x52b   : > { %v5163_v24 = vsel %vm558_vm0, %v5160_v50, %v5162_v59  ;;  %v5087_v9 = vmax.f32 %v4792_v51, %v5023_v22  ;;  %7800 = vmatprep.mubr.msk.f32.mxu0 %vm8242_vm8, %v12697_v62 }
 0x52c   : > { %v11817_v42 = vmax.f32 %v5085_v13, %v5163_v24  ;;  %v4794_v11 = vpop.f32.mrf.mxu1  ;;  %v5025_v31 = vpop.f32.mrf.mxu0  ;;  %v11820_v1 = vsel %vm2625_vm3, %v5319_v58, %v5321_v26 }
 0x52d   : > { %v5164_v53 = vrot.slane %v5087_v9, 2  ;;  %7694 = vmatmul.mubr.msk.f32.gmra.mxu1 %vm5341_vm9, %v11820_v1 }
 0x52e   : > { %v4797_v60 = vpop.f32.mrf.mxu1  ;;  %v5028_v28 = vpop.f32.mrf.mxu0  ;;  %7801 = vmatmul.mubr.msk.f32.gmra.mxu0 %vm5341_vm9, %v11817_v42  ;;  %7696 = vmatprep.mubr.msk.f32.mxu1 %vm8242_vm8, %v12697_v62  ;;  %v5323_v61 = vrot.slane %v11817_v42, 4 }
 0x52f   : > { %v5165_v43 = vsel %vm558_vm0, %v5162_v59, %v5164_v53  ;;  %v5088_v19 = vmax.f32 %v4797_v60, %v5028_v28  ;;  %7803 = vmatprep.mubr.msk.f32.mxu0 %vm8242_vm8, %v12697_v62 }
 0x530   : > { %v11832_v16 = vmax.f32 %v5086_v49, %v5165_v43  ;;  %v4799_v25 = vpop.f32.mrf.mxu1  ;;  %v5030_v15 = vpop.f32.mrf.mxu0  ;;  %v11835_v33 = vsel %vm2625_vm3, %v5321_v26, %v5323_v61 }
 0x531   : > { %v5166_v13 = vrot.slane %v5088_v19, 2  ;;  %7697 = vmatmul.mubr.msk.f32.gmra.mxu1 %vm5341_vm9, %v11835_v33 }
 0x532   : > { %v4802_v38 = vpop.f32.mrf.mxu1  ;;  %v5033_v44 = vpop.f32.mrf.mxu0  ;;  %7804 = vmatmul.mubr.msk.f32.gmra.mxu0 %vm5341_vm9, %v11832_v16  ;;  %7699 = vmatprep.mubr.msk.f32.mxu1 %vm8242_vm8, %v12697_v62  ;;  %v5325_v50 = vrot.slane %v11832_v16, 4 }
 0x533   : > { %v5167_v27 = vsel %vm558_vm0, %v5164_v53, %v5166_v13  ;;  %v5089_v0 = vmax.f32 %v4802_v38, %v5033_v44  ;;  %7806 = vmatprep.mubr.msk.f32.mxu0 %vm8242_vm8, %v12697_v62 }
 0x534   : > { %v11847_v58 = vmax.f32 %v5087_v9, %v5167_v27  ;;  %v4804_v37 = vpop.f32.mrf.mxu1  ;;  %v5035_v49 = vpop.f32.mrf.mxu0  ;;  %v11850_v54 = vsel %vm2625_vm3, %v5323_v61, %v5325_v50 }
 0x535   : > { %v5168_v18 = vrot.slane %v5089_v0, 2  ;;  %7700 = vmatmul.mubr.msk.f32.gmra.mxu1 %vm5341_vm9, %v11850_v54 }
 0x536   : > { %v4807_v59 = vpop.f32.mrf.mxu1  ;;  %v5038_v51 = vpop.f32.mrf.mxu0  ;;  %7807 = vmatmul.mubr.msk.f32.gmra.mxu0 %vm5341_vm9, %v11847_v58  ;;  %7702 = vmatprep.mubr.msk.f32.mxu1 %vm8242_vm8, %v12697_v62  ;;  %v5327_v22 = vrot.slane %v11847_v58, 4 }
 0x537   : > { %v5169_v26 = vsel %vm558_vm0, %v5166_v13, %v5168_v18  ;;  %v5090_v24 = vmax.f32 %v4807_v59, %v5038_v51  ;;  %7809 = vmatprep.mubr.msk.f32.mxu0 %vm8242_vm8, %v12697_v62 }
 0x538   : > { %v11862_v9 = vmax.f32 %v5088_v19, %v5169_v26  ;;  %v4809_v11 = vpop.f32.mrf.mxu1  ;;  %v5040_v31 = vpop.f32.mrf.mxu0  ;;  %v11865_v53 = vsel %vm2625_vm3, %v5325_v50, %v5327_v22 }
 0x539   : > { %v5170_v60 = vrot.slane %v5090_v24, 2  ;;  %7703 = vmatmul.mubr.msk.f32.gmra.mxu1 %vm5341_vm9, %v11865_v53 }
 0x53a   : > { %v4812_v28 = vpop.f32.mrf.mxu1  ;;  %v5043_v61 = vpop.f32.mrf.mxu0  ;;  %7810 = vmatmul.mubr.msk.f32.gmra.mxu0 %vm5341_vm9, %v11862_v9  ;;  %7705 = vmatprep.mubr.msk.f32.mxu1 %vm8242_vm8, %v12697_v62  ;;  %v5329_v43 = vrot.slane %v11862_v9, 4 }
 0x53b   : > { %v5171_v19 = vsel %vm558_vm0, %v5168_v18, %v5170_v60  ;;  %v5091_v25 = vmax.f32 %v4812_v28, %v5043_v61  ;;  %7812 = vmatprep.mubr.msk.f32.mxu0 %vm8242_vm8, %v12697_v62 }
 0x53c   : > { %v11877_v15 = vmax.f32 %v5089_v0, %v5171_v19  ;;  %v4814_v13 = vpop.f32.mrf.mxu1  ;;  %v5045_v38 = vpop.f32.mrf.mxu0  ;;  %v11880_v44 = vsel %vm2625_vm3, %v5327_v22, %v5329_v43 }
 0x53d   : > { %v5172_v50 = vrot.slane %v5091_v25, 2  ;;  %7706 = vmatmul.mubr.msk.f32.gmra.mxu1 %vm5341_vm9, %v11880_v44 }
 0x53e   : > { %v4817_v27 = vpop.f32.mrf.mxu1  ;;  %v5048_v37 = vpop.f32.mrf.mxu0  ;;  %7813 = vmatmul.mubr.msk.f32.gmra.mxu0 %vm5341_vm9, %v11877_v15  ;;  %7708 = vmatprep.mubr.msk.f32.mxu1 %vm8242_vm8, %v12697_v62  ;;  %v5331_v0 = vrot.slane %v11877_v15, 4 }
 0x53f   : > { %v5173_v49 = vsel %vm558_vm0, %v5170_v60, %v5172_v50  ;;  %v5092_v18 = vmax.f32 %v4817_v27, %v5048_v37  ;;  %7815 = vmatprep.mubr.msk.f32.mxu0 %vm8242_vm8, %v12697_v62 }
 0x540   : > { %v11892_v59 = vmax.f32 %v5090_v24, %v5173_v49  ;;  %v4819_v51 = vpop.f32.mrf.mxu1  ;;  %v5050_v22 = vpop.f32.mrf.mxu0  ;;  %v11895_v26 = vsel %vm2625_vm3, %v5329_v43, %v5331_v0 }
 0x541   : > { %v5174_v11 = vrot.slane %v5092_v18, 2  ;;  %7709 = vmatmul.mubr.msk.f32.gmra.mxu1 %vm5341_vm9, %v11895_v26 }
 0x542   : > { %v4822_v31 = vpop.f32.mrf.mxu1  ;;  %v5053_v28 = vpop.f32.mrf.mxu0  ;;  %7816 = vmatmul.mubr.msk.f32.gmra.mxu0 %vm5341_vm9, %v11892_v59  ;;  %7711 = vmatprep.mubr.msk.f32.mxu1 %vm8242_vm8, %v12697_v62  ;;  %v5333_v24 = vrot.slane %v11892_v59, 4 }
 0x543   : > { %v5175_v60 = vsel %vm558_vm0, %v5172_v50, %v5174_v11  ;;  %v5093_v61 = vmax.f32 %v4822_v31, %v5053_v28  ;;  %7818 = vmatprep.mubr.msk.f32.mxu0 %vm8242_vm8, %v12697_v62 }
 0x544   : > { %v11907_v43 = vmax.f32 %v5091_v25, %v5175_v60  ;;  %v4824_v19 = vpop.f32.mrf.mxu1  ;;  %v5055_v13 = vpop.f32.mrf.mxu0  ;;  %v11910_v38 = vsel %vm2625_vm3, %v5331_v0, %v5333_v24 }
 0x545   : > { %v5176_v27 = vrot.slane %v5093_v61, 2  ;;  %7712 = vmatmul.mubr.msk.f32.gmra.mxu1 %vm5341_vm9, %v11910_v38 }
 0x546   : > { %v4827_v37 = vpop.f32.mrf.mxu1  ;;  %v5058_v49 = vpop.f32.mrf.mxu0  ;;  %7819 = vmatmul.mubr.msk.f32.gmra.mxu0 %vm5341_vm9, %v11907_v43  ;;  %7714 = vmatprep.mubr.msk.f32.mxu1 %vm8242_vm8, %v12697_v62  ;;  %v5335_v25 = vrot.slane %v11907_v43, 4 }
 0x547   : > { %v5177_v50 = vsel %vm558_vm0, %v5174_v11, %v5176_v27  ;;  %v5094_v51 = vmax.f32 %v4827_v37, %v5058_v49  ;;  %7821 = vmatprep.mubr.msk.f32.mxu0 %vm8242_vm8, %v12697_v62 }
 0x548   : > { %v11922_v0 = vmax.f32 %v5092_v18, %v5177_v50  ;;  %v4829_v22 = vpop.f32.mrf.mxu1  ;;  %v5060_v31 = vpop.f32.mrf.mxu0  ;;  %v11925_v28 = vsel %vm2625_vm3, %v5333_v24, %v5335_v25 }
 0x549   : > { %v5178_v60 = vrot.slane %v5094_v51, 2  ;;  %7715 = vmatmul.mubr.msk.f32.gmra.mxu1 %vm5341_vm9, %v11925_v28 }
 0x54a   : > { %v4832_v19 = vpop.f32.mrf.mxu1  ;;  %v5063_v13 = vpop.f32.mrf.mxu0  ;;  %7822 = vmatmul.mubr.msk.f32.gmra.mxu0 %vm5341_vm9, %v11922_v0  ;;  %7717 = vmatprep.mubr.msk.f32.mxu1 %vm8242_vm8, %v12697_v62  ;;  %v5337_v18 = vrot.slane %v11922_v0, 4 }
 0x54b   : > { %v5179_v11 = vsel %vm558_vm0, %v5176_v27, %v5178_v60  ;;  %v5095_v37 = vmax.f32 %v4832_v19, %v5063_v13  ;;  %7824 = vmatprep.mubr.msk.f32.mxu0 %vm8242_vm8, %v12697_v62 }
 0x54c   : > { %v11937_v24 = vmax.f32 %v5093_v61, %v5179_v11  ;;  %v4834_v49 = vpop.f32.mrf.mxu1  ;;  %v5065_v50 = vpop.f32.mrf.mxu0  ;;  %v11940_v22 = vsel %vm2625_vm3, %v5335_v25, %v5337_v18 }
 0x54d   : > { %v5180_v31 = vrot.slane %v5095_v37, 2  ;;  %7718 = vmatmul.mubr.msk.f32.gmra.mxu1 %vm5341_vm9, %v11940_v22 }
 0x54e   : > { %7825 = vmatmul.mubr.msk.f32.gmra.mxu0 %vm5341_vm9, %v11937_v24  ;;  %7720 = vmatprep.mubr.msk.f32.mxu1 %vm8242_vm8, %v12697_v62  ;;  %v11949_v27 = vrot.slane %v11937_v24, 4 }
 0x54f   : > { %v5181_v61 = vsel %vm558_vm0, %v5178_v60, %v5180_v31  ;;  %v11952_v19 = vmax.f32 %v5095_v37, %v5180_v31  ;;  %7948 = vmatprep.mubr.msk.f32.mxu0 %vm8242_vm8, %v12697_v62 }
 0x550   : > { %v11956_v25 = vmax.f32 %v5094_v51, %v5181_v61  ;;  %v11960_v13 = vsel %vm2625_vm3, %v5337_v18, %v11949_v27 }
 0x551   : > { %7721 = vmatmul.mubr.msk.f32.gmra.mxu1 %vm5341_vm9, %v11960_v13 }
 0x552   : > { %7949 = vmatmul.mubr.msk.f32.vlgmr.msra.gmra.mxu0 %vm5341_vm9, %v11536_v39  ;;  %7723 = vmatprep.mubr.msk.f32.mxu1 %vm8242_vm8, %v12697_v62  ;;  %v7405_v39 = vld [vmem:[%s12596_s5 + $0x188] sm:$0xff] }
 0x553   : > { %7951 = vmatprep.mubr.msk.f32.mxu0 %vm8242_vm8, %v12697_v62 }
 0x555   : > { %7724 = vmatmul.mubr.msk.f32.gmra.mxu1 %vm5341_vm9, %v11949_v27 }
 0x556   : > { %7952 = vmatmul.mubr.msk.f32.gmra.mxu0 %vm5341_vm9, %v11559_v52  ;;  %7847 = vmatprep.mubr.msk.f32.mxu1 %vm8242_vm8, %v12697_v62  ;;  %v7404_v52 = vld [vmem:[%s12596_s5 + $0x180] sm:$0xff] }
 0x557   : > { %7954 = vmatprep.mubr.msk.f32.mxu0 %vm8242_vm8, %v12697_v62 }
 0x559   : > { %7848 = vmatmul.mubr.msk.f32.vlgmr.msra.gmra.mxu1 %vm5341_vm9, %v11498_v29  ;;  %v7403_v29 = vld [vmem:[%s12596_s5 + $0x178] sm:$0xff] }
 0x55a   : > { %7955 = vmatmul.mubr.msk.f32.gmra.mxu0 %vm5341_vm9, %v11582_v2  ;;  %7850 = vmatprep.mubr.msk.f32.mxu1 %vm8242_vm8, %v12697_v62  ;;  %v7402_v2 = vld [vmem:[%s12596_s5 + $0x170] sm:$0xff] }
 0x55b   : > { %7957 = vmatprep.mubr.msk.f32.mxu0 %vm8242_vm8, %v12697_v62  ;;  %8030 = vmatpush3.msra.mxu1 %v7405_v39 }
 0x55c   : > { %8031 = vmatprep.subr.mxu1 %v12697_v62 }
 0x55d   : > { %7851 = vmatmul.mubr.msk.f32.gmra.mxu1 %vm5341_vm9, %v11514_v48 }
 0x55e   : > { %7958 = vmatmul.mubr.msk.f32.gmra.mxu0 %vm5341_vm9, %v11605_v10  ;;  %7853 = vmatprep.mubr.msk.f32.mxu1 %vm8242_vm8, %v12697_v62  ;;  %v7401_v10 = vld [vmem:[%s12596_s5 + $0x168] sm:$0xff] }
 0x55f   : > { %7960 = vmatprep.mubr.msk.f32.mxu0 %vm8242_vm8, %v12697_v62  ;;  %8032 = vmatpush3.msra.mxu1 %v7404_v52 }
 0x560   : > { %8033 = vmatprep.subr.mxu1 %v12697_v62 }
 0x561   : > { %7854 = vmatmul.mubr.msk.f32.gmra.mxu1 %vm5341_vm9, %v11533_v30 }
 0x562   : > { %7961 = vmatmul.mubr.msk.f32.gmra.mxu0 %vm5341_vm9, %v11628_v5  ;;  %7856 = vmatprep.mubr.msk.f32.mxu1 %vm8242_vm8, %v12697_v62  ;;  %v7400_v5 = vld [vmem:[%s12596_s5 + $0x160] sm:$0xff] }
 0x563   : > { %7963 = vmatprep.mubr.msk.f32.mxu0 %vm8242_vm8, %v12697_v62  ;;  %8034 = vmatpush3.msra.mxu1 %v7403_v29 }
 0x564   : > { %8035 = vmatprep.subr.mxu1 %v12697_v62 }
 0x565   : > { %7857 = vmatmul.mubr.msk.f32.gmra.mxu1 %vm5341_vm9, %v11556_v41 }
 0x566   : > { %7964 = vmatmul.mubr.msk.f32.gmra.mxu0 %vm5341_vm9, %v11651_v32  ;;  %7859 = vmatprep.mubr.msk.f32.mxu1 %vm8242_vm8, %v12697_v62  ;;  %v7399_v32 = vld [vmem:[%s12596_s5 + $0x158] sm:$0xff] }
 0x567   : > { %7966 = vmatprep.mubr.msk.f32.mxu0 %vm8242_vm8, %v12697_v62  ;;  %8036 = vmatpush3.msra.mxu1 %v7402_v2 }
 0x568   : > { %8037 = vmatprep.subr.mxu1 %v12697_v62 }
 0x569   : > { %7860 = vmatmul.mubr.msk.f32.gmra.mxu1 %vm5341_vm9, %v11579_v23 }
 0x56a   : > { %7967 = vmatmul.mubr.msk.f32.gmra.mxu0 %vm5341_vm9, %v11671_v36  ;;  %7862 = vmatprep.mubr.msk.f32.mxu1 %vm8242_vm8, %v12697_v62  ;;  %v7398_v36 = vld [vmem:[%s12596_s5 + $0x150] sm:$0xff] }
 0x56b   : > { %7969 = vmatprep.mubr.msk.f32.mxu0 %vm8242_vm8, %v12697_v62  ;;  %8038 = vmatpush3.msra.mxu1 %v7401_v10 }
 0x56c   : > { %8039 = vmatprep.subr.mxu1 %v12697_v62 }
 0x56d   : > { %7863 = vmatmul.mubr.msk.f32.gmra.mxu1 %vm5341_vm9, %v11602_v35 }
 0x56e   : > { %7970 = vmatmul.mubr.msk.f32.gmra.mxu0 %vm5341_vm9, %v11691_v12  ;;  %7865 = vmatprep.mubr.msk.f32.mxu1 %vm8242_vm8, %v12697_v62  ;;  %v7397_v12 = vld [vmem:[%s12596_s5 + $0x148] sm:$0xff] }
 0x56f   : > { %7972 = vmatprep.mubr.msk.f32.mxu0 %vm8242_vm8, %v12697_v62  ;;  %8040 = vmatpush3.msra.mxu1 %v7400_v5 }
 0x570   : > { %8041 = vmatprep.subr.mxu1 %v12697_v62 }
 0x571   : > { %7866 = vmatmul.mubr.msk.f32.gmra.mxu1 %vm5341_vm9, %v11625_v55 }
 0x572   : > { %7973 = vmatmul.mubr.msk.f32.gmra.mxu0 %vm5341_vm9, %v11710_v14  ;;  %7868 = vmatprep.mubr.msk.f32.mxu1 %vm8242_vm8, %v12697_v62  ;;  %v7396_v14 = vld [vmem:[%s12596_s5 + $0x140] sm:$0xff] }
 0x573   : > { %7975 = vmatprep.mubr.msk.f32.mxu0 %vm8242_vm8, %v12697_v62  ;;  %8042 = vmatpush3.msra.mxu1 %v7399_v32 }
 0x574   : > { %8043 = vmatprep.subr.mxu1 %v12697_v62 }
 0x575   : > { %7869 = vmatmul.mubr.msk.f32.gmra.mxu1 %vm5341_vm9, %v11648_v63 }
 0x576   : > { %7976 = vmatmul.mubr.msk.f32.gmra.mxu0 %vm5341_vm9, %v11729_v8  ;;  %7871 = vmatprep.mubr.msk.f32.mxu1 %vm8242_vm8, %v12697_v62 }
 0x577   : > { %7978 = vmatprep.mubr.msk.f32.mxu0 %vm8242_vm8, %v12697_v62  ;;  %8044 = vmatpush3.msra.mxu1 %v7398_v36 }
 0x578   : > { %8045 = vmatprep.subr.mxu1 %v12697_v62 }
 0x579   : > { %7872 = vmatmul.mubr.msk.f32.gmra.mxu1 %vm5341_vm9, %v11668_v47 }
 0x57a   : > { %7979 = vmatmul.mubr.msk.f32.gmra.mxu0 %vm5341_vm9, %v11745_v21  ;;  %7874 = vmatprep.mubr.msk.f32.mxu1 %vm8242_vm8, %v12697_v62 }
 0x57b   : > { %7981 = vmatprep.mubr.msk.f32.mxu0 %vm8242_vm8, %v12697_v62  ;;  %8046 = vmatpush3.msra.mxu1 %v7397_v12 }
 0x57c   : > { %8047 = vmatprep.subr.mxu1 %v12697_v62 }
 0x57d   : > { %7875 = vmatmul.mubr.msk.f32.gmra.mxu1 %vm5341_vm9, %v11688_v3 }
 0x57e   : > { %7982 = vmatmul.mubr.msk.f32.gmra.mxu0 %vm5341_vm9, %v11760_v20  ;;  %7877 = vmatprep.mubr.msk.f32.mxu1 %vm8242_vm8, %v12697_v62 }
 0x57f   : > { %7984 = vmatprep.mubr.msk.f32.mxu0 %vm8242_vm8, %v12697_v62  ;;  %8048 = vmatpush3.msra.mxu1 %v7396_v14 }
 0x581   : > { %7878 = vmatmul.mubr.msk.f32.gmra.mxu1 %vm5341_vm9, %v11707_v56 }
 0x582   : > { %7985 = vmatmul.mubr.msk.f32.gmra.mxu0 %vm5341_vm9, %v11775_v40  ;;  %7880 = vmatprep.mubr.msk.f32.mxu1 %vm8242_vm8, %v12697_v62 }
 0x583   : > { %7987 = vmatprep.mubr.msk.f32.mxu0 %vm8242_vm8, %v12697_v62 }
 0x585   : > { %7881 = vmatmul.mubr.msk.f32.gmra.mxu1 %vm5341_vm9, %v11726_v6 }
 0x586   : > { %7988 = vmatmul.mubr.msk.f32.gmra.mxu0 %vm5341_vm9, %v11790_v7  ;;  %7883 = vmatprep.mubr.msk.f32.mxu1 %vm8242_vm8, %v12697_v62 }
 0x587   : > { %7990 = vmatprep.mubr.msk.f32.mxu0 %vm8242_vm8, %v12697_v62 }
 0x589   : > { %7884 = vmatmul.mubr.msk.f32.gmra.mxu1 %vm5341_vm9, %v11742_v4 }
 0x58a   : > { %7991 = vmatmul.mubr.msk.f32.gmra.mxu0 %vm5341_vm9, %v11805_v17  ;;  %7886 = vmatprep.mubr.msk.f32.mxu1 %vm8242_vm8, %v12697_v62 }
 0x58b   : > { %7993 = vmatprep.mubr.msk.f32.mxu0 %vm8242_vm8, %v12697_v62 }
 0x58d   : > { %7887 = vmatmul.mubr.msk.f32.gmra.mxu1 %vm5341_vm9, %v11757_v57 }
 0x58e   : > { %7994 = vmatmul.mubr.msk.f32.gmra.mxu0 %vm5341_vm9, %v11820_v1  ;;  %7889 = vmatprep.mubr.msk.f32.mxu1 %vm8242_vm8, %v12697_v62 }
 0x58f   : > { %7996 = vmatprep.mubr.msk.f32.mxu0 %vm8242_vm8, %v12697_v62 }
 0x591   : > { %7890 = vmatmul.mubr.msk.f32.gmra.mxu1 %vm5341_vm9, %v11772_v45 }
 0x592   : > { %7997 = vmatmul.mubr.msk.f32.gmra.mxu0 %vm5341_vm9, %v11835_v33  ;;  %7892 = vmatprep.mubr.msk.f32.mxu1 %vm8242_vm8, %v12697_v62 }
 0x593   : > { %7999 = vmatprep.mubr.msk.f32.mxu0 %vm8242_vm8, %v12697_v62 }
 0x595   : > { %7893 = vmatmul.mubr.msk.f32.gmra.mxu1 %vm5341_vm9, %v11787_v46 }
 0x596   : > { %8000 = vmatmul.mubr.msk.f32.gmra.mxu0 %vm5341_vm9, %v11850_v54  ;;  %7895 = vmatprep.mubr.msk.f32.mxu1 %vm8242_vm8, %v12697_v62 }
 0x597   : > { %8002 = vmatprep.mubr.msk.f32.mxu0 %vm8242_vm8, %v12697_v62 }
 0x599   : > { %7896 = vmatmul.mubr.msk.f32.gmra.mxu1 %vm5341_vm9, %v11802_v34 }
 0x59a   : > { %8003 = vmatmul.mubr.msk.f32.gmra.mxu0 %vm5341_vm9, %v11865_v53  ;;  %7898 = vmatprep.mubr.msk.f32.mxu1 %vm8242_vm8, %v12697_v62 }
 0x59b   : > { %8005 = vmatprep.mubr.msk.f32.mxu0 %vm8242_vm8, %v12697_v62 }
 0x59d   : > { %7899 = vmatmul.mubr.msk.f32.gmra.mxu1 %vm5341_vm9, %v11817_v42 }
 0x59e   : > { %8006 = vmatmul.mubr.msk.f32.gmra.mxu0 %vm5341_vm9, %v11880_v44  ;;  %7901 = vmatprep.mubr.msk.f32.mxu1 %vm8242_vm8, %v12697_v62  ;;  %v6102_v44 = vrot.slane %v11956_v25, 4 }
 0x59f   : > { %8008 = vmatprep.mubr.msk.f32.mxu0 %vm8242_vm8, %v12697_v62 }
 0x5a0   : > { %v6103_v18 = vsel %vm2625_vm3, %v11949_v27, %v6102_v44 }
 0x5a1   : > { %7902 = vmatmul.mubr.msk.f32.gmra.mxu1 %vm5341_vm9, %v11832_v16 }
 0x5a2   : > { %8009 = vmatmul.mubr.msk.f32.gmra.mxu0 %vm5341_vm9, %v11895_v26  ;;  %7904 = vmatprep.mubr.msk.f32.mxu1 %vm8242_vm8, %v12697_v62 }
 0x5a3   : > { %8011 = vmatprep.mubr.msk.f32.mxu0 %vm8242_vm8, %v12697_v62 }
 0x5a5   : > { %7905 = vmatmul.mubr.msk.f32.gmra.mxu1 %vm5341_vm9, %v11847_v58 }
 0x5a6   : > { %v5716_v8 = vpop.f32.mrf.mxu0  ;;  %8012 = vmatmul.mubr.msk.f32.gmra.mxu0 %vm5341_vm9, %v11910_v38  ;;  %7907 = vmatprep.mubr.msk.f32.mxu1 %vm8242_vm8, %v12697_v62 }
 0x5a7   : > { %8014 = vmatprep.mubr.msk.f32.mxu0 %vm8242_vm8, %v12697_v62 }
 0x5a8   : > { %v7748_v21 = vpop.f32.mrf.mxu0 }
 0x5a9   : > { %7908 = vmatmul.mubr.msk.f32.gmra.mxu1 %vm5341_vm9, %v11862_v9 }
 0x5aa   : > { %v5721_v20 = vpop.f32.mrf.mxu0  ;;  %8015 = vmatmul.mubr.msk.f32.gmra.mxu0 %vm5341_vm9, %v11925_v28  ;;  %7910 = vmatprep.mubr.msk.f32.mxu1 %vm8242_vm8, %v12697_v62 }
 0x5ab   : > { %8017 = vmatprep.mubr.msk.f32.mxu0 %vm8242_vm8, %v12697_v62 }
 0x5ac   : > { %v7751_v40 = vpop.f32.mrf.mxu0 }
 0x5ad   : > { %v5462_v7 = vpop.f32.mrf.mxu1  ;;  %7911 = vmatmul.mubr.msk.f32.gmra.mxu1 %vm5341_vm9, %v11877_v15 }
 0x5ae   : > { %v12187_v17 = vadd.f32 %v5716_v8, %v5462_v7  ;;  %v5726_v1 = vpop.f32.mrf.mxu0  ;;  %8018 = vmatmul.mubr.msk.f32.gmra.mxu0 %vm5341_vm9, %v11940_v22  ;;  %7913 = vmatprep.mubr.msk.f32.mxu1 %vm8242_vm8, %v12697_v62 }
 0x5af   : > { %v7647_v33 = vpop.f32.mrf.mxu1  ;;  %8020 = vmatprep.mubr.msk.f32.mxu0 %vm8242_vm8, %v12697_v62 }
 0x5b0   : > { %v7754_v54 = vpop.f32.mrf.mxu0 }
 0x5b1   : > { %v5467_v53 = vpop.f32.mrf.mxu1  ;;  %7914 = vmatmul.mubr.msk.f32.gmra.mxu1 %vm5341_vm9, %v11892_v59 }
 0x5b2   : > { %v12198_v26 = vadd.f32 %v5721_v20, %v5467_v53  ;;  %v5731_v38 = vpop.f32.mrf.mxu0  ;;  %8021 = vmatmul.mubr.msk.f32.gmra.mxu0 %vm5341_vm9, %v11960_v13  ;;  %7916 = vmatprep.mubr.msk.f32.mxu1 %vm8242_vm8, %v12697_v62 }
 0x5b3   : > { %v7650_v51 = vpop.f32.mrf.mxu1  ;;  %8023 = vmatprep.mubr.msk.f32.mxu0 %vm8242_vm8, %v12697_v62 }
 0x5b4   : > { %v7757_v28 = vpop.f32.mrf.mxu0 }
 0x5b5   : > { %v5472_v60 = vpop.f32.mrf.mxu1  ;;  %7917 = vmatmul.mubr.msk.f32.gmra.mxu1 %vm5341_vm9, %v11907_v43 }
 0x5b6   : > { %v12210_v11 = vadd.f32 %v5726_v1, %v5472_v60  ;;  %v5736_v37 = vpop.f32.mrf.mxu0  ;;  %8024 = vmatmul.mubr.msk.f32.gmra.mxu0 %vm5341_vm9, %v6103_v18  ;;  %7919 = vmatprep.mubr.msk.f32.mxu1 %vm8242_vm8, %v12697_v62 }
 0x5b7   : > { %v7653_v49 = vpop.f32.mrf.mxu1  ;;  %8026 = vmatprep.mubr.msk.f32.mxu0 %vm8242_vm8, %v12697_v62 }
 0x5b8   : > { %v7760_v50 = vpop.f32.mrf.mxu0 }
 0x5b9   : > { %v5477_v22 = vpop.f32.mrf.mxu1  ;;  %7920 = vmatmul.mubr.msk.f32.gmra.mxu1 %vm5341_vm9, %v11922_v0 }
 0x5ba   : > { %v12219_v31 = vadd.f32 %v5731_v38, %v5477_v22  ;;  %v5741_v27 = vpop.f32.mrf.mxu0  ;;  %8027 = vmatmul.mubr.msk.f32.gmra.mxu0 %vm5341_vm9, %v6102_v44  ;;  %7922 = vmatprep.mubr.msk.f32.mxu1 %vm8242_vm8, %v12697_v62 }
 0x5bb   : > { %v7656_v61 = vpop.f32.mrf.mxu1 }
 0x5bc   : > { %v7763_v13 = vpop.f32.mrf.mxu0 }
 0x5bd   : > { %v5482_v39 = vpop.f32.mrf.mxu1  ;;  %7923 = vmatmul.mubr.msk.f32.gmra.mxu1 %vm5341_vm9, %v11937_v24 }
 0x5be   : > { %v12226_v52 = vadd.f32 %v5736_v37, %v5482_v39  ;;  %v5746_v29 = vpop.f32.mrf.mxu0  ;;  %7925 = vmatprep.mubr.msk.f32.mxu1 %vm8242_vm8, %v12697_v62 }
 0x5bf   : > { %v7659_v2 = vpop.f32.mrf.mxu1 }
 0x5c0   : > { %v7766_v10 = vpop.f32.mrf.mxu0 }
 0x5c1   : > { %v5487_v5 = vpop.f32.mrf.mxu1  ;;  %7926 = vmatmul.mubr.msk.f32.gmra.mxu1 %vm5341_vm9, %v11956_v25 }
 0x5c2   : > { %v12232_v32 = vadd.f32 %v5741_v27, %v5487_v5  ;;  %v5751_v36 = vpop.f32.mrf.mxu0  ;;  %8049 = vmatprep.mubr.msk.f32.mxu1 %vm8242_vm8, %v12697_v62 }
 0x5c3   : > { %v7662_v12 = vpop.f32.mrf.mxu1 }
 0x5c4   : > { %v7769_v14 = vpop.f32.mrf.mxu0 }
 0x5c5   : > { %v5492_v8 = vpop.f32.mrf.mxu1  ;;  %8050 = vmatmul.mubr.msk.f32.vlgmr.msra.gmra.mxu1 %vm5341_vm9, %v11514_v48 }
 0x5c6   : > { %v12238_v21 = vadd.f32 %v5746_v29, %v5492_v8  ;;  %v5756_v20 = vpop.f32.mrf.mxu0  ;;  %8052 = vmatprep.mubr.msk.f32.mxu1 %vm8242_vm8, %v12697_v62 }
 0x5c7   : > { %v7665_v40 = vpop.f32.mrf.mxu1 }
 0x5c8   : > { %v7772_v7 = vpop.f32.mrf.mxu0 }
 0x5c9   : > { %v5497_v1 = vpop.f32.mrf.mxu1  ;;  %8053 = vmatmul.mubr.msk.f32.gmra.mxu1 %vm5341_vm9, %v11533_v30 }
 0x5ca   : > { %v12244_v33 = vadd.f32 %v5751_v36, %v5497_v1  ;;  %v5761_v54 = vpop.f32.mrf.mxu0  ;;  %8055 = vmatprep.mubr.msk.f32.mxu1 %vm8242_vm8, %v12697_v62 }
 0x5cb   : > { %v7668_v53 = vpop.f32.mrf.mxu1 }
 0x5cc   : > { %v7775_v48 = vpop.f32.mrf.mxu0 }
 0x5cd   : > { %v5502_v44 = vpop.f32.mrf.mxu1  ;;  %8056 = vmatmul.mubr.msk.f32.gmra.mxu1 %vm5341_vm9, %v11556_v41 }
 0x5ce   : > { %v12250_v38 = vadd.f32 %v5756_v20, %v5502_v44  ;;  %v5766_v51 = vpop.f32.mrf.mxu0  ;;  %8058 = vmatprep.mubr.msk.f32.mxu1 %vm8242_vm8, %v12697_v62 }
 0x5cf   : > { %v7671_v28 = vpop.f32.mrf.mxu1 }
 0x5d0   : > { %v7778_v30 = vpop.f32.mrf.mxu0 }
 0x5d1   : > { %v5507_v60 = vpop.f32.mrf.mxu1  ;;  %8059 = vmatmul.mubr.msk.f32.gmra.mxu1 %vm5341_vm9, %v11579_v23 }
 0x5d2   : > { %v12256_v18 = vadd.f32 %v5761_v54, %v5507_v60  ;;  %v5771_v37 = vpop.f32.mrf.mxu0  ;;  %8061 = vmatprep.mubr.msk.f32.mxu1 %vm8242_vm8, %v12697_v62 }
 0x5d3   : > { %v7674_v49 = vpop.f32.mrf.mxu1 }
 0x5d4   : > { %v7781_v41 = vpop.f32.mrf.mxu0 }
 0x5d5   : > { %v5512_v50 = vpop.f32.mrf.mxu1  ;;  %8062 = vmatmul.mubr.msk.f32.gmra.mxu1 %vm5341_vm9, %v11602_v35 }
 0x5d6   : > { %v12262_v22 = vadd.f32 %v5766_v51, %v5512_v50  ;;  %v5776_v27 = vpop.f32.mrf.mxu0  ;;  %8064 = vmatprep.mubr.msk.f32.mxu1 %vm8242_vm8, %v12697_v62 }
 0x5d7   : > { %v7677_v61 = vpop.f32.mrf.mxu1 }
 0x5d8   : > { %v7784_v23 = vpop.f32.mrf.mxu0 }
 0x5d9   : > { %v5517_v13 = vpop.f32.mrf.mxu1  ;;  %8065 = vmatmul.mubr.msk.f32.gmra.mxu1 %vm5341_vm9, %v11625_v55 }
 0x5da   : > { %v12268_v39 = vadd.f32 %v5771_v37, %v5517_v13  ;;  %v5781_v29 = vpop.f32.mrf.mxu0  ;;  %8067 = vmatprep.mubr.msk.f32.mxu1 %vm8242_vm8, %v12697_v62 }
 0x5db   : > { %v7680_v2 = vpop.f32.mrf.mxu1 }
 0x5dc   : > { %v7787_v35 = vpop.f32.mrf.mxu0 }
 0x5dd   : > { %v5522_v10 = vpop.f32.mrf.mxu1  ;;  %8068 = vmatmul.mubr.msk.f32.gmra.mxu1 %vm5341_vm9, %v11648_v63 }
 0x5de   : > { %v12274_v5 = vadd.f32 %v5776_v27, %v5522_v10  ;;  %v5786_v36 = vpop.f32.mrf.mxu0  ;;  %8070 = vmatprep.mubr.msk.f32.mxu1 %vm8242_vm8, %v12697_v62 }
 0x5df   : > { %v7683_v12 = vpop.f32.mrf.mxu1 }
 0x5e0   : > { %v7790_v55 = vpop.f32.mrf.mxu0 }
 0x5e1   : > { %v5527_v14 = vpop.f32.mrf.mxu1  ;;  %8071 = vmatmul.mubr.msk.f32.gmra.mxu1 %vm5341_vm9, %v11668_v47 }
 0x5e2   : > { %v12280_v8 = vadd.f32 %v5781_v29, %v5527_v14  ;;  %v5791_v20 = vpop.f32.mrf.mxu0  ;;  %8073 = vmatprep.mubr.msk.f32.mxu1 %vm8242_vm8, %v12697_v62 }
 0x5e3   : > { %v7686_v40 = vpop.f32.mrf.mxu1 }
 0x5e4   : > { %v7793_v63 = vpop.f32.mrf.mxu0 }
 0x5e5   : > { %v5532_v7 = vpop.f32.mrf.mxu1  ;;  %8074 = vmatmul.mubr.msk.f32.gmra.mxu1 %vm5341_vm9, %v11688_v3 }
 0x5e6   : > { %v12286_v1 = vadd.f32 %v5786_v36, %v5532_v7  ;;  %v5796_v54 = vpop.f32.mrf.mxu0  ;;  %8076 = vmatprep.mubr.msk.f32.mxu1 %vm8242_vm8, %v12697_v62 }
 0x5e7   : > { %v7689_v53 = vpop.f32.mrf.mxu1 }
 0x5e8   : > { %v7796_v47 = vpop.f32.mrf.mxu0 }
 0x5e9   : > { %v5537_v48 = vpop.f32.mrf.mxu1  ;;  %8077 = vmatmul.mubr.msk.f32.gmra.mxu1 %vm5341_vm9, %v11707_v56 }
 0x5ea   : > { %v12292_v44 = vadd.f32 %v5791_v20, %v5537_v48  ;;  %v5801_v51 = vpop.f32.mrf.mxu0  ;;  %8079 = vmatprep.mubr.msk.f32.mxu1 %vm8242_vm8, %v12697_v62 }
 0x5eb   : > { %v7692_v28 = vpop.f32.mrf.mxu1 }
 0x5ec   : > { %v7799_v3 = vpop.f32.mrf.mxu0 }
 0x5ed   : > { %v5542_v30 = vpop.f32.mrf.mxu1  ;;  %8080 = vmatmul.mubr.msk.f32.gmra.mxu1 %vm5341_vm9, %v11726_v6 }
 0x5ee   : > { %v12298_v60 = vadd.f32 %v5796_v54, %v5542_v30  ;;  %v5806_v37 = vpop.f32.mrf.mxu0  ;;  %8082 = vmatprep.mubr.msk.f32.mxu1 %vm8242_vm8, %v12697_v62 }
 0x5ef   : > { %v7695_v49 = vpop.f32.mrf.mxu1 }
 0x5f0   : > { %v7802_v56 = vpop.f32.mrf.mxu0 }
 0x5f1   : > { %v5547_v41 = vpop.f32.mrf.mxu1  ;;  %8083 = vmatmul.mubr.msk.f32.gmra.mxu1 %vm5341_vm9, %v11742_v4 }
 0x5f2   : > { %v12304_v50 = vadd.f32 %v5801_v51, %v5547_v41  ;;  %v5811_v27 = vpop.f32.mrf.mxu0  ;;  %8085 = vmatprep.mubr.msk.f32.mxu1 %vm8242_vm8, %v12697_v62 }
 0x5f3   : > { %v7698_v61 = vpop.f32.mrf.mxu1 }
 0x5f4   : > { %v7805_v6 = vpop.f32.mrf.mxu0 }
 0x5f5   : > { %v5552_v23 = vpop.f32.mrf.mxu1  ;;  %8086 = vmatmul.mubr.msk.f32.gmra.mxu1 %vm5341_vm9, %v11757_v57 }
 0x5f6   : > { %v12310_v13 = vadd.f32 %v5806_v37, %v5552_v23  ;;  %v5816_v29 = vpop.f32.mrf.mxu0  ;;  %8088 = vmatprep.mubr.msk.f32.mxu1 %vm8242_vm8, %v12697_v62 }
 0x5f7   : > { %v7701_v2 = vpop.f32.mrf.mxu1 }
 0x5f8   : > { %v7808_v4 = vpop.f32.mrf.mxu0 }
 0x5f9   : > { %v5557_v35 = vpop.f32.mrf.mxu1  ;;  %8089 = vmatmul.mubr.msk.f32.gmra.mxu1 %vm5341_vm9, %v11772_v45 }
 0x5fa   : > { %v12316_v10 = vadd.f32 %v5811_v27, %v5557_v35  ;;  %v5821_v36 = vpop.f32.mrf.mxu0  ;;  %8091 = vmatprep.mubr.msk.f32.mxu1 %vm8242_vm8, %v12697_v62 }
 0x5fb   : > { %v7704_v12 = vpop.f32.mrf.mxu1 }
 0x5fc   : > { %v7811_v57 = vpop.f32.mrf.mxu0 }
 0x5fd   : > { %v5562_v55 = vpop.f32.mrf.mxu1  ;;  %8092 = vmatmul.mubr.msk.f32.gmra.mxu1 %vm5341_vm9, %v11787_v46 }
 0x5fe   : > { %v12322_v14 = vadd.f32 %v5816_v29, %v5562_v55  ;;  %v5826_v20 = vpop.f32.mrf.mxu0  ;;  %8094 = vmatprep.mubr.msk.f32.mxu1 %vm8242_vm8, %v12697_v62 }
 0x5ff   : > { %v7707_v40 = vpop.f32.mrf.mxu1 }
 0x600   : > { %v7814_v45 = vpop.f32.mrf.mxu0 }
 0x601   : > { %v5567_v63 = vpop.f32.mrf.mxu1  ;;  %8095 = vmatmul.mubr.msk.f32.gmra.mxu1 %vm5341_vm9, %v11802_v34 }
 0x602   : > { %v12328_v7 = vadd.f32 %v5821_v36, %v5567_v63  ;;  %v5831_v54 = vpop.f32.mrf.mxu0  ;;  %8097 = vmatprep.mubr.msk.f32.mxu1 %vm8242_vm8, %v12697_v62 }
 0x603   : > { %v7710_v53 = vpop.f32.mrf.mxu1 }
 0x604   : > { %v7817_v46 = vpop.f32.mrf.mxu0 }
 0x605   : > { %v5572_v47 = vpop.f32.mrf.mxu1  ;;  %8098 = vmatmul.mubr.msk.f32.gmra.mxu1 %vm5341_vm9, %v11817_v42 }
 0x606   : > { %v12334_v48 = vadd.f32 %v5826_v20, %v5572_v47  ;;  %v5836_v51 = vpop.f32.mrf.mxu0  ;;  %8100 = vmatprep.mubr.msk.f32.mxu1 %vm8242_vm8, %v12697_v62 }
 0x607   : > { %v7713_v28 = vpop.f32.mrf.mxu1 }
 0x608   : > { %v7820_v34 = vpop.f32.mrf.mxu0 }
 0x609   : > { %v5577_v3 = vpop.f32.mrf.mxu1  ;;  %8101 = vmatmul.mubr.msk.f32.gmra.mxu1 %vm5341_vm9, %v11832_v16 }
 0x60a   : > { %v12340_v30 = vadd.f32 %v5831_v54, %v5577_v3  ;;  %v5841_v37 = vpop.f32.mrf.mxu0  ;;  %8103 = vmatprep.mubr.msk.f32.mxu1 %vm8242_vm8, %v12697_v62 }
 0x60b   : > { %v7716_v49 = vpop.f32.mrf.mxu1 }
 0x60c   : > { %v7823_v42 = vpop.f32.mrf.mxu0 }
 0x60d   : > { %v5582_v56 = vpop.f32.mrf.mxu1  ;;  %8104 = vmatmul.mubr.msk.f32.gmra.mxu1 %vm5341_vm9, %v11847_v58 }
 0x60e   : > { %v12346_v41 = vadd.f32 %v5836_v51, %v5582_v56  ;;  %v5846_v27 = vpop.f32.mrf.mxu0  ;;  %8106 = vmatprep.mubr.msk.f32.mxu1 %vm8242_vm8, %v12697_v62 }
 0x60f   : > { %v7719_v61 = vpop.f32.mrf.mxu1 }
 0x610   : > { %v7826_v16 = vpop.f32.mrf.mxu0 }
 0x611   : > { %v5587_v6 = vpop.f32.mrf.mxu1  ;;  %8107 = vmatmul.mubr.msk.f32.gmra.mxu1 %vm5341_vm9, %v11862_v9 }
 0x612   : > { %v12352_v23 = vadd.f32 %v5841_v37, %v5587_v6  ;;  %v6174_v29 = vpop.f32.mrf.mxu0  ;;  %8109 = vmatprep.mubr.msk.f32.mxu1 %vm8242_vm8, %v12697_v62 }
 0x613   : > { %v7722_v2 = vpop.f32.mrf.mxu1 }
 0x614   : > { %v7950_v58 = vpop.f32.mrf.mxu0 }
 0x615   : > { %v5592_v4 = vpop.f32.mrf.mxu1  ;;  %8110 = vmatmul.mubr.msk.f32.gmra.mxu1 %vm5341_vm9, %v11877_v15 }
 0x616   : > { %v12358_v35 = vadd.f32 %v5846_v27, %v5592_v4  ;;  %v6179_v36 = vpop.f32.mrf.mxu0  ;;  %8112 = vmatprep.mubr.msk.f32.mxu1 %vm8242_vm8, %v12697_v62 }
 0x617   : > { %v7725_v12 = vpop.f32.mrf.mxu1 }
 0x618   : > { %v7953_v9 = vpop.f32.mrf.mxu0 }
 0x619   : > { %v5930_v57 = vpop.f32.mrf.mxu1  ;;  %8113 = vmatmul.mubr.msk.f32.gmra.mxu1 %vm5341_vm9, %v11892_v59 }
 0x61a   : > { %v6064_v55 = vadd.f32 %v5930_v57, %v12187_v17  ;;  %v6184_v20 = vpop.f32.mrf.mxu0  ;;  %8115 = vmatprep.mubr.msk.f32.mxu1 %vm8242_vm8, %v12697_v62 }
 0x61b   : > { %v7849_v40 = vpop.f32.mrf.mxu1 }
 0x61c   : > { %v7956_v15 = vpop.f32.mrf.mxu0  ;;  %v12367_v45 = vadd.f32 %v6174_v29, %v6064_v55 }
 0x61d   : > { %v5935_v63 = vpop.f32.mrf.mxu1  ;;  %8116 = vmatmul.mubr.msk.f32.gmra.mxu1 %vm5341_vm9, %v11907_v43 }
 0x61e   : > { %v6065_v54 = vadd.f32 %v5935_v63, %v12198_v26  ;;  %v6189_v53 = vpop.f32.mrf.mxu0  ;;  %8118 = vmatprep.mubr.msk.f32.mxu1 %vm8242_vm8, %v12697_v62 }
 0x61f   : > { %v7852_v59 = vpop.f32.mrf.mxu1 }
 0x620   : > { %v7959_v17 = vpop.f32.mrf.mxu0  ;;  %v12374_v46 = vadd.f32 %v6179_v36, %v6065_v54 }
 0x621   : > { %v5940_v47 = vpop.f32.mrf.mxu1  ;;  %8119 = vmatmul.mubr.msk.f32.gmra.mxu1 %vm5341_vm9, %v11922_v0 }
 0x622   : > { %v6066_v51 = vadd.f32 %v5940_v47, %v12210_v11  ;;  %v6194_v28 = vpop.f32.mrf.mxu0  ;;  %8121 = vmatprep.mubr.msk.f32.mxu1 %vm8242_vm8, %v12697_v62 }
 0x623   : > { %v7855_v43 = vpop.f32.mrf.mxu1 }
 0x624   : > { %v7962_v26 = vpop.f32.mrf.mxu0  ;;  %v12381_v34 = vadd.f32 %v6184_v20, %v6066_v51 }
 0x625   : > { %v5945_v3 = vpop.f32.mrf.mxu1  ;;  %8122 = vmatmul.mubr.msk.f32.gmra.mxu1 %vm5341_vm9, %v11937_v24 }
 0x626   : > { %v6067_v37 = vadd.f32 %v5945_v3, %v12219_v31  ;;  %v6199_v49 = vpop.f32.mrf.mxu0  ;;  %8124 = vmatprep.mubr.msk.f32.mxu1 %vm8242_vm8, %v12697_v62 }
 0x627   : > { %v7858_v0 = vpop.f32.mrf.mxu1 }
 0x628   : > { %v7965_v11 = vpop.f32.mrf.mxu0  ;;  %v12388_v42 = vadd.f32 %v6189_v53, %v6067_v37 }
 0x629   : > { %v5950_v56 = vpop.f32.mrf.mxu1  ;;  %8125 = vmatmul.mubr.msk.f32.gmra.mxu1 %vm5341_vm9, %v11956_v25 }
 0x62a   : > { %v6068_v27 = vadd.f32 %v5950_v56, %v12226_v52  ;;  %v6204_v61 = vpop.f32.mrf.mxu0  ;;  %8127 = vmatprep.mubr.msk.f32.mxu1 %vm8242_vm8, %v12697_v62 }
 0x62b   : > { %v7861_v24 = vpop.f32.mrf.mxu1 }
 0x62c   : > { %v7968_v31 = vpop.f32.mrf.mxu0  ;;  %v12395_v16 = vadd.f32 %v6194_v28, %v6068_v27 }
 0x62d   : > { %v5955_v6 = vpop.f32.mrf.mxu1  ;;  %8128 = vmatmul.mubr.msk.f32.gmra.mxu1 %vm5341_vm9, %v11952_v19 }
 0x62e   : > { %v6069_v29 = vadd.f32 %v5955_v6, %v12232_v32  ;;  %v6209_v2 = vpop.f32.mrf.mxu0 }
 0x62f   : > { %v7864_v58 = vpop.f32.mrf.mxu1 }
 0x630   : > { %v7971_v4 = vpop.f32.mrf.mxu0  ;;  %v12400_v25 = vadd.f32 %v6199_v49, %v6069_v29 }
 0x631   : > { %v5960_v52 = vpop.f32.mrf.mxu1 }
 0x632   : > { %v6070_v36 = vadd.f32 %v5960_v52, %v12238_v21  ;;  %v6214_v12 = vpop.f32.mrf.mxu0 }
 0x633   : > { %v7867_v9 = vpop.f32.mrf.mxu1 }
 0x634   : > { %v7974_v57 = vpop.f32.mrf.mxu0  ;;  %v12403_v55 = vadd.f32 %v6204_v61, %v6070_v36 }
 0x635   : > { %v5965_v20 = vpop.f32.mrf.mxu1 }
 0x636   : > { %v6071_v40 = vadd.f32 %v5965_v20, %v12244_v33  ;;  %v6219_v15 = vpop.f32.mrf.mxu0 }
 0x637   : > { %v7870_v19 = vpop.f32.mrf.mxu1 }
 0x638   : > { %v7977_v63 = vpop.f32.mrf.mxu0  ;;  %v12406_v32 = vadd.f32 %v6209_v2, %v6071_v40 }
 0x639   : > { %v5970_v54 = vpop.f32.mrf.mxu1 }
 0x63a   : > { %v6072_v53 = vadd.f32 %v5970_v54, %v12250_v38  ;;  %v6224_v59 = vpop.f32.mrf.mxu0 }
 0x63b   : > { %v7873_v17 = vpop.f32.mrf.mxu1 }
 0x63c   : > { %v7980_v47 = vpop.f32.mrf.mxu0  ;;  %v12409_v21 = vadd.f32 %v6214_v12, %v6072_v53 }
 0x63d   : > { %v5975_v51 = vpop.f32.mrf.mxu1 }
 0x63e   : > { %v6073_v28 = vadd.f32 %v5975_v51, %v12256_v18  ;;  %v6229_v43 = vpop.f32.mrf.mxu0 }
 0x63f   : > { %v7876_v26 = vpop.f32.mrf.mxu1 }
 0x640   : > { %v7983_v3 = vpop.f32.mrf.mxu0  ;;  %v12412_v33 = vadd.f32 %v6219_v15, %v6073_v28 }
 0x641   : > { %v5980_v37 = vpop.f32.mrf.mxu1 }
 0x642   : > { %v6074_v49 = vadd.f32 %v5980_v37, %v12262_v22  ;;  %v6234_v0 = vpop.f32.mrf.mxu0 }
 0x643   : > { %v7879_v11 = vpop.f32.mrf.mxu1 }
 0x644   : > { %v7986_v56 = vpop.f32.mrf.mxu0  ;;  %v12415_v38 = vadd.f32 %v6224_v59, %v6074_v49 }
 0x645   : > { %v5985_v27 = vpop.f32.mrf.mxu1 }
 0x646   : > { %v6075_v61 = vadd.f32 %v5985_v27, %v12268_v39  ;;  %v6239_v24 = vpop.f32.mrf.mxu0 }
 0x647   : > { %v7882_v31 = vpop.f32.mrf.mxu1 }
 0x648   : > { %v7989_v6 = vpop.f32.mrf.mxu0  ;;  %v12418_v18 = vadd.f32 %v6229_v43, %v6075_v61 }
 0x649   : > { %v5990_v29 = vpop.f32.mrf.mxu1 }
 0x64a   : > { %v6076_v2 = vadd.f32 %v5990_v29, %v12274_v5  ;;  %v6244_v58 = vpop.f32.mrf.mxu0 }
 0x64b   : > { %v7885_v4 = vpop.f32.mrf.mxu1 }
 0x64c   : > { %v7992_v52 = vpop.f32.mrf.mxu0  ;;  %v12421_v22 = vadd.f32 %v6234_v0, %v6076_v2 }
 0x64d   : > { %v5995_v36 = vpop.f32.mrf.mxu1 }
 0x64e   : > { %v6077_v12 = vadd.f32 %v5995_v36, %v12280_v8  ;;  %v6249_v9 = vpop.f32.mrf.mxu0 }
 0x64f   : > { %v7888_v57 = vpop.f32.mrf.mxu1 }
 0x650   : > { %v7995_v20 = vpop.f32.mrf.mxu0  ;;  %v12424_v39 = vadd.f32 %v6239_v24, %v6077_v12 }
 0x651   : > { %v6000_v40 = vpop.f32.mrf.mxu1 }
 0x652   : > { %v6078_v15 = vadd.f32 %v6000_v40, %v12286_v1  ;;  %v6254_v19 = vpop.f32.mrf.mxu0 }
 0x653   : > { %v7891_v63 = vpop.f32.mrf.mxu1 }
 0x654   : > { %v7998_v54 = vpop.f32.mrf.mxu0  ;;  %v12427_v5 = vadd.f32 %v6244_v58, %v6078_v15 }
 0x655   : > { %v6005_v53 = vpop.f32.mrf.mxu1 }
 0x656   : > { %v6079_v59 = vadd.f32 %v6005_v53, %v12292_v44  ;;  %v6259_v17 = vpop.f32.mrf.mxu0 }
 0x657   : > { %v7894_v47 = vpop.f32.mrf.mxu1 }
 0x658   : > { %v8001_v51 = vpop.f32.mrf.mxu0  ;;  %v12430_v8 = vadd.f32 %v6249_v9, %v6079_v59 }
 0x659   : > { %v6010_v28 = vpop.f32.mrf.mxu1 }
 0x65a   : > { %v6080_v43 = vadd.f32 %v6010_v28, %v12298_v60  ;;  %v6264_v26 = vpop.f32.mrf.mxu0 }
 0x65b   : > { %v7897_v3 = vpop.f32.mrf.mxu1 }
 0x65c   : > { %v8004_v37 = vpop.f32.mrf.mxu0  ;;  %v12433_v1 = vadd.f32 %v6254_v19, %v6080_v43 }
 0x65d   : > { %v6015_v49 = vpop.f32.mrf.mxu1 }
 0x65e   : > { %v6081_v0 = vadd.f32 %v6015_v49, %v12304_v50  ;;  %v6269_v11 = vpop.f32.mrf.mxu0 }
 0x65f   : > { %v7900_v56 = vpop.f32.mrf.mxu1 }
 0x660   : > { %v8007_v27 = vpop.f32.mrf.mxu0  ;;  %v12436_v44 = vadd.f32 %v6259_v17, %v6081_v0 }
 0x661   : > { %v6020_v61 = vpop.f32.mrf.mxu1 }
 0x662   : > { %v6082_v24 = vadd.f32 %v6020_v61, %v12310_v13  ;;  %v6274_v31 = vpop.f32.mrf.mxu0 }
 0x663   : > { %v7903_v6 = vpop.f32.mrf.mxu1 }
 0x664   : > { %v8010_v29 = vpop.f32.mrf.mxu0  ;;  %v12439_v60 = vadd.f32 %v6264_v26, %v6082_v24 }
 0x665   : > { %v6025_v2 = vpop.f32.mrf.mxu1 }
 0x666   : > { %v6083_v58 = vadd.f32 %v6025_v2, %v12316_v10  ;;  %v6279_v4 = vpop.f32.mrf.mxu0 }
 0x667   : > { %v7906_v52 = vpop.f32.mrf.mxu1 }
 0x668   : > { %v8013_v36 = vpop.f32.mrf.mxu0  ;;  %v12442_v50 = vadd.f32 %v6269_v11, %v6083_v58 }
 0x669   : > { %v6030_v12 = vpop.f32.mrf.mxu1 }
 0x66a   : > { %v6084_v9 = vadd.f32 %v6030_v12, %v12322_v14  ;;  %v6284_v57 = vpop.f32.mrf.mxu0 }
 0x66b   : > { %v7909_v20 = vpop.f32.mrf.mxu1 }
 0x66c   : > { %v8016_v40 = vpop.f32.mrf.mxu0  ;;  %v12445_v13 = vadd.f32 %v6274_v31, %v6084_v9 }
 0x66d   : > { %v6035_v15 = vpop.f32.mrf.mxu1 }
 0x66e   : > { %v6085_v19 = vadd.f32 %v6035_v15, %v12328_v7  ;;  %v6289_v63 = vpop.f32.mrf.mxu0 }
 0x66f   : > { %v7912_v54 = vpop.f32.mrf.mxu1 }
 0x670   : > { %v8019_v53 = vpop.f32.mrf.mxu0  ;;  %v12448_v10 = vadd.f32 %v6279_v4, %v6085_v19 }
 0x671   : > { %v6040_v59 = vpop.f32.mrf.mxu1 }
 0x672   : > { %v6086_v17 = vadd.f32 %v6040_v59, %v12334_v48  ;;  %v6294_v47 = vpop.f32.mrf.mxu0 }
 0x673   : > { %v7915_v51 = vpop.f32.mrf.mxu1 }
 0x674   : > { %v8022_v28 = vpop.f32.mrf.mxu0  ;;  %v12451_v14 = vadd.f32 %v6284_v57, %v6086_v17 }
 0x675   : > { %v6045_v43 = vpop.f32.mrf.mxu1 }
 0x676   : > { %v6087_v26 = vadd.f32 %v6045_v43, %v12340_v30  ;;  %v6299_v3 = vpop.f32.mrf.mxu0 }
 0x677   : > { %v7918_v37 = vpop.f32.mrf.mxu1 }
 0x678   : > { %v8025_v49 = vpop.f32.mrf.mxu0  ;;  %v12454_v7 = vadd.f32 %v6289_v63, %v6087_v26 }
 0x679   : > { %v6050_v0 = vpop.f32.mrf.mxu1 }
 0x67a   : > { %v6088_v11 = vadd.f32 %v6050_v0, %v12346_v41  ;;  %v6304_v56 = vpop.f32.mrf.mxu0  ;;  %v6577_v41 = vld [vmem:[%s12597_s6 + $0x8] sm:$0xff] }
 0x67b   : > { %v7921_v27 = vpop.f32.mrf.mxu1  ;;  %7435 = vmatprep.mubr.msk.f32.mxu0 %vm6585_vm10, %v6577_v41 }
 0x67c   : > { %v8028_v61 = vpop.f32.mrf.mxu0  ;;  %v12457_v48 = vadd.f32 %v6294_v47, %v6088_v11 }
 0x67d   : > { %v6055_v24 = vpop.f32.mrf.mxu1 }
 0x67e   : > { %v6089_v31 = vadd.f32 %v6055_v24, %v12352_v23 }
 0x67f   : > { %v7924_v6 = vpop.f32.mrf.mxu1 }
 0x680   : > { %v12460_v29 = vadd.f32 %v6299_v3, %v6089_v31 }
 0x681   : > { %v6060_v30 = vpop.f32.mrf.mxu1 }
 0x682   : > { %v6090_v2 = vadd.f32 %v6060_v30, %v12358_v35 }
 0x683   : > { %v7927_v58 = vpop.f32.mrf.mxu1 }
 0x684   : > { %v12463_v4 = vadd.f32 %v6304_v56, %v6090_v2 }
 0x685   : > { %v6415_v52 = vpop.f32.mrf.mxu1 }
 0x686   : > { %v12469_v36 = vadd.f32 %v6415_v52, %v12367_v45 }
 0x687   : > { %v8051_v23 = vpop.f32.mrf.mxu1 }
 0x689   : > { %v6420_v12 = vpop.f32.mrf.mxu1 }
 0x68a   : > { %v12472_v9 = vadd.f32 %v6420_v12, %v12374_v46 }
 0x68b   : > { %v8054_v57 = vpop.f32.mrf.mxu1 }
 0x68d   : > { %v6425_v35 = vpop.f32.mrf.mxu1 }
 0x68e   : > { %v12475_v20 = vadd.f32 %v6425_v35, %v12381_v34 }
 0x68f   : > { %v8057_v40 = vpop.f32.mrf.mxu1 }
 0x691   : > { %v6430_v15 = vpop.f32.mrf.mxu1 }
 0x692   : > { %v12478_v19 = vadd.f32 %v6430_v15, %v12388_v42 }
 0x693   : > { %v8060_v63 = vpop.f32.mrf.mxu1 }
 0x695   : > { %v6435_v54 = vpop.f32.mrf.mxu1 }
 0x696   : > { %v12481_v45 = vadd.f32 %v6435_v54, %v12395_v16 }
 0x697   : > { %v8063_v53 = vpop.f32.mrf.mxu1 }
 0x699   : > { %v6440_v59 = vpop.f32.mrf.mxu1 }
 0x69a   : > { %v6554_v54 = vadd.f32 %v6440_v59, %v12400_v25 }
 0x69b   : > { %v8066_v17 = vpop.f32.mrf.mxu1 }
 0x69d   : > { %v6445_v46 = vpop.f32.mrf.mxu1 }
 0x69e   : > { %v6555_v63 = vadd.f32 %v6445_v46, %v12403_v55 }
 0x69f   : > { %v8069_v47 = vpop.f32.mrf.mxu1 }
 0x6a1   : > { %v6450_v51 = vpop.f32.mrf.mxu1 }
 0x6a2   : > { %v6556_v15 = vadd.f32 %v6450_v51, %v12406_v32 }
 0x6a3   : > { %v8072_v28 = vpop.f32.mrf.mxu1 }
 0x6a5   : > { %v6455_v43 = vpop.f32.mrf.mxu1 }
 0x6a6   : > { %v6557_v40 = vadd.f32 %v6455_v43, %v12409_v21 }
 0x6a7   : > { %v8075_v34 = vpop.f32.mrf.mxu1 }
 0x6a9   : > { %v6460_v26 = vpop.f32.mrf.mxu1 }
 0x6ab   : > { %v8078_v3 = vpop.f32.mrf.mxu1 }
 0x6ad   : > { %v6465_v37 = vpop.f32.mrf.mxu1 }
 0x6ae   : > { %v6559_v57 = vadd.f32 %v6465_v37, %v12415_v38 }
 0x6af   : > { %v8081_v49 = vpop.f32.mrf.mxu1 }
 0x6b1   : > { %v6470_v42 = vpop.f32.mrf.mxu1 }
 0x6b3   : > { %v8084_v0 = vpop.f32.mrf.mxu1 }
 0x6b5   : > { %v6475_v11 = vpop.f32.mrf.mxu1 }
 0x6b6   : > { %v6561_v23 = vadd.f32 %v6475_v11, %v12421_v22  ;;  %v6558_v22 = vadd.f32 %v6460_v26, %v12412_v33 }
 0x6b7   : > { %v8087_v56 = vpop.f32.mrf.mxu1 }
 0x6b9   : > { %v6480_v27 = vpop.f32.mrf.mxu1 }
 0x6ba   : > { %v6562_v41 = vadd.f32 %v6480_v27, %v12424_v39 }
 0x6bb   : > { %v8090_v16 = vpop.f32.mrf.mxu1 }
 0x6bd   : > { %v6485_v61 = vpop.f32.mrf.mxu1 }
 0x6be   : > { %v6563_v2 = vadd.f32 %v6485_v61, %v12427_v5  ;;  %v6560_v5 = vadd.f32 %v6470_v42, %v12418_v18 }
 0x6bf   : > { %v8093_v24 = vpop.f32.mrf.mxu1 }
 0x6c1   : > { %v6490_v31 = vpop.f32.mrf.mxu1 }
 0x6c2   : > { %v6564_v6 = vadd.f32 %v6490_v31, %v12430_v8 }
 0x6c3   : > { %v8096_v30 = vpop.f32.mrf.mxu1 }
 0x6c4   : > { %6594 = vmatpush1.msra.mxu0 %v6564_v6 }
 0x6c5   : > { %v12485_v58 = vpop.f32.mrf.mxu1  ;;  %6595 = vmatprep.subr.mxu0 %v12697_v62 }
 0x6c6   : > { %6596 = vmatpush1.msra.mxu0 %v6563_v2 }
 0x6c7   : > { %v8099_v52 = vpop.f32.mrf.mxu1  ;;  %6597 = vmatprep.subr.mxu0 %v12697_v62 }
 0x6c8   : > { %6598 = vmatpush1.msra.mxu0 %v6562_v41 }
 0x6c9   : > { %v12491_v12 = vpop.f32.mrf.mxu1  ;;  %6599 = vmatprep.subr.mxu0 %v12697_v62 }
 0x6ca   : > { %6600 = vmatpush1.msra.mxu0 %v6561_v23 }
 0x6cb   : > { %v8102_v8 = vpop.f32.mrf.mxu1  ;;  %6601 = vmatprep.subr.mxu0 %v12697_v62 }
 0x6cc   : > { %6602 = vmatpush1.msra.mxu0 %v6560_v5 }
 0x6cd   : > { %v12497_v39 = vpop.f32.mrf.mxu1  ;;  %6603 = vmatprep.subr.mxu0 %v12697_v62 }
 0x6ce   : > { %6604 = vmatpush1.msra.mxu0 %v6559_v57 }
 0x6cf   : > { %v8105_v35 = vpop.f32.mrf.mxu1  ;;  %6605 = vmatprep.subr.mxu0 %v12697_v62 }
 0x6d0   : > { %6606 = vmatpush1.msra.mxu0 %v6558_v22 }
 0x6d1   : > { %v6510_v18 = vpop.f32.mrf.mxu1  ;;  %6607 = vmatprep.subr.mxu0 %v12697_v62 }
 0x6d2   : > { %6608 = vmatpush1.msra.mxu0 %v6557_v40 }
 0x6d3   : > { %v8108_v38 = vpop.f32.mrf.mxu1  ;;  %6609 = vmatprep.subr.mxu0 %v12697_v62 }
 0x6d4   : > { %6610 = vmatpush1.msra.mxu0 %v6556_v15 }
 0x6d5   : > { %v6515_v33 = vpop.f32.mrf.mxu1  ;;  %6611 = vmatprep.subr.mxu0 %v12697_v62 }
 0x6d6   : > { %6612 = vmatpush1.msra.mxu0 %v6555_v63 }
 0x6d7   : > { %v8111_v21 = vpop.f32.mrf.mxu1  ;;  %6613 = vmatprep.subr.mxu0 %v12697_v62 }
 0x6d8   : > { %6614 = vmatpush1.msra.mxu0 %v6554_v54 }
 0x6d9   : > { %v6520_v53 = vpop.f32.mrf.mxu1  ;;  %6615 = vmatprep.subr.mxu0 %v12697_v62 }
 0x6da   : > { %6616 = vmatpush1.msra.mxu0 %v12481_v45 }
 0x6db   : > { %v8114_v32 = vpop.f32.mrf.mxu1  ;;  %6617 = vmatprep.subr.mxu0 %v12697_v62 }
 0x6dc   : > { %6618 = vmatpush1.msra.mxu0 %v12478_v19 }
 0x6dd   : > { %v6525_v55 = vpop.f32.mrf.mxu1  ;;  %6619 = vmatprep.subr.mxu0 %v12697_v62 }
 0x6de   : > { %6620 = vmatpush1.msra.mxu0 %v12475_v20  ;;  %v6571_v34 = vadd.f32 %v6525_v55, %v12451_v14  ;;  %v6567_v14 = vadd.f32 %v12497_v39, %v12439_v60 }
 0x6df   : > { %v8117_v25 = vpop.f32.mrf.mxu1  ;;  %6621 = vmatprep.subr.mxu0 %v12697_v62 }
 0x6e0   : > { %6622 = vmatpush1.msra.mxu0 %v12472_v9 }
 0x6e1   : > { %v6530_v59 = vpop.f32.mrf.mxu1  ;;  %6623 = vmatprep.subr.mxu0 %v12697_v62 }
 0x6e2   : > { %6624 = vmatpush1.msra.mxu0 %v12469_v36  ;;  %v6572_v36 = vadd.f32 %v6530_v59, %v12454_v7  ;;  %v6568_v7 = vadd.f32 %v6510_v18, %v12442_v50  ;;  %v6576_v50 = vld [vmem:[%s12597_s6] sm:$0xff] }
 0x6e3   : > { %v8120_v45 = vpop.f32.mrf.mxu1  ;;  %6635 = vmatprep.subr.mxu0 %v12697_v62 }
 0x6e5   : > { %v6535_v17 = vpop.f32.mrf.mxu1 }
 0x6e6   : > { %v6573_v9 = vadd.f32 %v6535_v17, %v12457_v48  ;;  %v6569_v48 = vadd.f32 %v6515_v33, %v12445_v13  ;;  %v6565_v13 = vadd.f32 %v12485_v58, %v12433_v1 }
 0x6e7   : > { %v8123_v19 = vpop.f32.mrf.mxu1 }
 0x6e9   : > { %v6540_v46 = vpop.f32.mrf.mxu1 }
 0x6ea   : > { %v6574_v43 = vadd.f32 %v6540_v46, %v12460_v29  ;;  %v6570_v29 = vadd.f32 %v6520_v53, %v12448_v10  ;;  %v6566_v10 = vadd.f32 %v12491_v12, %v12436_v44  ;;  %v7433_v44 = vld [vmem:[%s12600_s9] ss:$0 sm:$0xff] }
 0x6eb   : > { %v8126_v47 = vpop.f32.mrf.mxu1 }
 0x6ed   : > { %v6545_v51 = vpop.f32.mrf.mxu1 }
 0x6ee   : > { %v6575_v20 = vadd.f32 %v6545_v51, %v12463_v4 }
 0x6ef   : > { %v8129_v28 = vpop.f32.mrf.mxu1 }
 0x6f0   : > { %7434 = vmatpush2.msk.msra.mxu0 %vm6589_vm11, %v6575_v20 }
 0x6f1   : > { %6637 = vmatprep.subr.mxu0 %v12697_v62 }
 0x6f2   : > { %6638 = vmatpush2.msra.mxu0 %v6574_v43 }
 0x6f3   : > { %6639 = vmatprep.subr.mxu0 %v12697_v62 }
 0x6f4   : > { %6640 = vmatpush2.msra.mxu0 %v6573_v9 }
 0x6f5   : > { %6641 = vmatprep.subr.mxu0 %v12697_v62 }
 0x6f6   : > { %6642 = vmatpush2.msra.mxu0 %v6572_v36 }
 0x6f7   : > { %6643 = vmatprep.subr.mxu0 %v12697_v62 }
 0x6f8   : > { %6644 = vmatpush2.msra.mxu0 %v6571_v34 }
 0x6f9   : > { %6645 = vmatprep.subr.mxu0 %v12697_v62 }
 0x6fa   : > { %6646 = vmatpush2.msra.mxu0 %v6570_v29 }
 0x6fb   : > { %6647 = vmatprep.subr.mxu0 %v12697_v62 }
 0x6fc   : > { %6648 = vmatpush2.msra.mxu0 %v6569_v48 }
 0x6fd   : > { %6649 = vmatprep.subr.mxu0 %v12697_v62 }
 0x6fe   : > { %6650 = vmatpush2.msra.mxu0 %v6568_v7 }
 0x6ff   : > { %6651 = vmatprep.subr.mxu0 %v12697_v62 }
 0x700   : > { %6652 = vmatpush2.msra.mxu0 %v6567_v14 }
 0x701   : > { %6653 = vmatprep.subr.mxu0 %v12697_v62 }
 0x702   : > { %6654 = vmatpush2.msra.mxu0 %v6566_v10 }
 0x703   : > { %6655 = vmatprep.subr.mxu0 %v12697_v62 }
 0x704   : > { %6656 = vmatpush2.msra.mxu0 %v6565_v13 }
 0x705   : > { %6658 = vmatmul.mubr.f32.vlgmr.msra.gmra.mxu0 %v6576_v50 }
 0x7c5   : > { %v6659_v1 = vpop.f32.mrf.mxu0 }
 0x7c6   : > { %v6660_v60 = vadd.f32 %v7433_v44, %v6659_v1 }
 0x7c7   : > { %v6661_v62 = vpop.f32.mrf.mxu0 }
 0x7c8   : > { %6664 = vst.msk [vmem:[%s353_s27] sm:$0xff] %vm6663_vm12, %v6660_v60 }
 0x7c9   : > { %8192 = shalt.err (!%p8189_p3)
}
 0x7ca   : > { %s8193_s25 = scalar_lea.hbm %s12556_s18, 128  ;;  %s8197_s27 = scalar_lea.hbm %s12601_s10, 256 }
 0x7cb   : > { %p8194_p4 = scmp.ne.s32.totalorder %s12556_s18, %s8193_s25  ;;  %p8198_p9 = scmp.lt.s32.totalorder %s12556_s18, %s12601_s10 }
 0x7cc   : > { %p8199_p10 = scmp.lt.s32.totalorder %s8197_s27, %s8193_s25 }
 0x7cd   : > { %p8195_p7 = pnand %p8194_p4, %p8337_p5 }
 0x7ce   : > { %p8200_p11 = por %p8199_p10, %p8198_p9 }
 0x7cf   : > { %p8196_p8 = pneg %p8195_p7 }
 0x7d1   : > { %p8201_p12 = pnand %p8200_p11, %p8196_p8 }
 0x7d3   : > { %8204 = shalt.err (!%p8201_p12)
}
 0x7d4   : > { %8138 = dma.vmem_to_hbm [thread:$0]  (%p8337_p5), %s6680_s28, 128, %s12556_s18, %s6666_s11  }
 0x7d5 PF: > { %p8144_p13 = scmp.ge.s32.totalorder %s8239_s16, 2  ;;  %s6691_s0 = sand.u32 1, %s8227_s13  }
 0x7d6   : > { %s6692_s17 = scalar_lea.sflag [#allocation3], %s6691_s0 }
 0x7d7   : > { %p8141_p0 = pnand %p8144_p13, %p8341_p6 }
 0x7d9   : > { %p8142_p1 = pneg %p8141_p0 }
 0x7db   : > { %8222 = dma.done.wait (%p8142_p1), %s6692_s17, 128  }
 0x7dc   : > { %8224 = vsyncadd (%p8142_p1), %s6692_s17, 4294967168  ;;  %p20_p2 = scmp.ge.s32.totalorder %s8324_s19, 4   ;;  %s13001_s13 = smov %s8231_s14 }
 0x7dd   : > { %s13002_s14 = smov %s8235_s15  ;;  %s13003_s15 = smov %s8335_s22 }
 0x7de   : > { %s13004_s16 = smov %s8324_s19  ;;  %22 = sbr.rel (!%p20_p2) target bundleno = 5 (0x5), region = 107 }
 0x7e3   :  { %6697 = vsyncpa [#allocation3], 1 }
 0x7e4   :  { %6699 = vsyncpa [#allocation3 + $0x1], 1 }

</bundles_post_ra>
